<compile_context>
chip_gen: v6e
topology: v6e:2x2x1
jax: 0.10.0
libtpu: 0.0.40
codegen_flags: <defaults>
</compile_context>

<pallas_src>
import jax
import jax.numpy as jnp
from jax.experimental import pallas as pl
from jax.experimental.pallas import tpu as pltpu

IN_FEATURES = 1800
HIDDEN = 1024
MAX_BATCH_TILE = 512  # rows of x processed per grid step for large batches


def _mlp_kernel(x_ref, w0_ref, b0_ref, w1_ref, b1_ref, o_ref):
    # x arrives f32; cast to bf16 on the VPU right before the MXU feed.
    x = x_ref[...].astype(jnp.bfloat16)
    # Layer 0: (TB, 1800)bf16 @ (1800, 1024)bf16 on the MXU, f32 accumulation.
    h = jnp.dot(x, w0_ref[...], preferred_element_type=jnp.float32)
    # Bias + ReLU stay f32 on the VPU.
    h = jnp.maximum(h + b0_ref[...], 0.0)
    # Layer 1 (out_features == 1): VPU multiply + lane reduction instead of an
    # MXU matmul with a 1-wide RHS.
    out = jnp.sum(h * w1_ref[...], axis=-1, keepdims=True) + b1_ref[...]
    o_ref[...] = out.astype(o_ref.dtype)


def _build_mlp_call(padded_b, tb, single_buffer_weights):
    num_tiles = padded_b // tb

    def _resident_spec(shape):
        # Grid-invariant block: same block index every step -> fetched once and
        # kept VMEM-resident. Single-buffer it when supported to save VMEM.
        kwargs = {}
        if single_buffer_weights:
            kwargs["pipeline_mode"] = pl.Buffered(1)
        return pl.BlockSpec(shape, lambda i: (0, 0), **kwargs)

    return pl.pallas_call(
        _mlp_kernel,
        out_shape=jax.ShapeDtypeStruct((padded_b, 1), jnp.float32),
        grid_spec=pltpu.PrefetchScalarGridSpec(
            num_scalar_prefetch=0,
            grid=(num_tiles,),
            in_specs=[
                pl.BlockSpec((tb, IN_FEATURES), lambda i: (i, 0)),  # x streams (f32)
                _resident_spec((IN_FEATURES, HIDDEN)),              # W0 (bf16)
                _resident_spec((1, HIDDEN)),                        # b0 (f32)
                _resident_spec((1, HIDDEN)),                        # w1 row (f32)
                _resident_spec((1, 1)),                             # b1 (f32)
            ],
            out_specs=pl.BlockSpec((tb, 1), lambda i: (i, 0)),
        ),
        compiler_params=pltpu.CompilerParams(
            # Only shard the batch axis across cores once there is enough work
            # to amortize the duplicated weight DMA (weight-DMA-bound at small B).
            dimension_semantics=("parallel",) if num_tiles >= 8 else ("arbitrary",),
            vmem_limit_bytes=32 << 20,
        ),
    )


def basic_mlp_forward(x, w0, b0, w1, b1):
    """x: (B, 1800) f32; w0: (1800, 1024); b0: (1, 1024); w1: (1024, 1); b1: (1, 1).

    Returns torch-style `x.squeeze()`: shape (B,) for B > 1, () for B == 1.
    """
    B = x.shape[0]
    tb = B if B <= MAX_BATCH_TILE else MAX_BATCH_TILE
    num_tiles = pl.cdiv(B, tb)
    padded_b = num_tiles * tb

    xf = x.astype(jnp.float32)
    if padded_b != B:
        xf = jnp.pad(xf, ((0, padded_b - B), (0, 0)))

    # One-off (weight-load-time) cast of W0 to bf16; amortized across calls.
    w0b = w0 if w0.dtype == jnp.bfloat16 else w0.astype(jnp.bfloat16)
    b0r = b0.reshape(1, HIDDEN).astype(jnp.float32)
    w1r = w1.reshape(1, HIDDEN).astype(jnp.float32)  # row vector for the VPU reduce
    b1r = b1.reshape(1, 1).astype(jnp.float32)

    try:
        out = _build_mlp_call(padded_b, tb, True)(xf, w0b, b0r, w1r, b1r)
    except Exception:
        # pipeline_mode=pl.Buffered(1) not supported by this JAX build; the
        # default double-buffered weights still fit comfortably in 32 MiB.
        out = _build_mlp_call(padded_b, tb, False)(xf, w0b, b0r, w1r, b1r)

    out = out[:B]
    return jnp.squeeze(out)  # matches torch's .squeeze() for both B > 1 and B == 1


def init_params(key):
    """Deterministic synthetic parameters matching the PyTorch module's shapes
    (stored as (in, out), i.e. transposed vs. torch's (out, in) Linear weight)."""
    k0, k1, k2, k3 = jax.random.split(key, 4)
    w0 = jax.random.normal(k0, (IN_FEATURES, HIDDEN), jnp.float32) * 0.02
    b0 = jax.random.normal(k1, (1, HIDDEN), jnp.float32) * 0.01
    w1 = jax.random.normal(k2, (HIDDEN, 1), jnp.float32) * 0.02
    b1 = jax.random.normal(k3, (1, 1), jnp.float32) * 0.01
    return w0, b0, w1, b1


def _reference(x, w0, b0, w1, b1):
    # Pure-JAX reference with the same bf16 rounding of the matmul operands as
    # the kernel; the rest of the math is f32.
    xb = x.astype(jnp.bfloat16).astype(jnp.float32)
    w0b = w0.astype(jnp.bfloat16).astype(jnp.float32)
    h = jnp.maximum(
        jnp.dot(xb, w0b, precision=jax.lax.Precision.HIGHEST) + b0.reshape(1, -1),
        0.0,
    )
    y = jnp.sum(h * w1.reshape(1, -1), axis=-1) + b1.reshape(-1)
    return jnp.squeeze(y)


if __name__ == "__main__":
    key = jax.random.PRNGKey(0)
    kx, kp = jax.random.split(key)
    w0, b0, w1, b1 = init_params(kp)

    # Small batch: single batch tile, weight-DMA-bound path.
    B0 = 8
    x0 = jax.random.normal(kx, (B0, IN_FEATURES), jnp.float32)
    y0 = jax.block_until_ready(basic_mlp_forward(x0, w0, b0, w1, b1))
    assert y0.shape == (B0,)
    assert jnp.allclose(y0, _reference(x0, w0, b0, w1, b1), atol=2e-3, rtol=2e-3)

    # Larger batch: exercises the batch-tiled grid (multiple tiles + padding of
    # the remainder tile) with VMEM-resident weights.
    B1 = 1280
    x1 = jax.random.normal(jax.random.PRNGKey(1), (B1, IN_FEATURES), jnp.float32)
    y1 = jax.block_until_ready(basic_mlp_forward(x1, w0, b0, w1, b1))
    assert y1.shape == (B1,)
    assert jnp.allclose(y1, _reference(x1, w0, b0, w1, b1), atol=2e-3, rtol=2e-3)

    print("KERNEL_OK")
</pallas_src>

<mosaic_0001>
module attributes {stable_mosaic.version = 11 : i64} {
  func.func @_mlp_kernel(%arg0: i32, %arg1: memref<8x1800xf32, #tpu.memory_space<vmem>>, %arg2: memref<1800x1024xbf16, #tpu.memory_space<vmem>>, %arg3: memref<1x1024xf32, #tpu.memory_space<vmem>>, %arg4: memref<1x1024xf32, #tpu.memory_space<vmem>>, %arg5: memref<1x1xf32, #tpu.memory_space<vmem>>, %arg6: memref<8x1xf32, #tpu.memory_space<vmem>>) attributes {dimension_semantics = [#tpu.dimension_semantics<arbitrary>], iteration_bounds = array<i64: 1>, scalar_prefetch = 0 : i64, scratch_operands = 0 : i64, tpu.core_type = #tpu.core_type<tc>, window_params = [{transform_indices = @transform_0, window_bounds = array<i64: 8, 1800>}, {pipeline_mode = #tpu.pipeline_mode<synchronous>, transform_indices = @transform_1, window_bounds = array<i64: 1800, 1024>}, {pipeline_mode = #tpu.pipeline_mode<synchronous>, transform_indices = @transform_2, window_bounds = array<i64: 1, 1024>}, {pipeline_mode = #tpu.pipeline_mode<synchronous>, transform_indices = @transform_3, window_bounds = array<i64: 1, 1024>}, {pipeline_mode = #tpu.pipeline_mode<synchronous>, transform_indices = @transform_4, window_bounds = array<i64: 1, 1>}, {transform_indices = @transform_5, window_bounds = array<i64: 8, 1>}]} {
    %c0 = arith.constant 0 : index
    %c0_0 = arith.constant 0 : index
    %0 = vector.load %arg1[%c0, %c0_0] : memref<8x1800xf32, #tpu.memory_space<vmem>>, vector<8x1800xf32>
    %1 = arith.truncf %0 : vector<8x1800xf32> to vector<8x1800xbf16>
    %c0_1 = arith.constant 0 : index
    %c0_2 = arith.constant 0 : index
    %2 = vector.load %arg2[%c0_1, %c0_2] : memref<1800x1024xbf16, #tpu.memory_space<vmem>>, vector<1800x1024xbf16>
    %cst = arith.constant dense<0.000000e+00> : vector<8x1024xf32>
    %3 = tpu.matmul %1, %2, %cst {dimension_numbers = #tpu.dot_dimension_numbers<[1], [0], [0], [1], [0, 0, 1, 1], [], []>} : vector<8x1800xbf16>, vector<1800x1024xbf16>, vector<8x1024xf32> -> vector<8x1024xf32>
    %c0_3 = arith.constant 0 : index
    %c0_4 = arith.constant 0 : index
    %4 = vector.load %arg3[%c0_3, %c0_4] : memref<1x1024xf32, #tpu.memory_space<vmem>>, vector<1x1024xf32>
    %5 = vector.broadcast %4 : vector<1x1024xf32> to vector<8x1024xf32>
    %6 = arith.addf %3, %5 : vector<8x1024xf32>
    %cst_5 = arith.constant 0.000000e+00 : f32
    %7 = vector.broadcast %cst_5 : f32 to vector<8x1024xf32>
    %8 = arith.maximumf %6, %7 : vector<8x1024xf32>
    %c0_6 = arith.constant 0 : index
    %c0_7 = arith.constant 0 : index
    %9 = vector.load %arg4[%c0_6, %c0_7] : memref<1x1024xf32, #tpu.memory_space<vmem>>, vector<1x1024xf32>
    %10 = vector.broadcast %9 : vector<1x1024xf32> to vector<8x1024xf32>
    %11 = arith.mulf %8, %10 : vector<8x1024xf32>
    %cst_8 = arith.constant dense<0.000000e+00> : vector<8xf32>
    %12 = vector.multi_reduction <add>, %11, %cst_8 [1] : vector<8x1024xf32> to vector<8xf32>
    %13 = vector.shape_cast %12 : vector<8xf32> to vector<8x1xf32>
    %c0_9 = arith.constant 0 : index
    %c0_10 = arith.constant 0 : index
    %14 = vector.load %arg5[%c0_9, %c0_10] : memref<1x1xf32, #tpu.memory_space<vmem>>, vector<1x1xf32>
    %15 = vector.broadcast %14 : vector<1x1xf32> to vector<8x1xf32>
    %16 = arith.addf %13, %15 : vector<8x1xf32>
    %c0_11 = arith.constant 0 : index
    %c0_12 = arith.constant 0 : index
    %17 = vector.load %arg6[%c0_11, %c0_12] : memref<8x1xf32, #tpu.memory_space<vmem>>, vector<8x1xf32>
    tpu.vector_store %arg6[%c0_11, %c0_12], %16 {strides = array<i32>} : memref<8x1xf32, #tpu.memory_space<vmem>>, vector<8x1xf32>,
    return
  }
  func.func @transform_0(%arg0: i32) -> (i32, i32) {
    %c0_i32 = arith.constant 0 : i32
    %c0_i32_0 = arith.constant 0 : i32
    return %arg0, %c0_i32 : i32, i32
  }
  func.func @transform_1(%arg0: i32) -> (i32, i32) {
    %c0_i32 = arith.constant 0 : i32
    %c0_i32_0 = arith.constant 0 : i32
    %c0_i32_1 = arith.constant 0 : i32
    return %c0_i32, %c0_i32_0 : i32, i32
  }
  func.func @transform_2(%arg0: i32) -> (i32, i32) {
    %c0_i32 = arith.constant 0 : i32
    %c0_i32_0 = arith.constant 0 : i32
    %c0_i32_1 = arith.constant 0 : i32
    return %c0_i32, %c0_i32_0 : i32, i32
  }
  func.func @transform_3(%arg0: i32) -> (i32, i32) {
    %c0_i32 = arith.constant 0 : i32
    %c0_i32_0 = arith.constant 0 : i32
    %c0_i32_1 = arith.constant 0 : i32
    return %c0_i32, %c0_i32_0 : i32, i32
  }
  func.func @transform_4(%arg0: i32) -> (i32, i32) {
    %c0_i32 = arith.constant 0 : i32
    %c0_i32_0 = arith.constant 0 : i32
    %c0_i32_1 = arith.constant 0 : i32
    return %c0_i32, %c0_i32_0 : i32, i32
  }
  func.func @transform_5(%arg0: i32) -> (i32, i32) {
    %c0_i32 = arith.constant 0 : i32
    %c0_i32_0 = arith.constant 0 : i32
    return %arg0, %c0_i32 : i32, i32
  }
}

module attributes {stable_mosaic.version = 11 : i64} {
  func.func @_mlp_kernel(%arg0: i32, %arg1: memref<8x1800xf32, #tpu.memory_space<vmem>>, %arg2: memref<1800x1024xbf16, #tpu.memory_space<vmem>>, %arg3: memref<1x1024xf32, #tpu.memory_space<vmem>>, %arg4: memref<1x1024xf32, #tpu.memory_space<vmem>>, %arg5: memref<1x1xf32, #tpu.memory_space<vmem>>, %arg6: memref<8x1xf32, #tpu.memory_space<vmem>>) attributes {dimension_semantics = [#tpu.dimension_semantics<arbitrary>], iteration_bounds = array<i64: 1>, scalar_prefetch = 0 : i64, scratch_operands = 0 : i64, tpu.core_type = #tpu.core_type<tc>, window_params = [{transform_indices = @transform_0, window_bounds = array<i64: 8, 1800>}, {pipeline_mode = #tpu.pipeline_mode<synchronous>, transform_indices = @transform_1, window_bounds = array<i64: 1800, 1024>}, {pipeline_mode = #tpu.pipeline_mode<synchronous>, transform_indices = @transform_2, window_bounds = array<i64: 1, 1024>}, {pipeline_mode = #tpu.pipeline_mode<synchronous>, transform_indices = @transform_3, window_bounds = array<i64: 1, 1024>}, {pipeline_mode = #tpu.pipeline_mode<synchronous>, transform_indices = @transform_4, window_bounds = array<i64: 1, 1>}, {transform_indices = @transform_5, window_bounds = array<i64: 8, 1>}]} {
    %c0 = arith.constant 0 : index
    %c0_0 = arith.constant 0 : index
    %0 = vector.load %arg1[%c0, %c0_0] : memref<8x1800xf32, #tpu.memory_space<vmem>>, vector<8x1800xf32>
    %1 = arith.truncf %0 : vector<8x1800xf32> to vector<8x1800xbf16>
    %c0_1 = arith.constant 0 : index
    %c0_2 = arith.constant 0 : index
    %2 = vector.load %arg2[%c0_1, %c0_2] : memref<1800x1024xbf16, #tpu.memory_space<vmem>>, vector<1800x1024xbf16>
    %cst = arith.constant dense<0.000000e+00> : vector<8x1024xf32>
    %3 = tpu.matmul %1, %2, %cst {dimension_numbers = #tpu.dot_dimension_numbers<[1], [0], [0], [1], [0, 0, 1, 1], [], []>} : vector<8x1800xbf16>, vector<1800x1024xbf16>, vector<8x1024xf32> -> vector<8x1024xf32>
    %c0_3 = arith.constant 0 : index
    %c0_4 = arith.constant 0 : index
    %4 = vector.load %arg3[%c0_3, %c0_4] : memref<1x1024xf32, #tpu.memory_space<vmem>>, vector<1x1024xf32>
    %5 = vector.broadcast %4 : vector<1x1024xf32> to vector<8x1024xf32>
    %6 = arith.addf %3, %5 : vector<8x1024xf32>
    %cst_5 = arith.constant 0.000000e+00 : f32
    %7 = vector.broadcast %cst_5 : f32 to vector<8x1024xf32>
    %8 = arith.maximumf %6, %7 : vector<8x1024xf32>
    %c0_6 = arith.constant 0 : index
    %c0_7 = arith.constant 0 : index
    %9 = vector.load %arg4[%c0_6, %c0_7] : memref<1x1024xf32, #tpu.memory_space<vmem>>, vector<1x1024xf32>
    %10 = vector.broadcast %9 : vector<1x1024xf32> to vector<8x1024xf32>
    %11 = arith.mulf %8, %10 : vector<8x1024xf32>
    %cst_8 = arith.constant dense<0.000000e+00> : vector<8xf32>
    %12 = vector.multi_reduction <add>, %11, %cst_8 [1] : vector<8x1024xf32> to vector<8xf32>
    %13 = vector.shape_cast %12 : vector<8xf32> to vector<8x1xf32>
    %c0_9 = arith.constant 0 : index
    %c0_10 = arith.constant 0 : index
    %14 = vector.load %arg5[%c0_9, %c0_10] : memref<1x1xf32, #tpu.memory_space<vmem>>, vector<1x1xf32>
    %15 = vector.broadcast %14 : vector<1x1xf32> to vector<8x1xf32>
    %16 = arith.addf %13, %15 : vector<8x1xf32>
    %c0_11 = arith.constant 0 : index
    %c0_12 = arith.constant 0 : index
    %17 = vector.load %arg6[%c0_11, %c0_12] : memref<8x1xf32, #tpu.memory_space<vmem>>, vector<8x1xf32>
    tpu.vector_store %arg6[%c0_11, %c0_12], %16 {strides = array<i32>} : memref<8x1xf32, #tpu.memory_space<vmem>>, vector<8x1xf32>,
    return
  }
  func.func @transform_0(%arg0: i32) -> (i32, i32) {
    %c0_i32 = arith.constant 0 : i32
    %c0_i32_0 = arith.constant 0 : i32
    return %arg0, %c0_i32 : i32, i32
  }
  func.func @transform_1(%arg0: i32) -> (i32, i32) {
    %c0_i32 = arith.constant 0 : i32
    %c0_i32_0 = arith.constant 0 : i32
    %c0_i32_1 = arith.constant 0 : i32
    return %c0_i32, %c0_i32_0 : i32, i32
  }
  func.func @transform_2(%arg0: i32) -> (i32, i32) {
    %c0_i32 = arith.constant 0 : i32
    %c0_i32_0 = arith.constant 0 : i32
    %c0_i32_1 = arith.constant 0 : i32
    return %c0_i32, %c0_i32_0 : i32, i32
  }
  func.func @transform_3(%arg0: i32) -> (i32, i32) {
    %c0_i32 = arith.constant 0 : i32
    %c0_i32_0 = arith.constant 0 : i32
    %c0_i32_1 = arith.constant 0 : i32
    return %c0_i32, %c0_i32_0 : i32, i32
  }
  func.func @transform_4(%arg0: i32) -> (i32, i32) {
    %c0_i32 = arith.constant 0 : i32
    %c0_i32_0 = arith.constant 0 : i32
    %c0_i32_1 = arith.constant 0 : i32
    return %c0_i32, %c0_i32_0 : i32, i32
  }
  func.func @transform_5(%arg0: i32) -> (i32, i32) {
    %c0_i32 = arith.constant 0 : i32
    %c0_i32_0 = arith.constant 0 : i32
    return %arg0, %c0_i32 : i32, i32
  }
}

</mosaic_0001>

<bundles_post_ra>
// kernel: tpu_custom_call.1
= control target key start
LH: loop header
LB: loop body
LE: loop exit
PB: predicated region body
PF: predicated region fallthrough
CT: control target
= control target key end

     0   :  { %s8261_s0 = inlined_call_operand.hbm [shape: f32[8,1800], index: 0, kind: input, shape index: {}]   ;;  %s8262_s1 = inlined_call_operand.hbm [shape: bf16[1800,1024], index: 1, kind: input, shape index: {}]   ;;  %s8263_s2 = inlined_call_operand.hbm [shape: f32[1,1024], index: 2, kind: input, shape index: {}]   ;;  %s8264_s3 = inlined_call_operand.hbm [shape: f32[1,1024], index: 3, kind: input, shape index: {}]   ;;  %s8265_s4 = inlined_call_operand.<no memory space> [shape: f32[1,1], index: 4, kind: input, shape index: {}]   ;;  %s8266_s5 = inlined_call_operand.vmem [shape: f32[8,1], index: 5, kind: output, shape index: {}]  }
   0x1   :  { %v10_v0 = vstv %s8265_s4 }
   0x2   :  { %11 = vst [vmem:[#allocation2] sm:$0x1] %v10_v0 }
   0x3   :  { %12 = vsyncpa [#allocation4], 0 }
   0x4   :  { %13 = vsyncpa [#allocation6], 0 }
   0x5   :  { %14 = vsyncpa [#allocation9], 0  ;;  %s7988_s20 = smov [#allocation5]  }
   0x6   :  { %s30_s21 = sshll.u32 %s7988_s20, 4  ;;  %s31_s21 = int_to_ptr.vmem [resolvable:$true] %s30_s21 }
   0x7   :  { %s7910_s22 = scalar_lea.vmem %s31_s21, 115200  ;;  %p7915_p1 = scmp.lt.s32.totalorder %s31_s21, %s31_s21 }
   0x8   :  { %p7911_p0 = scmp.ne.s32.totalorder %s31_s21, %s7910_s22  ;;  %p7916_p2 = scmp.lt.s32.totalorder %s7910_s22, %s7910_s22 }
   0xa   :  { %p7917_p3 = por %p7916_p2, %p7915_p1 }
   0xc   :  { %p7918_p4 = pnand %p7917_p3, %p7911_p0 }
   0xe   :  { %7921 = shalt.err (!%p7918_p4)
}
   0xf   :  { %s7989_s23 = smov 512   ;;  %s7990_s24 = smov 32  }
  0x10   :  { %36 = dma.hbm_to_vmem [thread:$0]  %s8262_s1, 115200, %s31_s21, [#allocation6], %s7989_s23, %s7989_s23, %s7990_s24  }
  0x11   :  { %s7991_s4 = smov [#allocation3]   ;;  %s7992_s28 = smov [#allocation7]  }
  0x12   :  { %s21_s27 = sshll.u32 %s7991_s4, 4  ;;  %s43_s29 = sshll.u32 %s7992_s28, 4  ;;  %s22_s27 = int_to_ptr.vmem [resolvable:$true] %s21_s27  ;;  %s44_s29 = int_to_ptr.vmem [resolvable:$true] %s43_s29 }
  0x13   :  { %s7930_s30 = scalar_lea.vmem %s22_s27, 1920  ;;  %p7935_p6 = scmp.lt.s32.totalorder %s22_s27, %s22_s27 }
  0x14   :  { %p7931_p5 = scmp.ne.s32.totalorder %s22_s27, %s7930_s30  ;;  %p7936_p7 = scmp.lt.s32.totalorder %s7930_s30, %s7930_s30 }
  0x16   :  { %p7937_p8 = por %p7936_p7, %p7935_p6 }
  0x18   :  { %p7938_p9 = pnand %p7937_p8, %p7931_p5 }
  0x1a   :  { %7941 = shalt.err (!%p7938_p9)
}
  0x1b   :  { %24 = dma.hbm_to_vmem [thread:$0]  %s8261_s0, 1920, %s22_s27, [#allocation4]  }
  0x1c   :  { %s7950_s8 = scalar_lea.vmem %s44_s29, 128  ;;  %p7955_p11 = scmp.lt.s32.totalorder %s44_s29, %s44_s29 }
  0x1d   :  { %p7951_p10 = scmp.ne.s32.totalorder %s44_s29, %s7950_s8  ;;  %p7956_p12 = scmp.lt.s32.totalorder %s7950_s8, %s7950_s8 }
  0x1f   :  { %p7957_p13 = por %p7956_p12, %p7955_p11 }
  0x21   :  { %p7958_p0 = pnand %p7957_p13, %p7951_p10 }
  0x23   :  { %7961 = shalt.err (!%p7958_p0)
}
  0x24   :  { %46 = dma.hbm_to_vmem [thread:$0]  %s8263_s2, 128, %s44_s29, [#allocation6]  }
  0x25   :  { %s7993_s10 = smov [#allocation8]  }
  0x26   :  { %s53_s11 = sshll.u32 %s7993_s10, 4  ;;  %s54_s11 = int_to_ptr.vmem [resolvable:$true] %s53_s11 }
  0x27   :  { %s7970_s12 = scalar_lea.vmem %s54_s11, 128  ;;  %p7975_p2 = scmp.lt.s32.totalorder %s54_s11, %s54_s11 }
  0x28   :  { %p7971_p1 = scmp.ne.s32.totalorder %s54_s11, %s7970_s12  ;;  %p7976_p3 = scmp.lt.s32.totalorder %s7970_s12, %s7970_s12 }
  0x2a   :  { %p7977_p4 = por %p7976_p3, %p7975_p2 }
  0x2c   :  { %p7978_p5 = pnand %p7977_p4, %p7971_p1 }
  0x2e   :  { %7981 = shalt.err (!%p7978_p5)
}
  0x2f   :  { %56 = dma.hbm_to_vmem [thread:$0]  %s8264_s3, 128, %s54_s11, [#allocation9]  }
  0x30   :  { %7982 = dma.done.wait [#allocation4], 1920  }
  0x31   :  { %7983 = vsyncadd [#allocation4], 4294965376 }
  0x32   :  { %7984 = dma.done.wait [#allocation6], 115328  }
  0x33   :  { %7985 = vsyncadd [#allocation6], 4294851968 }
  0x34   :  { %7986 = dma.done.wait [#allocation9], 128  }
  0x35   :  { %7987 = vsyncadd [#allocation9], 4294967168  ;;  %v158_v1 = vld [vmem:[#allocation5 + $0x1c0] sm:$0xff]  ;;  %v73_v54 = vld [vmem:[#allocation3 + $0x8] sm:$0xff]  ;;  %vm5548_vm0 = vcmask 1043456   ;;  %vm5544_vm1 = vcmask 64512  }
  0x36   :  { %v162_v2 = vld [vmem:[#allocation5 + $0x1e0] sm:$0xff]  ;;  %v8040_v59 = vpack.c.bf16 %v73_v54, %v73_v54  ;;  %vm6960_vm2 = vcmask 7168  }
  0x37   :  { %v286_v3 = vld [vmem:[#allocation5 + $0x5c0] sm:$0xff]  ;;  %v7026_v4 = vcombine.high %v158_v1, %v162_v2  ;;  %v7025_v6 = vcombine.low %v158_v1, %v162_v2 }
  0x38   :  { %v290_v5 = vld [vmem:[#allocation5 + $0x5e0] sm:$0xff]  ;;  %5605 = vmatprep.mubr.bf16.mxu0 %v8040_v59 }
  0x39   :  { %v150_v7 = vld [vmem:[#allocation5 + $0x180] sm:$0xff]  ;;  %v7154_v9 = vcombine.high %v286_v3, %v290_v5  ;;  %v7153_v10 = vcombine.low %v286_v3, %v290_v5  ;;  %5573 = vmatprep.subr.bf16.mxu0 %v7026_v4 }
  0x3a   :  { %v154_v8 = vld [vmem:[#allocation5 + $0x1a0] sm:$0xff]  ;;  %5574 = vmatpush1.bf16.msra.mxu0 %v7025_v6 }
  0x3b   :  { %v7018_v11 = vcombine.high %v150_v7, %v154_v8  ;;  %v278_v12 = vld [vmem:[#allocation5 + $0x580] sm:$0xff]  ;;  %5614 = vmatprep.subr.bf16.mxu1 %v7154_v9  ;;  %v7017_v19 = vcombine.low %v150_v7, %v154_v8 }
  0x3c   :  { %v282_v13 = vld [vmem:[#allocation5 + $0x5a0] sm:$0xff]  ;;  %5615 = vmatpush1.bf16.msra.mxu1 %v7153_v10 }
  0x3d   :  { %v142_v14 = vld [vmem:[#allocation5 + $0x140] sm:$0xff]  ;;  %v7146_v15 = vcombine.high %v278_v12, %v282_v13  ;;  %5575 = vmatprep.subr.bf16.mxu0 %v7018_v11  ;;  %v7145_v20 = vcombine.low %v278_v12, %v282_v13 }
  0x3e   :  { %v146_v16 = vld [vmem:[#allocation5 + $0x160] sm:$0xff]  ;;  %5576 = vmatpush1.bf16.msra.mxu0 %v7017_v19 }
  0x3f   :  { %v270_v17 = vld [vmem:[#allocation5 + $0x540] sm:$0xff]  ;;  %v7010_v21 = vcombine.high %v142_v14, %v146_v16  ;;  %5616 = vmatprep.subr.bf16.mxu1 %v7146_v15  ;;  %v7009_v27 = vcombine.low %v142_v14, %v146_v16 }
  0x40   :  { %v274_v18 = vld [vmem:[#allocation5 + $0x560] sm:$0xff]  ;;  %5617 = vmatpush1.bf16.msra.mxu1 %v7145_v20 }
  0x41   :  { %v7138_v22 = vcombine.high %v270_v17, %v274_v18  ;;  %v134_v23 = vld [vmem:[#allocation5 + $0x100] sm:$0xff]  ;;  %5577 = vmatprep.subr.bf16.mxu0 %v7010_v21  ;;  %v7137_v28 = vcombine.low %v270_v17, %v274_v18 }
  0x42   :  { %v138_v24 = vld [vmem:[#allocation5 + $0x120] sm:$0xff]  ;;  %5578 = vmatpush1.bf16.msra.mxu0 %v7009_v27 }
  0x43   :  { %v262_v25 = vld [vmem:[#allocation5 + $0x500] sm:$0xff]  ;;  %v7002_v29 = vcombine.high %v134_v23, %v138_v24  ;;  %5618 = vmatprep.subr.bf16.mxu1 %v7138_v22  ;;  %v7001_v35 = vcombine.low %v134_v23, %v138_v24 }
  0x44   :  { %v266_v26 = vld [vmem:[#allocation5 + $0x520] sm:$0xff]  ;;  %5619 = vmatpush1.bf16.msra.mxu1 %v7137_v28 }
  0x45   :  { %v7130_v30 = vcombine.high %v262_v25, %v266_v26  ;;  %v126_v31 = vld [vmem:[#allocation5 + $0xc0] sm:$0xff]  ;;  %5579 = vmatprep.subr.bf16.mxu0 %v7002_v29  ;;  %v7129_v36 = vcombine.low %v262_v25, %v266_v26 }
  0x46   :  { %v130_v32 = vld [vmem:[#allocation5 + $0xe0] sm:$0xff]  ;;  %5580 = vmatpush1.bf16.msra.mxu0 %v7001_v35 }
  0x47   :  { %v254_v33 = vld [vmem:[#allocation5 + $0x4c0] sm:$0xff]  ;;  %v6994_v37 = vcombine.high %v126_v31, %v130_v32  ;;  %5620 = vmatprep.subr.bf16.mxu1 %v7130_v30  ;;  %v6993_v43 = vcombine.low %v126_v31, %v130_v32 }
  0x48   :  { %v258_v34 = vld [vmem:[#allocation5 + $0x4e0] sm:$0xff]  ;;  %5621 = vmatpush1.bf16.msra.mxu1 %v7129_v36 }
  0x49   :  { %v7122_v38 = vcombine.high %v254_v33, %v258_v34  ;;  %v118_v39 = vld [vmem:[#allocation5 + $0x80] sm:$0xff]  ;;  %5581 = vmatprep.subr.bf16.mxu0 %v6994_v37  ;;  %v7121_v44 = vcombine.low %v254_v33, %v258_v34 }
  0x4a   :  { %v122_v40 = vld [vmem:[#allocation5 + $0xa0] sm:$0xff]  ;;  %5582 = vmatpush1.bf16.msra.mxu0 %v6993_v43 }
  0x4b   :  { %v246_v41 = vld [vmem:[#allocation5 + $0x480] sm:$0xff]  ;;  %v6986_v45 = vcombine.high %v118_v39, %v122_v40  ;;  %5622 = vmatprep.subr.bf16.mxu1 %v7122_v38  ;;  %v6985_v51 = vcombine.low %v118_v39, %v122_v40 }
  0x4c   :  { %v250_v42 = vld [vmem:[#allocation5 + $0x4a0] sm:$0xff]  ;;  %5623 = vmatpush1.bf16.msra.mxu1 %v7121_v44 }
  0x4d   :  { %v7114_v46 = vcombine.high %v246_v41, %v250_v42  ;;  %v110_v47 = vld [vmem:[#allocation5 + $0x40] sm:$0xff]  ;;  %5583 = vmatprep.subr.bf16.mxu0 %v6986_v45  ;;  %v7113_v52 = vcombine.low %v246_v41, %v250_v42 }
  0x4e   :  { %v114_v48 = vld [vmem:[#allocation5 + $0x60] sm:$0xff]  ;;  %5584 = vmatpush1.bf16.msra.mxu0 %v6985_v51 }
  0x4f   :  { %v238_v49 = vld [vmem:[#allocation5 + $0x440] sm:$0xff]  ;;  %v6978_v53 = vcombine.high %v110_v47, %v114_v48  ;;  %5624 = vmatprep.subr.bf16.mxu1 %v7114_v46  ;;  %v6977_v63 = vcombine.low %v110_v47, %v114_v48 }
  0x50   :  { %v242_v50 = vld [vmem:[#allocation5 + $0x460] sm:$0xff]  ;;  %5625 = vmatpush1.bf16.msra.mxu1 %v7113_v52 }
  0x51   :  { %v75_v55 = vld [vmem:[#allocation3 + $0x18] sm:$0xff]  ;;  %v7106_v56 = vcombine.high %v238_v49, %v242_v50  ;;  %5585 = vmatprep.subr.bf16.mxu0 %v6978_v53  ;;  %v7105_v0 = vcombine.low %v238_v49, %v242_v50 }
  0x52   :  { %v102_v57 = vld [vmem:[#allocation5] sm:$0xff]  ;;  %v8042_v60 = vpack.c.bf16 %v75_v55, %v75_v55  ;;  %5586 = vmatpush1.bf16.msra.mxu0 %v6977_v63 }
  0x53   :  { %v106_v58 = vld [vmem:[#allocation5 + $0x20] sm:$0xff]  ;;  %5626 = vmatprep.subr.bf16.mxu1 %v7106_v56 }
  0x54   :  { %v230_v61 = vld [vmem:[#allocation5 + $0x400] sm:$0xff]  ;;  %v6970_v1 = vcombine.high %v102_v57, %v106_v58  ;;  %5646 = vmatprep.mubr.bf16.mxu1 %v8042_v60  ;;  %v6969_v7 = vcombine.low %v102_v57, %v106_v58  ;;  %5627 = vmatpush1.bf16.msra.mxu1 %v7105_v0 }
  0x55   :  { %v234_v62 = vld [vmem:[#allocation5 + $0x420] sm:$0xff] }
  0x56   :  { %v7098_v2 = vcombine.high %v230_v61, %v234_v62  ;;  %v222_v3 = vld [vmem:[#allocation5 + $0x3c0] sm:$0xff]  ;;  %5587 = vmatprep.subr.bf16.mxu0 %v6970_v1  ;;  %v7097_v8 = vcombine.low %v230_v61, %v234_v62 }
  0x57   :  { %v226_v4 = vld [vmem:[#allocation5 + $0x3e0] sm:$0xff]  ;;  %5588 = vmatpush1.bf16.msra.mxu0 %v6969_v7 }
  0x58   :  { %v350_v5 = vld [vmem:[#allocation5 + $0x7c0] sm:$0xff]  ;;  %v7090_v9 = vcombine.high %v222_v3, %v226_v4  ;;  %5628 = vmatprep.subr.bf16.mxu1 %v7098_v2  ;;  %v7089_v15 = vcombine.low %v222_v3, %v226_v4 }
  0x59   :  { %v354_v6 = vld [vmem:[#allocation5 + $0x7e0] sm:$0xff]  ;;  %5629 = vmatpush1.bf16.msra.mxu1 %v7097_v8 }
  0x5a   :  { %v7218_v10 = vcombine.high %v350_v5, %v354_v6  ;;  %v214_v11 = vld [vmem:[#allocation5 + $0x380] sm:$0xff]  ;;  %5589 = vmatprep.subr.bf16.mxu0 %v7090_v9  ;;  %v7217_v16 = vcombine.low %v350_v5, %v354_v6 }
  0x5b   :  { %v218_v12 = vld [vmem:[#allocation5 + $0x3a0] sm:$0xff]  ;;  %5590 = vmatpush2.bf16.msra.mxu0 %v7089_v15 }
  0x5c   :  { %v342_v13 = vld [vmem:[#allocation5 + $0x780] sm:$0xff]  ;;  %v7082_v17 = vcombine.high %v214_v11, %v218_v12  ;;  %5630 = vmatprep.subr.bf16.mxu1 %v7218_v10  ;;  %v7081_v23 = vcombine.low %v214_v11, %v218_v12  ;;  %v72_v10 = vld [vmem:[#allocation3] sm:$0xff]  ;;  %v74_v12 = vld [vmem:[#allocation3 + $0x10] sm:$0xff] }
  0x5d   :  { %v346_v14 = vld [vmem:[#allocation5 + $0x7a0] sm:$0xff]  ;;  %5631 = vmatpush2.bf16.msra.mxu1 %v7217_v16 }
  0x5e   :  { %v7210_v18 = vcombine.high %v342_v13, %v346_v14  ;;  %v206_v19 = vld [vmem:[#allocation5 + $0x340] sm:$0xff]  ;;  %5591 = vmatprep.subr.bf16.mxu0 %v7082_v17  ;;  %v7209_v24 = vcombine.low %v342_v13, %v346_v14  ;;  %v8046_v17 = vpack.c.bf16 %v72_v10, %v72_v10 }
  0x5f   :  { %v210_v20 = vld [vmem:[#allocation5 + $0x360] sm:$0xff]  ;;  %5592 = vmatpush2.bf16.msra.mxu0 %v7081_v23 }
  0x60   :  { %v334_v21 = vld [vmem:[#allocation5 + $0x740] sm:$0xff]  ;;  %v7074_v25 = vcombine.high %v206_v19, %v210_v20  ;;  %5632 = vmatprep.subr.bf16.mxu1 %v7210_v18  ;;  %v7073_v31 = vcombine.low %v206_v19, %v210_v20  ;;  %v77_v20 = vld [vmem:[#allocation3 + $0x28] sm:$0xff] }
  0x61   :  { %v338_v22 = vld [vmem:[#allocation5 + $0x760] sm:$0xff]  ;;  %5633 = vmatpush2.bf16.msra.mxu1 %v7209_v24 }
  0x62   :  { %v7202_v26 = vcombine.high %v334_v21, %v338_v22  ;;  %v198_v27 = vld [vmem:[#allocation5 + $0x300] sm:$0xff]  ;;  %5593 = vmatprep.subr.bf16.mxu0 %v7074_v25  ;;  %v7201_v32 = vcombine.low %v334_v21, %v338_v22  ;;  %v8048_v21 = vpack.c.bf16 %v74_v12, %v74_v12 }
  0x63   :  { %v202_v28 = vld [vmem:[#allocation5 + $0x320] sm:$0xff]  ;;  %5594 = vmatpush2.bf16.msra.mxu0 %v7073_v31 }
  0x64   :  { %v326_v29 = vld [vmem:[#allocation5 + $0x700] sm:$0xff]  ;;  %v7066_v33 = vcombine.high %v198_v27, %v202_v28  ;;  %5634 = vmatprep.subr.bf16.mxu1 %v7202_v26  ;;  %v7065_v39 = vcombine.low %v198_v27, %v202_v28 }
  0x65   :  { %v330_v30 = vld [vmem:[#allocation5 + $0x720] sm:$0xff]  ;;  %5635 = vmatpush2.bf16.msra.mxu1 %v7201_v32 }
  0x66   :  { %v7194_v34 = vcombine.high %v326_v29, %v330_v30  ;;  %v190_v35 = vld [vmem:[#allocation5 + $0x2c0] sm:$0xff]  ;;  %5595 = vmatprep.subr.bf16.mxu0 %v7066_v33  ;;  %v7193_v40 = vcombine.low %v326_v29, %v330_v30  ;;  %v8050_v29 = vpack.c.bf16 %v77_v20, %v77_v20 }
  0x67   :  { %v194_v36 = vld [vmem:[#allocation5 + $0x2e0] sm:$0xff]  ;;  %5596 = vmatpush2.bf16.msra.mxu0 %v7065_v39 }
  0x68   :  { %v318_v37 = vld [vmem:[#allocation5 + $0x6c0] sm:$0xff]  ;;  %v7058_v41 = vcombine.high %v190_v35, %v194_v36  ;;  %5636 = vmatprep.subr.bf16.mxu1 %v7194_v34  ;;  %v7057_v47 = vcombine.low %v190_v35, %v194_v36 }
  0x69   :  { %v322_v38 = vld [vmem:[#allocation5 + $0x6e0] sm:$0xff]  ;;  %5637 = vmatpush2.bf16.msra.mxu1 %v7193_v40 }
  0x6a   :  { %v7186_v42 = vcombine.high %v318_v37, %v322_v38  ;;  %v182_v43 = vld [vmem:[#allocation5 + $0x280] sm:$0xff]  ;;  %5597 = vmatprep.subr.bf16.mxu0 %v7058_v41  ;;  %v7185_v48 = vcombine.low %v318_v37, %v322_v38 }
  0x6b   :  { %v186_v44 = vld [vmem:[#allocation5 + $0x2a0] sm:$0xff]  ;;  %5598 = vmatpush2.bf16.msra.mxu0 %v7057_v47 }
  0x6c   :  { %v310_v45 = vld [vmem:[#allocation5 + $0x680] sm:$0xff]  ;;  %v7050_v49 = vcombine.high %v182_v43, %v186_v44  ;;  %5638 = vmatprep.subr.bf16.mxu1 %v7186_v42  ;;  %v7049_v55 = vcombine.low %v182_v43, %v186_v44 }
  0x6d   :  { %v314_v46 = vld [vmem:[#allocation5 + $0x6a0] sm:$0xff]  ;;  %5639 = vmatpush2.bf16.msra.mxu1 %v7185_v48 }
  0x6e   :  { %v7178_v50 = vcombine.high %v310_v45, %v314_v46  ;;  %v174_v51 = vld [vmem:[#allocation5 + $0x240] sm:$0xff]  ;;  %5599 = vmatprep.subr.bf16.mxu0 %v7050_v49  ;;  %v7177_v56 = vcombine.low %v310_v45, %v314_v46 }
  0x6f   :  { %v178_v52 = vld [vmem:[#allocation5 + $0x260] sm:$0xff]  ;;  %5600 = vmatpush2.bf16.msra.mxu0 %v7049_v55 }
  0x70   :  { %v302_v53 = vld [vmem:[#allocation5 + $0x640] sm:$0xff]  ;;  %v7042_v57 = vcombine.high %v174_v51, %v178_v52  ;;  %5640 = vmatprep.subr.bf16.mxu1 %v7178_v50  ;;  %v7041_v1 = vcombine.low %v174_v51, %v178_v52 }
  0x71   :  { %v306_v54 = vld [vmem:[#allocation5 + $0x660] sm:$0xff]  ;;  %5641 = vmatpush2.bf16.msra.mxu1 %v7177_v56 }
  0x72   :  { %v7170_v58 = vcombine.high %v302_v53, %v306_v54  ;;  %v166_v61 = vld [vmem:[#allocation5 + $0x200] sm:$0xff]  ;;  %5601 = vmatprep.subr.bf16.mxu0 %v7042_v57  ;;  %v7169_v2 = vcombine.low %v302_v53, %v306_v54 }
  0x73   :  { %v170_v62 = vld [vmem:[#allocation5 + $0x220] sm:$0xff]  ;;  %5602 = vmatpush2.bf16.msra.mxu0 %v7041_v1 }
  0x74   :  { %v294_v63 = vld [vmem:[#allocation5 + $0x600] sm:$0xff]  ;;  %v7034_v3 = vcombine.high %v166_v61, %v170_v62  ;;  %5642 = vmatprep.subr.bf16.mxu1 %v7170_v58  ;;  %v7033_v9 = vcombine.low %v166_v61, %v170_v62 }
  0x75   :  { %v298_v0 = vld [vmem:[#allocation5 + $0x620] sm:$0xff]  ;;  %5643 = vmatpush2.bf16.msra.mxu1 %v7169_v2 }
  0x76   :  { %v7162_v4 = vcombine.high %v294_v63, %v298_v0  ;;  %v414_v5 = vld [vmem:[#allocation5 + $0x9c0] sm:$0xff]  ;;  %5603 = vmatprep.subr.bf16.mxu0 %v7034_v3  ;;  %v7161_v11 = vcombine.low %v294_v63, %v298_v0 }
  0x77   :  { %v418_v6 = vld [vmem:[#allocation5 + $0x9e0] sm:$0xff]  ;;  %5604 = vmatpush2.bf16.msra.mxu0 %v7033_v9 }
  0x78   :  { %v542_v7 = vld [vmem:[#allocation5 + $0xdc0] sm:$0xff]  ;;  %v7282_v13 = vcombine.high %v414_v5, %v418_v6  ;;  %5644 = vmatprep.subr.bf16.mxu1 %v7162_v4  ;;  %v7281_v22 = vcombine.low %v414_v5, %v418_v6 }
  0x79   :  { %v546_v8 = vld [vmem:[#allocation5 + $0xde0] sm:$0xff]  ;;  %5645 = vmatpush2.bf16.msra.mxu1 %v7161_v11 }
  0x7a   :  { %v7410_v14 = vcombine.high %v542_v7, %v546_v8  ;;  %v406_v15 = vld [vmem:[#allocation5 + $0x980] sm:$0xff]  ;;  %5655 = vmatprep.subr.bf16.mxu0 %v7282_v13  ;;  %v7409_v24 = vcombine.low %v542_v7, %v546_v8  ;;  %5606 = vmatmul.mubr.bf16.vlgmr.msra.gmra.mxu0 %v8046_v17 }
  0x7b   :  { %v410_v16 = vld [vmem:[#allocation5 + $0x9a0] sm:$0xff]  ;;  %5656 = vmatpush1.bf16.msra.mxu0 %v7281_v22  ;;  %5687 = vmatprep.mubr.bf16.mxu0 %v8050_v29 }
  0x7c   :  { %v534_v18 = vld [vmem:[#allocation5 + $0xd80] sm:$0xff]  ;;  %v7274_v25 = vcombine.high %v406_v15, %v410_v16  ;;  %5696 = vmatprep.subr.bf16.mxu1 %v7410_v14  ;;  %5647 = vmatmul.mubr.bf16.vlgmr.msra.gmra.mxu1 %v8048_v21  ;;  %v7273_v33 = vcombine.low %v406_v15, %v410_v16 }
  0x7d   :  { %v538_v19 = vld [vmem:[#allocation5 + $0xda0] sm:$0xff]  ;;  %5697 = vmatpush1.bf16.msra.mxu1 %v7409_v24 }
  0x7e   :  { %v79_v23 = vld [vmem:[#allocation3 + $0x38] sm:$0xff]  ;;  %v7402_v26 = vcombine.high %v534_v18, %v538_v19  ;;  %5657 = vmatprep.subr.bf16.mxu0 %v7274_v25  ;;  %v7401_v34 = vcombine.low %v534_v18, %v538_v19 }
  0x7f   :  { %v398_v27 = vld [vmem:[#allocation5 + $0x940] sm:$0xff]  ;;  %v8053_v32 = vpack.c.bf16 %v79_v23, %v79_v23  ;;  %5658 = vmatpush1.bf16.msra.mxu0 %v7273_v33 }
  0x80   :  { %v402_v28 = vld [vmem:[#allocation5 + $0x960] sm:$0xff]  ;;  %5698 = vmatprep.subr.bf16.mxu1 %v7402_v26 }
  0x81   :  { %v526_v30 = vld [vmem:[#allocation5 + $0xd40] sm:$0xff]  ;;  %v7266_v35 = vcombine.high %v398_v27, %v402_v28  ;;  %5728 = vmatprep.mubr.bf16.mxu1 %v8053_v32  ;;  %v7265_v41 = vcombine.low %v398_v27, %v402_v28  ;;  %5699 = vmatpush1.bf16.msra.mxu1 %v7401_v34 }
  0x82   :  { %v530_v31 = vld [vmem:[#allocation5 + $0xd60] sm:$0xff] }
  0x83   :  { %v7394_v36 = vcombine.high %v526_v30, %v530_v31  ;;  %v390_v37 = vld [vmem:[#allocation5 + $0x900] sm:$0xff]  ;;  %5659 = vmatprep.subr.bf16.mxu0 %v7266_v35  ;;  %v7393_v42 = vcombine.low %v526_v30, %v530_v31 }
  0x84   :  { %v394_v38 = vld [vmem:[#allocation5 + $0x920] sm:$0xff]  ;;  %5660 = vmatpush1.bf16.msra.mxu0 %v7265_v41 }
  0x85   :  { %v518_v39 = vld [vmem:[#allocation5 + $0xd00] sm:$0xff]  ;;  %v7258_v43 = vcombine.high %v390_v37, %v394_v38  ;;  %5700 = vmatprep.subr.bf16.mxu1 %v7394_v36  ;;  %v7257_v49 = vcombine.low %v390_v37, %v394_v38 }
  0x86   :  { %v522_v40 = vld [vmem:[#allocation5 + $0xd20] sm:$0xff]  ;;  %5701 = vmatpush1.bf16.msra.mxu1 %v7393_v42 }
  0x87   :  { %v7386_v44 = vcombine.high %v518_v39, %v522_v40  ;;  %v382_v45 = vld [vmem:[#allocation5 + $0x8c0] sm:$0xff]  ;;  %5661 = vmatprep.subr.bf16.mxu0 %v7258_v43  ;;  %v7385_v50 = vcombine.low %v518_v39, %v522_v40 }
  0x88   :  { %v386_v46 = vld [vmem:[#allocation5 + $0x8e0] sm:$0xff]  ;;  %5662 = vmatpush1.bf16.msra.mxu0 %v7257_v49 }
  0x89   :  { %v510_v47 = vld [vmem:[#allocation5 + $0xcc0] sm:$0xff]  ;;  %v7250_v51 = vcombine.high %v382_v45, %v386_v46  ;;  %5702 = vmatprep.subr.bf16.mxu1 %v7386_v44  ;;  %v7249_v57 = vcombine.low %v382_v45, %v386_v46 }
  0x8a   :  { %v514_v48 = vld [vmem:[#allocation5 + $0xce0] sm:$0xff]  ;;  %5703 = vmatpush1.bf16.msra.mxu1 %v7385_v50 }
  0x8b   :  { %v7378_v52 = vcombine.high %v510_v47, %v514_v48  ;;  %v374_v53 = vld [vmem:[#allocation5 + $0x880] sm:$0xff]  ;;  %5663 = vmatprep.subr.bf16.mxu0 %v7250_v51  ;;  %v7377_v58 = vcombine.low %v510_v47, %v514_v48 }
  0x8c   :  { %v378_v54 = vld [vmem:[#allocation5 + $0x8a0] sm:$0xff]  ;;  %5664 = vmatpush1.bf16.msra.mxu0 %v7249_v57 }
  0x8d   :  { %v502_v55 = vld [vmem:[#allocation5 + $0xc80] sm:$0xff]  ;;  %v7242_v61 = vcombine.high %v374_v53, %v378_v54  ;;  %5704 = vmatprep.subr.bf16.mxu1 %v7378_v52  ;;  %v7241_v3 = vcombine.low %v374_v53, %v378_v54 }
  0x8e   :  { %v506_v56 = vld [vmem:[#allocation5 + $0xca0] sm:$0xff]  ;;  %5705 = vmatpush1.bf16.msra.mxu1 %v7377_v58 }
  0x8f   :  { %v7370_v62 = vcombine.high %v502_v55, %v506_v56  ;;  %v366_v63 = vld [vmem:[#allocation5 + $0x840] sm:$0xff]  ;;  %5665 = vmatprep.subr.bf16.mxu0 %v7242_v61  ;;  %v7369_v4 = vcombine.low %v502_v55, %v506_v56 }
  0x90   :  { %v370_v0 = vld [vmem:[#allocation5 + $0x860] sm:$0xff]  ;;  %5666 = vmatpush1.bf16.msra.mxu0 %v7241_v3 }
  0x91   :  { %v494_v1 = vld [vmem:[#allocation5 + $0xc40] sm:$0xff]  ;;  %v7234_v5 = vcombine.high %v366_v63, %v370_v0  ;;  %5706 = vmatprep.subr.bf16.mxu1 %v7370_v62  ;;  %v7233_v11 = vcombine.low %v366_v63, %v370_v0 }
  0x92   :  { %v498_v2 = vld [vmem:[#allocation5 + $0xc60] sm:$0xff]  ;;  %5707 = vmatpush1.bf16.msra.mxu1 %v7369_v4 }
  0x93   :  { %v7362_v6 = vcombine.high %v494_v1, %v498_v2  ;;  %v358_v7 = vld [vmem:[#allocation5 + $0x800] sm:$0xff]  ;;  %5667 = vmatprep.subr.bf16.mxu0 %v7234_v5  ;;  %v7361_v12 = vcombine.low %v494_v1, %v498_v2 }
  0x94   :  { %v362_v8 = vld [vmem:[#allocation5 + $0x820] sm:$0xff]  ;;  %5668 = vmatpush1.bf16.msra.mxu0 %v7233_v11 }
  0x95   :  { %v486_v9 = vld [vmem:[#allocation5 + $0xc00] sm:$0xff]  ;;  %v7226_v13 = vcombine.high %v358_v7, %v362_v8  ;;  %5708 = vmatprep.subr.bf16.mxu1 %v7362_v6  ;;  %v7225_v20 = vcombine.low %v358_v7, %v362_v8 }
  0x96   :  { %v490_v10 = vld [vmem:[#allocation5 + $0xc20] sm:$0xff]  ;;  %5709 = vmatpush1.bf16.msra.mxu1 %v7361_v12 }
  0x97   :  { %v7354_v14 = vcombine.high %v486_v9, %v490_v10  ;;  %v478_v15 = vld [vmem:[#allocation5 + $0xbc0] sm:$0xff]  ;;  %5669 = vmatprep.subr.bf16.mxu0 %v7226_v13  ;;  %v7353_v22 = vcombine.low %v486_v9, %v490_v10 }
  0x98   :  { %v482_v16 = vld [vmem:[#allocation5 + $0xbe0] sm:$0xff]  ;;  %5670 = vmatpush1.bf16.msra.mxu0 %v7225_v20 }
  0x99   :  { %v606_v18 = vld [vmem:[#allocation5 + $0xfc0] sm:$0xff]  ;;  %v7346_v23 = vcombine.high %v478_v15, %v482_v16  ;;  %5710 = vmatprep.subr.bf16.mxu1 %v7354_v14  ;;  %v7345_v30 = vcombine.low %v478_v15, %v482_v16 }
  0x9a   :  { %v610_v19 = vld [vmem:[#allocation5 + $0xfe0] sm:$0xff]  ;;  %5711 = vmatpush1.bf16.msra.mxu1 %v7353_v22 }
  0x9b   :  { %v7474_v24 = vcombine.high %v606_v18, %v610_v19  ;;  %v470_v25 = vld [vmem:[#allocation5 + $0xb80] sm:$0xff]  ;;  %5671 = vmatprep.subr.bf16.mxu0 %v7346_v23  ;;  %v7473_v31 = vcombine.low %v606_v18, %v610_v19 }
  0x9c   :  { %v474_v26 = vld [vmem:[#allocation5 + $0xba0] sm:$0xff]  ;;  %5672 = vmatpush2.bf16.msra.mxu0 %v7345_v30 }
  0x9d   :  { %v598_v27 = vld [vmem:[#allocation5 + $0xf80] sm:$0xff]  ;;  %v7338_v33 = vcombine.high %v470_v25, %v474_v26  ;;  %5712 = vmatprep.subr.bf16.mxu1 %v7474_v24  ;;  %v7337_v39 = vcombine.low %v470_v25, %v474_v26 }
  0x9e   :  { %v602_v28 = vld [vmem:[#allocation5 + $0xfa0] sm:$0xff]  ;;  %5713 = vmatpush2.bf16.msra.mxu1 %v7473_v31  ;;  %v78_v31 = vld [vmem:[#allocation3 + $0x30] sm:$0xff] }
  0x9f   :  { %v7466_v34 = vcombine.high %v598_v27, %v602_v28  ;;  %v462_v35 = vld [vmem:[#allocation5 + $0xb40] sm:$0xff]  ;;  %5673 = vmatprep.subr.bf16.mxu0 %v7338_v33  ;;  %v7465_v40 = vcombine.low %v598_v27, %v602_v28  ;;  %v76_v28 = vld [vmem:[#allocation3 + $0x20] sm:$0xff] }
  0xa0   :  { %v466_v36 = vld [vmem:[#allocation5 + $0xb60] sm:$0xff]  ;;  %5674 = vmatpush2.bf16.msra.mxu0 %v7337_v39 }
  0xa1   :  { %v590_v37 = vld [vmem:[#allocation5 + $0xf40] sm:$0xff]  ;;  %v7330_v41 = vcombine.high %v462_v35, %v466_v36  ;;  %5714 = vmatprep.subr.bf16.mxu1 %v7466_v34  ;;  %v7329_v47 = vcombine.low %v462_v35, %v466_v36 }
  0xa2   :  { %v594_v38 = vld [vmem:[#allocation5 + $0xf60] sm:$0xff]  ;;  %5715 = vmatpush2.bf16.msra.mxu1 %v7465_v40  ;;  %v81_v40 = vld [vmem:[#allocation3 + $0x48] sm:$0xff] }
  0xa3   :  { %v7458_v42 = vcombine.high %v590_v37, %v594_v38  ;;  %v454_v43 = vld [vmem:[#allocation5 + $0xb00] sm:$0xff]  ;;  %5675 = vmatprep.subr.bf16.mxu0 %v7330_v41  ;;  %v7457_v48 = vcombine.low %v590_v37, %v594_v38  ;;  %v8058_v37 = vpack.c.bf16 %v76_v28, %v76_v28  ;;  %v8060_v41 = vpack.c.bf16 %v78_v31, %v78_v31 }
  0xa4   :  { %v458_v44 = vld [vmem:[#allocation5 + $0xb20] sm:$0xff]  ;;  %5676 = vmatpush2.bf16.msra.mxu0 %v7329_v47 }
  0xa5   :  { %v582_v45 = vld [vmem:[#allocation5 + $0xf00] sm:$0xff]  ;;  %v7322_v49 = vcombine.high %v454_v43, %v458_v44  ;;  %5716 = vmatprep.subr.bf16.mxu1 %v7458_v42  ;;  %v7321_v55 = vcombine.low %v454_v43, %v458_v44 }
  0xa6   :  { %v586_v46 = vld [vmem:[#allocation5 + $0xf20] sm:$0xff]  ;;  %5717 = vmatpush2.bf16.msra.mxu1 %v7457_v48 }
  0xa7   :  { %v7450_v50 = vcombine.high %v582_v45, %v586_v46  ;;  %v446_v51 = vld [vmem:[#allocation5 + $0xac0] sm:$0xff]  ;;  %5677 = vmatprep.subr.bf16.mxu0 %v7322_v49  ;;  %v7449_v56 = vcombine.low %v582_v45, %v586_v46  ;;  %v8062_v49 = vpack.c.bf16 %v81_v40, %v81_v40 }
  0xa8   :  { %v450_v52 = vld [vmem:[#allocation5 + $0xae0] sm:$0xff]  ;;  %5678 = vmatpush2.bf16.msra.mxu0 %v7321_v55 }
  0xa9   :  { %v574_v53 = vld [vmem:[#allocation5 + $0xec0] sm:$0xff]  ;;  %v7314_v57 = vcombine.high %v446_v51, %v450_v52  ;;  %5718 = vmatprep.subr.bf16.mxu1 %v7450_v50  ;;  %v7313_v1 = vcombine.low %v446_v51, %v450_v52 }
  0xaa   :  { %v578_v54 = vld [vmem:[#allocation5 + $0xee0] sm:$0xff]  ;;  %5719 = vmatpush2.bf16.msra.mxu1 %v7449_v56 }
  0xab   :  { %v7442_v58 = vcombine.high %v574_v53, %v578_v54  ;;  %v438_v61 = vld [vmem:[#allocation5 + $0xa80] sm:$0xff]  ;;  %5679 = vmatprep.subr.bf16.mxu0 %v7314_v57  ;;  %v7441_v2 = vcombine.low %v574_v53, %v578_v54 }
  0xac   :  { %v442_v62 = vld [vmem:[#allocation5 + $0xaa0] sm:$0xff]  ;;  %5680 = vmatpush2.bf16.msra.mxu0 %v7313_v1 }
  0xad   :  { %v566_v63 = vld [vmem:[#allocation5 + $0xe80] sm:$0xff]  ;;  %v7306_v3 = vcombine.high %v438_v61, %v442_v62  ;;  %5720 = vmatprep.subr.bf16.mxu1 %v7442_v58  ;;  %v7305_v9 = vcombine.low %v438_v61, %v442_v62 }
  0xae   :  { %v570_v0 = vld [vmem:[#allocation5 + $0xea0] sm:$0xff]  ;;  %5721 = vmatpush2.bf16.msra.mxu1 %v7441_v2 }
  0xaf   :  { %v7434_v4 = vcombine.high %v566_v63, %v570_v0  ;;  %v430_v5 = vld [vmem:[#allocation5 + $0xa40] sm:$0xff]  ;;  %5681 = vmatprep.subr.bf16.mxu0 %v7306_v3  ;;  %v7433_v10 = vcombine.low %v566_v63, %v570_v0 }
  0xb0   :  { %v434_v6 = vld [vmem:[#allocation5 + $0xa60] sm:$0xff]  ;;  %5682 = vmatpush2.bf16.msra.mxu0 %v7305_v9 }
  0xb1   :  { %v558_v7 = vld [vmem:[#allocation5 + $0xe40] sm:$0xff]  ;;  %v7298_v11 = vcombine.high %v430_v5, %v434_v6  ;;  %5722 = vmatprep.subr.bf16.mxu1 %v7434_v4  ;;  %v7297_v18 = vcombine.low %v430_v5, %v434_v6 }
  0xb2   :  { %v562_v8 = vld [vmem:[#allocation5 + $0xe60] sm:$0xff]  ;;  %5723 = vmatpush2.bf16.msra.mxu1 %v7433_v10 }
  0xb3   :  { %v7426_v12 = vcombine.high %v558_v7, %v562_v8  ;;  %v422_v13 = vld [vmem:[#allocation5 + $0xa00] sm:$0xff]  ;;  %5683 = vmatprep.subr.bf16.mxu0 %v7298_v11  ;;  %v7425_v19 = vcombine.low %v558_v7, %v562_v8 }
  0xb4   :  { %v426_v14 = vld [vmem:[#allocation5 + $0xa20] sm:$0xff]  ;;  %5684 = vmatpush2.bf16.msra.mxu0 %v7297_v18 }
  0xb5   :  { %v550_v15 = vld [vmem:[#allocation5 + $0xe00] sm:$0xff]  ;;  %v7290_v20 = vcombine.high %v422_v13, %v426_v14  ;;  %5724 = vmatprep.subr.bf16.mxu1 %v7426_v12  ;;  %v7289_v27 = vcombine.low %v422_v13, %v426_v14 }
  0xb6   :  { %v554_v16 = vld [vmem:[#allocation5 + $0xe20] sm:$0xff]  ;;  %5725 = vmatpush2.bf16.msra.mxu1 %v7425_v19 }
  0xb7   :  { %v7418_v22 = vcombine.high %v550_v15, %v554_v16  ;;  %v670_v23 = vld [vmem:[#allocation5 + $0x11c0] sm:$0xff]  ;;  %5685 = vmatprep.subr.bf16.mxu0 %v7290_v20  ;;  %v7417_v30 = vcombine.low %v550_v15, %v554_v16 }
  0xb8   :  { %v674_v24 = vld [vmem:[#allocation5 + $0x11e0] sm:$0xff]  ;;  %5686 = vmatpush2.bf16.msra.mxu0 %v7289_v27 }
  0xb9   :  { %v798_v25 = vld [vmem:[#allocation5 + $0x15c0] sm:$0xff]  ;;  %v7538_v33 = vcombine.high %v670_v23, %v674_v24  ;;  %5726 = vmatprep.subr.bf16.mxu1 %v7418_v22  ;;  %v7537_v42 = vcombine.low %v670_v23, %v674_v24 }
  0xba   :  { %v802_v26 = vld [vmem:[#allocation5 + $0x15e0] sm:$0xff]  ;;  %5727 = vmatpush2.bf16.msra.mxu1 %v7417_v30 }
  0xbb   :  { %v7666_v34 = vcombine.high %v798_v25, %v802_v26  ;;  %v662_v35 = vld [vmem:[#allocation5 + $0x1180] sm:$0xff]  ;;  %5737 = vmatprep.subr.bf16.mxu0 %v7538_v33  ;;  %v7665_v44 = vcombine.low %v798_v25, %v802_v26  ;;  %5688 = vmatmul.mubr.bf16.vlgmr.msra.gmra.mxu0 %v8058_v37 }
  0xbc   :  { %v666_v36 = vld [vmem:[#allocation5 + $0x11a0] sm:$0xff]  ;;  %5738 = vmatpush1.bf16.msra.mxu0 %v7537_v42  ;;  %5769 = vmatprep.mubr.bf16.mxu0 %v8062_v49 }
  0xbd   :  { %v790_v38 = vld [vmem:[#allocation5 + $0x1580] sm:$0xff]  ;;  %v7530_v45 = vcombine.high %v662_v35, %v666_v36  ;;  %5778 = vmatprep.subr.bf16.mxu1 %v7666_v34  ;;  %5729 = vmatmul.mubr.bf16.vlgmr.msra.gmra.mxu1 %v8060_v41  ;;  %v7529_v53 = vcombine.low %v662_v35, %v666_v36 }
  0xbe   :  { %v794_v39 = vld [vmem:[#allocation5 + $0x15a0] sm:$0xff]  ;;  %5779 = vmatpush1.bf16.msra.mxu1 %v7665_v44 }
  0xbf   :  { %v83_v43 = vld [vmem:[#allocation3 + $0x58] sm:$0xff]  ;;  %v7658_v46 = vcombine.high %v790_v38, %v794_v39  ;;  %5739 = vmatprep.subr.bf16.mxu0 %v7530_v45  ;;  %v7657_v54 = vcombine.low %v790_v38, %v794_v39 }
  0xc0   :  { %v654_v47 = vld [vmem:[#allocation5 + $0x1140] sm:$0xff]  ;;  %v8065_v52 = vpack.c.bf16 %v83_v43, %v83_v43  ;;  %5740 = vmatpush1.bf16.msra.mxu0 %v7529_v53 }
  0xc1   :  { %v658_v48 = vld [vmem:[#allocation5 + $0x1160] sm:$0xff]  ;;  %5780 = vmatprep.subr.bf16.mxu1 %v7658_v46 }
  0xc2   :  { %v782_v50 = vld [vmem:[#allocation5 + $0x1540] sm:$0xff]  ;;  %v7522_v55 = vcombine.high %v654_v47, %v658_v48  ;;  %5810 = vmatprep.mubr.bf16.mxu1 %v8065_v52  ;;  %v7521_v63 = vcombine.low %v654_v47, %v658_v48  ;;  %5781 = vmatpush1.bf16.msra.mxu1 %v7657_v54 }
  0xc3   :  { %v786_v51 = vld [vmem:[#allocation5 + $0x1560] sm:$0xff] }
  0xc4   :  { %v7650_v56 = vcombine.high %v782_v50, %v786_v51  ;;  %v646_v57 = vld [vmem:[#allocation5 + $0x1100] sm:$0xff]  ;;  %5741 = vmatprep.subr.bf16.mxu0 %v7522_v55  ;;  %v7649_v0 = vcombine.low %v782_v50, %v786_v51 }
  0xc5   :  { %v650_v58 = vld [vmem:[#allocation5 + $0x1120] sm:$0xff]  ;;  %5742 = vmatpush1.bf16.msra.mxu0 %v7521_v63 }
  0xc6   :  { %v774_v61 = vld [vmem:[#allocation5 + $0x1500] sm:$0xff]  ;;  %v7514_v1 = vcombine.high %v646_v57, %v650_v58  ;;  %5782 = vmatprep.subr.bf16.mxu1 %v7650_v56  ;;  %v7513_v7 = vcombine.low %v646_v57, %v650_v58 }
  0xc7   :  { %v778_v62 = vld [vmem:[#allocation5 + $0x1520] sm:$0xff]  ;;  %5783 = vmatpush1.bf16.msra.mxu1 %v7649_v0 }
  0xc8   :  { %v7642_v2 = vcombine.high %v774_v61, %v778_v62  ;;  %v638_v3 = vld [vmem:[#allocation5 + $0x10c0] sm:$0xff]  ;;  %5743 = vmatprep.subr.bf16.mxu0 %v7514_v1  ;;  %v7641_v8 = vcombine.low %v774_v61, %v778_v62 }
  0xc9   :  { %v642_v4 = vld [vmem:[#allocation5 + $0x10e0] sm:$0xff]  ;;  %5744 = vmatpush1.bf16.msra.mxu0 %v7513_v7 }
  0xca   :  { %v766_v5 = vld [vmem:[#allocation5 + $0x14c0] sm:$0xff]  ;;  %v7506_v9 = vcombine.high %v638_v3, %v642_v4  ;;  %5784 = vmatprep.subr.bf16.mxu1 %v7642_v2  ;;  %v7505_v15 = vcombine.low %v638_v3, %v642_v4 }
  0xcb   :  { %v770_v6 = vld [vmem:[#allocation5 + $0x14e0] sm:$0xff]  ;;  %5785 = vmatpush1.bf16.msra.mxu1 %v7641_v8 }
  0xcc   :  { %v7634_v10 = vcombine.high %v766_v5, %v770_v6  ;;  %v630_v11 = vld [vmem:[#allocation5 + $0x1080] sm:$0xff]  ;;  %5745 = vmatprep.subr.bf16.mxu0 %v7506_v9  ;;  %v7633_v16 = vcombine.low %v766_v5, %v770_v6 }
  0xcd   :  { %v634_v12 = vld [vmem:[#allocation5 + $0x10a0] sm:$0xff]  ;;  %5746 = vmatpush1.bf16.msra.mxu0 %v7505_v15 }
  0xce   :  { %v758_v13 = vld [vmem:[#allocation5 + $0x1480] sm:$0xff]  ;;  %v7498_v18 = vcombine.high %v630_v11, %v634_v12  ;;  %5786 = vmatprep.subr.bf16.mxu1 %v7634_v10  ;;  %v7497_v25 = vcombine.low %v630_v11, %v634_v12 }
  0xcf   :  { %v762_v14 = vld [vmem:[#allocation5 + $0x14a0] sm:$0xff]  ;;  %5787 = vmatpush1.bf16.msra.mxu1 %v7633_v16 }
  0xd0   :  { %v7626_v19 = vcombine.high %v758_v13, %v762_v14  ;;  %v622_v20 = vld [vmem:[#allocation5 + $0x1040] sm:$0xff]  ;;  %5747 = vmatprep.subr.bf16.mxu0 %v7498_v18  ;;  %v7625_v26 = vcombine.low %v758_v13, %v762_v14 }
  0xd1   :  { %v626_v22 = vld [vmem:[#allocation5 + $0x1060] sm:$0xff]  ;;  %5748 = vmatpush1.bf16.msra.mxu0 %v7497_v25 }
  0xd2   :  { %v750_v23 = vld [vmem:[#allocation5 + $0x1440] sm:$0xff]  ;;  %v7490_v27 = vcombine.high %v622_v20, %v626_v22  ;;  %5788 = vmatprep.subr.bf16.mxu1 %v7626_v19  ;;  %v7489_v35 = vcombine.low %v622_v20, %v626_v22 }
  0xd3   :  { %v754_v24 = vld [vmem:[#allocation5 + $0x1460] sm:$0xff]  ;;  %5789 = vmatpush1.bf16.msra.mxu1 %v7625_v26 }
  0xd4   :  { %v7618_v28 = vcombine.high %v750_v23, %v754_v24  ;;  %v614_v30 = vld [vmem:[#allocation5 + $0x1000] sm:$0xff]  ;;  %5749 = vmatprep.subr.bf16.mxu0 %v7490_v27  ;;  %v7617_v36 = vcombine.low %v750_v23, %v754_v24 }
  0xd5   :  { %v618_v31 = vld [vmem:[#allocation5 + $0x1020] sm:$0xff]  ;;  %5750 = vmatpush1.bf16.msra.mxu0 %v7489_v35 }
  0xd6   :  { %v742_v33 = vld [vmem:[#allocation5 + $0x1400] sm:$0xff]  ;;  %v7482_v38 = vcombine.high %v614_v30, %v618_v31  ;;  %5790 = vmatprep.subr.bf16.mxu1 %v7618_v28  ;;  %v7481_v45 = vcombine.low %v614_v30, %v618_v31 }
  0xd7   :  { %v746_v34 = vld [vmem:[#allocation5 + $0x1420] sm:$0xff]  ;;  %5791 = vmatpush1.bf16.msra.mxu1 %v7617_v36 }
  0xd8   :  { %v7610_v39 = vcombine.high %v742_v33, %v746_v34  ;;  %v734_v40 = vld [vmem:[#allocation5 + $0x13c0] sm:$0xff]  ;;  %5751 = vmatprep.subr.bf16.mxu0 %v7482_v38  ;;  %v7609_v46 = vcombine.low %v742_v33, %v746_v34 }
  0xd9   :  { %v738_v42 = vld [vmem:[#allocation5 + $0x13e0] sm:$0xff]  ;;  %5752 = vmatpush1.bf16.msra.mxu0 %v7481_v45 }
  0xda   :  { %v862_v43 = vld [vmem:[#allocation5 + $0x17c0] sm:$0xff]  ;;  %v7602_v47 = vcombine.high %v734_v40, %v738_v42  ;;  %5792 = vmatprep.subr.bf16.mxu1 %v7610_v39  ;;  %v7601_v55 = vcombine.low %v734_v40, %v738_v42 }
  0xdb   :  { %v866_v44 = vld [vmem:[#allocation5 + $0x17e0] sm:$0xff]  ;;  %5793 = vmatpush1.bf16.msra.mxu1 %v7609_v46 }
  0xdc   :  { %v7730_v48 = vcombine.high %v862_v43, %v866_v44  ;;  %v726_v50 = vld [vmem:[#allocation5 + $0x1380] sm:$0xff]  ;;  %5753 = vmatprep.subr.bf16.mxu0 %v7602_v47  ;;  %v7729_v56 = vcombine.low %v862_v43, %v866_v44 }
  0xdd   :  { %v730_v51 = vld [vmem:[#allocation5 + $0x13a0] sm:$0xff]  ;;  %5754 = vmatpush2.bf16.msra.mxu0 %v7601_v55 }
  0xde   :  { %v854_v53 = vld [vmem:[#allocation5 + $0x1780] sm:$0xff]  ;;  %v7594_v57 = vcombine.high %v726_v50, %v730_v51  ;;  %5794 = vmatprep.subr.bf16.mxu1 %v7730_v48  ;;  %v7593_v1 = vcombine.low %v726_v50, %v730_v51 }
  0xdf   :  { %v858_v54 = vld [vmem:[#allocation5 + $0x17a0] sm:$0xff]  ;;  %5795 = vmatpush2.bf16.msra.mxu1 %v7729_v56 }
  0xe0   :  { %v7722_v58 = vcombine.high %v854_v53, %v858_v54  ;;  %v718_v61 = vld [vmem:[#allocation5 + $0x1340] sm:$0xff]  ;;  %5755 = vmatprep.subr.bf16.mxu0 %v7594_v57  ;;  %v7721_v2 = vcombine.low %v854_v53, %v858_v54  ;;  %v80_v57 = vld [vmem:[#allocation3 + $0x40] sm:$0xff] }
  0xe1   :  { %v722_v62 = vld [vmem:[#allocation5 + $0x1360] sm:$0xff]  ;;  %5756 = vmatpush2.bf16.msra.mxu0 %v7593_v1 }
  0xe2   :  { %v846_v63 = vld [vmem:[#allocation5 + $0x1740] sm:$0xff]  ;;  %v7586_v3 = vcombine.high %v718_v61, %v722_v62  ;;  %5796 = vmatprep.subr.bf16.mxu1 %v7722_v58  ;;  %v7585_v9 = vcombine.low %v718_v61, %v722_v62  ;;  %v82_v61 = vld [vmem:[#allocation3 + $0x50] sm:$0xff] }
  0xe3   :  { %v850_v0 = vld [vmem:[#allocation5 + $0x1760] sm:$0xff]  ;;  %5797 = vmatpush2.bf16.msra.mxu1 %v7721_v2 }
  0xe4   :  { %v7714_v4 = vcombine.high %v846_v63, %v850_v0  ;;  %v710_v5 = vld [vmem:[#allocation5 + $0x1300] sm:$0xff]  ;;  %5757 = vmatprep.subr.bf16.mxu0 %v7586_v3  ;;  %v7713_v10 = vcombine.low %v846_v63, %v850_v0  ;;  %v8070_v3 = vpack.c.bf16 %v80_v57, %v80_v57 }
  0xe5   :  { %v714_v6 = vld [vmem:[#allocation5 + $0x1320] sm:$0xff]  ;;  %5758 = vmatpush2.bf16.msra.mxu0 %v7585_v9 }
  0xe6   :  { %v838_v7 = vld [vmem:[#allocation5 + $0x1700] sm:$0xff]  ;;  %v7578_v11 = vcombine.high %v710_v5, %v714_v6  ;;  %5798 = vmatprep.subr.bf16.mxu1 %v7714_v4  ;;  %v7577_v18 = vcombine.low %v710_v5, %v714_v6  ;;  %v159_v4 = vld [vmem:[#allocation5 + $0x1c8] sm:$0xff]  ;;  %v8072_v6 = vpack.c.bf16 %v82_v61, %v82_v61 }
  0xe7   :  { %v842_v8 = vld [vmem:[#allocation5 + $0x1720] sm:$0xff]  ;;  %5799 = vmatpush2.bf16.msra.mxu1 %v7713_v10  ;;  %v163_v5 = vld [vmem:[#allocation5 + $0x1e8] sm:$0xff] }
  0xe8   :  { %v7706_v12 = vcombine.high %v838_v7, %v842_v8  ;;  %v702_v13 = vld [vmem:[#allocation5 + $0x12c0] sm:$0xff]  ;;  %5759 = vmatprep.subr.bf16.mxu0 %v7578_v11  ;;  %v7705_v19 = vcombine.low %v838_v7, %v842_v8  ;;  %v85_v8 = vld [vmem:[#allocation3 + $0x68] sm:$0xff]  ;;  %v7028_v11 = vcombine.high %v159_v4, %v163_v5 }
  0xe9   :  { %v706_v14 = vld [vmem:[#allocation5 + $0x12e0] sm:$0xff]  ;;  %5760 = vmatpush2.bf16.msra.mxu0 %v7577_v18  ;;  %v86_v18 = vld [vmem:[#allocation3 + $0x70] sm:$0xff] }
  0xea   :  { %v830_v15 = vld [vmem:[#allocation5 + $0x16c0] sm:$0xff]  ;;  %v7570_v20 = vcombine.high %v702_v13, %v706_v14  ;;  %5800 = vmatprep.subr.bf16.mxu1 %v7706_v12  ;;  %v7569_v27 = vcombine.low %v702_v13, %v706_v14  ;;  %v8077_v14 = vpack.c.bf16 %v85_v8, %v85_v8 }
  0xeb   :  { %v834_v16 = vld [vmem:[#allocation5 + $0x16e0] sm:$0xff]  ;;  %5801 = vmatpush2.bf16.msra.mxu1 %v7705_v19  ;;  %v7994_v19 = vmov 0  }
  0xec   :  { %v7698_v22 = vcombine.high %v830_v15, %v834_v16  ;;  %v694_v23 = vld [vmem:[#allocation5 + $0x1280] sm:$0xff]  ;;  %5761 = vmatprep.subr.bf16.mxu0 %v7570_v20  ;;  %v7697_v28 = vcombine.low %v830_v15, %v834_v16 }
  0xed   :  { %v698_v24 = vld [vmem:[#allocation5 + $0x12a0] sm:$0xff]  ;;  %5762 = vmatpush2.bf16.msra.mxu0 %v7569_v27  ;;  %v7027_v27 = vcombine.low %v159_v4, %v163_v5 }
  0xee   :  { %v822_v25 = vld [vmem:[#allocation5 + $0x1680] sm:$0xff]  ;;  %v7562_v30 = vcombine.high %v694_v23, %v698_v24  ;;  %5802 = vmatprep.subr.bf16.mxu1 %v7698_v22  ;;  %v7561_v38 = vcombine.low %v694_v23, %v698_v24  ;;  %v151_v23 = vld [vmem:[#allocation5 + $0x188] sm:$0xff] }
  0xef   :  { %v826_v26 = vld [vmem:[#allocation5 + $0x16a0] sm:$0xff]  ;;  %5803 = vmatpush2.bf16.msra.mxu1 %v7697_v28  ;;  %v155_v24 = vld [vmem:[#allocation5 + $0x1a8] sm:$0xff] }
  0xf0   :  { %v7690_v31 = vcombine.high %v822_v25, %v826_v26  ;;  %v686_v33 = vld [vmem:[#allocation5 + $0x1240] sm:$0xff]  ;;  %5763 = vmatprep.subr.bf16.mxu0 %v7562_v30  ;;  %v7689_v39 = vcombine.low %v822_v25, %v826_v26  ;;  %v8082_v26 = vpack.c.bf16 %v86_v18, %v86_v18  ;;  %v7020_v30 = vcombine.high %v151_v23, %v155_v24 }
  0xf1   :  { %v690_v34 = vld [vmem:[#allocation5 + $0x1260] sm:$0xff]  ;;  %5764 = vmatpush2.bf16.msra.mxu0 %v7561_v38  ;;  %v7019_v38 = vcombine.low %v151_v23, %v155_v24  ;;  %v107_v23 = vld [vmem:[#allocation5 + $0x28] sm:$0xff] }
  0xf2   :  { %v814_v35 = vld [vmem:[#allocation5 + $0x1640] sm:$0xff]  ;;  %v7554_v40 = vcombine.high %v686_v33, %v690_v34  ;;  %5804 = vmatprep.subr.bf16.mxu1 %v7690_v31  ;;  %v7553_v47 = vcombine.low %v686_v33, %v690_v34  ;;  %v143_v34 = vld [vmem:[#allocation5 + $0x148] sm:$0xff] }
  0xf3   :  { %v818_v36 = vld [vmem:[#allocation5 + $0x1660] sm:$0xff]  ;;  %5805 = vmatpush2.bf16.msra.mxu1 %v7689_v39 }
  0xf4   :  { %v7682_v42 = vcombine.high %v814_v35, %v818_v36  ;;  %v678_v43 = vld [vmem:[#allocation5 + $0x1200] sm:$0xff]  ;;  %5765 = vmatprep.subr.bf16.mxu0 %v7554_v40  ;;  %v7681_v48 = vcombine.low %v814_v35, %v818_v36  ;;  %v147_v35 = vld [vmem:[#allocation5 + $0x168] sm:$0xff] }
  0xf5   :  { %v682_v44 = vld [vmem:[#allocation5 + $0x1220] sm:$0xff]  ;;  %5766 = vmatpush2.bf16.msra.mxu0 %v7553_v47  ;;  %v7012_v40 = vcombine.high %v143_v34, %v147_v35  ;;  %v7011_v47 = vcombine.low %v143_v34, %v147_v35  ;;  %v227_v34 = vld [vmem:[#allocation5 + $0x3e8] sm:$0xff] }
  0xf6   :  { %v806_v45 = vld [vmem:[#allocation5 + $0x1600] sm:$0xff]  ;;  %v7546_v50 = vcombine.high %v678_v43, %v682_v44  ;;  %5806 = vmatprep.subr.bf16.mxu1 %v7682_v42  ;;  %v7545_v56 = vcombine.low %v678_v43, %v682_v44  ;;  %v135_v44 = vld [vmem:[#allocation5 + $0x108] sm:$0xff] }
  0xf7   :  { %v810_v46 = vld [vmem:[#allocation5 + $0x1620] sm:$0xff]  ;;  %5807 = vmatpush2.bf16.msra.mxu1 %v7681_v48 }
  0xf8   :  { %v7674_v51 = vcombine.high %v806_v45, %v810_v46  ;;  %v926_v53 = vld [vmem:[#allocation5 + $0x19c0] sm:$0xff]  ;;  %5767 = vmatprep.subr.bf16.mxu0 %v7546_v50  ;;  %v7673_v58 = vcombine.low %v806_v45, %v810_v46  ;;  %v139_v45 = vld [vmem:[#allocation5 + $0x128] sm:$0xff] }
  0xf9   :  { %v930_v54 = vld [vmem:[#allocation5 + $0x19e0] sm:$0xff]  ;;  %5768 = vmatpush2.bf16.msra.mxu0 %v7545_v56  ;;  %v7004_v50 = vcombine.high %v135_v44, %v139_v45  ;;  %v7003_v57 = vcombine.low %v135_v44, %v139_v45  ;;  %v219_v44 = vld [vmem:[#allocation5 + $0x3a8] sm:$0xff] }
  0xfa   :  { %v998_v55 = vld [vmem:[#allocation5 + $0x1c00] sm:$0xff]  ;;  %v7794_v62 = vcombine.high %v926_v53, %v930_v54  ;;  %5808 = vmatprep.subr.bf16.mxu1 %v7674_v51  ;;  %v7793_v7 = vcombine.low %v926_v53, %v930_v54  ;;  %v127_v54 = vld [vmem:[#allocation5 + $0xc8] sm:$0xff] }
  0xfb   :  { %v7866_v63 = vcombine.high %v998_v55, %v998_v55  ;;  %v7865_v0 = vcombine.low %v998_v55, %v998_v55  ;;  %v918_v1 = vld [vmem:[#allocation5 + $0x1980] sm:$0xff]  ;;  %5809 = vmatpush2.bf16.msra.mxu1 %v7673_v58  ;;  %v131_v55 = vld [vmem:[#allocation5 + $0xe8] sm:$0xff] }
  0xfc   :  { %v922_v2 = vld [vmem:[#allocation5 + $0x19a0] sm:$0xff]  ;;  %5819 = vmatprep.subr.bf16.mxu0 %v7794_v62  ;;  %5770 = vmatmul.mubr.bf16.vlgmr.msra.gmra.mxu0 %v8070_v3  ;;  %v6996_v61 = vcombine.high %v127_v54, %v131_v55  ;;  %v6995_v4 = vcombine.low %v127_v54, %v131_v55  ;;  %v211_v54 = vld [vmem:[#allocation5 + $0x368] sm:$0xff] }
  0xfd   :  { %v7786_v9 = vcombine.high %v918_v1, %v922_v2  ;;  %7873 = vmatprep.subr.msk.bf16.mxu1 %vm5548_vm0, %v7866_v63  ;;  %v5550_v10 = vsel %vm5548_vm0, %v7865_v0, 0  ;;  %v910_v12 = vld [vmem:[#allocation5 + $0x1940] sm:$0xff]  ;;  %5820 = vmatpush1.bf16.msra.mxu0 %v7793_v7  ;;  %v7785_v15 = vcombine.low %v918_v1, %v922_v2  ;;  %v119_v0 = vld [vmem:[#allocation5 + $0x88] sm:$0xff] }
  0xfe   :  { %v914_v13 = vld [vmem:[#allocation5 + $0x1960] sm:$0xff]  ;;  %5811 = vmatmul.mubr.bf16.vlgmr.msra.gmra.mxu1 %v8072_v6  ;;  %5851 = vmatprep.mubr.bf16.mxu0 %v8077_v14  ;;  %v123_v1 = vld [vmem:[#allocation5 + $0xa8] sm:$0xff] }
  0xff   :  { %5875 = vmatpush1.bf16.msra.mxu1 %v5550_v10  ;;  %5821 = vmatprep.subr.bf16.mxu0 %v7786_v9  ;;  %v7778_v16 = vcombine.high %v910_v12, %v914_v13  ;;  %v902_v20 = vld [vmem:[#allocation5 + $0x1900] sm:$0xff]  ;;  %v7777_v25 = vcombine.low %v910_v12, %v914_v13  ;;  %v6988_v7 = vcombine.high %v119_v0, %v123_v1  ;;  %v111_v10 = vld [vmem:[#allocation5 + $0x48] sm:$0xff] }
 0x100   :  { %5892 = vmatprep.mubr.bf16.mxu1 %v7994_v19  ;;  %5901 = vmatprep.subr.bf16.mxu1 %v7028_v11  ;;  %v906_v22 = vld [vmem:[#allocation5 + $0x1920] sm:$0xff]  ;;  %v115_v11 = vld [vmem:[#allocation5 + $0x68] sm:$0xff]  ;;  %v6987_v13 = vcombine.low %v119_v0, %v123_v1 }
 0x101   :  { %5822 = vmatpush1.bf16.msra.mxu0 %v7785_v15  ;;  %v7770_v28 = vcombine.high %v902_v20, %v906_v22  ;;  %v894_v31 = vld [vmem:[#allocation5 + $0x18c0] sm:$0xff]  ;;  %v7769_v36 = vcombine.low %v902_v20, %v906_v22  ;;  %v103_v22 = vld [vmem:[#allocation5 + $0x8] sm:$0xff] }
 0x102   :  { %5823 = vmatprep.subr.bf16.mxu0 %v7778_v16  ;;  %v898_v33 = vld [vmem:[#allocation5 + $0x18e0] sm:$0xff]  ;;  %v6980_v16 = vcombine.high %v111_v10, %v115_v11  ;;  %v203_v0 = vld [vmem:[#allocation5 + $0x328] sm:$0xff] }
 0x103   :  { %v7762_v39 = vcombine.high %v894_v31, %v898_v33  ;;  %v886_v42 = vld [vmem:[#allocation5 + $0x1880] sm:$0xff]  ;;  %v7761_v46 = vcombine.low %v894_v31, %v898_v33  ;;  %v223_v33 = vld [vmem:[#allocation5 + $0x3c8] sm:$0xff] }
 0x104   :  { %v890_v43 = vld [vmem:[#allocation5 + $0x18a0] sm:$0xff] }
 0x105   :  { %5824 = vmatpush1.bf16.msra.mxu0 %v7777_v25  ;;  %v7754_v48 = vcombine.high %v886_v42, %v890_v43  ;;  %v878_v51 = vld [vmem:[#allocation5 + $0x1840] sm:$0xff]  ;;  %v7753_v56 = vcombine.low %v886_v42, %v890_v43  ;;  %v6979_v25 = vcombine.low %v111_v10, %v115_v11  ;;  %v215_v43 = vld [vmem:[#allocation5 + $0x388] sm:$0xff] }
 0x106   :  { %7874 = vmatmul.mubr.msk.bf16.vlgmr.msra.gmra.mxu1 %vm5544_vm1, %v8082_v26  ;;  %5825 = vmatprep.subr.bf16.mxu0 %v7770_v28  ;;  %v882_v53 = vld [vmem:[#allocation5 + $0x1860] sm:$0xff]  ;;  %v6972_v28 = vcombine.high %v103_v22, %v107_v23  ;;  %v195_v10 = vld [vmem:[#allocation5 + $0x2e8] sm:$0xff] }
 0x107   :  { %5902 = vmatpush1.bf16.msra.mxu1 %v7027_v27  ;;  %5933 = vmatprep.mubr.bf16.mxu1 %v8040_v59  ;;  %v7746_v58 = vcombine.high %v878_v51, %v882_v53  ;;  %v870_v62 = vld [vmem:[#allocation5 + $0x1800] sm:$0xff]  ;;  %v7745_v2 = vcombine.low %v878_v51, %v882_v53  ;;  %v207_v53 = vld [vmem:[#allocation5 + $0x348] sm:$0xff] }
 0x108   :  { %5903 = vmatprep.subr.bf16.mxu1 %v7020_v30  ;;  %v874_v63 = vld [vmem:[#allocation5 + $0x1820] sm:$0xff] }
 0x109   :  { %5826 = vmatpush1.bf16.msra.mxu0 %v7769_v36  ;;  %v7738_v5 = vcombine.high %v870_v62, %v874_v63  ;;  %v990_v8 = vld [vmem:[#allocation5 + $0x1bc0] sm:$0xff]  ;;  %v7737_v12 = vcombine.low %v870_v62, %v874_v63  ;;  %v6971_v36 = vcombine.low %v103_v22, %v107_v23  ;;  %v199_v63 = vld [vmem:[#allocation5 + $0x308] sm:$0xff] }
 0x10a   :  { %5827 = vmatprep.subr.bf16.mxu0 %v7762_v39  ;;  %v994_v9 = vld [vmem:[#allocation5 + $0x1be0] sm:$0xff]  ;;  %v7092_v39 = vcombine.high %v223_v33, %v227_v34  ;;  %v183_v22 = vld [vmem:[#allocation5 + $0x288] sm:$0xff] }
 0x10b   :  { %5904 = vmatpush1.bf16.msra.mxu1 %v7019_v38  ;;  %v7858_v15 = vcombine.high %v990_v8, %v994_v9  ;;  %v982_v18 = vld [vmem:[#allocation5 + $0x1b80] sm:$0xff]  ;;  %v7857_v24 = vcombine.low %v990_v8, %v994_v9  ;;  %v191_v9 = vld [vmem:[#allocation5 + $0x2c8] sm:$0xff] }
 0x10c   :  { %5905 = vmatprep.subr.bf16.mxu1 %v7012_v40  ;;  %v986_v20 = vld [vmem:[#allocation5 + $0x1ba0] sm:$0xff]  ;;  %v187_v23 = vld [vmem:[#allocation5 + $0x2a8] sm:$0xff] }
 0x10d   :  { %5828 = vmatpush1.bf16.msra.mxu0 %v7761_v46  ;;  %v7850_v27 = vcombine.high %v982_v18, %v986_v20  ;;  %v974_v30 = vld [vmem:[#allocation5 + $0x1b40] sm:$0xff]  ;;  %v7849_v35 = vcombine.low %v982_v18, %v986_v20  ;;  %v7091_v46 = vcombine.low %v223_v33, %v227_v34  ;;  %v291_v33 = vld [vmem:[#allocation5 + $0x5e8] sm:$0xff] }
 0x10e   :  { %5829 = vmatprep.subr.bf16.mxu0 %v7754_v48  ;;  %v978_v31 = vld [vmem:[#allocation5 + $0x1b60] sm:$0xff]  ;;  %v7084_v48 = vcombine.high %v215_v43, %v219_v44  ;;  %v175_v34 = vld [vmem:[#allocation5 + $0x248] sm:$0xff] }
 0x10f   :  { %5906 = vmatpush1.bf16.msra.mxu1 %v7011_v47  ;;  %v7842_v38 = vcombine.high %v974_v30, %v978_v31  ;;  %v966_v40 = vld [vmem:[#allocation5 + $0x1b00] sm:$0xff]  ;;  %v7841_v45 = vcombine.low %v974_v30, %v978_v31  ;;  %v7052_v30 = vcombine.high %v183_v22, %v187_v23  ;;  %v287_v31 = vld [vmem:[#allocation5 + $0x5c8] sm:$0xff] }
 0x110   :  { %5907 = vmatprep.subr.bf16.mxu1 %v7004_v50  ;;  %v970_v42 = vld [vmem:[#allocation5 + $0x1b20] sm:$0xff] }
 0x111   :  { %5830 = vmatpush1.bf16.msra.mxu0 %v7753_v56  ;;  %v7834_v47 = vcombine.high %v966_v40, %v970_v42  ;;  %v958_v50 = vld [vmem:[#allocation5 + $0x1ac0] sm:$0xff]  ;;  %v7833_v55 = vcombine.low %v966_v40, %v970_v42  ;;  %v7083_v56 = vcombine.low %v215_v43, %v219_v44  ;;  %v7051_v40 = vcombine.low %v183_v22, %v187_v23  ;;  %v411_v22 = vld [vmem:[#allocation5 + $0x9a8] sm:$0xff] }
 0x112   :  { %5831 = vmatprep.subr.bf16.mxu0 %v7746_v58  ;;  %v962_v51 = vld [vmem:[#allocation5 + $0x1ae0] sm:$0xff]  ;;  %v7076_v58 = vcombine.high %v207_v53, %v211_v54  ;;  %v7156_v43 = vcombine.high %v287_v31, %v291_v33 }
 0x113   :  { %5908 = vmatpush1.bf16.msra.mxu1 %v7003_v57  ;;  %v7826_v57 = vcombine.high %v958_v50, %v962_v51  ;;  %v954_v62 = vld [vmem:[#allocation5 + $0x1aa0] sm:$0xff]  ;;  %v7825_v1 = vcombine.low %v958_v50, %v962_v51  ;;  %v167_v50 = vld [vmem:[#allocation5 + $0x208] sm:$0xff] }
 0x114   :  { %5909 = vmatprep.subr.bf16.mxu1 %v6996_v61  ;;  %v950_v61 = vld [vmem:[#allocation5 + $0x1a80] sm:$0xff]  ;;  %v171_v51 = vld [vmem:[#allocation5 + $0x228] sm:$0xff] }
 0x115   :  { %5832 = vmatpush1.bf16.msra.mxu0 %v7745_v2  ;;  %v7075_v2 = vcombine.low %v207_v53, %v211_v54  ;;  %v946_v8 = vld [vmem:[#allocation5 + $0x1a60] sm:$0xff]  ;;  %v7817_v11 = vcombine.low %v950_v61, %v954_v62  ;;  %v7155_v54 = vcombine.low %v287_v31, %v291_v33 }
 0x116   :  { %5833 = vmatprep.subr.bf16.mxu0 %v7738_v5  ;;  %v7068_v5 = vcombine.high %v199_v63, %v203_v0  ;;  %v934_v18 = vld [vmem:[#allocation5 + $0x1a00] sm:$0xff] }
 0x117   :  { %5910 = vmatpush1.bf16.msra.mxu1 %v6995_v4  ;;  %v7818_v4 = vcombine.high %v950_v61, %v954_v62  ;;  %v938_v20 = vld [vmem:[#allocation5 + $0x1a20] sm:$0xff]  ;;  %v271_v61 = vld [vmem:[#allocation5 + $0x548] sm:$0xff] }
 0x118   :  { %5911 = vmatprep.subr.bf16.mxu1 %v6988_v7  ;;  %v942_v7 = vld [vmem:[#allocation5 + $0x1a40] sm:$0xff]  ;;  %v275_v62 = vld [vmem:[#allocation5 + $0x568] sm:$0xff] }
 0x119   :  { %5834 = vmatpush1.bf16.msra.mxu0 %v7737_v12  ;;  %v1004_v12 = vlaneseq  ;;  %v1002_v42 = vld [vmem:[#allocation7] sm:$0xff] }
 0x11a   :  { %5835 = vmatprep.subr.bf16.mxu0 %v7858_v15  ;;  %v7810_v15 = vcombine.high %v942_v7, %v946_v8 }
 0x11b   :  { %5912 = vmatpush1.bf16.msra.mxu1 %v6987_v13  ;;  %v7067_v13 = vcombine.low %v199_v63, %v203_v0  ;;  %v415_v0 = vld [vmem:[#allocation5 + $0x9c8] sm:$0xff] }
 0x11c   :  { %5913 = vmatprep.subr.bf16.mxu1 %v6980_v16  ;;  %v7060_v16 = vcombine.high %v191_v9, %v195_v10 }
 0x11d   :  { %5836 = vmatpush2.bf16.msra.mxu0 %v7857_v24  ;;  %v7809_v24 = vcombine.low %v942_v7, %v946_v8  ;;  %v7035_v8 = vcombine.low %v167_v50, %v171_v51 }
 0x11e   :  { %5837 = vmatprep.subr.bf16.mxu0 %v7850_v27  ;;  %v7059_v27 = vcombine.low %v191_v9, %v195_v10  ;;  %v7140_v9 = vcombine.high %v271_v61, %v275_v62 }
 0x11f   :  { %5914 = vmatpush1.bf16.msra.mxu1 %v6979_v25  ;;  %v8087_v25 = vshrl.u32 %v1004_v12, 7 }
 0x120   :  { %5915 = vmatprep.subr.bf16.mxu1 %v6972_v28  ;;  %v7802_v28 = vcombine.high %v934_v18, %v938_v20 }
 0x121   :  { %5838 = vmatpush2.bf16.msra.mxu0 %v7849_v35  ;;  %v179_v35 = vld [vmem:[#allocation5 + $0x268] sm:$0xff] }
 0x122   :  { %5839 = vmatprep.subr.bf16.mxu0 %v7842_v38  ;;  %v1006_v38 = vsub.s32 0, %v8087_v25  ;;  %v7044_v44 = vcombine.high %v175_v34, %v179_v35 }
 0x123   :  { %5916 = vmatpush1.bf16.msra.mxu1 %v6971_v36  ;;  %v7801_v36 = vcombine.low %v934_v18, %v938_v20  ;;  %v407_v20 = vld [vmem:[#allocation5 + $0x988] sm:$0xff] }
 0x124   :  { %5917 = vmatprep.subr.bf16.mxu1 %v7092_v39  ;;  %v84_v39 = vld [vmem:[#allocation3 + $0x60] sm:$0xff]  ;;  %v1007_v53 = vrot.slane %v1002_v42, %v1006_v38 }
 0x125   :  { %5840 = vmatpush2.bf16.msra.mxu0 %v7841_v45  ;;  %v1010_v45 = vsub.s32 1, %v8087_v25 }
 0x126   :  { %5841 = vmatprep.subr.bf16.mxu0 %v7834_v47  ;;  %v283_v47 = vld [vmem:[#allocation5 + $0x5a8] sm:$0xff] }
 0x127   :  { %5918 = vmatpush2.bf16.msra.mxu1 %v7091_v46  ;;  %v279_v46 = vld [vmem:[#allocation5 + $0x588] sm:$0xff] }
 0x128   :  { %5919 = vmatprep.subr.bf16.mxu1 %v7084_v48  ;;  %v8091_v48 = vpack.c.bf16 %v84_v39, %v84_v39  ;;  %v399_v39 = vld [vmem:[#allocation5 + $0x948] sm:$0xff] }
 0x129   :  { %5842 = vmatpush2.bf16.msra.mxu0 %v7833_v55  ;;  %v7043_v55 = vcombine.low %v175_v34, %v179_v35  ;;  %v7276_v34 = vcombine.high %v407_v20, %v411_v22  ;;  %v255_v35 = vld [vmem:[#allocation5 + $0x4c8] sm:$0xff] }
 0x12a   :  { %5843 = vmatprep.subr.bf16.mxu0 %v7826_v57  ;;  %v1011_v57 = vrot.slane %v1002_v42, %v1010_v45 }
 0x12b   :  { %5920 = vmatpush2.bf16.msra.mxu1 %v7083_v56  ;;  %v7148_v56 = vcombine.high %v279_v46, %v283_v47 }
 0x12c   :  { %5921 = vmatprep.subr.bf16.mxu1 %v7076_v58  ;;  %v7036_v58 = vcombine.high %v167_v50, %v171_v51  ;;  %v251_v50 = vld [vmem:[#allocation5 + $0x4a8] sm:$0xff] }
 0x12d   :  { %5844 = vmatpush2.bf16.msra.mxu0 %v7825_v1  ;;  %v419_v1 = vld [vmem:[#allocation5 + $0x9e8] sm:$0xff] }
 0x12e   :  { %5845 = vmatprep.subr.bf16.mxu0 %v7818_v4  ;;  %v391_v51 = vld [vmem:[#allocation5 + $0x908] sm:$0xff] }
 0x12f   :  { %5922 = vmatpush2.bf16.msra.mxu1 %v7075_v2 }
 0x130   :  { %5923 = vmatprep.subr.bf16.mxu1 %v7068_v5  ;;  %v7147_v5 = vcombine.low %v279_v46, %v283_v47  ;;  %v247_v47 = vld [vmem:[#allocation5 + $0x488] sm:$0xff] }
 0x131   :  { %5846 = vmatpush2.bf16.msra.mxu0 %v7817_v11 }
 0x132   :  { %5847 = vmatprep.subr.bf16.mxu0 %v7810_v15  ;;  %v263_v15 = vld [vmem:[#allocation5 + $0x508] sm:$0xff] }
 0x133   :  { %5924 = vmatpush2.bf16.msra.mxu1 %v7067_v13  ;;  %v7284_v13 = vcombine.high %v415_v0, %v419_v1 }
 0x134   :  { %5925 = vmatprep.subr.bf16.mxu1 %v7060_v16  ;;  %v267_v16 = vld [vmem:[#allocation5 + $0x528] sm:$0xff] }
 0x135   :  { %5848 = vmatpush2.bf16.msra.mxu0 %v7809_v24  ;;  %v7132_v31 = vcombine.high %v263_v15, %v267_v16  ;;  %v7131_v42 = vcombine.low %v263_v15, %v267_v16  ;;  %v351_v16 = vld [vmem:[#allocation5 + $0x7c8] sm:$0xff] }
 0x136   :  { %5849 = vmatprep.subr.bf16.mxu0 %v7802_v28 }
 0x137   :  { %5926 = vmatpush2.bf16.msra.mxu1 %v7059_v27  ;;  %v7139_v27 = vcombine.low %v271_v61, %v275_v62  ;;  %v243_v61 = vld [vmem:[#allocation5 + $0x468] sm:$0xff] }
 0x138   :  { %5927 = vmatprep.subr.bf16.mxu1 %v7052_v30  ;;  %v7283_v30 = vcombine.low %v415_v0, %v419_v1  ;;  %v383_v62 = vld [vmem:[#allocation5 + $0x8c8] sm:$0xff]  ;;  %v7115_v0 = vcombine.low %v247_v47, %v251_v50 }
 0x139   :  { %5850 = vmatpush2.bf16.msra.mxu0 %v7801_v36  ;;  %v259_v36 = vld [vmem:[#allocation5 + $0x4e8] sm:$0xff] }
 0x13a   :  { %5942 = vmatprep.subr.bf16.mxu0 %v7156_v43  ;;  %v5607_v63 = vpop.f32.mrf.mxu0  ;;  %v7275_v43 = vcombine.low %v407_v20, %v411_v22  ;;  %v367_v20 = vld [vmem:[#allocation5 + $0x848] sm:$0xff] }
 0x13b   :  { %5928 = vmatpush2.bf16.msra.mxu1 %v7051_v40  ;;  %v5608_v2 = vadd.f32 %v5607_v63, %v1007_v53  ;;  %v403_v40 = vld [vmem:[#allocation5 + $0x968] sm:$0xff] }
 0x13c   :  { %5929 = vmatprep.subr.bf16.mxu1 %v7044_v44  ;;  %5852 = vmatmul.mubr.bf16.vlgmr.msra.gmra.mxu0 %v8091_v48  ;;  %v5648_v4 = vpop.f32.mrf.mxu1  ;;  %v5609_v7 = vpop.f32.mrf.mxu0  ;;  %v7124_v44 = vcombine.high %v255_v35, %v259_v36  ;;  %v7268_v46 = vcombine.high %v399_v39, %v403_v40  ;;  %v395_v53 = vld [vmem:[#allocation5 + $0x928] sm:$0xff] }
 0x13d   :  { %5943 = vmatpush1.bf16.msra.mxu0 %v7155_v54  ;;  %5974 = vmatprep.mubr.bf16.mxu0 %v8042_v60  ;;  %v8099_v10 = vadd.f32 %v5648_v4, %v5608_v2  ;;  %v5610_v11 = vadd.f32 %v5609_v7, %v1011_v57  ;;  %v7123_v54 = vcombine.low %v255_v35, %v259_v36  ;;  %v387_v63 = vld [vmem:[#allocation5 + $0x8e8] sm:$0xff] }
 0x13e   :  { %5944 = vmatprep.subr.bf16.mxu0 %v7148_v56  ;;  %v5650_v12 = vpop.f32.mrf.mxu1  ;;  %v5611_v18 = vpop.f32.mrf.mxu0  ;;  %v7116_v56 = vcombine.high %v247_v47, %v251_v50  ;;  %v7260_v57 = vcombine.high %v391_v51, %v395_v53  ;;  %v7259_v1 = vcombine.low %v391_v51, %v395_v53  ;;  %v7252_v4 = vcombine.high %v383_v62, %v387_v63  ;;  %v235_v7 = vld [vmem:[#allocation5 + $0x428] sm:$0xff] }
 0x13f   :  { %5930 = vmatpush2.bf16.msra.mxu1 %v7043_v55  ;;  %v8101_v23 = vadd.f32 %v5650_v12, %v5610_v11  ;;  %v7267_v55 = vcombine.low %v399_v39, %v403_v40  ;;  %v7251_v12 = vcombine.low %v383_v62, %v387_v63  ;;  %v355_v18 = vld [vmem:[#allocation5 + $0x7e8] sm:$0xff] }
 0x140   :  { %5931 = vmatprep.subr.bf16.mxu1 %v7036_v58  ;;  %v5652_v24 = vpop.f32.mrf.mxu1  ;;  %v5612_v28 = vpop.f32.mrf.mxu0  ;;  %v239_v58 = vld [vmem:[#allocation5 + $0x448] sm:$0xff]  ;;  %v7219_v36 = vcombine.low %v351_v16, %v355_v18 }
 0x141   :  { %5945 = vmatpush1.bf16.msra.mxu0 %v7147_v5  ;;  %v7108_v2 = vcombine.high %v239_v58, %v243_v61  ;;  %v231_v5 = vld [vmem:[#allocation5 + $0x408] sm:$0xff]  ;;  %v7107_v11 = vcombine.low %v239_v58, %v243_v61  ;;  %v7220_v28 = vcombine.high %v351_v16, %v355_v18 }
 0x142   :  { %5946 = vmatprep.subr.bf16.mxu0 %v7140_v9  ;;  %v5653_v33 = vpop.f32.mrf.mxu1  ;;  %v379_v9 = vld [vmem:[#allocation5 + $0x8a8] sm:$0xff]  ;;  %v7099_v24 = vcombine.low %v231_v5, %v235_v7 }
 0x143   :  { %5932 = vmatpush2.bf16.msra.mxu1 %v7035_v8  ;;  %v375_v8 = vld [vmem:[#allocation5 + $0x888] sm:$0xff] }
 0x144   :  { %5983 = vmatprep.subr.bf16.mxu1 %v7284_v13  ;;  %v7100_v13 = vcombine.high %v231_v5, %v235_v7  ;;  %v7244_v15 = vcombine.high %v375_v8, %v379_v9  ;;  %v371_v22 = vld [vmem:[#allocation5 + $0x868] sm:$0xff] }
 0x145   :  { %5947 = vmatpush1.bf16.msra.mxu0 %v7139_v27  ;;  %v7243_v27 = vcombine.low %v375_v8, %v379_v9  ;;  %v347_v33 = vld [vmem:[#allocation5 + $0x7a8] sm:$0xff]  ;;  %v7235_v39 = vcombine.low %v367_v20, %v371_v22 }
 0x146   :  { %5934 = vmatmul.mubr.bf16.vlgmr.msra.gmra.mxu1 %v8046_v17  ;;  %5948 = vmatprep.subr.bf16.mxu0 %v7132_v31  ;;  %v343_v31 = vld [vmem:[#allocation5 + $0x788] sm:$0xff] }
 0x147   :  { %5984 = vmatpush1.bf16.msra.mxu1 %v7283_v30  ;;  %6015 = vmatprep.mubr.bf16.mxu1 %v8050_v29  ;;  %v7236_v30 = vcombine.high %v367_v20, %v371_v22  ;;  %v363_v35 = vld [vmem:[#allocation5 + $0x828] sm:$0xff]  ;;  %v7212_v40 = vcombine.high %v343_v31, %v347_v33  ;;  %v7211_v50 = vcombine.low %v343_v31, %v347_v33 }
 0x148   :  { %5985 = vmatprep.subr.bf16.mxu1 %v7276_v34  ;;  %v359_v34 = vld [vmem:[#allocation5 + $0x808] sm:$0xff] }
 0x149   :  { %5949 = vmatpush1.bf16.msra.mxu0 %v7131_v42  ;;  %v7228_v42 = vcombine.high %v359_v34, %v363_v35  ;;  %v483_v47 = vld [vmem:[#allocation5 + $0xbe8] sm:$0xff]  ;;  %v7227_v51 = vcombine.low %v359_v34, %v363_v35 }
 0x14a   :  { %5950 = vmatprep.subr.bf16.mxu0 %v7124_v44  ;;  %v339_v44 = vld [vmem:[#allocation5 + $0x768] sm:$0xff] }
 0x14b   :  { %5986 = vmatpush1.bf16.msra.mxu1 %v7275_v43  ;;  %v335_v43 = vld [vmem:[#allocation5 + $0x748] sm:$0xff] }
 0x14c   :  { %5987 = vmatprep.subr.bf16.mxu1 %v7268_v46  ;;  %v479_v46 = vld [vmem:[#allocation5 + $0xbc8] sm:$0xff]  ;;  %v7204_v53 = vcombine.high %v335_v43, %v339_v44  ;;  %v7203_v61 = vcombine.low %v335_v43, %v339_v44 }
 0x14d   :  { %5951 = vmatpush1.bf16.msra.mxu0 %v7123_v54  ;;  %v7348_v54 = vcombine.high %v479_v46, %v483_v47  ;;  %v475_v58 = vld [vmem:[#allocation5 + $0xba8] sm:$0xff]  ;;  %v7347_v62 = vcombine.low %v479_v46, %v483_v47 }
 0x14e   :  { %5952 = vmatprep.subr.bf16.mxu0 %v7116_v56  ;;  %v331_v56 = vld [vmem:[#allocation5 + $0x728] sm:$0xff] }
 0x14f   :  { %5988 = vmatpush1.bf16.msra.mxu1 %v7267_v55  ;;  %v327_v55 = vld [vmem:[#allocation5 + $0x708] sm:$0xff] }
 0x150   :  { %5989 = vmatprep.subr.bf16.mxu1 %v7260_v57  ;;  %v471_v57 = vld [vmem:[#allocation5 + $0xb88] sm:$0xff]  ;;  %v7196_v63 = vcombine.high %v327_v55, %v331_v56  ;;  %v7195_v7 = vcombine.low %v327_v55, %v331_v56 }
 0x151   :  { %5953 = vmatpush1.bf16.msra.mxu0 %v7115_v0  ;;  %v7340_v0 = vcombine.high %v471_v57, %v475_v58  ;;  %v467_v5 = vld [vmem:[#allocation5 + $0xb68] sm:$0xff]  ;;  %v7339_v8 = vcombine.low %v471_v57, %v475_v58 }
 0x152   :  { %5954 = vmatprep.subr.bf16.mxu0 %v7108_v2  ;;  %v323_v2 = vld [vmem:[#allocation5 + $0x6e8] sm:$0xff] }
 0x153   :  { %5990 = vmatpush1.bf16.msra.mxu1 %v7259_v1  ;;  %v319_v1 = vld [vmem:[#allocation5 + $0x6c8] sm:$0xff] }
 0x154   :  { %5991 = vmatprep.subr.bf16.mxu1 %v7252_v4  ;;  %v463_v4 = vld [vmem:[#allocation5 + $0xb48] sm:$0xff]  ;;  %v7188_v9 = vcombine.high %v319_v1, %v323_v2  ;;  %v7187_v18 = vcombine.low %v319_v1, %v323_v2 }
 0x155   :  { %5955 = vmatpush1.bf16.msra.mxu0 %v7107_v11  ;;  %v7332_v11 = vcombine.high %v463_v4, %v467_v5  ;;  %v459_v16 = vld [vmem:[#allocation5 + $0xb28] sm:$0xff]  ;;  %v7331_v20 = vcombine.low %v463_v4, %v467_v5 }
 0x156   :  { %5956 = vmatprep.subr.bf16.mxu0 %v7100_v13  ;;  %v315_v13 = vld [vmem:[#allocation5 + $0x6a8] sm:$0xff] }
 0x157   :  { %5992 = vmatpush1.bf16.msra.mxu1 %v7251_v12  ;;  %v311_v12 = vld [vmem:[#allocation5 + $0x688] sm:$0xff] }
 0x158   :  { %5993 = vmatprep.subr.bf16.mxu1 %v7244_v15  ;;  %v455_v15 = vld [vmem:[#allocation5 + $0xb08] sm:$0xff]  ;;  %v7180_v22 = vcombine.high %v311_v12, %v315_v13  ;;  %v7179_v33 = vcombine.low %v311_v12, %v315_v13 }
 0x159   :  { %5957 = vmatpush1.bf16.msra.mxu0 %v7099_v24  ;;  %v7324_v24 = vcombine.high %v455_v15, %v459_v16  ;;  %v451_v31 = vld [vmem:[#allocation5 + $0xae8] sm:$0xff]  ;;  %v7323_v34 = vcombine.low %v455_v15, %v459_v16 }
 0x15a   :  { %5958 = vmatprep.subr.bf16.mxu0 %v7220_v28  ;;  %v307_v28 = vld [vmem:[#allocation5 + $0x668] sm:$0xff] }
 0x15b   :  { %5994 = vmatpush1.bf16.msra.mxu1 %v7243_v27  ;;  %v303_v27 = vld [vmem:[#allocation5 + $0x648] sm:$0xff] }
 0x15c   :  { %5995 = vmatprep.subr.bf16.mxu1 %v7236_v30  ;;  %v447_v30 = vld [vmem:[#allocation5 + $0xac8] sm:$0xff]  ;;  %v7172_v35 = vcombine.high %v303_v27, %v307_v28  ;;  %v7171_v44 = vcombine.low %v303_v27, %v307_v28 }
 0x15d   :  { %5959 = vmatpush2.bf16.msra.mxu0 %v7219_v36  ;;  %v7316_v36 = vcombine.high %v447_v30, %v451_v31  ;;  %v443_v43 = vld [vmem:[#allocation5 + $0xaa8] sm:$0xff]  ;;  %v7315_v46 = vcombine.low %v447_v30, %v451_v31 }
 0x15e   :  { %5960 = vmatprep.subr.bf16.mxu0 %v7212_v40  ;;  %v299_v40 = vld [vmem:[#allocation5 + $0x628] sm:$0xff] }
 0x15f   :  { %5996 = vmatpush1.bf16.msra.mxu1 %v7235_v39  ;;  %v295_v39 = vld [vmem:[#allocation5 + $0x608] sm:$0xff] }
 0x160   :  { %5997 = vmatprep.subr.bf16.mxu1 %v7228_v42  ;;  %v439_v42 = vld [vmem:[#allocation5 + $0xa88] sm:$0xff]  ;;  %v7164_v47 = vcombine.high %v295_v39, %v299_v40  ;;  %v7163_v56 = vcombine.low %v295_v39, %v299_v40 }
 0x161   :  { %5961 = vmatpush2.bf16.msra.mxu0 %v7211_v50  ;;  %v7308_v50 = vcombine.high %v439_v42, %v443_v43  ;;  %v435_v55 = vld [vmem:[#allocation5 + $0xa68] sm:$0xff]  ;;  %v7307_v57 = vcombine.low %v439_v42, %v443_v43 }
 0x162   :  { %5962 = vmatprep.subr.bf16.mxu0 %v7204_v53  ;;  %v547_v53 = vld [vmem:[#allocation5 + $0xde8] sm:$0xff] }
 0x163   :  { %5998 = vmatpush1.bf16.msra.mxu1 %v7227_v51  ;;  %v543_v51 = vld [vmem:[#allocation5 + $0xdc8] sm:$0xff] }
 0x164   :  { %5999 = vmatprep.subr.bf16.mxu1 %v7348_v54  ;;  %v431_v54 = vld [vmem:[#allocation5 + $0xa48] sm:$0xff]  ;;  %v7412_v58 = vcombine.high %v543_v51, %v547_v53  ;;  %v7411_v2 = vcombine.low %v543_v51, %v547_v53 }
 0x165   :  { %5963 = vmatpush2.bf16.msra.mxu0 %v7203_v61  ;;  %v7300_v61 = vcombine.high %v431_v54, %v435_v55  ;;  %v427_v1 = vld [vmem:[#allocation5 + $0xa28] sm:$0xff]  ;;  %v7299_v4 = vcombine.low %v431_v54, %v435_v55 }
 0x166   :  { %5964 = vmatprep.subr.bf16.mxu0 %v7196_v63  ;;  %v539_v63 = vld [vmem:[#allocation5 + $0xda8] sm:$0xff] }
 0x167   :  { %6000 = vmatpush2.bf16.msra.mxu1 %v7347_v62  ;;  %v535_v62 = vld [vmem:[#allocation5 + $0xd88] sm:$0xff] }
 0x168   :  { %6001 = vmatprep.subr.bf16.mxu1 %v7340_v0  ;;  %v423_v0 = vld [vmem:[#allocation5 + $0xa08] sm:$0xff]  ;;  %v7404_v5 = vcombine.high %v535_v62, %v539_v63 }
 0x169   :  { %5965 = vmatpush2.bf16.msra.mxu0 %v7195_v7  ;;  %v7292_v7 = vcombine.high %v423_v0, %v427_v1  ;;  %v671_v12 = vld [vmem:[#allocation5 + $0x11c8] sm:$0xff] }
 0x16a   :  { %5966 = vmatprep.subr.bf16.mxu0 %v7188_v9  ;;  %v531_v9 = vld [vmem:[#allocation5 + $0xd68] sm:$0xff] }
 0x16b   :  { %6002 = vmatpush2.bf16.msra.mxu1 %v7339_v8  ;;  %v527_v8 = vld [vmem:[#allocation5 + $0xd48] sm:$0xff] }
 0x16c   :  { %6003 = vmatprep.subr.bf16.mxu1 %v7332_v11  ;;  %v675_v13 = vld [vmem:[#allocation5 + $0x11e8] sm:$0xff]  ;;  %v7395_v42 = vcombine.low %v527_v8, %v531_v9 }
 0x16d   :  { %5967 = vmatpush2.bf16.msra.mxu0 %v7187_v18  ;;  %v7403_v18 = vcombine.low %v535_v62, %v539_v63  ;;  %v7540_v31 = vcombine.high %v671_v12, %v675_v13  ;;  %v515_v51 = vld [vmem:[#allocation5 + $0xce8] sm:$0xff] }
 0x16e   :  { %5968 = vmatprep.subr.bf16.mxu0 %v7180_v22  ;;  %v7291_v22 = vcombine.low %v423_v0, %v427_v1  ;;  %v655_v53 = vld [vmem:[#allocation5 + $0x1148] sm:$0xff] }
 0x16f   :  { %6004 = vmatpush2.bf16.msra.mxu1 %v7331_v20  ;;  %v659_v54 = vld [vmem:[#allocation5 + $0x1168] sm:$0xff] }
 0x170   :  { %6005 = vmatprep.subr.bf16.mxu1 %v7324_v24  ;;  %v7396_v24 = vcombine.high %v527_v8, %v531_v9  ;;  %v507_v62 = vld [vmem:[#allocation5 + $0xca8] sm:$0xff] }
 0x171   :  { %5969 = vmatpush2.bf16.msra.mxu0 %v7179_v33  ;;  %v519_v33 = vld [vmem:[#allocation5 + $0xd08] sm:$0xff] }
 0x172   :  { %5970 = vmatprep.subr.bf16.mxu0 %v7172_v35  ;;  %v663_v35 = vld [vmem:[#allocation5 + $0x1188] sm:$0xff] }
 0x173   :  { %6006 = vmatpush2.bf16.msra.mxu1 %v7323_v34  ;;  %v523_v34 = vld [vmem:[#allocation5 + $0xd28] sm:$0xff] }
 0x174   :  { %6007 = vmatprep.subr.bf16.mxu1 %v7316_v36  ;;  %v667_v36 = vld [vmem:[#allocation5 + $0x11a8] sm:$0xff]  ;;  %v7387_v55 = vcombine.low %v519_v33, %v523_v34 }
 0x175   :  { %5971 = vmatpush2.bf16.msra.mxu0 %v7171_v44  ;;  %v7539_v44 = vcombine.low %v671_v12, %v675_v13  ;;  %v647_v63 = vld [vmem:[#allocation5 + $0x1108] sm:$0xff] }
 0x176   :  { %5972 = vmatprep.subr.bf16.mxu0 %v7164_v47  ;;  %v651_v0 = vld [vmem:[#allocation5 + $0x1128] sm:$0xff] }
 0x177   :  { %6008 = vmatpush2.bf16.msra.mxu1 %v7315_v46  ;;  %v7388_v46 = vcombine.high %v519_v33, %v523_v34  ;;  %v499_v8 = vld [vmem:[#allocation5 + $0xc68] sm:$0xff]  ;;  %v7515_v13 = vcombine.low %v647_v63, %v651_v0 }
 0x178   :  { %6009 = vmatprep.subr.bf16.mxu1 %v7308_v50  ;;  %v511_v50 = vld [vmem:[#allocation5 + $0xcc8] sm:$0xff] }
 0x179   :  { %5973 = vmatpush2.bf16.msra.mxu0 %v7163_v56  ;;  %v7531_v56 = vcombine.low %v663_v35, %v667_v36  ;;  %v7379_v1 = vcombine.low %v511_v50, %v515_v51  ;;  %v639_v9 = vld [vmem:[#allocation5 + $0x10c8] sm:$0xff] }
 0x17a   :  { %6024 = vmatprep.subr.bf16.mxu0 %v7412_v58  ;;  %v7524_v58 = vcombine.high %v655_v53, %v659_v54  ;;  %v607_v34 = vld [vmem:[#allocation5 + $0xfc8] sm:$0xff] }
 0x17b   :  { %6010 = vmatpush2.bf16.msra.mxu1 %v7307_v57  ;;  %v5689_v11 = vpop.f32.mrf.mxu0  ;;  %v7380_v57 = vcombine.high %v511_v50, %v515_v51  ;;  %v619_v50 = vld [vmem:[#allocation5 + $0x1028] sm:$0xff] }
 0x17c   :  { %6011 = vmatprep.subr.bf16.mxu1 %v7300_v61  ;;  %5975 = vmatmul.mubr.bf16.vlgmr.msra.gmra.mxu0 %v8048_v21  ;;  %v5690_v15 = vadd.f32 %v5689_v11, %v8099_v10  ;;  %v503_v61 = vld [vmem:[#allocation5 + $0xc88] sm:$0xff] }
 0x17d   :  { %v5730_v16 = vpop.f32.mrf.mxu1  ;;  %6025 = vmatpush1.bf16.msra.mxu0 %v7411_v2  ;;  %6056 = vmatprep.mubr.bf16.mxu0 %v8053_v32  ;;  %v5691_v20 = vpop.f32.mrf.mxu0  ;;  %v7523_v2 = vcombine.low %v655_v53, %v659_v54  ;;  %v643_v11 = vld [vmem:[#allocation5 + $0x10e8] sm:$0xff]  ;;  %v7371_v12 = vcombine.low %v503_v61, %v507_v62 }
 0x17e   :  { %6026 = vmatprep.subr.bf16.mxu0 %v7404_v5  ;;  %v8108_v27 = vadd.f32 %v5730_v16, %v5690_v15  ;;  %v5692_v28 = vadd.f32 %v5691_v20, %v8101_v23  ;;  %v7532_v23 = vcombine.high %v663_v35, %v667_v36  ;;  %v7516_v5 = vcombine.high %v647_v63, %v651_v0  ;;  %v491_v20 = vld [vmem:[#allocation5 + $0xc28] sm:$0xff] }
 0x17f   :  { %6012 = vmatpush2.bf16.msra.mxu1 %v7299_v4  ;;  %v5732_v30 = vpop.f32.mrf.mxu1  ;;  %v5693_v10 = vpop.f32.mrf.mxu0  ;;  %v7372_v4 = vcombine.high %v503_v61, %v507_v62  ;;  %v7508_v16 = vcombine.high %v639_v9, %v643_v11  ;;  %v623_v35 = vld [vmem:[#allocation5 + $0x1048] sm:$0xff] }
 0x180   :  { %6013 = vmatprep.subr.bf16.mxu1 %v7292_v7  ;;  %v8111_v39 = vadd.f32 %v5732_v30, %v5692_v28  ;;  %v495_v7 = vld [vmem:[#allocation5 + $0xc48] sm:$0xff]  ;;  %v7507_v30 = vcombine.low %v639_v9, %v643_v11 }
 0x181   :  { %v5734_v40 = vpop.f32.mrf.mxu1  ;;  %6027 = vmatpush1.bf16.msra.mxu0 %v7403_v18  ;;  %v5694_v43 = vpop.f32.mrf.mxu0  ;;  %v7364_v15 = vcombine.high %v495_v7, %v499_v8  ;;  %v487_v18 = vld [vmem:[#allocation5 + $0xc08] sm:$0xff]  ;;  %v7363_v28 = vcombine.low %v495_v7, %v499_v8 }
 0x182   :  { %6028 = vmatprep.subr.bf16.mxu0 %v7396_v24  ;;  %v635_v24 = vld [vmem:[#allocation5 + $0x10a8] sm:$0xff]  ;;  %v7355_v40 = vcombine.low %v487_v18, %v491_v20 }
 0x183   :  { %6014 = vmatpush2.bf16.msra.mxu1 %v7291_v22  ;;  %v5735_v47 = vpop.f32.mrf.mxu1  ;;  %v631_v22 = vld [vmem:[#allocation5 + $0x1088] sm:$0xff] }
 0x184   :  { %6065 = vmatprep.subr.bf16.mxu1 %v7540_v31  ;;  %v7356_v31 = vcombine.high %v487_v18, %v491_v20  ;;  %v7500_v33 = vcombine.high %v631_v22, %v635_v24  ;;  %v611_v10 = vld [vmem:[#allocation5 + $0xfe8] sm:$0xff] }
 0x185   :  { %6029 = vmatpush1.bf16.msra.mxu0 %v7395_v42  ;;  %v627_v36 = vld [vmem:[#allocation5 + $0x1068] sm:$0xff]  ;;  %v7499_v42 = vcombine.low %v631_v22, %v635_v24  ;;  %v7476_v43 = vcombine.high %v607_v34, %v611_v10  ;;  %v7475_v51 = vcombine.low %v607_v34, %v611_v10 }
 0x186   :  { %6016 = vmatmul.mubr.bf16.vlgmr.msra.gmra.mxu1 %v8058_v37  ;;  %6030 = vmatprep.subr.bf16.mxu0 %v7388_v46  ;;  %v599_v46 = vld [vmem:[#allocation5 + $0xf88] sm:$0xff]  ;;  %v7491_v53 = vcombine.low %v623_v35, %v627_v36 }
 0x187   :  { %6066 = vmatpush1.bf16.msra.mxu1 %v7539_v44  ;;  %6097 = vmatprep.mubr.bf16.mxu1 %v8062_v49  ;;  %v7492_v44 = vcombine.high %v623_v35, %v627_v36  ;;  %v603_v47 = vld [vmem:[#allocation5 + $0xfa8] sm:$0xff] }
 0x188   :  { %6067 = vmatprep.subr.bf16.mxu1 %v7532_v23  ;;  %v615_v23 = vld [vmem:[#allocation5 + $0x1008] sm:$0xff]  ;;  %v7468_v54 = vcombine.high %v599_v46, %v603_v47  ;;  %v7467_v62 = vcombine.low %v599_v46, %v603_v47 }
 0x189   :  { %6031 = vmatpush1.bf16.msra.mxu0 %v7387_v55  ;;  %v7484_v55 = vcombine.high %v615_v23, %v619_v50  ;;  %v739_v61 = vld [vmem:[#allocation5 + $0x13e8] sm:$0xff]  ;;  %v7483_v63 = vcombine.low %v615_v23, %v619_v50 }
 0x18a   :  { %6032 = vmatprep.subr.bf16.mxu0 %v7380_v57  ;;  %v595_v57 = vld [vmem:[#allocation5 + $0xf68] sm:$0xff] }
 0x18b   :  { %6068 = vmatpush1.bf16.msra.mxu1 %v7531_v56  ;;  %v591_v56 = vld [vmem:[#allocation5 + $0xf48] sm:$0xff] }
 0x18c   :  { %6069 = vmatprep.subr.bf16.mxu1 %v7524_v58  ;;  %v735_v58 = vld [vmem:[#allocation5 + $0x13c8] sm:$0xff]  ;;  %v7460_v0 = vcombine.high %v591_v56, %v595_v57  ;;  %v7459_v8 = vcombine.low %v591_v56, %v595_v57 }
 0x18d   :  { %6033 = vmatpush1.bf16.msra.mxu0 %v7379_v1  ;;  %v7604_v1 = vcombine.high %v735_v58, %v739_v61  ;;  %v731_v7 = vld [vmem:[#allocation5 + $0x13a8] sm:$0xff]  ;;  %v7603_v9 = vcombine.low %v735_v58, %v739_v61 }
 0x18e   :  { %6034 = vmatprep.subr.bf16.mxu0 %v7372_v4  ;;  %v587_v4 = vld [vmem:[#allocation5 + $0xf28] sm:$0xff] }
 0x18f   :  { %6070 = vmatpush1.bf16.msra.mxu1 %v7523_v2  ;;  %v583_v2 = vld [vmem:[#allocation5 + $0xf08] sm:$0xff] }
 0x190   :  { %6071 = vmatprep.subr.bf16.mxu1 %v7516_v5  ;;  %v727_v5 = vld [vmem:[#allocation5 + $0x1388] sm:$0xff]  ;;  %v7452_v11 = vcombine.high %v583_v2, %v587_v4  ;;  %v7451_v20 = vcombine.low %v583_v2, %v587_v4 }
 0x191   :  { %6035 = vmatpush1.bf16.msra.mxu0 %v7371_v12  ;;  %v7596_v12 = vcombine.high %v727_v5, %v731_v7  ;;  %v723_v18 = vld [vmem:[#allocation5 + $0x1368] sm:$0xff]  ;;  %v7595_v22 = vcombine.low %v727_v5, %v731_v7 }
 0x192   :  { %6036 = vmatprep.subr.bf16.mxu0 %v7364_v15  ;;  %v579_v15 = vld [vmem:[#allocation5 + $0xee8] sm:$0xff] }
 0x193   :  { %6072 = vmatpush1.bf16.msra.mxu1 %v7515_v13  ;;  %v575_v13 = vld [vmem:[#allocation5 + $0xec8] sm:$0xff] }
 0x194   :  { %6073 = vmatprep.subr.bf16.mxu1 %v7508_v16  ;;  %v719_v16 = vld [vmem:[#allocation5 + $0x1348] sm:$0xff]  ;;  %v7444_v24 = vcombine.high %v575_v13, %v579_v15  ;;  %v7443_v10 = vcombine.low %v575_v13, %v579_v15 }
 0x195   :  { %6037 = vmatpush1.bf16.msra.mxu0 %v7363_v28  ;;  %v7588_v28 = vcombine.high %v719_v16, %v723_v18  ;;  %v715_v34 = vld [vmem:[#allocation5 + $0x1328] sm:$0xff]  ;;  %v7587_v35 = vcombine.low %v719_v16, %v723_v18 }
 0x196   :  { %6038 = vmatprep.subr.bf16.mxu0 %v7356_v31  ;;  %v571_v31 = vld [vmem:[#allocation5 + $0xea8] sm:$0xff] }
 0x197   :  { %6074 = vmatpush1.bf16.msra.mxu1 %v7507_v30  ;;  %v567_v30 = vld [vmem:[#allocation5 + $0xe88] sm:$0xff] }
 0x198   :  { %6075 = vmatprep.subr.bf16.mxu1 %v7500_v33  ;;  %v711_v33 = vld [vmem:[#allocation5 + $0x1308] sm:$0xff]  ;;  %v7436_v36 = vcombine.high %v567_v30, %v571_v31  ;;  %v7435_v47 = vcombine.low %v567_v30, %v571_v31 }
 0x199   :  { %6039 = vmatpush1.bf16.msra.mxu0 %v7355_v40  ;;  %v7580_v40 = vcombine.high %v711_v33, %v715_v34  ;;  %v707_v46 = vld [vmem:[#allocation5 + $0x12e8] sm:$0xff]  ;;  %v7579_v23 = vcombine.low %v711_v33, %v715_v34 }
 0x19a   :  { %6040 = vmatprep.subr.bf16.mxu0 %v7476_v43  ;;  %v563_v43 = vld [vmem:[#allocation5 + $0xe68] sm:$0xff] }
 0x19b   :  { %6076 = vmatpush1.bf16.msra.mxu1 %v7499_v42  ;;  %v559_v42 = vld [vmem:[#allocation5 + $0xe48] sm:$0xff] }
 0x19c   :  { %6077 = vmatprep.subr.bf16.mxu1 %v7492_v44  ;;  %v703_v44 = vld [vmem:[#allocation5 + $0x12c8] sm:$0xff]  ;;  %v7428_v50 = vcombine.high %v559_v42, %v563_v43  ;;  %v7427_v57 = vcombine.low %v559_v42, %v563_v43 }
 0x19d   :  { %6041 = vmatpush2.bf16.msra.mxu0 %v7475_v51  ;;  %v7572_v51 = vcombine.high %v703_v44, %v707_v46  ;;  %v699_v56 = vld [vmem:[#allocation5 + $0x12a8] sm:$0xff]  ;;  %v7571_v58 = vcombine.low %v703_v44, %v707_v46 }
 0x19e   :  { %6042 = vmatprep.subr.bf16.mxu0 %v7468_v54  ;;  %v555_v54 = vld [vmem:[#allocation5 + $0xe28] sm:$0xff] }
 0x19f   :  { %6078 = vmatpush1.bf16.msra.mxu1 %v7491_v53  ;;  %v551_v53 = vld [vmem:[#allocation5 + $0xe08] sm:$0xff] }
 0x1a0   :  { %6079 = vmatprep.subr.bf16.mxu1 %v7484_v55  ;;  %v695_v55 = vld [vmem:[#allocation5 + $0x1288] sm:$0xff]  ;;  %v7420_v61 = vcombine.high %v551_v53, %v555_v54  ;;  %v7419_v4 = vcombine.low %v551_v53, %v555_v54 }
 0x1a1   :  { %6043 = vmatpush2.bf16.msra.mxu0 %v7467_v62  ;;  %v7564_v62 = vcombine.high %v695_v55, %v699_v56  ;;  %v691_v2 = vld [vmem:[#allocation5 + $0x1268] sm:$0xff]  ;;  %v7563_v5 = vcombine.low %v695_v55, %v699_v56 }
 0x1a2   :  { %6044 = vmatprep.subr.bf16.mxu0 %v7460_v0  ;;  %v803_v0 = vld [vmem:[#allocation5 + $0x15e8] sm:$0xff] }
 0x1a3   :  { %6080 = vmatpush1.bf16.msra.mxu1 %v7483_v63  ;;  %v799_v63 = vld [vmem:[#allocation5 + $0x15c8] sm:$0xff] }
 0x1a4   :  { %6081 = vmatprep.subr.bf16.mxu1 %v7604_v1  ;;  %v687_v1 = vld [vmem:[#allocation5 + $0x1248] sm:$0xff]  ;;  %v7668_v7 = vcombine.high %v799_v63, %v803_v0  ;;  %v7667_v15 = vcombine.low %v799_v63, %v803_v0 }
 0x1a5   :  { %6045 = vmatpush2.bf16.msra.mxu0 %v7459_v8  ;;  %v7556_v8 = vcombine.high %v687_v1, %v691_v2  ;;  %v683_v13 = vld [vmem:[#allocation5 + $0x1228] sm:$0xff]  ;;  %v7555_v16 = vcombine.low %v687_v1, %v691_v2 }
 0x1a6   :  { %6046 = vmatprep.subr.bf16.mxu0 %v7452_v11  ;;  %v795_v11 = vld [vmem:[#allocation5 + $0x15a8] sm:$0xff] }
 0x1a7   :  { %6082 = vmatpush2.bf16.msra.mxu1 %v7603_v9  ;;  %v791_v9 = vld [vmem:[#allocation5 + $0x1588] sm:$0xff] }
 0x1a8   :  { %6083 = vmatprep.subr.bf16.mxu1 %v7596_v12  ;;  %v679_v12 = vld [vmem:[#allocation5 + $0x1208] sm:$0xff]  ;;  %v7660_v18 = vcombine.high %v791_v9, %v795_v11 }
 0x1a9   :  { %6047 = vmatpush2.bf16.msra.mxu0 %v7451_v20  ;;  %v7548_v20 = vcombine.high %v679_v12, %v683_v13  ;;  %v927_v30 = vld [vmem:[#allocation5 + $0x19c8] sm:$0xff] }
 0x1aa   :  { %6048 = vmatprep.subr.bf16.mxu0 %v7444_v24  ;;  %v787_v24 = vld [vmem:[#allocation5 + $0x1568] sm:$0xff] }
 0x1ab   :  { %6084 = vmatpush2.bf16.msra.mxu1 %v7595_v22  ;;  %v783_v22 = vld [vmem:[#allocation5 + $0x1548] sm:$0xff] }
 0x1ac   :  { %6085 = vmatprep.subr.bf16.mxu1 %v7588_v28  ;;  %v931_v31 = vld [vmem:[#allocation5 + $0x19e8] sm:$0xff]  ;;  %v7651_v55 = vcombine.low %v783_v22, %v787_v24 }
 0x1ad   :  { %6049 = vmatpush2.bf16.msra.mxu0 %v7443_v10  ;;  %v7659_v10 = vcombine.low %v791_v9, %v795_v11  ;;  %v7796_v46 = vcombine.high %v927_v30, %v931_v31  ;;  %v771_v63 = vld [vmem:[#allocation5 + $0x14e8] sm:$0xff] }
 0x1ae   :  { %6050 = vmatprep.subr.bf16.mxu0 %v7436_v36  ;;  %v7547_v36 = vcombine.low %v679_v12, %v683_v13  ;;  %v911_v0 = vld [vmem:[#allocation5 + $0x1948] sm:$0xff] }
 0x1af   :  { %6086 = vmatpush2.bf16.msra.mxu1 %v7587_v35  ;;  %v915_v1 = vld [vmem:[#allocation5 + $0x1968] sm:$0xff] }
 0x1b0   :  { %6087 = vmatprep.subr.bf16.mxu1 %v7580_v40  ;;  %v7652_v40 = vcombine.high %v783_v22, %v787_v24  ;;  %v7780_v9 = vcombine.high %v911_v0, %v915_v1  ;;  %v759_v11 = vld [vmem:[#allocation5 + $0x1488] sm:$0xff] }
 0x1b1   :  { %6051 = vmatpush2.bf16.msra.mxu0 %v7435_v47  ;;  %v775_v47 = vld [vmem:[#allocation5 + $0x1508] sm:$0xff] }
 0x1b2   :  { %6052 = vmatprep.subr.bf16.mxu0 %v7428_v50  ;;  %v919_v50 = vld [vmem:[#allocation5 + $0x1988] sm:$0xff] }
 0x1b3   :  { %6088 = vmatpush2.bf16.msra.mxu1 %v7579_v23  ;;  %v779_v23 = vld [vmem:[#allocation5 + $0x1528] sm:$0xff] }
 0x1b4   :  { %6089 = vmatprep.subr.bf16.mxu1 %v7572_v51  ;;  %v923_v51 = vld [vmem:[#allocation5 + $0x19a8] sm:$0xff] }
 0x1b5   :  { %6053 = vmatpush2.bf16.msra.mxu0 %v7427_v57  ;;  %v7795_v57 = vcombine.low %v927_v30, %v931_v31  ;;  %v763_v12 = vld [vmem:[#allocation5 + $0x14a8] sm:$0xff] }
 0x1b6   :  { %6054 = vmatprep.subr.bf16.mxu0 %v7420_v61  ;;  %v903_v13 = vld [vmem:[#allocation5 + $0x1908] sm:$0xff]  ;;  %v7628_v22 = vcombine.high %v759_v11, %v763_v12 }
 0x1b7   :  { %6090 = vmatpush2.bf16.msra.mxu1 %v7571_v58  ;;  %v7644_v58 = vcombine.high %v775_v47, %v779_v23  ;;  %v751_v30 = vld [vmem:[#allocation5 + $0x1448] sm:$0xff] }
 0x1b8   :  { %6091 = vmatprep.subr.bf16.mxu1 %v7564_v62  ;;  %v767_v62 = vld [vmem:[#allocation5 + $0x14c8] sm:$0xff] }
 0x1b9   :  { %6055 = vmatpush2.bf16.msra.mxu0 %v7419_v4  ;;  %v7643_v4 = vcombine.low %v775_v47, %v779_v23  ;;  %v755_v31 = vld [vmem:[#allocation5 + $0x1468] sm:$0xff] }
 0x1ba   :  { %6106 = vmatprep.subr.bf16.mxu0 %v7668_v7  ;;  %v7636_v7 = vcombine.high %v767_v62, %v771_v63  ;;  %v891_v47 = vld [vmem:[#allocation5 + $0x18a8] sm:$0xff]  ;;  %v7619_v23 = vcombine.low %v751_v30, %v755_v31 }
 0x1bb   :  { %6092 = vmatpush2.bf16.msra.mxu1 %v7563_v5  ;;  %v7787_v5 = vcombine.low %v919_v50, %v923_v51 }
 0x1bc   :  { %6093 = vmatprep.subr.bf16.mxu1 %v7556_v8  ;;  %v5771_v28 = vpop.f32.mrf.mxu0  ;;  %6057 = vmatmul.mubr.bf16.vlgmr.msra.gmra.mxu0 %v8060_v41 }
 0x1bd   :  { %v5772_v33 = vadd.f32 %v5771_v28, %v8108_v27  ;;  %6107 = vmatpush1.bf16.msra.mxu0 %v7667_v15  ;;  %6138 = vmatprep.mubr.bf16.mxu0 %v8065_v52  ;;  %v907_v15 = vld [vmem:[#allocation5 + $0x1928] sm:$0xff] }
 0x1be   :  { %v5812_v34 = vpop.f32.mrf.mxu1  ;;  %v5773_v35 = vpop.f32.mrf.mxu0  ;;  %6108 = vmatprep.subr.bf16.mxu0 %v7660_v18  ;;  %v7635_v18 = vcombine.low %v767_v62, %v771_v63  ;;  %v7772_v28 = vcombine.high %v903_v13, %v907_v15  ;;  %v855_v63 = vld [vmem:[#allocation5 + $0x1788] sm:$0xff] }
 0x1bf   :  { %6094 = vmatpush2.bf16.msra.mxu1 %v7555_v16  ;;  %v8118_v42 = vadd.f32 %v5812_v34, %v5772_v33  ;;  %v5774_v43 = vadd.f32 %v5773_v35, %v8111_v39  ;;  %v7788_v39 = vcombine.high %v919_v50, %v923_v51  ;;  %v895_v33 = vld [vmem:[#allocation5 + $0x18c8] sm:$0xff]  ;;  %v7771_v35 = vcombine.low %v903_v13, %v907_v15 }
 0x1c0   :  { %v5814_v44 = vpop.f32.mrf.mxu1  ;;  %6095 = vmatprep.subr.bf16.mxu1 %v7548_v20  ;;  %v5775_v27 = vpop.f32.mrf.mxu0  ;;  %v7779_v20 = vcombine.low %v911_v0, %v915_v1  ;;  %v899_v34 = vld [vmem:[#allocation5 + $0x18e8] sm:$0xff] }
 0x1c1   :  { %v8121_v53 = vadd.f32 %v5814_v44, %v5774_v43  ;;  %6109 = vmatpush1.bf16.msra.mxu0 %v7659_v10  ;;  %v7627_v10 = vcombine.low %v759_v11, %v763_v12  ;;  %v743_v43 = vld [vmem:[#allocation5 + $0x1408] sm:$0xff]  ;;  %v7763_v27 = vcombine.low %v895_v33, %v899_v34 }
 0x1c2   :  { %v5816_v54 = vpop.f32.mrf.mxu1  ;;  %v5776_v56 = vpop.f32.mrf.mxu0  ;;  %6110 = vmatprep.subr.bf16.mxu0 %v7652_v40  ;;  %v7764_v40 = vcombine.high %v895_v33, %v899_v34  ;;  %v747_v44 = vld [vmem:[#allocation5 + $0x1428] sm:$0xff] }
 0x1c3   :  { %6096 = vmatpush2.bf16.msra.mxu1 %v7547_v36  ;;  %v7620_v36 = vcombine.high %v751_v30, %v755_v31  ;;  %v7612_v50 = vcombine.high %v743_v43, %v747_v44  ;;  %v863_v54 = vld [vmem:[#allocation5 + $0x17c8] sm:$0xff] }
 0x1c4   :  { %v5817_v61 = vpop.f32.mrf.mxu1  ;;  %6147 = vmatprep.subr.bf16.mxu1 %v7796_v46  ;;  %v887_v46 = vld [vmem:[#allocation5 + $0x1888] sm:$0xff] }
 0x1c5   :  { %6111 = vmatpush1.bf16.msra.mxu0 %v7651_v55  ;;  %v7756_v51 = vcombine.high %v887_v46, %v891_v47  ;;  %v867_v55 = vld [vmem:[#allocation5 + $0x17e8] sm:$0xff]  ;;  %v7755_v61 = vcombine.low %v887_v46, %v891_v47 }
 0x1c6   :  { %6098 = vmatmul.mubr.bf16.vlgmr.msra.gmra.mxu1 %v8070_v3  ;;  %v8124_v2 = vpop.f32.mrf.mxu1  ;;  %6112 = vmatprep.subr.bf16.mxu0 %v7644_v58  ;;  %v879_v56 = vld [vmem:[#allocation5 + $0x1848] sm:$0xff]  ;;  %v7611_v58 = vcombine.low %v743_v43, %v747_v44 }
 0x1c7   :  { %6148 = vmatpush1.bf16.msra.mxu1 %v7795_v57  ;;  %6179 = vmatprep.mubr.bf16.mxu1 %v8077_v14  ;;  %v883_v57 = vld [vmem:[#allocation5 + $0x1868] sm:$0xff] }
 0x1c8   :  { %v8126_v8 = vpop.f32.mrf.mxu1  ;;  %6149 = vmatprep.subr.bf16.mxu1 %v7788_v39  ;;  %v7732_v39 = vcombine.high %v863_v54, %v867_v55  ;;  %v7748_v62 = vcombine.high %v879_v56, %v883_v57  ;;  %v859_v0 = vld [vmem:[#allocation5 + $0x17a8] sm:$0xff] }
 0x1c9   :  { %6113 = vmatpush1.bf16.msra.mxu0 %v7643_v4  ;;  %v871_v1 = vld [vmem:[#allocation5 + $0x1808] sm:$0xff] }
 0x1ca   :  { %v5898_v16 = vpop.f32.mrf.mxu1  ;;  %6114 = vmatprep.subr.bf16.mxu0 %v7636_v7  ;;  %v875_v4 = vld [vmem:[#allocation5 + $0x1828] sm:$0xff]  ;;  %v7747_v7 = vcombine.low %v879_v56, %v883_v57 }
 0x1cb   :  { %6150 = vmatpush1.bf16.msra.mxu1 %v7787_v5  ;;  %v7731_v5 = vcombine.low %v863_v54, %v867_v55  ;;  %v7740_v11 = vcombine.high %v871_v1, %v875_v4  ;;  %v847_v12 = vld [vmem:[#allocation5 + $0x1748] sm:$0xff] }
 0x1cc   :  { %v5899_v24 = vpop.f32.mrf.mxu1  ;;  %6151 = vmatprep.subr.bf16.mxu1 %v7780_v9  ;;  %v7724_v9 = vcombine.high %v855_v63, %v859_v0  ;;  %v851_v13 = vld [vmem:[#allocation5 + $0x1768] sm:$0xff] }
 0x1cd   :  { %6115 = vmatpush1.bf16.msra.mxu0 %v7635_v18  ;;  %v991_v15 = vld [vmem:[#allocation5 + $0x1bc8] sm:$0xff]  ;;  %v7723_v18 = vcombine.low %v855_v63, %v859_v0  ;;  %v7715_v34 = vcombine.low %v847_v12, %v851_v13 }
 0x1ce   :  { %6116 = vmatprep.subr.bf16.mxu0 %v7628_v22  ;;  %v995_v16 = vld [vmem:[#allocation5 + $0x1be8] sm:$0xff]  ;;  %v7716_v22 = vcombine.high %v847_v12, %v851_v13 }
 0x1cf   :  { %6152 = vmatpush1.bf16.msra.mxu1 %v7779_v20  ;;  %v7739_v20 = vcombine.low %v871_v1, %v875_v4  ;;  %v7860_v24 = vcombine.high %v991_v15, %v995_v16  ;;  %v843_v30 = vld [vmem:[#allocation5 + $0x1728] sm:$0xff] }
 0x1d0   :  { %6153 = vmatprep.subr.bf16.mxu1 %v7772_v28  ;;  %v839_v28 = vld [vmem:[#allocation5 + $0x1708] sm:$0xff] }
 0x1d1   :  { %6117 = vmatpush1.bf16.msra.mxu0 %v7627_v10  ;;  %v983_v31 = vld [vmem:[#allocation5 + $0x1b88] sm:$0xff]  ;;  %v7859_v10 = vcombine.low %v991_v15, %v995_v16  ;;  %v7707_v47 = vcombine.low %v839_v28, %v843_v30 }
 0x1d2   :  { %6118 = vmatprep.subr.bf16.mxu0 %v7620_v36  ;;  %v987_v33 = vld [vmem:[#allocation5 + $0x1ba8] sm:$0xff] }
 0x1d3   :  { %6154 = vmatpush1.bf16.msra.mxu1 %v7771_v35  ;;  %v7708_v35 = vcombine.high %v839_v28, %v843_v30  ;;  %v7852_v36 = vcombine.high %v983_v31, %v987_v33  ;;  %v835_v43 = vld [vmem:[#allocation5 + $0x16e8] sm:$0xff] }
 0x1d4   :  { %6155 = vmatprep.subr.bf16.mxu1 %v7764_v40  ;;  %v831_v40 = vld [vmem:[#allocation5 + $0x16c8] sm:$0xff] }
 0x1d5   :  { %6119 = vmatpush1.bf16.msra.mxu0 %v7619_v23  ;;  %v975_v44 = vld [vmem:[#allocation5 + $0x1b48] sm:$0xff]  ;;  %v7851_v23 = vcombine.low %v983_v31, %v987_v33  ;;  %v7699_v57 = vcombine.low %v831_v40, %v835_v43 }
 0x1d6   :  { %6120 = vmatprep.subr.bf16.mxu0 %v7612_v50  ;;  %v979_v46 = vld [vmem:[#allocation5 + $0x1b68] sm:$0xff] }
 0x1d7   :  { %6156 = vmatpush1.bf16.msra.mxu1 %v7763_v27  ;;  %v7700_v27 = vcombine.high %v831_v40, %v835_v43  ;;  %v7844_v50 = vcombine.high %v975_v44, %v979_v46  ;;  %v827_v54 = vld [vmem:[#allocation5 + $0x16a8] sm:$0xff]  ;;  %v164_v40 = vld [vmem:[#allocation5 + $0x1f0] sm:$0xff] }
 0x1d8   :  { %6157 = vmatprep.subr.bf16.mxu1 %v7756_v51  ;;  %v823_v51 = vld [vmem:[#allocation5 + $0x1688] sm:$0xff] }
 0x1d9   :  { %6121 = vmatpush1.bf16.msra.mxu0 %v7611_v58  ;;  %v967_v55 = vld [vmem:[#allocation5 + $0x1b08] sm:$0xff]  ;;  %v7843_v58 = vcombine.low %v975_v44, %v979_v46  ;;  %v7691_v4 = vcombine.low %v823_v51, %v827_v54 }
 0x1da   :  { %6122 = vmatprep.subr.bf16.mxu0 %v7732_v39  ;;  %v971_v56 = vld [vmem:[#allocation5 + $0x1b28] sm:$0xff] }
 0x1db   :  { %6158 = vmatpush1.bf16.msra.mxu1 %v7755_v61  ;;  %v7692_v61 = vcombine.high %v823_v51, %v827_v54  ;;  %v7836_v39 = vcombine.high %v967_v55, %v971_v56  ;;  %v819_v63 = vld [vmem:[#allocation5 + $0x1668] sm:$0xff]  ;;  %v288_v51 = vld [vmem:[#allocation5 + $0x5d0] sm:$0xff] }
 0x1dc   :  { %6159 = vmatprep.subr.bf16.mxu1 %v7748_v62  ;;  %v815_v62 = vld [vmem:[#allocation5 + $0x1648] sm:$0xff]  ;;  %v292_v54 = vld [vmem:[#allocation5 + $0x5f0] sm:$0xff] }
 0x1dd   :  { %6123 = vmatpush2.bf16.msra.mxu0 %v7731_v5  ;;  %v959_v0 = vld [vmem:[#allocation5 + $0x1ac8] sm:$0xff]  ;;  %v7835_v5 = vcombine.low %v967_v55, %v971_v56  ;;  %v7683_v16 = vcombine.low %v815_v62, %v819_v63 }
 0x1de   :  { %6124 = vmatprep.subr.bf16.mxu0 %v7724_v9  ;;  %v963_v1 = vld [vmem:[#allocation5 + $0x1ae8] sm:$0xff] }
 0x1df   :  { %6160 = vmatpush1.bf16.msra.mxu1 %v7747_v7  ;;  %v7684_v7 = vcombine.high %v815_v62, %v819_v63  ;;  %v7828_v9 = vcombine.high %v959_v0, %v963_v1  ;;  %v811_v12 = vld [vmem:[#allocation5 + $0x1628] sm:$0xff]  ;;  %v7158_v62 = vcombine.high %v288_v51, %v292_v54  ;;  %v152_v63 = vld [vmem:[#allocation5 + $0x190] sm:$0xff] }
 0x1e0   :  { %6161 = vmatprep.subr.bf16.mxu1 %v7740_v11  ;;  %v807_v11 = vld [vmem:[#allocation5 + $0x1608] sm:$0xff] }
 0x1e1   :  { %6125 = vmatpush2.bf16.msra.mxu0 %v7723_v18  ;;  %v951_v13 = vld [vmem:[#allocation5 + $0x1a88] sm:$0xff]  ;;  %v7827_v18 = vcombine.low %v959_v0, %v963_v1  ;;  %v7675_v31 = vcombine.low %v807_v11, %v811_v12  ;;  %v156_v0 = vld [vmem:[#allocation5 + $0x1b0] sm:$0xff] }
 0x1e2   :  { %6126 = vmatprep.subr.bf16.mxu0 %v7716_v22  ;;  %v955_v15 = vld [vmem:[#allocation5 + $0x1aa8] sm:$0xff] }
 0x1e3   :  { %6162 = vmatpush1.bf16.msra.mxu1 %v7739_v20  ;;  %v7676_v20 = vcombine.high %v807_v11, %v811_v12  ;;  %v7820_v22 = vcombine.high %v951_v13, %v955_v15  ;;  %v943_v28 = vld [vmem:[#allocation5 + $0x1a48] sm:$0xff]  ;;  %v7819_v33 = vcombine.low %v951_v13, %v955_v15  ;;  %v7022_v13 = vcombine.high %v152_v63, %v156_v0 }
 0x1e4   :  { %6163 = vmatprep.subr.bf16.mxu1 %v7860_v24  ;;  %v999_v24 = vld [vmem:[#allocation5 + $0x1c08] sm:$0xff] }
 0x1e5   :  { %6127 = vmatpush2.bf16.msra.mxu0 %v7715_v34  ;;  %v947_v30 = vld [vmem:[#allocation5 + $0x1a68] sm:$0xff]  ;;  %v7868_v34 = vcombine.high %v999_v24, %v999_v24 }
 0x1e6   :  { %6128 = vmatprep.subr.bf16.mxu0 %v7708_v35  ;;  %v7812_v35 = vcombine.high %v943_v28, %v947_v30  ;;  %v935_v43 = vld [vmem:[#allocation5 + $0x1a08] sm:$0xff]  ;;  %v7811_v46 = vcombine.low %v943_v28, %v947_v30 }
 0x1e7   :  { %6164 = vmatpush2.bf16.msra.mxu1 %v7859_v10  ;;  %v7867_v10 = vcombine.low %v999_v24, %v999_v24  ;;  %v939_v44 = vld [vmem:[#allocation5 + $0x1a28] sm:$0xff] }
 0x1e8   :  { %6165 = vmatprep.subr.bf16.mxu1 %v7852_v36  ;;  %v160_v36 = vld [vmem:[#allocation5 + $0x1d0] sm:$0xff]  ;;  %v6893_v55 = vld [vmem:[#allocation8] sm:$0xff] }
 0x1e9   :  { %6129 = vmatpush2.bf16.msra.mxu0 %v7707_v47  ;;  %v5556_v47 = vsel %vm5548_vm0, %v7867_v10, 0  ;;  %v6898_v1 = vrot.slane %v6893_v55, %v1006_v38  ;;  %v7029_v12 = vcombine.low %v160_v36, %v164_v40  ;;  %v272_v38 = vld [vmem:[#allocation5 + $0x550] sm:$0xff] }
 0x1ea   :  { %6130 = vmatprep.subr.bf16.mxu0 %v7700_v27  ;;  %v7804_v27 = vcombine.high %v935_v43, %v939_v44  ;;  %v136_v10 = vld [vmem:[#allocation5 + $0x110] sm:$0xff] }
 0x1eb   :  { %6166 = vmatpush2.bf16.msra.mxu1 %v7851_v23  ;;  %v7030_v23 = vcombine.high %v160_v36, %v164_v40  ;;  %v264_v40 = vld [vmem:[#allocation5 + $0x510] sm:$0xff] }
 0x1ec   :  { %6167 = vmatprep.subr.bf16.mxu1 %v7844_v50 }
 0x1ed   :  { %6131 = vmatpush2.bf16.msra.mxu0 %v7699_v57 }
 0x1ee   :  { %6132 = vmatprep.subr.bf16.mxu0 %v7692_v61 }
 0x1ef   :  { %6168 = vmatpush2.bf16.msra.mxu1 %v7843_v58  ;;  %v7803_v58 = vcombine.low %v935_v43, %v939_v44  ;;  %v268_v43 = vld [vmem:[#allocation5 + $0x530] sm:$0xff] }
 0x1f0   :  { %6169 = vmatprep.subr.bf16.mxu1 %v7836_v39 }
 0x1f1   :  { %6133 = vmatpush2.bf16.msra.mxu0 %v7691_v4 }
 0x1f2   :  { %6134 = vmatprep.subr.bf16.mxu0 %v7684_v7  ;;  %v6902_v7 = vrot.slane %v6893_v55, %v1010_v45  ;;  %v256_v55 = vld [vmem:[#allocation5 + $0x4d0] sm:$0xff] }
 0x1f3   :  { %6170 = vmatpush2.bf16.msra.mxu1 %v7835_v5  ;;  %v284_v5 = vld [vmem:[#allocation5 + $0x5b0] sm:$0xff] }
 0x1f4   :  { %6171 = vmatprep.subr.bf16.mxu1 %v7828_v9 }
 0x1f5   :  { %6135 = vmatpush2.bf16.msra.mxu0 %v7683_v16 }
 0x1f6   :  { %6136 = vmatprep.subr.bf16.mxu0 %v7676_v20  ;;  %v148_v20 = vld [vmem:[#allocation5 + $0x170] sm:$0xff] }
 0x1f7   :  { %6172 = vmatpush2.bf16.msra.mxu1 %v7827_v18  ;;  %v144_v18 = vld [vmem:[#allocation5 + $0x150] sm:$0xff] }
 0x1f8   :  { %6173 = vmatprep.subr.bf16.mxu1 %v7820_v22  ;;  %v276_v22 = vld [vmem:[#allocation5 + $0x570] sm:$0xff] }
 0x1f9   :  { %6137 = vmatpush2.bf16.msra.mxu0 %v7675_v31  ;;  %v7014_v31 = vcombine.high %v144_v18, %v148_v20 }
 0x1fa   :  { %7875 = vmatprep.subr.msk.bf16.mxu0 %vm5548_vm0, %v7868_v34  ;;  %v7142_v34 = vcombine.high %v272_v38, %v276_v22 }
 0x1fb   :  { %6174 = vmatpush2.bf16.msra.mxu1 %v7819_v33 }
 0x1fc   :  { %6175 = vmatprep.subr.bf16.mxu1 %v7812_v35  ;;  %v5853_v50 = vpop.f32.mrf.mxu0  ;;  %6139 = vmatmul.mubr.bf16.vlgmr.msra.gmra.mxu0 %v8072_v6  ;;  %v140_v35 = vld [vmem:[#allocation5 + $0x130] sm:$0xff] }
 0x1fd   :  { %v5854_v56 = vadd.f32 %v5853_v50, %v8118_v42  ;;  %6203 = vmatpush1.bf16.msra.mxu0 %v5556_v47  ;;  %6220 = vmatprep.mubr.bf16.mxu0 %v7994_v19  ;;  %v280_v42 = vld [vmem:[#allocation5 + $0x590] sm:$0xff]  ;;  %v7141_v47 = vcombine.low %v272_v38, %v276_v22  ;;  %v7134_v50 = vcombine.high %v264_v40, %v268_v43 }
 0x1fe   :  { %v5855_v57 = vpop.f32.mrf.mxu0  ;;  %6229 = vmatprep.subr.bf16.mxu0 %v7030_v23  ;;  %v7150_v16 = vcombine.high %v280_v42, %v284_v5  ;;  %v7149_v30 = vcombine.low %v280_v42, %v284_v5  ;;  %v7006_v23 = vcombine.high %v136_v10, %v140_v35  ;;  %v232_v38 = vld [vmem:[#allocation5 + $0x410] sm:$0xff] }
 0x1ff   :  { %6176 = vmatpush2.bf16.msra.mxu1 %v7811_v46  ;;  %v5895_v61 = vadd.f32 %v8124_v2, %v5854_v56  ;;  %v5856_v39 = vadd.f32 %v5855_v57, %v8121_v53  ;;  %v7157_v53 = vcombine.low %v288_v51, %v292_v54  ;;  %v7013_v46 = vcombine.low %v144_v18, %v148_v20  ;;  %v128_v51 = vld [vmem:[#allocation5 + $0xd0] sm:$0xff] }
 0x200   :  { %6177 = vmatprep.subr.bf16.mxu1 %v7804_v27  ;;  %v5857_v4 = vpop.f32.mrf.mxu0  ;;  %v132_v54 = vld [vmem:[#allocation5 + $0xf0] sm:$0xff]  ;;  %v7005_v57 = vcombine.low %v136_v10, %v140_v35 }
 0x201   :  { %v6885_v9 = vmax.f32 %v5895_v61, 0.0  ;;  %v5897_v11 = vadd.f32 %v8126_v8, %v5856_v39  ;;  %v7021_v8 = vcombine.low %v152_v63, %v156_v0  ;;  %v260_v56 = vld [vmem:[#allocation5 + $0x4f0] sm:$0xff]  ;;  %v6998_v61 = vcombine.high %v128_v51, %v132_v54 }
 0x202   :  { %v5858_v2 = vpop.f32.mrf.mxu0  ;;  %v7126_v39 = vcombine.high %v256_v55, %v260_v56  ;;  %v124_v63 = vld [vmem:[#allocation5 + $0xb0] sm:$0xff]  ;;  %v6997_v4 = vcombine.low %v128_v51, %v132_v54  ;;  %v7125_v42 = vcombine.low %v256_v55, %v260_v56 }
 0x203   :  { %6178 = vmatpush2.bf16.msra.mxu1 %v7803_v58  ;;  %v6886_v15 = vmax.f32 %v5897_v11, 0.0  ;;  %v6935_v24 = vmul.f32 %v6898_v1, %v6885_v9  ;;  %v7133_v58 = vcombine.low %v264_v40, %v268_v43  ;;  %v248_v0 = vld [vmem:[#allocation5 + $0x490] sm:$0xff] }
 0x204   :  { %6270 = vmatprep.subr.bf16.mxu1 %v7158_v62  ;;  %7876 = vmatmul.mubr.msk.bf16.vlgmr.msra.gmra.mxu0 %vm5544_vm1, %v8082_v26  ;;  %v120_v62 = vld [vmem:[#allocation5 + $0x90] sm:$0xff] }
 0x205   :  { %v6936_v45 = vmul.f32 %v6902_v7, %v6886_v15  ;;  %6230 = vmatpush1.bf16.msra.mxu0 %v7029_v12  ;;  %6261 = vmatprep.mubr.bf16.mxu0 %v8040_v59  ;;  %v252_v1 = vld [vmem:[#allocation5 + $0x4b0] sm:$0xff]  ;;  %v6990_v5 = vcombine.high %v120_v62, %v124_v63 }
 0x206   :  { %v8143_v28 = vpop.f32.mrf.mxu1  ;;  %6180 = vmatmul.mubr.bf16.vlgmr.msra.gmra.mxu1 %v8091_v48  ;;  %6231 = vmatprep.subr.bf16.mxu0 %v7022_v13  ;;  %v7118_v7 = vcombine.high %v248_v0, %v252_v1  ;;  %v112_v9 = vld [vmem:[#allocation5 + $0x50] sm:$0xff]  ;;  %v7117_v13 = vcombine.low %v248_v0, %v252_v1 }
 0x207   :  { %6271 = vmatpush1.bf16.msra.mxu1 %v7157_v53  ;;  %v8149_v36 = vadd.f32 %v6936_v45, %v6935_v24  ;;  %6302 = vmatprep.mubr.bf16.mxu1 %v8042_v60  ;;  %v116_v11 = vld [vmem:[#allocation5 + $0x70] sm:$0xff]  ;;  %v6989_v53 = vcombine.low %v120_v62, %v124_v63 }
 0x208   :  { %v8146_v33 = vpop.f32.mrf.mxu1  ;;  %6272 = vmatprep.subr.bf16.mxu1 %v7150_v16  ;;  %v240_v12 = vld [vmem:[#allocation5 + $0x450] sm:$0xff]  ;;  %v6982_v15 = vcombine.high %v112_v9, %v116_v11  ;;  %v6981_v24 = vcombine.low %v112_v9, %v116_v11 }
 0x209   :  { %6232 = vmatpush1.bf16.msra.mxu0 %v7021_v8  ;;  %v244_v2 = vld [vmem:[#allocation5 + $0x470] sm:$0xff] }
 0x20a   :  { %v5939_v44 = vpop.f32.mrf.mxu1  ;;  %6233 = vmatprep.subr.bf16.mxu0 %v7014_v31  ;;  %v7110_v16 = vcombine.high %v240_v12, %v244_v2  ;;  %v104_v18 = vld [vmem:[#allocation5 + $0x10] sm:$0xff]  ;;  %v7109_v45 = vcombine.low %v240_v12, %v244_v2 }
 0x20b   :  { %6273 = vmatpush1.bf16.msra.mxu1 %v7149_v30  ;;  %v108_v20 = vld [vmem:[#allocation5 + $0x30] sm:$0xff] }
 0x20c   :  { %v5940_v27 = vpop.f32.mrf.mxu1  ;;  %6274 = vmatprep.subr.bf16.mxu1 %v7142_v34  ;;  %v236_v22 = vld [vmem:[#allocation5 + $0x430] sm:$0xff]  ;;  %v6974_v8 = vcombine.high %v104_v18, %v108_v20  ;;  %v6973_v40 = vcombine.low %v104_v18, %v108_v20 }
 0x20d   :  { %6234 = vmatpush1.bf16.msra.mxu0 %v7013_v46  ;;  %v7102_v30 = vcombine.high %v232_v38, %v236_v22  ;;  %v224_v31 = vld [vmem:[#allocation5 + $0x3d0] sm:$0xff]  ;;  %v7101_v43 = vcombine.low %v232_v38, %v236_v22 }
 0x20e   :  { %6235 = vmatprep.subr.bf16.mxu0 %v7006_v23  ;;  %v228_v34 = vld [vmem:[#allocation5 + $0x3f0] sm:$0xff] }
 0x20f   :  { %6275 = vmatpush1.bf16.msra.mxu1 %v7141_v47  ;;  %v352_v10 = vld [vmem:[#allocation5 + $0x7d0] sm:$0xff]  ;;  %v7094_v44 = vcombine.high %v224_v31, %v228_v34  ;;  %v7093_v51 = vcombine.low %v224_v31, %v228_v34 }
 0x210   :  { %6276 = vmatprep.subr.bf16.mxu1 %v7134_v50  ;;  %v356_v35 = vld [vmem:[#allocation5 + $0x7f0] sm:$0xff] }
 0x211   :  { %6236 = vmatpush1.bf16.msra.mxu0 %v7005_v57  ;;  %v7222_v46 = vcombine.high %v352_v10, %v356_v35  ;;  %v216_v47 = vld [vmem:[#allocation5 + $0x390] sm:$0xff]  ;;  %v7221_v54 = vcombine.low %v352_v10, %v356_v35  ;;  %v1014_v35 = vsub.s32 2, %v8087_v25 }
 0x212   :  { %6237 = vmatprep.subr.bf16.mxu0 %v6998_v61  ;;  %v220_v23 = vld [vmem:[#allocation5 + $0x3b0] sm:$0xff] }
 0x213   :  { %6277 = vmatpush1.bf16.msra.mxu1 %v7133_v58  ;;  %v344_v27 = vld [vmem:[#allocation5 + $0x790] sm:$0xff]  ;;  %v7086_v55 = vcombine.high %v216_v47, %v220_v23  ;;  %v7085_v62 = vcombine.low %v216_v47, %v220_v23  ;;  %v1018_v23 = vsub.s32 3, %v8087_v25 }
 0x214   :  { %6278 = vmatprep.subr.bf16.mxu1 %v7126_v39  ;;  %v348_v50 = vld [vmem:[#allocation5 + $0x7b0] sm:$0xff] }
 0x215   :  { %6238 = vmatpush1.bf16.msra.mxu0 %v6997_v4  ;;  %v7214_v56 = vcombine.high %v344_v27, %v348_v50  ;;  %v208_v57 = vld [vmem:[#allocation5 + $0x350] sm:$0xff]  ;;  %v7213_v63 = vcombine.low %v344_v27, %v348_v50 }
 0x216   :  { %6239 = vmatprep.subr.bf16.mxu0 %v6990_v5  ;;  %v212_v58 = vld [vmem:[#allocation5 + $0x370] sm:$0xff] }
 0x217   :  { %6279 = vmatpush1.bf16.msra.mxu1 %v7125_v42  ;;  %v336_v61 = vld [vmem:[#allocation5 + $0x750] sm:$0xff]  ;;  %v7078_v0 = vcombine.high %v208_v57, %v212_v58  ;;  %v7077_v9 = vcombine.low %v208_v57, %v212_v58 }
 0x218   :  { %6280 = vmatprep.subr.bf16.mxu1 %v7118_v7  ;;  %v340_v39 = vld [vmem:[#allocation5 + $0x770] sm:$0xff] }
 0x219   :  { %6240 = vmatpush1.bf16.msra.mxu0 %v6989_v53  ;;  %v7206_v1 = vcombine.high %v336_v61, %v340_v39  ;;  %v200_v4 = vld [vmem:[#allocation5 + $0x310] sm:$0xff]  ;;  %v7205_v11 = vcombine.low %v336_v61, %v340_v39 }
 0x21a   :  { %6241 = vmatprep.subr.bf16.mxu0 %v6982_v15  ;;  %v204_v42 = vld [vmem:[#allocation5 + $0x330] sm:$0xff] }
 0x21b   :  { %6281 = vmatpush1.bf16.msra.mxu1 %v7117_v13  ;;  %v328_v5 = vld [vmem:[#allocation5 + $0x710] sm:$0xff]  ;;  %v7070_v12 = vcombine.high %v200_v4, %v204_v42  ;;  %v7069_v18 = vcombine.low %v200_v4, %v204_v42 }
 0x21c   :  { %6282 = vmatprep.subr.bf16.mxu1 %v7110_v16  ;;  %v332_v7 = vld [vmem:[#allocation5 + $0x730] sm:$0xff] }
 0x21d   :  { %6242 = vmatpush1.bf16.msra.mxu0 %v6981_v24  ;;  %v7198_v2 = vcombine.high %v328_v5, %v332_v7  ;;  %v192_v53 = vld [vmem:[#allocation5 + $0x2d0] sm:$0xff]  ;;  %v7197_v20 = vcombine.low %v328_v5, %v332_v7 }
 0x21e   :  { %6243 = vmatprep.subr.bf16.mxu0 %v6974_v8  ;;  %v196_v13 = vld [vmem:[#allocation5 + $0x2f0] sm:$0xff] }
 0x21f   :  { %6283 = vmatpush1.bf16.msra.mxu1 %v7109_v45  ;;  %v320_v15 = vld [vmem:[#allocation5 + $0x6d0] sm:$0xff]  ;;  %v7062_v38 = vcombine.high %v192_v53, %v196_v13  ;;  %v7061_v31 = vcombine.low %v192_v53, %v196_v13 }
 0x220   :  { %6284 = vmatprep.subr.bf16.mxu1 %v7102_v30  ;;  %v324_v16 = vld [vmem:[#allocation5 + $0x6f0] sm:$0xff] }
 0x221   :  { %6244 = vmatpush1.bf16.msra.mxu0 %v6973_v40  ;;  %v7190_v22 = vcombine.high %v320_v15, %v324_v16  ;;  %v184_v24 = vld [vmem:[#allocation5 + $0x290] sm:$0xff]  ;;  %v7189_v34 = vcombine.low %v320_v15, %v324_v16 }
 0x222   :  { %6245 = vmatprep.subr.bf16.mxu0 %v7094_v44  ;;  %v188_v45 = vld [vmem:[#allocation5 + $0x2b0] sm:$0xff] }
 0x223   :  { %6285 = vmatpush1.bf16.msra.mxu1 %v7101_v43  ;;  %v312_v8 = vld [vmem:[#allocation5 + $0x690] sm:$0xff]  ;;  %v7054_v10 = vcombine.high %v184_v24, %v188_v45  ;;  %v7053_v27 = vcombine.low %v184_v24, %v188_v45 }
 0x224   :  { %6286 = vmatprep.subr.bf16.mxu1 %v7222_v46  ;;  %v316_v30 = vld [vmem:[#allocation5 + $0x6b0] sm:$0xff] }
 0x225   :  { %6246 = vmatpush2.bf16.msra.mxu0 %v7093_v51  ;;  %v7182_v40 = vcombine.high %v312_v8, %v316_v30  ;;  %v176_v43 = vld [vmem:[#allocation5 + $0x250] sm:$0xff]  ;;  %v7181_v50 = vcombine.low %v312_v8, %v316_v30 }
 0x226   :  { %6247 = vmatprep.subr.bf16.mxu0 %v7086_v55  ;;  %v180_v44 = vld [vmem:[#allocation5 + $0x270] sm:$0xff] }
 0x227   :  { %6287 = vmatpush2.bf16.msra.mxu1 %v7221_v54  ;;  %v304_v46 = vld [vmem:[#allocation5 + $0x650] sm:$0xff]  ;;  %v7046_v51 = vcombine.high %v176_v43, %v180_v44  ;;  %v7897_v54 = vld [vmem:[#allocation7] sm:$0xff] }
 0x228   :  { %6288 = vmatprep.subr.bf16.mxu1 %v7214_v56  ;;  %v308_v47 = vld [vmem:[#allocation5 + $0x670] sm:$0xff]  ;;  %v1015_v55 = vrot.slane %v7897_v54, %v1014_v35 }
 0x229   :  { %6248 = vmatpush2.bf16.msra.mxu0 %v7085_v62  ;;  %v7174_v56 = vcombine.high %v304_v46, %v308_v47  ;;  %v168_v57 = vld [vmem:[#allocation5 + $0x210] sm:$0xff]  ;;  %v1019_v62 = vrot.slane %v7897_v54, %v1018_v23 }
 0x22a   :  { %6249 = vmatprep.subr.bf16.mxu0 %v7078_v0  ;;  %v172_v58 = vld [vmem:[#allocation5 + $0x230] sm:$0xff]  ;;  %v7173_v0 = vcombine.low %v304_v46, %v308_v47  ;;  %v5936_v4 = vadd.f32 %v8143_v28, %v1015_v55 }
 0x22b   :  { %6289 = vmatpush2.bf16.msra.mxu1 %v7213_v63  ;;  %v296_v61 = vld [vmem:[#allocation5 + $0x610] sm:$0xff]  ;;  %v7045_v63 = vcombine.low %v176_v43, %v180_v44  ;;  %v7037_v13 = vcombine.low %v168_v57, %v172_v58 }
 0x22c   :  { %6290 = vmatprep.subr.bf16.mxu1 %v7206_v1  ;;  %v300_v39 = vld [vmem:[#allocation5 + $0x630] sm:$0xff]  ;;  %v7038_v1 = vcombine.high %v168_v57, %v172_v58 }
 0x22d   :  { %6250 = vmatpush2.bf16.msra.mxu0 %v7077_v9  ;;  %v7166_v42 = vcombine.high %v296_v61, %v300_v39  ;;  %v416_v5 = vld [vmem:[#allocation5 + $0x9d0] sm:$0xff]  ;;  %v7165_v16 = vcombine.low %v296_v61, %v300_v39 }
 0x22e   :  { %6251 = vmatprep.subr.bf16.mxu0 %v7070_v12  ;;  %v420_v7 = vld [vmem:[#allocation5 + $0x9f0] sm:$0xff] }
 0x22f   :  { %6291 = vmatpush2.bf16.msra.mxu1 %v7205_v11  ;;  %v544_v11 = vld [vmem:[#allocation5 + $0xdd0] sm:$0xff]  ;;  %v7285_v30 = vcombine.low %v416_v5, %v420_v7 }
 0x230   :  { %6292 = vmatprep.subr.bf16.mxu1 %v7198_v2  ;;  %v548_v12 = vld [vmem:[#allocation5 + $0xdf0] sm:$0xff]  ;;  %v5938_v2 = vadd.f32 %v8146_v33, %v1019_v62 }
 0x231   :  { %6252 = vmatpush2.bf16.msra.mxu0 %v7069_v18  ;;  %v7286_v18 = vcombine.high %v416_v5, %v420_v7  ;;  %v7414_v28 = vcombine.high %v544_v11, %v548_v12  ;;  %v536_v45 = vld [vmem:[#allocation5 + $0xd90] sm:$0xff] }
 0x232   :  { %6253 = vmatprep.subr.bf16.mxu0 %v7062_v38  ;;  %v408_v38 = vld [vmem:[#allocation5 + $0x990] sm:$0xff] }
 0x233   :  { %6293 = vmatpush2.bf16.msra.mxu1 %v7197_v20  ;;  %v540_v8 = vld [vmem:[#allocation5 + $0xdb0] sm:$0xff] }
 0x234   :  { %6294 = vmatprep.subr.bf16.mxu1 %v7190_v22  ;;  %v412_v22 = vld [vmem:[#allocation5 + $0x9b0] sm:$0xff] }
 0x235   :  { %6254 = vmatpush2.bf16.msra.mxu0 %v7061_v31  ;;  %v7413_v31 = vcombine.low %v544_v11, %v548_v12  ;;  %v404_v43 = vld [vmem:[#allocation5 + $0x970] sm:$0xff] }
 0x236   :  { %6255 = vmatprep.subr.bf16.mxu0 %v7054_v10  ;;  %v7406_v10 = vcombine.high %v536_v45, %v540_v8  ;;  %v528_v44 = vld [vmem:[#allocation5 + $0xd50] sm:$0xff] }
 0x237   :  { %6295 = vmatpush2.bf16.msra.mxu1 %v7189_v34  ;;  %v7278_v34 = vcombine.high %v408_v38, %v412_v22  ;;  %v532_v46 = vld [vmem:[#allocation5 + $0xd70] sm:$0xff] }
 0x238   :  { %6296 = vmatprep.subr.bf16.mxu1 %v7182_v40  ;;  %v400_v40 = vld [vmem:[#allocation5 + $0x950] sm:$0xff] }
 0x239   :  { %6256 = vmatpush2.bf16.msra.mxu0 %v7053_v27  ;;  %v7277_v27 = vcombine.low %v408_v38, %v412_v22  ;;  %v7270_v54 = vcombine.high %v400_v40, %v404_v43  ;;  %v392_v57 = vld [vmem:[#allocation5 + $0x910] sm:$0xff] }
 0x23a   :  { %6257 = vmatprep.subr.bf16.mxu0 %v7046_v51  ;;  %v7405_v51 = vcombine.low %v536_v45, %v540_v8  ;;  %v396_v58 = vld [vmem:[#allocation5 + $0x930] sm:$0xff] }
 0x23b   :  { %6297 = vmatpush2.bf16.msra.mxu1 %v7181_v50  ;;  %v520_v39 = vld [vmem:[#allocation5 + $0xd10] sm:$0xff] }
 0x23c   :  { %6298 = vmatprep.subr.bf16.mxu1 %v7174_v56  ;;  %v5976_v9 = vpop.f32.mrf.mxu0  ;;  %v7398_v56 = vcombine.high %v528_v44, %v532_v46  ;;  %v524_v62 = vld [vmem:[#allocation5 + $0xd30] sm:$0xff] }
 0x23d   :  { %v5977_v53 = vadd.f32 %v5976_v9, %v5936_v4  ;;  %6258 = vmatpush2.bf16.msra.mxu0 %v7045_v63  ;;  %v7262_v4 = vcombine.high %v392_v57, %v396_v58  ;;  %v7390_v5 = vcombine.high %v520_v39, %v524_v62  ;;  %v384_v7 = vld [vmem:[#allocation5 + $0x8d0] sm:$0xff] }
 0x23e   :  { %v5978_v15 = vpop.f32.mrf.mxu0  ;;  %6259 = vmatprep.subr.bf16.mxu0 %v7038_v1  ;;  %v7397_v1 = vcombine.low %v528_v44, %v532_v46  ;;  %v388_v9 = vld [vmem:[#allocation5 + $0x8f0] sm:$0xff] }
 0x23f   :  { %6299 = vmatpush2.bf16.msra.mxu1 %v7173_v0  ;;  %v5979_v20 = vadd.f32 %v5978_v15, %v5938_v2  ;;  %v7269_v0 = vcombine.low %v400_v40, %v404_v43  ;;  %v512_v11 = vld [vmem:[#allocation5 + $0xcd0] sm:$0xff]  ;;  %v7261_v2 = vcombine.low %v392_v57, %v396_v58  ;;  %v7253_v38 = vcombine.low %v384_v7, %v388_v9 }
 0x240   :  { %6300 = vmatprep.subr.bf16.mxu1 %v7166_v42  ;;  %v5980_v24 = vpop.f32.mrf.mxu0  ;;  %v516_v12 = vld [vmem:[#allocation5 + $0xcf0] sm:$0xff] }
 0x241   :  { %6260 = vmatpush2.bf16.msra.mxu0 %v7037_v13  ;;  %v7254_v13 = vcombine.high %v384_v7, %v388_v9  ;;  %v7382_v15 = vcombine.high %v512_v11, %v516_v12  ;;  %v7381_v22 = vcombine.low %v512_v11, %v516_v12  ;;  %v368_v8 = vld [vmem:[#allocation5 + $0x850] sm:$0xff] }
 0x242   :  { %v5981_v33 = vpop.f32.mrf.mxu0  ;;  %6311 = vmatprep.subr.bf16.mxu0 %v7286_v18  ;;  %v380_v18 = vld [vmem:[#allocation5 + $0x8b0] sm:$0xff] }
 0x243   :  { %6301 = vmatpush2.bf16.msra.mxu1 %v7165_v16  ;;  %v376_v16 = vld [vmem:[#allocation5 + $0x890] sm:$0xff] }
 0x244   :  { %6352 = vmatprep.subr.bf16.mxu1 %v7414_v28  ;;  %6262 = vmatmul.mubr.bf16.vlgmr.msra.gmra.mxu0 %v8046_v17  ;;  %v508_v28 = vld [vmem:[#allocation5 + $0xcb0] sm:$0xff]  ;;  %v7246_v24 = vcombine.high %v376_v16, %v380_v18 }
 0x245   :  { %6312 = vmatpush1.bf16.msra.mxu0 %v7285_v30  ;;  %6343 = vmatprep.mubr.bf16.mxu0 %v8050_v29  ;;  %v372_v30 = vld [vmem:[#allocation5 + $0x870] sm:$0xff] }
 0x246   :  { %v6017_v47 = vpop.f32.mrf.mxu1  ;;  %6303 = vmatmul.mubr.bf16.vlgmr.msra.gmra.mxu1 %v8048_v21  ;;  %6313 = vmatprep.subr.bf16.mxu0 %v7278_v34  ;;  %v496_v33 = vld [vmem:[#allocation5 + $0xc50] sm:$0xff]  ;;  %v7245_v34 = vcombine.low %v376_v16, %v380_v18  ;;  %v7238_v40 = vcombine.high %v368_v8, %v372_v30 }
 0x247   :  { %v8162_v50 = vadd.f32 %v6017_v47, %v5977_v53  ;;  %6353 = vmatpush1.bf16.msra.mxu1 %v7413_v31  ;;  %6384 = vmatprep.mubr.bf16.mxu1 %v8053_v32  ;;  %v7389_v53 = vcombine.low %v520_v39, %v524_v62  ;;  %v500_v31 = vld [vmem:[#allocation5 + $0xc70] sm:$0xff] }
 0x248   :  { %v6019_v55 = vpop.f32.mrf.mxu1  ;;  %6354 = vmatprep.subr.bf16.mxu1 %v7406_v10  ;;  %v7366_v43 = vcombine.high %v496_v33, %v500_v31  ;;  %v360_v44 = vld [vmem:[#allocation5 + $0x810] sm:$0xff] }
 0x249   :  { %v8165_v61 = vadd.f32 %v6019_v55, %v5979_v20  ;;  %6314 = vmatpush1.bf16.msra.mxu0 %v7277_v27  ;;  %v504_v20 = vld [vmem:[#allocation5 + $0xc90] sm:$0xff] }
 0x24a   :  { %v6021_v63 = vpop.f32.mrf.mxu1  ;;  %6315 = vmatprep.subr.bf16.mxu0 %v7270_v54  ;;  %v7374_v45 = vcombine.high %v504_v20, %v508_v28  ;;  %v7373_v10 = vcombine.low %v504_v20, %v508_v28  ;;  %v364_v46 = vld [vmem:[#allocation5 + $0x830] sm:$0xff]  ;;  %v7365_v54 = vcombine.low %v496_v33, %v500_v31 }
 0x24b   :  { %6355 = vmatpush1.bf16.msra.mxu1 %v7405_v51  ;;  %v488_v47 = vld [vmem:[#allocation5 + $0xc10] sm:$0xff]  ;;  %v7237_v51 = vcombine.low %v368_v8, %v372_v30  ;;  %v7230_v55 = vcombine.high %v360_v44, %v364_v46  ;;  %v7229_v63 = vcombine.low %v360_v44, %v364_v46 }
 0x24c   :  { %v6022_v42 = vpop.f32.mrf.mxu1  ;;  %6356 = vmatprep.subr.bf16.mxu1 %v7398_v56  ;;  %v492_v27 = vld [vmem:[#allocation5 + $0xc30] sm:$0xff] }
 0x24d   :  { %6316 = vmatpush1.bf16.msra.mxu0 %v7269_v0  ;;  %v7358_v56 = vcombine.high %v488_v47, %v492_v27  ;;  %v480_v57 = vld [vmem:[#allocation5 + $0xbd0] sm:$0xff]  ;;  %v7357_v0 = vcombine.low %v488_v47, %v492_v27 }
 0x24e   :  { %6317 = vmatprep.subr.bf16.mxu0 %v7262_v4  ;;  %v484_v58 = vld [vmem:[#allocation5 + $0xbf0] sm:$0xff] }
 0x24f   :  { %6357 = vmatpush1.bf16.msra.mxu1 %v7397_v1  ;;  %v608_v39 = vld [vmem:[#allocation5 + $0xfd0] sm:$0xff]  ;;  %v7350_v1 = vcombine.high %v480_v57, %v484_v58  ;;  %v7349_v11 = vcombine.low %v480_v57, %v484_v58 }
 0x250   :  { %6358 = vmatprep.subr.bf16.mxu1 %v7390_v5  ;;  %v612_v62 = vld [vmem:[#allocation5 + $0xff0] sm:$0xff] }
 0x251   :  { %6318 = vmatpush1.bf16.msra.mxu0 %v7261_v2  ;;  %v7478_v4 = vcombine.high %v608_v39, %v612_v62  ;;  %v472_v42 = vld [vmem:[#allocation5 + $0xb90] sm:$0xff]  ;;  %v7477_v12 = vcombine.low %v608_v39, %v612_v62 }
 0x252   :  { %6319 = vmatprep.subr.bf16.mxu0 %v7254_v13  ;;  %v476_v5 = vld [vmem:[#allocation5 + $0xbb0] sm:$0xff] }
 0x253   :  { %6359 = vmatpush1.bf16.msra.mxu1 %v7389_v53  ;;  %v600_v7 = vld [vmem:[#allocation5 + $0xf90] sm:$0xff]  ;;  %v7342_v2 = vcombine.high %v472_v42, %v476_v5  ;;  %v7341_v20 = vcombine.low %v472_v42, %v476_v5 }
 0x254   :  { %6360 = vmatprep.subr.bf16.mxu1 %v7382_v15  ;;  %v604_v9 = vld [vmem:[#allocation5 + $0xfb0] sm:$0xff] }
 0x255   :  { %6320 = vmatpush1.bf16.msra.mxu0 %v7253_v38  ;;  %v7470_v53 = vcombine.high %v600_v7, %v604_v9  ;;  %v464_v13 = vld [vmem:[#allocation5 + $0xb50] sm:$0xff]  ;;  %v7469_v28 = vcombine.low %v600_v7, %v604_v9 }
 0x256   :  { %6321 = vmatprep.subr.bf16.mxu0 %v7246_v24  ;;  %v468_v15 = vld [vmem:[#allocation5 + $0xb70] sm:$0xff] }
 0x257   :  { %6361 = vmatpush1.bf16.msra.mxu1 %v7381_v22  ;;  %v592_v16 = vld [vmem:[#allocation5 + $0xf50] sm:$0xff]  ;;  %v7334_v38 = vcombine.high %v464_v13, %v468_v15  ;;  %v7333_v33 = vcombine.low %v464_v13, %v468_v15 }
 0x258   :  { %6362 = vmatprep.subr.bf16.mxu1 %v7374_v45  ;;  %v596_v18 = vld [vmem:[#allocation5 + $0xf70] sm:$0xff] }
 0x259   :  { %6322 = vmatpush1.bf16.msra.mxu0 %v7245_v34  ;;  %v7462_v22 = vcombine.high %v592_v16, %v596_v18  ;;  %v456_v24 = vld [vmem:[#allocation5 + $0xb10] sm:$0xff]  ;;  %v7461_v31 = vcombine.low %v592_v16, %v596_v18 }
 0x25a   :  { %6323 = vmatprep.subr.bf16.mxu0 %v7238_v40  ;;  %v460_v45 = vld [vmem:[#allocation5 + $0xb30] sm:$0xff] }
 0x25b   :  { %6363 = vmatpush1.bf16.msra.mxu1 %v7373_v10  ;;  %v584_v8 = vld [vmem:[#allocation5 + $0xf10] sm:$0xff]  ;;  %v7326_v34 = vcombine.high %v456_v24, %v460_v45  ;;  %v7325_v47 = vcombine.low %v456_v24, %v460_v45 }
 0x25c   :  { %6364 = vmatprep.subr.bf16.mxu1 %v7366_v43  ;;  %v588_v30 = vld [vmem:[#allocation5 + $0xf30] sm:$0xff] }
 0x25d   :  { %6324 = vmatpush1.bf16.msra.mxu0 %v7237_v51  ;;  %v7454_v10 = vcombine.high %v584_v8, %v588_v30  ;;  %v448_v40 = vld [vmem:[#allocation5 + $0xad0] sm:$0xff]  ;;  %v7453_v27 = vcombine.low %v584_v8, %v588_v30 }
 0x25e   :  { %6325 = vmatprep.subr.bf16.mxu0 %v7230_v55  ;;  %v452_v43 = vld [vmem:[#allocation5 + $0xaf0] sm:$0xff] }
 0x25f   :  { %6365 = vmatpush1.bf16.msra.mxu1 %v7365_v54  ;;  %v576_v44 = vld [vmem:[#allocation5 + $0xed0] sm:$0xff]  ;;  %v7318_v51 = vcombine.high %v448_v40, %v452_v43  ;;  %v7317_v39 = vcombine.low %v448_v40, %v452_v43 }
 0x260   :  { %6366 = vmatprep.subr.bf16.mxu1 %v7358_v56  ;;  %v580_v46 = vld [vmem:[#allocation5 + $0xef0] sm:$0xff] }
 0x261   :  { %6326 = vmatpush1.bf16.msra.mxu0 %v7229_v63  ;;  %v7446_v54 = vcombine.high %v576_v44, %v580_v46  ;;  %v440_v55 = vld [vmem:[#allocation5 + $0xa90] sm:$0xff]  ;;  %v7445_v62 = vcombine.low %v576_v44, %v580_v46 }
 0x262   :  { %6327 = vmatprep.subr.bf16.mxu0 %v7350_v1  ;;  %v444_v56 = vld [vmem:[#allocation5 + $0xab0] sm:$0xff] }
 0x263   :  { %6367 = vmatpush1.bf16.msra.mxu1 %v7357_v0  ;;  %v568_v57 = vld [vmem:[#allocation5 + $0xe90] sm:$0xff]  ;;  %v7310_v63 = vcombine.high %v440_v55, %v444_v56  ;;  %v7309_v7 = vcombine.low %v440_v55, %v444_v56 }
 0x264   :  { %6368 = vmatprep.subr.bf16.mxu1 %v7478_v4  ;;  %v572_v58 = vld [vmem:[#allocation5 + $0xeb0] sm:$0xff] }
 0x265   :  { %6328 = vmatpush2.bf16.msra.mxu0 %v7349_v11  ;;  %v7438_v0 = vcombine.high %v568_v57, %v572_v58  ;;  %v432_v1 = vld [vmem:[#allocation5 + $0xa50] sm:$0xff]  ;;  %v7437_v9 = vcombine.low %v568_v57, %v572_v58 }
 0x266   :  { %6329 = vmatprep.subr.bf16.mxu0 %v7342_v2  ;;  %v436_v4 = vld [vmem:[#allocation5 + $0xa70] sm:$0xff] }
 0x267   :  { %6369 = vmatpush2.bf16.msra.mxu1 %v7477_v12  ;;  %v560_v42 = vld [vmem:[#allocation5 + $0xe50] sm:$0xff]  ;;  %v7302_v11 = vcombine.high %v432_v1, %v436_v4  ;;  %v7301_v16 = vcombine.low %v432_v1, %v436_v4 }
 0x268   :  { %6370 = vmatprep.subr.bf16.mxu1 %v7470_v53  ;;  %v564_v5 = vld [vmem:[#allocation5 + $0xe70] sm:$0xff] }
 0x269   :  { %6330 = vmatpush2.bf16.msra.mxu0 %v7341_v20  ;;  %v7430_v12 = vcombine.high %v560_v42, %v564_v5  ;;  %v424_v2 = vld [vmem:[#allocation5 + $0xa10] sm:$0xff]  ;;  %v7429_v18 = vcombine.low %v560_v42, %v564_v5 }
 0x26a   :  { %6331 = vmatprep.subr.bf16.mxu0 %v7334_v38  ;;  %v428_v53 = vld [vmem:[#allocation5 + $0xa30] sm:$0xff] }
 0x26b   :  { %6371 = vmatpush2.bf16.msra.mxu1 %v7469_v28  ;;  %v552_v13 = vld [vmem:[#allocation5 + $0xe10] sm:$0xff]  ;;  %v7294_v20 = vcombine.high %v424_v2, %v428_v53 }
 0x26c   :  { %6372 = vmatprep.subr.bf16.mxu1 %v7462_v22  ;;  %v556_v15 = vld [vmem:[#allocation5 + $0xe30] sm:$0xff] }
 0x26d   :  { %6332 = vmatpush2.bf16.msra.mxu0 %v7333_v33  ;;  %v7422_v28 = vcombine.high %v552_v13, %v556_v15  ;;  %v672_v38 = vld [vmem:[#allocation5 + $0x11d0] sm:$0xff]  ;;  %v7293_v33 = vcombine.low %v424_v2, %v428_v53 }
 0x26e   :  { %6333 = vmatprep.subr.bf16.mxu0 %v7326_v34  ;;  %v676_v22 = vld [vmem:[#allocation5 + $0x11f0] sm:$0xff]  ;;  %v7421_v34 = vcombine.low %v552_v13, %v556_v15 }
 0x26f   :  { %6373 = vmatpush2.bf16.msra.mxu1 %v7461_v31  ;;  %v800_v45 = vld [vmem:[#allocation5 + $0x15d0] sm:$0xff] }
 0x270   :  { %6374 = vmatprep.subr.bf16.mxu1 %v7454_v10  ;;  %v804_v8 = vld [vmem:[#allocation5 + $0x15f0] sm:$0xff]  ;;  %v7542_v10 = vcombine.high %v672_v38, %v676_v22 }
 0x271   :  { %6334 = vmatpush2.bf16.msra.mxu0 %v7325_v47  ;;  %v7670_v43 = vcombine.high %v800_v45, %v804_v8  ;;  %v664_v44 = vld [vmem:[#allocation5 + $0x1190] sm:$0xff]  ;;  %v7669_v55 = vcombine.low %v800_v45, %v804_v8 }
 0x272   :  { %6335 = vmatprep.subr.bf16.mxu0 %v7318_v51  ;;  %v668_v46 = vld [vmem:[#allocation5 + $0x11b0] sm:$0xff] }
 0x273   :  { %6375 = vmatpush2.bf16.msra.mxu1 %v7453_v27  ;;  %v792_v27 = vld [vmem:[#allocation5 + $0x1590] sm:$0xff]  ;;  %v7534_v56 = vcombine.high %v664_v44, %v668_v46 }
 0x274   :  { %6376 = vmatprep.subr.bf16.mxu1 %v7446_v54  ;;  %v796_v51 = vld [vmem:[#allocation5 + $0x15b0] sm:$0xff]  ;;  %v7541_v54 = vcombine.low %v672_v38, %v676_v22 }
 0x275   :  { %6336 = vmatpush2.bf16.msra.mxu0 %v7317_v39  ;;  %v7662_v57 = vcombine.high %v792_v27, %v796_v51  ;;  %v656_v58 = vld [vmem:[#allocation5 + $0x1150] sm:$0xff]  ;;  %v7661_v4 = vcombine.low %v792_v27, %v796_v51 }
 0x276   :  { %6337 = vmatprep.subr.bf16.mxu0 %v7310_v63  ;;  %v660_v39 = vld [vmem:[#allocation5 + $0x1170] sm:$0xff] }
 0x277   :  { %6377 = vmatpush2.bf16.msra.mxu1 %v7445_v62  ;;  %v788_v62 = vld [vmem:[#allocation5 + $0x1570] sm:$0xff]  ;;  %v7526_v42 = vcombine.high %v656_v58, %v660_v39  ;;  %v7525_v15 = vcombine.low %v656_v58, %v660_v39 }
 0x278   :  { %6378 = vmatprep.subr.bf16.mxu1 %v7438_v0  ;;  %v7533_v0 = vcombine.low %v664_v44, %v668_v46  ;;  %v776_v2 = vld [vmem:[#allocation5 + $0x1510] sm:$0xff] }
 0x279   :  { %6338 = vmatpush2.bf16.msra.mxu0 %v7309_v7  ;;  %v780_v53 = vld [vmem:[#allocation5 + $0x1530] sm:$0xff] }
 0x27a   :  { %6339 = vmatprep.subr.bf16.mxu0 %v7302_v11  ;;  %v652_v11 = vld [vmem:[#allocation5 + $0x1130] sm:$0xff] }
 0x27b   :  { %6379 = vmatpush2.bf16.msra.mxu1 %v7437_v9  ;;  %v648_v9 = vld [vmem:[#allocation5 + $0x1110] sm:$0xff] }
 0x27c   :  { %6380 = vmatprep.subr.bf16.mxu1 %v7430_v12  ;;  %v6058_v24 = vpop.f32.mrf.mxu0  ;;  %v640_v38 = vld [vmem:[#allocation5 + $0x10d0] sm:$0xff]  ;;  %v7517_v8 = vcombine.low %v648_v9, %v652_v11 }
 0x27d   :  { %v6059_v30 = vadd.f32 %v6058_v24, %v8162_v50  ;;  %6340 = vmatpush2.bf16.msra.mxu0 %v7301_v16  ;;  %v644_v22 = vld [vmem:[#allocation5 + $0x10f0] sm:$0xff] }
 0x27e   :  { %v6060_v31 = vpop.f32.mrf.mxu0  ;;  %6341 = vmatprep.subr.bf16.mxu0 %v7294_v20  ;;  %v768_v24 = vld [vmem:[#allocation5 + $0x14d0] sm:$0xff]  ;;  %v7509_v44 = vcombine.low %v640_v38, %v644_v22 }
 0x27f   :  { %6381 = vmatpush2.bf16.msra.mxu1 %v7429_v18  ;;  %v6061_v40 = vadd.f32 %v6060_v31, %v8165_v61  ;;  %v784_v61 = vld [vmem:[#allocation5 + $0x1550] sm:$0xff]  ;;  %v7518_v18 = vcombine.high %v648_v9, %v652_v11 }
 0x280   :  { %6382 = vmatprep.subr.bf16.mxu1 %v7422_v28  ;;  %v6062_v47 = vpop.f32.mrf.mxu0  ;;  %v7654_v7 = vcombine.high %v784_v61, %v788_v62  ;;  %v7653_v16 = vcombine.low %v784_v61, %v788_v62  ;;  %v7646_v28 = vcombine.high %v776_v2, %v780_v53  ;;  %v772_v45 = vld [vmem:[#allocation5 + $0x14f0] sm:$0xff] }
 0x281   :  { %6342 = vmatpush2.bf16.msra.mxu0 %v7293_v33  ;;  %v7510_v33 = vcombine.high %v640_v38, %v644_v22  ;;  %v7638_v31 = vcombine.high %v768_v24, %v772_v45  ;;  %v7637_v46 = vcombine.low %v768_v24, %v772_v45  ;;  %v624_v51 = vld [vmem:[#allocation5 + $0x1050] sm:$0xff] }
 0x282   :  { %v6063_v50 = vpop.f32.mrf.mxu0  ;;  %6393 = vmatprep.subr.bf16.mxu0 %v7542_v10  ;;  %v636_v10 = vld [vmem:[#allocation5 + $0x10b0] sm:$0xff] }
 0x283   :  { %6383 = vmatpush2.bf16.msra.mxu1 %v7421_v34  ;;  %v632_v34 = vld [vmem:[#allocation5 + $0x1090] sm:$0xff] }
 0x284   :  { %6434 = vmatprep.subr.bf16.mxu1 %v7670_v43  ;;  %6344 = vmatmul.mubr.bf16.vlgmr.msra.gmra.mxu0 %v8058_v37  ;;  %v764_v43 = vld [vmem:[#allocation5 + $0x14b0] sm:$0xff]  ;;  %v7502_v47 = vcombine.high %v632_v34, %v636_v10 }
 0x285   :  { %6394 = vmatpush1.bf16.msra.mxu0 %v7541_v54  ;;  %6425 = vmatprep.mubr.bf16.mxu0 %v8062_v49  ;;  %v628_v54 = vld [vmem:[#allocation5 + $0x1070] sm:$0xff] }
 0x286   :  { %v6099_v63 = vpop.f32.mrf.mxu1  ;;  %6385 = vmatmul.mubr.bf16.vlgmr.msra.gmra.mxu1 %v8060_v41  ;;  %6395 = vmatprep.subr.bf16.mxu0 %v7534_v56  ;;  %v752_v50 = vld [vmem:[#allocation5 + $0x1450] sm:$0xff]  ;;  %v7501_v56 = vcombine.low %v632_v34, %v636_v10  ;;  %v7494_v58 = vcombine.high %v624_v51, %v628_v54 }
 0x287   :  { %v8172_v1 = vadd.f32 %v6099_v63, %v6059_v30  ;;  %6435 = vmatpush1.bf16.msra.mxu1 %v7669_v55  ;;  %6466 = vmatprep.mubr.bf16.mxu1 %v8065_v52  ;;  %v7645_v30 = vcombine.low %v776_v2, %v780_v53  ;;  %v756_v55 = vld [vmem:[#allocation5 + $0x1470] sm:$0xff] }
 0x288   :  { %v6101_v5 = vpop.f32.mrf.mxu1  ;;  %6436 = vmatprep.subr.bf16.mxu1 %v7662_v57  ;;  %v7622_v39 = vcombine.high %v752_v50, %v756_v55  ;;  %v616_v61 = vld [vmem:[#allocation5 + $0x1010] sm:$0xff] }
 0x289   :  { %v8175_v12 = vadd.f32 %v6101_v5, %v6061_v40  ;;  %6396 = vmatpush1.bf16.msra.mxu0 %v7533_v0  ;;  %v760_v40 = vld [vmem:[#allocation5 + $0x1490] sm:$0xff] }
 0x28a   :  { %v6103_v13 = vpop.f32.mrf.mxu1  ;;  %6397 = vmatprep.subr.bf16.mxu0 %v7526_v42  ;;  %v7630_v27 = vcombine.high %v760_v40, %v764_v43  ;;  %v7629_v57 = vcombine.low %v760_v40, %v764_v43  ;;  %v620_v62 = vld [vmem:[#allocation5 + $0x1030] sm:$0xff]  ;;  %v7621_v42 = vcombine.low %v752_v50, %v756_v55 }
 0x28b   :  { %6437 = vmatpush1.bf16.msra.mxu1 %v7661_v4  ;;  %v744_v63 = vld [vmem:[#allocation5 + $0x1410] sm:$0xff]  ;;  %v7493_v4 = vcombine.low %v624_v51, %v628_v54  ;;  %v7486_v5 = vcombine.high %v616_v61, %v620_v62  ;;  %v7485_v13 = vcombine.low %v616_v61, %v620_v62 }
 0x28c   :  { %v6104_v20 = vpop.f32.mrf.mxu1  ;;  %6438 = vmatprep.subr.bf16.mxu1 %v7654_v7  ;;  %v748_v0 = vld [vmem:[#allocation5 + $0x1430] sm:$0xff] }
 0x28d   :  { %6398 = vmatpush1.bf16.msra.mxu0 %v7525_v15  ;;  %v7614_v7 = vcombine.high %v744_v63, %v748_v0  ;;  %v736_v9 = vld [vmem:[#allocation5 + $0x13d0] sm:$0xff]  ;;  %v7613_v15 = vcombine.low %v744_v63, %v748_v0 }
 0x28e   :  { %6399 = vmatprep.subr.bf16.mxu0 %v7518_v18  ;;  %v740_v11 = vld [vmem:[#allocation5 + $0x13f0] sm:$0xff] }
 0x28f   :  { %6439 = vmatpush1.bf16.msra.mxu1 %v7653_v16  ;;  %v864_v2 = vld [vmem:[#allocation5 + $0x17d0] sm:$0xff]  ;;  %v7606_v16 = vcombine.high %v736_v9, %v740_v11  ;;  %v7605_v24 = vcombine.low %v736_v9, %v740_v11 }
 0x290   :  { %6440 = vmatprep.subr.bf16.mxu1 %v7646_v28  ;;  %v868_v53 = vld [vmem:[#allocation5 + $0x17f0] sm:$0xff] }
 0x291   :  { %6400 = vmatpush1.bf16.msra.mxu0 %v7517_v8  ;;  %v7734_v18 = vcombine.high %v864_v2, %v868_v53  ;;  %v728_v20 = vld [vmem:[#allocation5 + $0x1390] sm:$0xff]  ;;  %v7733_v45 = vcombine.low %v864_v2, %v868_v53 }
 0x292   :  { %6401 = vmatprep.subr.bf16.mxu0 %v7510_v33  ;;  %v732_v28 = vld [vmem:[#allocation5 + $0x13b0] sm:$0xff] }
 0x293   :  { %6441 = vmatpush1.bf16.msra.mxu1 %v7645_v30  ;;  %v856_v38 = vld [vmem:[#allocation5 + $0x1790] sm:$0xff]  ;;  %v7598_v8 = vcombine.high %v728_v20, %v732_v28  ;;  %v7597_v40 = vcombine.low %v728_v20, %v732_v28 }
 0x294   :  { %6442 = vmatprep.subr.bf16.mxu1 %v7638_v31  ;;  %v860_v22 = vld [vmem:[#allocation5 + $0x17b0] sm:$0xff] }
 0x295   :  { %6402 = vmatpush1.bf16.msra.mxu0 %v7509_v44  ;;  %v7726_v30 = vcombine.high %v856_v38, %v860_v22  ;;  %v720_v33 = vld [vmem:[#allocation5 + $0x1350] sm:$0xff]  ;;  %v7725_v43 = vcombine.low %v856_v38, %v860_v22 }
 0x296   :  { %6403 = vmatprep.subr.bf16.mxu0 %v7502_v47  ;;  %v724_v31 = vld [vmem:[#allocation5 + $0x1370] sm:$0xff] }
 0x297   :  { %6443 = vmatpush1.bf16.msra.mxu1 %v7637_v46  ;;  %v848_v34 = vld [vmem:[#allocation5 + $0x1750] sm:$0xff]  ;;  %v7590_v44 = vcombine.high %v720_v33, %v724_v31  ;;  %v7589_v50 = vcombine.low %v720_v33, %v724_v31 }
 0x298   :  { %6444 = vmatprep.subr.bf16.mxu1 %v7630_v27  ;;  %v852_v10 = vld [vmem:[#allocation5 + $0x1770] sm:$0xff] }
 0x299   :  { %6404 = vmatpush1.bf16.msra.mxu0 %v7501_v56  ;;  %v7718_v46 = vcombine.high %v848_v34, %v852_v10  ;;  %v712_v47 = vld [vmem:[#allocation5 + $0x1310] sm:$0xff]  ;;  %v7717_v55 = vcombine.low %v848_v34, %v852_v10 }
 0x29a   :  { %6405 = vmatprep.subr.bf16.mxu0 %v7494_v58  ;;  %v716_v27 = vld [vmem:[#allocation5 + $0x1330] sm:$0xff] }
 0x29b   :  { %6445 = vmatpush1.bf16.msra.mxu1 %v7629_v57  ;;  %v840_v51 = vld [vmem:[#allocation5 + $0x1710] sm:$0xff]  ;;  %v7582_v56 = vcombine.high %v712_v47, %v716_v27  ;;  %v7581_v63 = vcombine.low %v712_v47, %v716_v27 }
 0x29c   :  { %6446 = vmatprep.subr.bf16.mxu1 %v7622_v39  ;;  %v844_v54 = vld [vmem:[#allocation5 + $0x1730] sm:$0xff] }
 0x29d   :  { %6406 = vmatpush1.bf16.msra.mxu0 %v7493_v4  ;;  %v7710_v57 = vcombine.high %v840_v51, %v844_v54  ;;  %v704_v58 = vld [vmem:[#allocation5 + $0x12d0] sm:$0xff]  ;;  %v7709_v0 = vcombine.low %v840_v51, %v844_v54 }
 0x29e   :  { %6407 = vmatprep.subr.bf16.mxu0 %v7486_v5  ;;  %v708_v39 = vld [vmem:[#allocation5 + $0x12f0] sm:$0xff] }
 0x29f   :  { %6447 = vmatpush1.bf16.msra.mxu1 %v7621_v42  ;;  %v832_v61 = vld [vmem:[#allocation5 + $0x16d0] sm:$0xff]  ;;  %v7574_v4 = vcombine.high %v704_v58, %v708_v39  ;;  %v7573_v2 = vcombine.low %v704_v58, %v708_v39 }
 0x2a0   :  { %6448 = vmatprep.subr.bf16.mxu1 %v7614_v7  ;;  %v836_v62 = vld [vmem:[#allocation5 + $0x16f0] sm:$0xff] }
 0x2a1   :  { %6408 = vmatpush1.bf16.msra.mxu0 %v7485_v13  ;;  %v7702_v42 = vcombine.high %v832_v61, %v836_v62  ;;  %v696_v5 = vld [vmem:[#allocation5 + $0x1290] sm:$0xff]  ;;  %v7701_v53 = vcombine.low %v832_v61, %v836_v62 }
 0x2a2   :  { %6409 = vmatprep.subr.bf16.mxu0 %v7606_v16  ;;  %v700_v7 = vld [vmem:[#allocation5 + $0x12b0] sm:$0xff] }
 0x2a3   :  { %6449 = vmatpush1.bf16.msra.mxu1 %v7613_v15  ;;  %v824_v9 = vld [vmem:[#allocation5 + $0x1690] sm:$0xff]  ;;  %v7566_v13 = vcombine.high %v696_v5, %v700_v7  ;;  %v7565_v38 = vcombine.low %v696_v5, %v700_v7 }
 0x2a4   :  { %6450 = vmatprep.subr.bf16.mxu1 %v7734_v18  ;;  %v828_v11 = vld [vmem:[#allocation5 + $0x16b0] sm:$0xff] }
 0x2a5   :  { %6410 = vmatpush2.bf16.msra.mxu0 %v7605_v24  ;;  %v7694_v15 = vcombine.high %v824_v9, %v828_v11  ;;  %v688_v16 = vld [vmem:[#allocation5 + $0x1250] sm:$0xff]  ;;  %v7693_v22 = vcombine.low %v824_v9, %v828_v11 }
 0x2a6   :  { %6411 = vmatprep.subr.bf16.mxu0 %v7598_v8  ;;  %v692_v18 = vld [vmem:[#allocation5 + $0x1270] sm:$0xff] }
 0x2a7   :  { %6451 = vmatpush2.bf16.msra.mxu1 %v7733_v45  ;;  %v816_v20 = vld [vmem:[#allocation5 + $0x1650] sm:$0xff]  ;;  %v7558_v24 = vcombine.high %v688_v16, %v692_v18  ;;  %v7557_v34 = vcombine.low %v688_v16, %v692_v18 }
 0x2a8   :  { %6452 = vmatprep.subr.bf16.mxu1 %v7726_v30  ;;  %v820_v28 = vld [vmem:[#allocation5 + $0x1670] sm:$0xff] }
 0x2a9   :  { %6412 = vmatpush2.bf16.msra.mxu0 %v7597_v40  ;;  %v7686_v45 = vcombine.high %v816_v20, %v820_v28  ;;  %v680_v8 = vld [vmem:[#allocation5 + $0x1210] sm:$0xff]  ;;  %v7685_v10 = vcombine.low %v816_v20, %v820_v28 }
 0x2aa   :  { %6413 = vmatprep.subr.bf16.mxu0 %v7590_v44  ;;  %v684_v30 = vld [vmem:[#allocation5 + $0x1230] sm:$0xff] }
 0x2ab   :  { %6453 = vmatpush2.bf16.msra.mxu1 %v7725_v43  ;;  %v808_v33 = vld [vmem:[#allocation5 + $0x1610] sm:$0xff]  ;;  %v7550_v40 = vcombine.high %v680_v8, %v684_v30  ;;  %v7549_v54 = vcombine.low %v680_v8, %v684_v30 }
 0x2ac   :  { %6454 = vmatprep.subr.bf16.mxu1 %v7718_v46  ;;  %v812_v31 = vld [vmem:[#allocation5 + $0x1630] sm:$0xff] }
 0x2ad   :  { %6414 = vmatpush2.bf16.msra.mxu0 %v7589_v50  ;;  %v7678_v43 = vcombine.high %v808_v33, %v812_v31  ;;  %v928_v44 = vld [vmem:[#allocation5 + $0x19d0] sm:$0xff] }
 0x2ae   :  { %6415 = vmatprep.subr.bf16.mxu0 %v7582_v56  ;;  %v932_v46 = vld [vmem:[#allocation5 + $0x19f0] sm:$0xff] }
 0x2af   :  { %6455 = vmatpush2.bf16.msra.mxu1 %v7717_v55  ;;  %v1000_v27 = vld [vmem:[#allocation5 + $0x1c10] sm:$0xff]  ;;  %v7677_v55 = vcombine.low %v808_v33, %v812_v31  ;;  %v7798_v56 = vcombine.high %v928_v44, %v932_v46  ;;  %v153_v33 = vld [vmem:[#allocation5 + $0x198] sm:$0xff] }
 0x2b0   :  { %6456 = vmatprep.subr.bf16.mxu1 %v7710_v57  ;;  %v7870_v58 = vcombine.high %v1000_v27, %v1000_v27  ;;  %v7869_v39 = vcombine.low %v1000_v27, %v1000_v27  ;;  %v920_v61 = vld [vmem:[#allocation5 + $0x1990] sm:$0xff]  ;;  %v157_v31 = vld [vmem:[#allocation5 + $0x1b8] sm:$0xff] }
 0x2b1   :  { %6416 = vmatpush2.bf16.msra.mxu0 %v7581_v63  ;;  %v924_v62 = vld [vmem:[#allocation5 + $0x19b0] sm:$0xff] }
 0x2b2   :  { %6417 = vmatprep.subr.bf16.mxu0 %v7574_v4  ;;  %v165_v4 = vld [vmem:[#allocation5 + $0x1f8] sm:$0xff]  ;;  %v7790_v5 = vcombine.high %v920_v61, %v924_v62  ;;  %v5562_v7 = vsel %vm5548_vm0, %v7869_v39, 0  ;;  %v916_v11 = vld [vmem:[#allocation5 + $0x1970] sm:$0xff]  ;;  %v7023_v39 = vcombine.low %v153_v33, %v157_v31 }
 0x2b3   :  { %6457 = vmatpush2.bf16.msra.mxu1 %v7709_v0  ;;  %v161_v0 = vld [vmem:[#allocation5 + $0x1d8] sm:$0xff]  ;;  %v904_v28 = vld [vmem:[#allocation5 + $0x1910] sm:$0xff] }
 0x2b4   :  { %6458 = vmatprep.subr.bf16.mxu1 %v7702_v42  ;;  %v7797_v42 = vcombine.low %v928_v44, %v932_v46  ;;  %v7032_v9 = vcombine.high %v161_v0, %v165_v4 }
 0x2b5   :  { %6418 = vmatpush2.bf16.msra.mxu0 %v7573_v2 }
 0x2b6   :  { %6419 = vmatprep.subr.bf16.mxu0 %v7566_v13  ;;  %v7789_v13 = vcombine.low %v920_v61, %v924_v62 }
 0x2b7   :  { %6459 = vmatpush2.bf16.msra.mxu1 %v7701_v53 }
 0x2b8   :  { %6460 = vmatprep.subr.bf16.mxu1 %v7694_v15 }
 0x2b9   :  { %6420 = vmatpush2.bf16.msra.mxu0 %v7565_v38  ;;  %v908_v38 = vld [vmem:[#allocation5 + $0x1930] sm:$0xff] }
 0x2ba   :  { %6421 = vmatprep.subr.bf16.mxu0 %v7558_v24  ;;  %v7898_v24 = vld [vmem:[#allocation8] sm:$0xff]  ;;  %v7774_v27 = vcombine.high %v904_v28, %v908_v38  ;;  %v7773_v61 = vcombine.low %v904_v28, %v908_v38  ;;  %v872_v28 = vld [vmem:[#allocation5 + $0x1810] sm:$0xff] }
 0x2bb   :  { %6461 = vmatpush2.bf16.msra.mxu1 %v7693_v22  ;;  %v6910_v46 = vrot.slane %v7898_v24, %v1018_v23  ;;  %v876_v38 = vld [vmem:[#allocation5 + $0x1830] sm:$0xff] }
 0x2bc   :  { %6462 = vmatprep.subr.bf16.mxu1 %v7686_v45  ;;  %v6140_v47 = vpop.f32.mrf.mxu0  ;;  %v6906_v45 = vrot.slane %v7898_v24, %v1014_v35  ;;  %v7024_v35 = vcombine.high %v153_v33, %v157_v31  ;;  %v125_v24 = vld [vmem:[#allocation5 + $0xb8] sm:$0xff]  ;;  %v992_v31 = vld [vmem:[#allocation5 + $0x1bd0] sm:$0xff] }
 0x2bd   :  { %v6141_v51 = vadd.f32 %v6140_v47, %v8172_v1  ;;  %6422 = vmatpush2.bf16.msra.mxu0 %v7557_v34 }
 0x2be   :  { %v6142_v50 = vpop.f32.mrf.mxu0  ;;  %6423 = vmatprep.subr.bf16.mxu0 %v7550_v40 }
 0x2bf   :  { %6463 = vmatpush2.bf16.msra.mxu1 %v7685_v10  ;;  %v6143_v57 = vadd.f32 %v6142_v50, %v8175_v12  ;;  %v912_v12 = vld [vmem:[#allocation5 + $0x1950] sm:$0xff]  ;;  %v7031_v10 = vcombine.low %v161_v0, %v165_v4 }
 0x2c0   :  { %6464 = vmatprep.subr.bf16.mxu1 %v7678_v43  ;;  %v6144_v63 = vpop.f32.mrf.mxu0  ;;  %v7782_v18 = vcombine.high %v912_v12, %v916_v11  ;;  %v7781_v40 = vcombine.low %v912_v12, %v916_v11  ;;  %v900_v50 = vld [vmem:[#allocation5 + $0x18f0] sm:$0xff] }
 0x2c1   :  { %6424 = vmatpush2.bf16.msra.mxu0 %v7549_v54  ;;  %v896_v54 = vld [vmem:[#allocation5 + $0x18d0] sm:$0xff] }
 0x2c2   :  { %v6145_v1 = vpop.f32.mrf.mxu0  ;;  %6475 = vmatprep.subr.bf16.mxu0 %v7798_v56  ;;  %v7766_v63 = vcombine.high %v896_v54, %v900_v50  ;;  %v888_v4 = vld [vmem:[#allocation5 + $0x1890] sm:$0xff] }
 0x2c3   :  { %6465 = vmatpush2.bf16.msra.mxu1 %v7677_v55 }
 0x2c4   :  { %7877 = vmatprep.subr.msk.bf16.mxu1 %vm5548_vm0, %v7870_v58  ;;  %6426 = vmatmul.mubr.bf16.vlgmr.msra.gmra.mxu0 %v8070_v3  ;;  %v6222_v2 = vpop.f32.mrf.mxu0  ;;  %v149_v58 = vld [vmem:[#allocation5 + $0x178] sm:$0xff] }
 0x2c5   :  { %6476 = vmatpush1.bf16.msra.mxu0 %v7797_v42  ;;  %6507 = vmatprep.mubr.bf16.mxu0 %v8077_v14  ;;  %v892_v42 = vld [vmem:[#allocation5 + $0x18b0] sm:$0xff] }
 0x2c6   :  { %v6181_v53 = vpop.f32.mrf.mxu1  ;;  %6467 = vmatmul.mubr.bf16.vlgmr.msra.gmra.mxu1 %v8072_v6  ;;  %v6224_v16 = vpop.f32.mrf.mxu0  ;;  %6477 = vmatprep.subr.bf16.mxu0 %v7790_v5  ;;  %v137_v5 = vld [vmem:[#allocation5 + $0x118] sm:$0xff] }
 0x2c7   :  { %v6182_v15 = vadd.f32 %v6181_v53, %v6141_v51  ;;  %6531 = vmatpush1.bf16.msra.mxu1 %v5562_v7  ;;  %6548 = vmatprep.mubr.bf16.mxu1 %v7994_v19  ;;  %v141_v7 = vld [vmem:[#allocation5 + $0x138] sm:$0xff]  ;;  %v884_v53 = vld [vmem:[#allocation5 + $0x1870] sm:$0xff] }
 0x2c8   :  { %v6183_v20 = vpop.f32.mrf.mxu1  ;;  %6557 = vmatprep.subr.bf16.mxu1 %v7032_v9  ;;  %v6226_v30 = vpop.f32.mrf.mxu0  ;;  %v7765_v9 = vcombine.low %v896_v54, %v900_v50  ;;  %v7008_v11 = vcombine.high %v137_v5, %v141_v7  ;;  %v109_v54 = vld [vmem:[#allocation5 + $0x38] sm:$0xff] }
 0x2c9   :  { %v6223_v22 = vadd.f32 %v6222_v2, %v6182_v15  ;;  %v6184_v8 = vadd.f32 %v6183_v20, %v6143_v57  ;;  %6478 = vmatpush1.bf16.msra.mxu0 %v7789_v13  ;;  %v145_v57 = vld [vmem:[#allocation5 + $0x158] sm:$0xff]  ;;  %v880_v2 = vld [vmem:[#allocation5 + $0x1850] sm:$0xff]  ;;  %v7742_v30 = vcombine.high %v872_v28, %v876_v38 }
 0x2ca   :  { %v6185_v34 = vpop.f32.mrf.mxu1  ;;  %v6227_v47 = vpop.f32.mrf.mxu0  ;;  %6479 = vmatprep.subr.bf16.mxu0 %v7782_v18  ;;  %v7016_v0 = vcombine.high %v145_v57, %v149_v58  ;;  %v7015_v12 = vcombine.low %v145_v57, %v149_v58  ;;  %v129_v13 = vld [vmem:[#allocation5 + $0xd8] sm:$0xff]  ;;  %v7750_v18 = vcombine.high %v880_v2, %v884_v53  ;;  %v976_v58 = vld [vmem:[#allocation5 + $0x1b50] sm:$0xff] }
 0x2cb   :  { %v6887_v43 = vmax.f32 %v6223_v22, 0.0  ;;  %v6225_v44 = vadd.f32 %v6224_v16, %v6184_v8  ;;  %v133_v15 = vld [vmem:[#allocation5 + $0xf8] sm:$0xff]  ;;  %v7757_v16 = vcombine.low %v888_v4, %v892_v42  ;;  %v996_v34 = vld [vmem:[#allocation5 + $0x1bf0] sm:$0xff] }
 0x2cc   :  { %v6186_v51 = vpop.f32.mrf.mxu1  ;;  %v7000_v20 = vcombine.high %v129_v13, %v133_v15  ;;  %v121_v22 = vld [vmem:[#allocation5 + $0x98] sm:$0xff]  ;;  %v6999_v8 = vcombine.low %v129_v13, %v133_v15  ;;  %v7861_v50 = vcombine.low %v992_v31, %v996_v34  ;;  %v964_v13 = vld [vmem:[#allocation5 + $0x1af0] sm:$0xff] }
 0x2cd   :  { %v6937_v55 = vmul.f32 %v6906_v45, %v6887_v43  ;;  %v6888_v56 = vmax.f32 %v6225_v44, 0.0  ;;  %6480 = vmatpush1.bf16.msra.mxu0 %v7781_v40  ;;  %v7749_v45 = vcombine.low %v880_v2, %v884_v53  ;;  %v6992_v33 = vcombine.high %v121_v22, %v125_v24  ;;  %v117_v40 = vld [vmem:[#allocation5 + $0x78] sm:$0xff]  ;;  %v988_v51 = vld [vmem:[#allocation5 + $0x1bb0] sm:$0xff] }
 0x2ce   :  { %7878 = vmatmul.mubr.msk.bf16.vlgmr.msra.gmra.mxu1 %vm5544_vm1, %v8082_v26  ;;  %6481 = vmatprep.subr.bf16.mxu0 %v7774_v27  ;;  %v7741_v43 = vcombine.low %v872_v28, %v876_v38  ;;  %v6991_v44 = vcombine.low %v121_v22, %v125_v24  ;;  %v984_v27 = vld [vmem:[#allocation5 + $0x1b90] sm:$0xff]  ;;  %v209_v15 = vld [vmem:[#allocation5 + $0x358] sm:$0xff] }
 0x2cf   :  { %v6944_v62 = vadd.f32 %v8149_v36, %v6937_v55  ;;  %v6938_v23 = vmul.f32 %v6910_v46, %v6888_v56  ;;  %6558 = vmatpush1.bf16.msra.mxu1 %v7031_v10  ;;  %6589 = vmatprep.mubr.bf16.mxu1 %v8040_v59  ;;  %v7758_v36 = vcombine.high %v888_v4, %v892_v42  ;;  %v113_v10 = vld [vmem:[#allocation5 + $0x58] sm:$0xff]  ;;  %v968_v42 = vld [vmem:[#allocation5 + $0x1b10] sm:$0xff] }
 0x2d0   :  { %6559 = vmatprep.subr.bf16.mxu1 %v7024_v35  ;;  %v7007_v59 = vcombine.low %v137_v5, %v141_v7  ;;  %v7862_v46 = vcombine.high %v992_v31, %v996_v34  ;;  %v6984_v47 = vcombine.high %v113_v10, %v117_v40  ;;  %v105_v35 = vld [vmem:[#allocation5 + $0x18] sm:$0xff]  ;;  %v6983_v55 = vcombine.low %v113_v10, %v117_v40  ;;  %v972_v5 = vld [vmem:[#allocation5 + $0x1b30] sm:$0xff] }
 0x2d1   :  { %v8194_v1 = vadd.f32 %v6944_v62, %v6938_v23  ;;  %6482 = vmatpush1.bf16.msra.mxu0 %v7773_v61  ;;  %v7854_v56 = vcombine.high %v984_v27, %v988_v51  ;;  %v6976_v57 = vcombine.high %v105_v35, %v109_v54  ;;  %v225_v61 = vld [vmem:[#allocation5 + $0x3d8] sm:$0xff]  ;;  %v7853_v23 = vcombine.low %v984_v27, %v988_v51  ;;  %v960_v53 = vld [vmem:[#allocation5 + $0x1ad0] sm:$0xff] }
 0x2d2   :  { %6483 = vmatprep.subr.bf16.mxu0 %v7766_v63  ;;  %v229_v62 = vld [vmem:[#allocation5 + $0x3f8] sm:$0xff]  ;;  %v6975_v63 = vcombine.low %v105_v35, %v109_v54  ;;  %v952_v38 = vld [vmem:[#allocation5 + $0x1a90] sm:$0xff] }
 0x2d3   :  { %6560 = vmatpush1.bf16.msra.mxu1 %v7023_v39  ;;  %v980_v39 = vld [vmem:[#allocation5 + $0x1b70] sm:$0xff]  ;;  %v7096_v4 = vcombine.high %v225_v61, %v229_v62  ;;  %v217_v7 = vld [vmem:[#allocation5 + $0x398] sm:$0xff] }
 0x2d4   :  { %6561 = vmatprep.subr.bf16.mxu1 %v7016_v0  ;;  %v7846_v0 = vcombine.high %v976_v58, %v980_v39  ;;  %v956_v22 = vld [vmem:[#allocation5 + $0x1ab0] sm:$0xff]  ;;  %v201_v24 = vld [vmem:[#allocation5 + $0x318] sm:$0xff] }
 0x2d5   :  { %6484 = vmatpush1.bf16.msra.mxu0 %v7765_v9  ;;  %v221_v9 = vld [vmem:[#allocation5 + $0x3b8] sm:$0xff]  ;;  %v944_v34 = vld [vmem:[#allocation5 + $0x1a50] sm:$0xff] }
 0x2d6   :  { %6485 = vmatprep.subr.bf16.mxu0 %v7758_v36  ;;  %v7095_v36 = vcombine.low %v225_v61, %v229_v62  ;;  %v7088_v2 = vcombine.high %v217_v7, %v221_v9  ;;  %v948_v10 = vld [vmem:[#allocation5 + $0x1a70] sm:$0xff]  ;;  %v193_v40 = vld [vmem:[#allocation5 + $0x2d8] sm:$0xff] }
 0x2d7   :  { %6562 = vmatpush1.bf16.msra.mxu1 %v7015_v12  ;;  %v7845_v12 = vcombine.low %v976_v58, %v980_v39  ;;  %v936_v51 = vld [vmem:[#allocation5 + $0x1a10] sm:$0xff]  ;;  %v185_v54 = vld [vmem:[#allocation5 + $0x298] sm:$0xff] }
 0x2d8   :  { %6563 = vmatprep.subr.bf16.mxu1 %v7008_v11  ;;  %v7838_v11 = vcombine.high %v968_v42, %v972_v5  ;;  %v940_v35 = vld [vmem:[#allocation5 + $0x1a30] sm:$0xff]  ;;  %v289_v39 = vld [vmem:[#allocation5 + $0x5d8] sm:$0xff] }
 0x2d9   :  { %6486 = vmatpush1.bf16.msra.mxu0 %v7757_v16  ;;  %v213_v16 = vld [vmem:[#allocation5 + $0x378] sm:$0xff] }
 0x2da   :  { %6487 = vmatprep.subr.bf16.mxu0 %v7750_v18  ;;  %v7087_v18 = vcombine.low %v217_v7, %v221_v9  ;;  %v7080_v28 = vcombine.high %v209_v15, %v213_v16  ;;  %v293_v61 = vld [vmem:[#allocation5 + $0x5f8] sm:$0xff]  ;;  %v1026_v7 = vsub.s32 5, %v8087_v25 }
 0x2db   :  { %6564 = vmatpush1.bf16.msra.mxu1 %v7007_v59  ;;  %v7837_v59 = vcombine.low %v968_v42, %v972_v5  ;;  %v177_v62 = vld [vmem:[#allocation5 + $0x258] sm:$0xff]  ;;  %v7160_v42 = vcombine.high %v289_v39, %v293_v61 }
 0x2dc   :  { %6565 = vmatprep.subr.bf16.mxu1 %v7000_v20  ;;  %v7830_v20 = vcombine.high %v960_v53, %v964_v13  ;;  %v281_v9 = vld [vmem:[#allocation5 + $0x598] sm:$0xff] }
 0x2dd   :  { %6488 = vmatpush1.bf16.msra.mxu0 %v7749_v45  ;;  %v205_v45 = vld [vmem:[#allocation5 + $0x338] sm:$0xff] }
 0x2de   :  { %6489 = vmatprep.subr.bf16.mxu0 %v7742_v30  ;;  %v7079_v30 = vcombine.low %v209_v15, %v213_v16  ;;  %v7072_v31 = vcombine.high %v201_v24, %v205_v45 }
 0x2df   :  { %6566 = vmatpush1.bf16.msra.mxu1 %v6999_v8  ;;  %v7829_v8 = vcombine.low %v960_v53, %v964_v13  ;;  %v7159_v13 = vcombine.low %v289_v39, %v293_v61  ;;  %v257_v61 = vld [vmem:[#allocation5 + $0x4d8] sm:$0xff] }
 0x2e0   :  { %6567 = vmatprep.subr.bf16.mxu1 %v6992_v33  ;;  %v7822_v33 = vcombine.high %v952_v38, %v956_v22 }
 0x2e1   :  { %6490 = vmatpush1.bf16.msra.mxu0 %v7741_v43  ;;  %v197_v43 = vld [vmem:[#allocation5 + $0x2f8] sm:$0xff] }
 0x2e2   :  { %6491 = vmatprep.subr.bf16.mxu0 %v7862_v46  ;;  %v7071_v46 = vcombine.low %v201_v24, %v205_v45  ;;  %v7064_v27 = vcombine.high %v193_v40, %v197_v43  ;;  %v421_v24 = vld [vmem:[#allocation5 + $0x9f8] sm:$0xff] }
 0x2e3   :  { %6568 = vmatpush1.bf16.msra.mxu1 %v6991_v44  ;;  %v7821_v44 = vcombine.low %v952_v38, %v956_v22  ;;  %v417_v22 = vld [vmem:[#allocation5 + $0x9d8] sm:$0xff] }
 0x2e4   :  { %6569 = vmatprep.subr.bf16.mxu1 %v6984_v47  ;;  %v7814_v47 = vcombine.high %v944_v34, %v948_v10 }
 0x2e5   :  { %6492 = vmatpush2.bf16.msra.mxu0 %v7861_v50  ;;  %v189_v50 = vld [vmem:[#allocation5 + $0x2b8] sm:$0xff] }
 0x2e6   :  { %6493 = vmatprep.subr.bf16.mxu0 %v7854_v56  ;;  %v7063_v56 = vcombine.low %v193_v40, %v197_v43  ;;  %v7056_v58 = vcombine.high %v185_v54, %v189_v50 }
 0x2e7   :  { %6570 = vmatpush1.bf16.msra.mxu1 %v6983_v55  ;;  %v7813_v55 = vcombine.low %v944_v34, %v948_v10 }
 0x2e8   :  { %6571 = vmatprep.subr.bf16.mxu1 %v6976_v57  ;;  %v7806_v57 = vcombine.high %v936_v51, %v940_v35 }
 0x2e9   :  { %6494 = vmatpush2.bf16.msra.mxu0 %v7853_v23  ;;  %v181_v23 = vld [vmem:[#allocation5 + $0x278] sm:$0xff] }
 0x2ea   :  { %6495 = vmatprep.subr.bf16.mxu0 %v7846_v0  ;;  %v1022_v0 = vsub.s32 4, %v8087_v25  ;;  %v7048_v5 = vcombine.high %v177_v62, %v181_v23  ;;  %v7047_v15 = vcombine.low %v177_v62, %v181_v23  ;;  %v261_v62 = vld [vmem:[#allocation5 + $0x4f8] sm:$0xff] }
 0x2eb   :  { %6572 = vmatpush1.bf16.msra.mxu1 %v6975_v63  ;;  %v7805_v63 = vcombine.low %v936_v51, %v940_v35  ;;  %v409_v51 = vld [vmem:[#allocation5 + $0x998] sm:$0xff] }
 0x2ec   :  { %6573 = vmatprep.subr.bf16.mxu1 %v7096_v4  ;;  %v7055_v4 = vcombine.low %v185_v54, %v189_v50  ;;  %v413_v35 = vld [vmem:[#allocation5 + $0x9b8] sm:$0xff] }
 0x2ed   :  { %6496 = vmatpush2.bf16.msra.mxu0 %v7845_v12  ;;  %v285_v12 = vld [vmem:[#allocation5 + $0x5b8] sm:$0xff]  ;;  %v7280_v39 = vcombine.high %v409_v51, %v413_v35 }
 0x2ee   :  { %6497 = vmatprep.subr.bf16.mxu0 %v7838_v11  ;;  %v173_v11 = vld [vmem:[#allocation5 + $0x238] sm:$0xff]  ;;  %v7152_v16 = vcombine.high %v281_v9, %v285_v12 }
 0x2ef   :  { %6574 = vmatpush2.bf16.msra.mxu1 %v7095_v36  ;;  %v169_v36 = vld [vmem:[#allocation5 + $0x218] sm:$0xff] }
 0x2f0   :  { %6575 = vmatprep.subr.bf16.mxu1 %v7088_v2  ;;  %v7899_v2 = vld [vmem:[#allocation7] sm:$0xff]  ;;  %v401_v23 = vld [vmem:[#allocation5 + $0x958] sm:$0xff] }
 0x2f1   :  { %6498 = vmatpush2.bf16.msra.mxu0 %v7837_v59  ;;  %v1023_v53 = vrot.slane %v7899_v2, %v1022_v0  ;;  %v1027_v59 = vrot.slane %v7899_v2, %v1026_v7  ;;  %v397_v2 = vld [vmem:[#allocation5 + $0x938] sm:$0xff] }
 0x2f2   :  { %6499 = vmatprep.subr.bf16.mxu0 %v7830_v20  ;;  %v273_v20 = vld [vmem:[#allocation5 + $0x558] sm:$0xff] }
 0x2f3   :  { %6576 = vmatpush2.bf16.msra.mxu1 %v7087_v18  ;;  %v7040_v18 = vcombine.high %v169_v36, %v173_v11 }
 0x2f4   :  { %6577 = vmatprep.subr.bf16.mxu1 %v7080_v28  ;;  %v277_v28 = vld [vmem:[#allocation5 + $0x578] sm:$0xff] }
 0x2f5   :  { %6500 = vmatpush2.bf16.msra.mxu0 %v7829_v8  ;;  %v7144_v34 = vcombine.high %v273_v20, %v277_v28 }
 0x2f6   :  { %6501 = vmatprep.subr.bf16.mxu0 %v7822_v33 }
 0x2f7   :  { %6578 = vmatpush2.bf16.msra.mxu1 %v7079_v30  ;;  %v7151_v30 = vcombine.low %v281_v9, %v285_v12  ;;  %v249_v12 = vld [vmem:[#allocation5 + $0x498] sm:$0xff] }
 0x2f8   :  { %6579 = vmatprep.subr.bf16.mxu1 %v7072_v31  ;;  %v7039_v31 = vcombine.low %v169_v36, %v173_v11  ;;  %v253_v36 = vld [vmem:[#allocation5 + $0x4b8] sm:$0xff] }
 0x2f9   :  { %6502 = vmatpush2.bf16.msra.mxu0 %v7821_v44  ;;  %v7288_v44 = vcombine.high %v417_v22, %v421_v24  ;;  %v393_v11 = vld [vmem:[#allocation5 + $0x918] sm:$0xff] }
 0x2fa   :  { %6503 = vmatprep.subr.bf16.mxu0 %v7814_v47  ;;  %v269_v47 = vld [vmem:[#allocation5 + $0x538] sm:$0xff] }
 0x2fb   :  { %6580 = vmatpush2.bf16.msra.mxu1 %v7071_v46  ;;  %v265_v46 = vld [vmem:[#allocation5 + $0x518] sm:$0xff] }
 0x2fc   :  { %6581 = vmatprep.subr.bf16.mxu1 %v7064_v27 }
 0x2fd   :  { %6504 = vmatpush2.bf16.msra.mxu0 %v7813_v55 }
 0x2fe   :  { %6505 = vmatprep.subr.bf16.mxu0 %v7806_v57  ;;  %v7136_v57 = vcombine.high %v265_v46, %v269_v47 }
 0x2ff   :  { %6582 = vmatpush2.bf16.msra.mxu1 %v7063_v56  ;;  %v7287_v56 = vcombine.low %v417_v22, %v421_v24  ;;  %v233_v24 = vld [vmem:[#allocation5 + $0x418] sm:$0xff] }
 0x300   :  { %6583 = vmatprep.subr.bf16.mxu1 %v7056_v58 }
 0x301   :  { %6506 = vmatpush2.bf16.msra.mxu0 %v7805_v63  ;;  %v405_v63 = vld [vmem:[#allocation5 + $0x978] sm:$0xff] }
 0x302   :  { %6598 = vmatprep.subr.bf16.mxu0 %v7160_v42  ;;  %v7279_v42 = vcombine.low %v409_v51, %v413_v35  ;;  %v7272_v9 = vcombine.high %v401_v23, %v405_v63 }
 0x303   :  { %6584 = vmatpush2.bf16.msra.mxu1 %v7055_v4  ;;  %v7135_v4 = vcombine.low %v265_v46, %v269_v47  ;;  %v369_v46 = vld [vmem:[#allocation5 + $0x858] sm:$0xff] }
 0x304   :  { %6585 = vmatprep.subr.bf16.mxu1 %v7048_v5  ;;  %v6263_v38 = vpop.f32.mrf.mxu0  ;;  %6508 = vmatmul.mubr.bf16.vlgmr.msra.gmra.mxu0 %v8091_v48  ;;  %v7128_v5 = vcombine.high %v257_v61, %v261_v62  ;;  %v373_v47 = vld [vmem:[#allocation5 + $0x878] sm:$0xff] }
 0x305   :  { %v6264_v45 = vadd.f32 %v6263_v38, %v1023_v53  ;;  %6599 = vmatpush1.bf16.msra.mxu0 %v7159_v13  ;;  %6630 = vmatprep.mubr.bf16.mxu0 %v8042_v60  ;;  %v7143_v60 = vcombine.low %v273_v20, %v277_v28  ;;  %v7127_v53 = vcombine.low %v257_v61, %v261_v62  ;;  %v389_v20 = vld [vmem:[#allocation5 + $0x8f8] sm:$0xff] }
 0x306   :  { %v6304_v8 = vpop.f32.mrf.mxu1  ;;  %v6265_v33 = vpop.f32.mrf.mxu0  ;;  %6600 = vmatprep.subr.bf16.mxu0 %v7152_v16  ;;  %v7271_v13 = vcombine.low %v401_v23, %v405_v63  ;;  %v241_v16 = vld [vmem:[#allocation5 + $0x458] sm:$0xff]  ;;  %v7119_v28 = vcombine.low %v249_v12, %v253_v36  ;;  %v7263_v38 = vcombine.low %v393_v11, %v397_v2 }
 0x307   :  { %6586 = vmatpush2.bf16.msra.mxu1 %v7047_v15  ;;  %v8204_v10 = vadd.f32 %v6304_v8, %v6264_v45  ;;  %v6266_v40 = vadd.f32 %v6265_v33, %v1027_v59  ;;  %v7264_v15 = vcombine.high %v393_v11, %v397_v2  ;;  %v245_v59 = vld [vmem:[#allocation5 + $0x478] sm:$0xff] }
 0x308   :  { %v6306_v43 = vpop.f32.mrf.mxu1  ;;  %6587 = vmatprep.subr.bf16.mxu1 %v7040_v18  ;;  %v6267_v27 = vpop.f32.mrf.mxu0  ;;  %v385_v18 = vld [vmem:[#allocation5 + $0x8d8] sm:$0xff]  ;;  %v7111_v33 = vcombine.low %v241_v16, %v245_v59 }
 0x309   :  { %v8206_v54 = vadd.f32 %v6306_v43, %v6266_v40  ;;  %6601 = vmatpush1.bf16.msra.mxu0 %v7151_v30  ;;  %v7256_v22 = vcombine.high %v385_v18, %v389_v20  ;;  %v237_v45 = vld [vmem:[#allocation5 + $0x438] sm:$0xff] }
 0x30a   :  { %v6308_v50 = vpop.f32.mrf.mxu1  ;;  %v6268_v55 = vpop.f32.mrf.mxu0  ;;  %6602 = vmatprep.subr.bf16.mxu0 %v7144_v34  ;;  %v377_v8 = vld [vmem:[#allocation5 + $0x898] sm:$0xff]  ;;  %v7104_v34 = vcombine.high %v233_v24, %v237_v45  ;;  %v7103_v27 = vcombine.low %v233_v24, %v237_v45 }
 0x30b   :  { %6588 = vmatpush2.bf16.msra.mxu1 %v7039_v31  ;;  %v381_v30 = vld [vmem:[#allocation5 + $0x8b8] sm:$0xff]  ;;  %v7255_v31 = vcombine.low %v385_v18, %v389_v20  ;;  %v7240_v50 = vcombine.high %v369_v46, %v373_v47 }
 0x30c   :  { %v6309_v58 = vpop.f32.mrf.mxu1  ;;  %6639 = vmatprep.subr.bf16.mxu1 %v7288_v44  ;;  %v7248_v40 = vcombine.high %v377_v8, %v381_v30  ;;  %v353_v43 = vld [vmem:[#allocation5 + $0x7d8] sm:$0xff]  ;;  %v7247_v51 = vcombine.low %v377_v8, %v381_v30 }
 0x30d   :  { %6603 = vmatpush1.bf16.msra.mxu0 %v7143_v60  ;;  %v357_v44 = vld [vmem:[#allocation5 + $0x7f8] sm:$0xff] }
 0x30e   :  { %6590 = vmatmul.mubr.bf16.vlgmr.msra.gmra.mxu1 %v8046_v17  ;;  %6604 = vmatprep.subr.bf16.mxu0 %v7136_v57  ;;  %v7120_v17 = vcombine.high %v249_v12, %v253_v36  ;;  %v7224_v35 = vcombine.high %v353_v43, %v357_v44  ;;  %v345_v60 = vld [vmem:[#allocation5 + $0x798] sm:$0xff]  ;;  %v7223_v58 = vcombine.low %v353_v43, %v357_v44 }
 0x30f   :  { %6640 = vmatpush1.bf16.msra.mxu1 %v7287_v56  ;;  %6671 = vmatprep.mubr.bf16.mxu1 %v8050_v29  ;;  %v7112_v29 = vcombine.high %v241_v16, %v245_v59  ;;  %v349_v55 = vld [vmem:[#allocation5 + $0x7b8] sm:$0xff] }
 0x310   :  { %6641 = vmatprep.subr.bf16.mxu1 %v7280_v39  ;;  %v361_v56 = vld [vmem:[#allocation5 + $0x818] sm:$0xff]  ;;  %v7239_v39 = vcombine.low %v369_v46, %v373_v47  ;;  %v7216_v61 = vcombine.high %v345_v60, %v349_v55 }
 0x311   :  { %6605 = vmatpush1.bf16.msra.mxu0 %v7135_v4  ;;  %v365_v57 = vld [vmem:[#allocation5 + $0x838] sm:$0xff] }
 0x312   :  { %6606 = vmatprep.subr.bf16.mxu0 %v7128_v5  ;;  %v7232_v62 = vcombine.high %v361_v56, %v365_v57  ;;  %v337_v23 = vld [vmem:[#allocation5 + $0x758] sm:$0xff]  ;;  %v7215_v5 = vcombine.low %v345_v60, %v349_v55 }
 0x313   :  { %6642 = vmatpush1.bf16.msra.mxu1 %v7279_v42  ;;  %v341_v63 = vld [vmem:[#allocation5 + $0x778] sm:$0xff] }
 0x314   :  { %6643 = vmatprep.subr.bf16.mxu1 %v7272_v9  ;;  %v481_v4 = vld [vmem:[#allocation5 + $0xbd8] sm:$0xff]  ;;  %v7231_v9 = vcombine.low %v361_v56, %v365_v57  ;;  %v7208_v12 = vcombine.high %v337_v23, %v341_v63 }
 0x315   :  { %6607 = vmatpush1.bf16.msra.mxu0 %v7127_v53  ;;  %v485_v42 = vld [vmem:[#allocation5 + $0xbf8] sm:$0xff] }
 0x316   :  { %6608 = vmatprep.subr.bf16.mxu0 %v7120_v17  ;;  %v7352_v36 = vcombine.high %v481_v4, %v485_v42  ;;  %v329_v11 = vld [vmem:[#allocation5 + $0x718] sm:$0xff]  ;;  %v7207_v17 = vcombine.low %v337_v23, %v341_v63 }
 0x317   :  { %6644 = vmatpush1.bf16.msra.mxu1 %v7271_v13  ;;  %v333_v2 = vld [vmem:[#allocation5 + $0x738] sm:$0xff] }
 0x318   :  { %6645 = vmatprep.subr.bf16.mxu1 %v7264_v15  ;;  %v473_v53 = vld [vmem:[#allocation5 + $0xb98] sm:$0xff]  ;;  %v7351_v15 = vcombine.low %v481_v4, %v485_v42  ;;  %v7200_v16 = vcombine.high %v329_v11, %v333_v2 }
 0x319   :  { %6609 = vmatpush1.bf16.msra.mxu0 %v7119_v28  ;;  %v477_v13 = vld [vmem:[#allocation5 + $0xbb8] sm:$0xff] }
 0x31a   :  { %6610 = vmatprep.subr.bf16.mxu0 %v7112_v29  ;;  %v7344_v59 = vcombine.high %v473_v53, %v477_v13  ;;  %v321_v18 = vld [vmem:[#allocation5 + $0x6d8] sm:$0xff]  ;;  %v7199_v29 = vcombine.low %v329_v11, %v333_v2 }
 0x31b   :  { %6646 = vmatpush1.bf16.msra.mxu1 %v7263_v38  ;;  %v325_v20 = vld [vmem:[#allocation5 + $0x6f8] sm:$0xff] }
 0x31c   :  { %6647 = vmatprep.subr.bf16.mxu1 %v7256_v22  ;;  %v465_v28 = vld [vmem:[#allocation5 + $0xb58] sm:$0xff]  ;;  %v7343_v22 = vcombine.low %v473_v53, %v477_v13  ;;  %v7192_v24 = vcombine.high %v321_v18, %v325_v20 }
 0x31d   :  { %6611 = vmatpush1.bf16.msra.mxu0 %v7111_v33  ;;  %v469_v38 = vld [vmem:[#allocation5 + $0xb78] sm:$0xff] }
 0x31e   :  { %6612 = vmatprep.subr.bf16.mxu0 %v7104_v34  ;;  %v7336_v45 = vcombine.high %v465_v28, %v469_v38  ;;  %v313_v8 = vld [vmem:[#allocation5 + $0x698] sm:$0xff]  ;;  %v7191_v34 = vcombine.low %v321_v18, %v325_v20 }
 0x31f   :  { %6648 = vmatpush1.bf16.msra.mxu1 %v7255_v31  ;;  %v317_v30 = vld [vmem:[#allocation5 + $0x6b8] sm:$0xff] }
 0x320   :  { %6649 = vmatprep.subr.bf16.mxu1 %v7248_v40  ;;  %v457_v33 = vld [vmem:[#allocation5 + $0xb18] sm:$0xff]  ;;  %v7335_v40 = vcombine.low %v465_v28, %v469_v38  ;;  %v7184_v43 = vcombine.high %v313_v8, %v317_v30 }
 0x321   :  { %6613 = vmatpush1.bf16.msra.mxu0 %v7103_v27  ;;  %v461_v31 = vld [vmem:[#allocation5 + $0xb38] sm:$0xff] }
 0x322   :  { %6614 = vmatprep.subr.bf16.mxu0 %v7224_v35  ;;  %v7328_v44 = vcombine.high %v457_v33, %v461_v31  ;;  %v305_v46 = vld [vmem:[#allocation5 + $0x658] sm:$0xff]  ;;  %v7183_v35 = vcombine.low %v313_v8, %v317_v30 }
 0x323   :  { %6650 = vmatpush1.bf16.msra.mxu1 %v7247_v51  ;;  %v309_v47 = vld [vmem:[#allocation5 + $0x678] sm:$0xff] }
 0x324   :  { %6651 = vmatprep.subr.bf16.mxu1 %v7240_v50  ;;  %v449_v27 = vld [vmem:[#allocation5 + $0xad8] sm:$0xff]  ;;  %v7327_v50 = vcombine.low %v457_v33, %v461_v31  ;;  %v7176_v60 = vcombine.high %v305_v46, %v309_v47 }
 0x325   :  { %6615 = vmatpush2.bf16.msra.mxu0 %v7223_v58  ;;  %v453_v51 = vld [vmem:[#allocation5 + $0xaf8] sm:$0xff] }
 0x326   :  { %6616 = vmatprep.subr.bf16.mxu0 %v7216_v61  ;;  %v7320_v55 = vcombine.high %v449_v27, %v453_v51  ;;  %v297_v56 = vld [vmem:[#allocation5 + $0x618] sm:$0xff]  ;;  %v7175_v61 = vcombine.low %v305_v46, %v309_v47 }
 0x327   :  { %6652 = vmatpush1.bf16.msra.mxu1 %v7239_v39  ;;  %v301_v57 = vld [vmem:[#allocation5 + $0x638] sm:$0xff] }
 0x328   :  { %6653 = vmatprep.subr.bf16.mxu1 %v7232_v62  ;;  %v441_v58 = vld [vmem:[#allocation5 + $0xa98] sm:$0xff]  ;;  %v7319_v62 = vcombine.low %v449_v27, %v453_v51  ;;  %v7168_v23 = vcombine.high %v297_v56, %v301_v57 }
 0x329   :  { %6617 = vmatpush2.bf16.msra.mxu0 %v7215_v5  ;;  %v445_v39 = vld [vmem:[#allocation5 + $0xab8] sm:$0xff] }
 0x32a   :  { %6618 = vmatprep.subr.bf16.mxu0 %v7208_v12  ;;  %v7312_v63 = vcombine.high %v441_v58, %v445_v39  ;;  %v545_v4 = vld [vmem:[#allocation5 + $0xdd8] sm:$0xff]  ;;  %v7167_v12 = vcombine.low %v297_v56, %v301_v57 }
 0x32b   :  { %6654 = vmatpush1.bf16.msra.mxu1 %v7231_v9  ;;  %v549_v42 = vld [vmem:[#allocation5 + $0xdf8] sm:$0xff] }
 0x32c   :  { %6655 = vmatprep.subr.bf16.mxu1 %v7352_v36  ;;  %v433_v5 = vld [vmem:[#allocation5 + $0xa58] sm:$0xff]  ;;  %v7311_v36 = vcombine.low %v441_v58, %v445_v39  ;;  %v7416_v11 = vcombine.high %v545_v4, %v549_v42 }
 0x32d   :  { %6619 = vmatpush2.bf16.msra.mxu0 %v7207_v17  ;;  %v437_v9 = vld [vmem:[#allocation5 + $0xa78] sm:$0xff] }
 0x32e   :  { %6620 = vmatprep.subr.bf16.mxu0 %v7200_v16  ;;  %v7304_v2 = vcombine.high %v433_v5, %v437_v9  ;;  %v537_v53 = vld [vmem:[#allocation5 + $0xd98] sm:$0xff]  ;;  %v7415_v16 = vcombine.low %v545_v4, %v549_v42 }
 0x32f   :  { %6656 = vmatpush2.bf16.msra.mxu1 %v7351_v15  ;;  %v541_v13 = vld [vmem:[#allocation5 + $0xdb8] sm:$0xff] }
 0x330   :  { %6657 = vmatprep.subr.bf16.mxu1 %v7344_v59  ;;  %v425_v17 = vld [vmem:[#allocation5 + $0xa18] sm:$0xff]  ;;  %v7303_v59 = vcombine.low %v433_v5, %v437_v9  ;;  %v7408_v18 = vcombine.high %v537_v53, %v541_v13  ;;  %v7407_v30 = vcombine.low %v537_v53, %v541_v13 }
 0x331   :  { %6621 = vmatpush2.bf16.msra.mxu0 %v7199_v29  ;;  %v429_v15 = vld [vmem:[#allocation5 + $0xa38] sm:$0xff] }
 0x332   :  { %6622 = vmatprep.subr.bf16.mxu0 %v7192_v24  ;;  %v7296_v20 = vcombine.high %v425_v17, %v429_v15  ;;  %v529_v28 = vld [vmem:[#allocation5 + $0xd58] sm:$0xff]  ;;  %v7295_v31 = vcombine.low %v425_v17, %v429_v15 }
 0x333   :  { %6658 = vmatpush2.bf16.msra.mxu1 %v7343_v22  ;;  %v533_v38 = vld [vmem:[#allocation5 + $0xd78] sm:$0xff] }
 0x334   :  { %6659 = vmatprep.subr.bf16.mxu1 %v7336_v45  ;;  %v673_v22 = vld [vmem:[#allocation5 + $0x11d8] sm:$0xff] }
 0x335   :  { %6623 = vmatpush2.bf16.msra.mxu0 %v7191_v34  ;;  %v677_v24 = vld [vmem:[#allocation5 + $0x11f8] sm:$0xff]  ;;  %v7400_v34 = vcombine.high %v529_v28, %v533_v38 }
 0x336   :  { %6624 = vmatprep.subr.bf16.mxu0 %v7184_v43  ;;  %v521_v46 = vld [vmem:[#allocation5 + $0xd18] sm:$0xff] }
 0x337   :  { %6660 = vmatpush2.bf16.msra.mxu1 %v7335_v40  ;;  %v525_v47 = vld [vmem:[#allocation5 + $0xd38] sm:$0xff] }
 0x338   :  { %6661 = vmatprep.subr.bf16.mxu1 %v7328_v44  ;;  %v665_v27 = vld [vmem:[#allocation5 + $0x1198] sm:$0xff]  ;;  %v7392_v56 = vcombine.high %v521_v46, %v525_v47 }
 0x339   :  { %6625 = vmatpush2.bf16.msra.mxu0 %v7183_v35  ;;  %v669_v51 = vld [vmem:[#allocation5 + $0x11b8] sm:$0xff] }
 0x33a   :  { %6626 = vmatprep.subr.bf16.mxu0 %v7176_v60  ;;  %v513_v58 = vld [vmem:[#allocation5 + $0xcd8] sm:$0xff] }
 0x33b   :  { %6662 = vmatpush2.bf16.msra.mxu1 %v7327_v50  ;;  %v7399_v50 = vcombine.low %v529_v28, %v533_v38  ;;  %v517_v39 = vld [vmem:[#allocation5 + $0xcf8] sm:$0xff] }
 0x33c   :  { %6663 = vmatprep.subr.bf16.mxu1 %v7320_v55  ;;  %v7543_v55 = vcombine.low %v673_v22, %v677_v24  ;;  %v7384_v4 = vcombine.high %v513_v58, %v517_v39  ;;  %v505_v5 = vld [vmem:[#allocation5 + $0xc98] sm:$0xff] }
 0x33d   :  { %6627 = vmatpush2.bf16.msra.mxu0 %v7175_v61  ;;  %v657_v61 = vld [vmem:[#allocation5 + $0x1158] sm:$0xff] }
 0x33e   :  { %6628 = vmatprep.subr.bf16.mxu0 %v7168_v23  ;;  %v7391_v23 = vcombine.low %v521_v46, %v525_v47  ;;  %v509_v9 = vld [vmem:[#allocation5 + $0xcb8] sm:$0xff] }
 0x33f   :  { %6664 = vmatpush2.bf16.msra.mxu1 %v7319_v62  ;;  %v661_v62 = vld [vmem:[#allocation5 + $0x1178] sm:$0xff] }
 0x340   :  { %6665 = vmatprep.subr.bf16.mxu1 %v7312_v63  ;;  %v7535_v63 = vcombine.low %v665_v27, %v669_v51  ;;  %v7528_v42 = vcombine.high %v657_v61, %v661_v62  ;;  %v497_v13 = vld [vmem:[#allocation5 + $0xc58] sm:$0xff] }
 0x341   :  { %6629 = vmatpush2.bf16.msra.mxu0 %v7167_v12  ;;  %v649_v12 = vld [vmem:[#allocation5 + $0x1118] sm:$0xff] }
 0x342   :  { %6680 = vmatprep.subr.bf16.mxu0 %v7416_v11  ;;  %v7383_v11 = vcombine.low %v513_v58, %v517_v39  ;;  %v501_v17 = vld [vmem:[#allocation5 + $0xc78] sm:$0xff] }
 0x343   :  { %6666 = vmatpush2.bf16.msra.mxu1 %v7311_v36  ;;  %v653_v36 = vld [vmem:[#allocation5 + $0x1138] sm:$0xff] }
 0x344   :  { %6667 = vmatprep.subr.bf16.mxu1 %v7304_v2  ;;  %v6345_v29 = vpop.f32.mrf.mxu0  ;;  %6631 = vmatmul.mubr.bf16.vlgmr.msra.gmra.mxu0 %v8048_v21  ;;  %v7544_v21 = vcombine.high %v673_v22, %v677_v24  ;;  %v7527_v2 = vcombine.low %v657_v61, %v661_v62  ;;  %v7520_v53 = vcombine.high %v649_v12, %v653_v36  ;;  %v641_v15 = vld [vmem:[#allocation5 + $0x10d8] sm:$0xff] }
 0x345   :  { %v6346_v45 = vadd.f32 %v6345_v29, %v8204_v10  ;;  %6681 = vmatpush1.bf16.msra.mxu0 %v7415_v16  ;;  %6712 = vmatprep.mubr.bf16.mxu0 %v8053_v32  ;;  %v645_v16 = vld [vmem:[#allocation5 + $0x10f8] sm:$0xff]  ;;  %v7367_v24 = vcombine.low %v497_v13, %v501_v17 }
 0x346   :  { %v6386_v8 = vpop.f32.mrf.mxu1  ;;  %v6347_v33 = vpop.f32.mrf.mxu0  ;;  %6682 = vmatprep.subr.bf16.mxu0 %v7408_v18  ;;  %v7519_v18 = vcombine.low %v649_v12, %v653_v36  ;;  %v489_v28 = vld [vmem:[#allocation5 + $0xc18] sm:$0xff] }
 0x347   :  { %6668 = vmatpush2.bf16.msra.mxu1 %v7303_v59  ;;  %v8213_v40 = vadd.f32 %v6386_v8, %v6346_v45  ;;  %v6348_v43 = vadd.f32 %v6347_v33, %v8206_v54  ;;  %v7536_v54 = vcombine.high %v665_v27, %v669_v51  ;;  %v7375_v59 = vcombine.low %v505_v5, %v509_v9  ;;  %v493_v38 = vld [vmem:[#allocation5 + $0xc38] sm:$0xff] }
 0x348   :  { %v6388_v44 = vpop.f32.mrf.mxu1  ;;  %6669 = vmatprep.subr.bf16.mxu1 %v7296_v20  ;;  %v6349_v10 = vpop.f32.mrf.mxu0  ;;  %v7512_v20 = vcombine.high %v641_v15, %v645_v16  ;;  %v633_v29 = vld [vmem:[#allocation5 + $0x1098] sm:$0xff]  ;;  %v7511_v45 = vcombine.low %v641_v15, %v645_v16  ;;  %v7360_v8 = vcombine.high %v489_v28, %v493_v38 }
 0x349   :  { %v8216_v35 = vadd.f32 %v6388_v44, %v6348_v43  ;;  %6683 = vmatpush1.bf16.msra.mxu0 %v7407_v30  ;;  %v637_v22 = vld [vmem:[#allocation5 + $0x10b8] sm:$0xff]  ;;  %v7359_v44 = vcombine.low %v489_v28, %v493_v38 }
 0x34a   :  { %v6390_v32 = vpop.f32.mrf.mxu1  ;;  %v6350_v60 = vpop.f32.mrf.mxu0  ;;  %6684 = vmatprep.subr.bf16.mxu0 %v7400_v34  ;;  %v7504_v30 = vcombine.high %v633_v29, %v637_v22  ;;  %v609_v33 = vld [vmem:[#allocation5 + $0xfd8] sm:$0xff] }
 0x34b   :  { %6670 = vmatpush2.bf16.msra.mxu1 %v7295_v31  ;;  %v613_v31 = vld [vmem:[#allocation5 + $0xff8] sm:$0xff] }
 0x34c   :  { %v6391_v57 = vpop.f32.mrf.mxu1  ;;  %6721 = vmatprep.subr.bf16.mxu1 %v7544_v21  ;;  %v625_v34 = vld [vmem:[#allocation5 + $0x1058] sm:$0xff]  ;;  %v7503_v21 = vcombine.low %v633_v29, %v637_v22  ;;  %v7480_v46 = vcombine.high %v609_v33, %v613_v31 }
 0x34d   :  { %6685 = vmatpush1.bf16.msra.mxu0 %v7399_v50  ;;  %v629_v43 = vld [vmem:[#allocation5 + $0x1078] sm:$0xff]  ;;  %v7479_v50 = vcombine.low %v609_v33, %v613_v31 }
 0x34e   :  { %6672 = vmatmul.mubr.bf16.vlgmr.msra.gmra.mxu1 %v8058_v37  ;;  %6686 = vmatprep.subr.bf16.mxu0 %v7392_v56  ;;  %v7376_v37 = vcombine.high %v505_v5, %v509_v9  ;;  %v7496_v47 = vcombine.high %v625_v34, %v629_v43  ;;  %v601_v10 = vld [vmem:[#allocation5 + $0xf98] sm:$0xff]  ;;  %v7495_v60 = vcombine.low %v625_v34, %v629_v43 }
 0x34f   :  { %6722 = vmatpush1.bf16.msra.mxu1 %v7543_v55  ;;  %6753 = vmatprep.mubr.bf16.mxu1 %v8062_v49  ;;  %v7368_v49 = vcombine.high %v497_v13, %v501_v17  ;;  %v605_v27 = vld [vmem:[#allocation5 + $0xfb8] sm:$0xff] }
 0x350   :  { %6723 = vmatprep.subr.bf16.mxu1 %v7536_v54  ;;  %v617_v51 = vld [vmem:[#allocation5 + $0x1018] sm:$0xff]  ;;  %v7472_v55 = vcombine.high %v601_v10, %v605_v27  ;;  %v7471_v61 = vcombine.low %v601_v10, %v605_v27 }
 0x351   :  { %6687 = vmatpush1.bf16.msra.mxu0 %v7391_v23  ;;  %v621_v32 = vld [vmem:[#allocation5 + $0x1038] sm:$0xff] }
 0x352   :  { %6688 = vmatprep.subr.bf16.mxu0 %v7384_v4  ;;  %v7488_v56 = vcombine.high %v617_v51, %v621_v32  ;;  %v593_v57 = vld [vmem:[#allocation5 + $0xf58] sm:$0xff]  ;;  %v7487_v62 = vcombine.low %v617_v51, %v621_v32 }
 0x353   :  { %6724 = vmatpush1.bf16.msra.mxu1 %v7535_v63  ;;  %v597_v54 = vld [vmem:[#allocation5 + $0xf78] sm:$0xff] }
 0x354   :  { %6725 = vmatprep.subr.bf16.mxu1 %v7528_v42  ;;  %v737_v58 = vld [vmem:[#allocation5 + $0x13d8] sm:$0xff]  ;;  %v7464_v23 = vcombine.high %v593_v57, %v597_v54  ;;  %v7463_v12 = vcombine.low %v593_v57, %v597_v54 }
 0x355   :  { %6689 = vmatpush1.bf16.msra.mxu0 %v7383_v11  ;;  %v741_v39 = vld [vmem:[#allocation5 + $0x13f8] sm:$0xff] }
 0x356   :  { %6690 = vmatprep.subr.bf16.mxu0 %v7376_v37  ;;  %v7608_v63 = vcombine.high %v737_v58, %v741_v39  ;;  %v585_v4 = vld [vmem:[#allocation5 + $0xf18] sm:$0xff]  ;;  %v7607_v36 = vcombine.low %v737_v58, %v741_v39 }
 0x357   :  { %6726 = vmatpush1.bf16.msra.mxu1 %v7527_v2  ;;  %v589_v42 = vld [vmem:[#allocation5 + $0xf38] sm:$0xff] }
 0x358   :  { %6727 = vmatprep.subr.bf16.mxu1 %v7520_v53  ;;  %v729_v5 = vld [vmem:[#allocation5 + $0x1398] sm:$0xff]  ;;  %v7456_v11 = vcombine.high %v585_v4, %v589_v42  ;;  %v7455_v15 = vcombine.low %v585_v4, %v589_v42 }
 0x359   :  { %6691 = vmatpush1.bf16.msra.mxu0 %v7375_v59  ;;  %v733_v9 = vld [vmem:[#allocation5 + $0x13b8] sm:$0xff] }
 0x35a   :  { %6692 = vmatprep.subr.bf16.mxu0 %v7368_v49  ;;  %v7600_v2 = vcombine.high %v729_v5, %v733_v9  ;;  %v577_v37 = vld [vmem:[#allocation5 + $0xed8] sm:$0xff]  ;;  %v7599_v16 = vcombine.low %v729_v5, %v733_v9 }
 0x35b   :  { %6728 = vmatpush1.bf16.msra.mxu1 %v7519_v18  ;;  %v581_v53 = vld [vmem:[#allocation5 + $0xef8] sm:$0xff] }
 0x35c   :  { %6729 = vmatprep.subr.bf16.mxu1 %v7512_v20  ;;  %v721_v13 = vld [vmem:[#allocation5 + $0x1358] sm:$0xff]  ;;  %v7448_v59 = vcombine.high %v577_v37, %v581_v53  ;;  %v7447_v29 = vcombine.low %v577_v37, %v581_v53 }
 0x35d   :  { %6693 = vmatpush1.bf16.msra.mxu0 %v7367_v24  ;;  %v725_v17 = vld [vmem:[#allocation5 + $0x1378] sm:$0xff] }
 0x35e   :  { %6694 = vmatprep.subr.bf16.mxu0 %v7360_v8  ;;  %v7592_v18 = vcombine.high %v721_v13, %v725_v17  ;;  %v569_v49 = vld [vmem:[#allocation5 + $0xe98] sm:$0xff]  ;;  %v7591_v22 = vcombine.low %v721_v13, %v725_v17 }
 0x35f   :  { %6730 = vmatpush1.bf16.msra.mxu1 %v7511_v45  ;;  %v573_v20 = vld [vmem:[#allocation5 + $0xeb8] sm:$0xff] }
 0x360   :  { %6731 = vmatprep.subr.bf16.mxu1 %v7504_v30  ;;  %v713_v28 = vld [vmem:[#allocation5 + $0x1318] sm:$0xff]  ;;  %v7440_v24 = vcombine.high %v569_v49, %v573_v20  ;;  %v7439_v34 = vcombine.low %v569_v49, %v573_v20 }
 0x361   :  { %6695 = vmatpush1.bf16.msra.mxu0 %v7359_v44  ;;  %v717_v38 = vld [vmem:[#allocation5 + $0x1338] sm:$0xff] }
 0x362   :  { %6696 = vmatprep.subr.bf16.mxu0 %v7480_v46  ;;  %v7584_v45 = vcombine.high %v713_v28, %v717_v38  ;;  %v561_v8 = vld [vmem:[#allocation5 + $0xe58] sm:$0xff]  ;;  %v7583_v43 = vcombine.low %v713_v28, %v717_v38 }
 0x363   :  { %6732 = vmatpush1.bf16.msra.mxu1 %v7503_v21  ;;  %v565_v30 = vld [vmem:[#allocation5 + $0xe78] sm:$0xff] }
 0x364   :  { %6733 = vmatprep.subr.bf16.mxu1 %v7496_v47  ;;  %v705_v33 = vld [vmem:[#allocation5 + $0x12d8] sm:$0xff]  ;;  %v7432_v44 = vcombine.high %v561_v8, %v565_v30  ;;  %v7431_v51 = vcombine.low %v561_v8, %v565_v30 }
 0x365   :  { %6697 = vmatpush2.bf16.msra.mxu0 %v7479_v50  ;;  %v709_v31 = vld [vmem:[#allocation5 + $0x12f8] sm:$0xff] }
 0x366   :  { %6698 = vmatprep.subr.bf16.mxu0 %v7472_v55  ;;  %v7576_v21 = vcombine.high %v705_v33, %v709_v31  ;;  %v553_v46 = vld [vmem:[#allocation5 + $0xe18] sm:$0xff]  ;;  %v7575_v32 = vcombine.low %v705_v33, %v709_v31 }
 0x367   :  { %6734 = vmatpush1.bf16.msra.mxu1 %v7495_v60  ;;  %v557_v47 = vld [vmem:[#allocation5 + $0xe38] sm:$0xff] }
 0x368   :  { %6735 = vmatprep.subr.bf16.mxu1 %v7488_v56  ;;  %v697_v10 = vld [vmem:[#allocation5 + $0x1298] sm:$0xff]  ;;  %v7424_v50 = vcombine.high %v553_v46, %v557_v47  ;;  %v7423_v58 = vcombine.low %v553_v46, %v557_v47 }
 0x369   :  { %6699 = vmatpush2.bf16.msra.mxu0 %v7471_v61  ;;  %v701_v27 = vld [vmem:[#allocation5 + $0x12b8] sm:$0xff] }
 0x36a   :  { %6700 = vmatprep.subr.bf16.mxu0 %v7464_v23  ;;  %v7568_v60 = vcombine.high %v697_v10, %v701_v27  ;;  %v801_v55 = vld [vmem:[#allocation5 + $0x15d8] sm:$0xff]  ;;  %v7567_v39 = vcombine.low %v697_v10, %v701_v27 }
 0x36b   :  { %6736 = vmatpush1.bf16.msra.mxu1 %v7487_v62  ;;  %v805_v56 = vld [vmem:[#allocation5 + $0x15f8] sm:$0xff] }
 0x36c   :  { %6737 = vmatprep.subr.bf16.mxu1 %v7608_v63  ;;  %v689_v57 = vld [vmem:[#allocation5 + $0x1258] sm:$0xff]  ;;  %v7672_v61 = vcombine.high %v801_v55, %v805_v56  ;;  %v7671_v5 = vcombine.low %v801_v55, %v805_v56 }
 0x36d   :  { %6701 = vmatpush2.bf16.msra.mxu0 %v7463_v12  ;;  %v693_v54 = vld [vmem:[#allocation5 + $0x1278] sm:$0xff] }
 0x36e   :  { %6702 = vmatprep.subr.bf16.mxu0 %v7456_v11  ;;  %v7560_v62 = vcombine.high %v689_v57, %v693_v54  ;;  %v793_v23 = vld [vmem:[#allocation5 + $0x1598] sm:$0xff]  ;;  %v7559_v9 = vcombine.low %v689_v57, %v693_v54 }
 0x36f   :  { %6738 = vmatpush2.bf16.msra.mxu1 %v7607_v36  ;;  %v797_v63 = vld [vmem:[#allocation5 + $0x15b8] sm:$0xff] }
 0x370   :  { %6739 = vmatprep.subr.bf16.mxu1 %v7600_v2  ;;  %v681_v4 = vld [vmem:[#allocation5 + $0x1218] sm:$0xff]  ;;  %v7664_v12 = vcombine.high %v793_v23, %v797_v63 }
 0x371   :  { %6703 = vmatpush2.bf16.msra.mxu0 %v7455_v15  ;;  %v685_v42 = vld [vmem:[#allocation5 + $0x1238] sm:$0xff] }
 0x372   :  { %6704 = vmatprep.subr.bf16.mxu0 %v7448_v59  ;;  %v7552_v36 = vcombine.high %v681_v4, %v685_v42  ;;  %v785_v11 = vld [vmem:[#allocation5 + $0x1558] sm:$0xff] }
 0x373   :  { %6740 = vmatpush2.bf16.msra.mxu1 %v7599_v16  ;;  %v789_v2 = vld [vmem:[#allocation5 + $0x1578] sm:$0xff]  ;;  %v7663_v16 = vcombine.low %v793_v23, %v797_v63 }
 0x374   :  { %6741 = vmatprep.subr.bf16.mxu1 %v7592_v18  ;;  %v929_v53 = vld [vmem:[#allocation5 + $0x19d8] sm:$0xff]  ;;  %v7551_v18 = vcombine.low %v681_v4, %v685_v42  ;;  %v7656_v49 = vcombine.high %v785_v11, %v789_v2  ;;  %v7655_v30 = vcombine.low %v785_v11, %v789_v2 }
 0x375   :  { %6705 = vmatpush2.bf16.msra.mxu0 %v7447_v29  ;;  %v933_v13 = vld [vmem:[#allocation5 + $0x19f8] sm:$0xff] }
 0x376   :  { %6706 = vmatprep.subr.bf16.mxu0 %v7440_v24  ;;  %v777_v29 = vld [vmem:[#allocation5 + $0x1518] sm:$0xff]  ;;  %v7799_v31 = vcombine.low %v929_v53, %v933_v13 }
 0x377   :  { %6742 = vmatpush2.bf16.msra.mxu1 %v7591_v22  ;;  %v781_v22 = vld [vmem:[#allocation5 + $0x1538] sm:$0xff] }
 0x378   :  { %6743 = vmatprep.subr.bf16.mxu1 %v7584_v45  ;;  %v921_v24 = vld [vmem:[#allocation5 + $0x1998] sm:$0xff]  ;;  %v7647_v27 = vcombine.low %v777_v29, %v781_v22 }
 0x379   :  { %6707 = vmatpush2.bf16.msra.mxu0 %v7439_v34  ;;  %v925_v45 = vld [vmem:[#allocation5 + $0x19b8] sm:$0xff]  ;;  %v7648_v34 = vcombine.high %v777_v29, %v781_v22 }
 0x37a   :  { %6708 = vmatprep.subr.bf16.mxu0 %v7432_v44  ;;  %v769_v44 = vld [vmem:[#allocation5 + $0x14d8] sm:$0xff] }
 0x37b   :  { %6744 = vmatpush2.bf16.msra.mxu1 %v7583_v43  ;;  %v913_v46 = vld [vmem:[#allocation5 + $0x1958] sm:$0xff] }
 0x37c   :  { %6745 = vmatprep.subr.bf16.mxu1 %v7576_v21  ;;  %v773_v21 = vld [vmem:[#allocation5 + $0x14f8] sm:$0xff] }
 0x37d   :  { %6709 = vmatpush2.bf16.msra.mxu0 %v7431_v51  ;;  %v917_v47 = vld [vmem:[#allocation5 + $0x1978] sm:$0xff]  ;;  %v7791_v51 = vcombine.low %v921_v24, %v925_v45 }
 0x37e   :  { %6710 = vmatprep.subr.bf16.mxu0 %v7424_v50  ;;  %v761_v55 = vld [vmem:[#allocation5 + $0x1498] sm:$0xff] }
 0x37f   :  { %6746 = vmatpush2.bf16.msra.mxu1 %v7575_v32  ;;  %v7640_v32 = vcombine.high %v769_v44, %v773_v21  ;;  %v765_v56 = vld [vmem:[#allocation5 + $0x14b8] sm:$0xff] }
 0x380   :  { %6747 = vmatprep.subr.bf16.mxu1 %v7568_v60  ;;  %v7784_v60 = vcombine.high %v913_v46, %v917_v47  ;;  %v905_v57 = vld [vmem:[#allocation5 + $0x1918] sm:$0xff] }
 0x381   :  { %6711 = vmatpush2.bf16.msra.mxu0 %v7423_v58  ;;  %v909_v54 = vld [vmem:[#allocation5 + $0x1938] sm:$0xff] }
 0x382   :  { %6762 = vmatprep.subr.bf16.mxu0 %v7672_v61  ;;  %v7632_v61 = vcombine.high %v761_v55, %v765_v56  ;;  %v7776_v23 = vcombine.high %v905_v57, %v909_v54  ;;  %v753_v63 = vld [vmem:[#allocation5 + $0x1458] sm:$0xff] }
 0x383   :  { %6748 = vmatpush2.bf16.msra.mxu1 %v7567_v39  ;;  %v7783_v39 = vcombine.low %v913_v46, %v917_v47  ;;  %v757_v4 = vld [vmem:[#allocation5 + $0x1478] sm:$0xff] }
 0x384   :  { %6749 = vmatprep.subr.bf16.mxu1 %v7560_v62  ;;  %v6427_v37 = vpop.f32.mrf.mxu0  ;;  %6713 = vmatmul.mubr.bf16.vlgmr.msra.gmra.mxu0 %v8060_v41  ;;  %v7800_v41 = vcombine.high %v929_v53, %v933_v13  ;;  %v897_v42 = vld [vmem:[#allocation5 + $0x18d8] sm:$0xff]  ;;  %v7623_v13 = vcombine.low %v753_v63, %v757_v4 }
 0x385   :  { %v6428_v17 = vadd.f32 %v6427_v37, %v8213_v40  ;;  %6763 = vmatpush1.bf16.msra.mxu0 %v7671_v5  ;;  %6794 = vmatprep.mubr.bf16.mxu0 %v8065_v52  ;;  %v901_v5 = vld [vmem:[#allocation5 + $0x18f8] sm:$0xff] }
 0x386   :  { %v6468_v15 = vpop.f32.mrf.mxu1  ;;  %v6429_v59 = vpop.f32.mrf.mxu0  ;;  %6764 = vmatprep.subr.bf16.mxu0 %v7664_v12  ;;  %v7624_v12 = vcombine.high %v753_v63, %v757_v4  ;;  %v745_v11 = vld [vmem:[#allocation5 + $0x1418] sm:$0xff] }
 0x387   :  { %6750 = vmatpush2.bf16.msra.mxu1 %v7559_v9  ;;  %v8223_v20 = vadd.f32 %v6468_v15, %v6428_v17  ;;  %v6430_v28 = vadd.f32 %v6429_v59, %v8216_v35  ;;  %v7792_v35 = vcombine.high %v921_v24, %v925_v45  ;;  %v7631_v9 = vcombine.low %v761_v55, %v765_v56  ;;  %v749_v2 = vld [vmem:[#allocation5 + $0x1438] sm:$0xff] }
 0x388   :  { %v6470_v38 = vpop.f32.mrf.mxu1  ;;  %6751 = vmatprep.subr.bf16.mxu1 %v7552_v36  ;;  %v6431_v40 = vpop.f32.mrf.mxu0  ;;  %v7768_v36 = vcombine.high %v897_v42, %v901_v5  ;;  %v889_v37 = vld [vmem:[#allocation5 + $0x1898] sm:$0xff]  ;;  %v7767_v17 = vcombine.low %v897_v42, %v901_v5  ;;  %v7616_v15 = vcombine.high %v745_v11, %v749_v2 }
 0x389   :  { %v8226_v8 = vadd.f32 %v6470_v38, %v6430_v28  ;;  %6765 = vmatpush1.bf16.msra.mxu0 %v7663_v16  ;;  %v893_v53 = vld [vmem:[#allocation5 + $0x18b8] sm:$0xff]  ;;  %v7615_v38 = vcombine.low %v745_v11, %v749_v2 }
 0x38a   :  { %v6472_v52 = vpop.f32.mrf.mxu1  ;;  %v6432_v33 = vpop.f32.mrf.mxu0  ;;  %6766 = vmatprep.subr.bf16.mxu0 %v7656_v49  ;;  %v7760_v16 = vcombine.high %v889_v37, %v893_v53  ;;  %v865_v59 = vld [vmem:[#allocation5 + $0x17d8] sm:$0xff] }
 0x38b   :  { %6752 = vmatpush2.bf16.msra.mxu1 %v7551_v18  ;;  %v869_v18 = vld [vmem:[#allocation5 + $0x17f8] sm:$0xff] }
 0x38c   :  { %v6473_v43 = vpop.f32.mrf.mxu1  ;;  %6803 = vmatprep.subr.bf16.mxu1 %v7800_v41  ;;  %v881_v49 = vld [vmem:[#allocation5 + $0x1858] sm:$0xff]  ;;  %v7759_v41 = vcombine.low %v889_v37, %v893_v53  ;;  %v7736_v29 = vcombine.high %v865_v59, %v869_v18 }
 0x38d   :  { %6767 = vmatpush1.bf16.msra.mxu0 %v7655_v30  ;;  %v885_v28 = vld [vmem:[#allocation5 + $0x1878] sm:$0xff]  ;;  %v7735_v30 = vcombine.low %v865_v59, %v869_v18 }
 0x38e   :  { %6754 = vmatmul.mubr.bf16.vlgmr.msra.gmra.mxu1 %v8070_v3  ;;  %v8229_v10 = vpop.f32.mrf.mxu1  ;;  %6768 = vmatprep.subr.bf16.mxu0 %v7648_v34  ;;  %v7639_v3 = vcombine.low %v769_v44, %v773_v21  ;;  %v7752_v22 = vcombine.high %v881_v49, %v885_v28  ;;  %v857_v40 = vld [vmem:[#allocation5 + $0x1798] sm:$0xff]  ;;  %v7751_v33 = vcombine.low %v881_v49, %v885_v28 }
 0x38f   :  { %6804 = vmatpush1.bf16.msra.mxu1 %v7799_v31  ;;  %6835 = vmatprep.mubr.bf16.mxu1 %v8077_v14  ;;  %v7775_v14 = vcombine.low %v905_v57, %v909_v54  ;;  %v861_v24 = vld [vmem:[#allocation5 + $0x17b8] sm:$0xff] }
 0x390   :  { %v8231_v50 = vpop.f32.mrf.mxu1  ;;  %6805 = vmatprep.subr.bf16.mxu1 %v7792_v35  ;;  %v873_v45 = vld [vmem:[#allocation5 + $0x1818] sm:$0xff]  ;;  %v7728_v31 = vcombine.high %v857_v40, %v861_v24  ;;  %v7727_v46 = vcombine.low %v857_v40, %v861_v24 }
 0x391   :  { %6769 = vmatpush1.bf16.msra.mxu0 %v7647_v27  ;;  %v877_v52 = vld [vmem:[#allocation5 + $0x1838] sm:$0xff] }
 0x392   :  { %v6554_v58 = vpop.f32.mrf.mxu1  ;;  %6770 = vmatprep.subr.bf16.mxu0 %v7640_v32  ;;  %v7744_v34 = vcombine.high %v873_v45, %v877_v52  ;;  %v849_v43 = vld [vmem:[#allocation5 + $0x1758] sm:$0xff]  ;;  %v7743_v47 = vcombine.low %v873_v45, %v877_v52 }
 0x393   :  { %6806 = vmatpush1.bf16.msra.mxu1 %v7791_v51  ;;  %v853_v35 = vld [vmem:[#allocation5 + $0x1778] sm:$0xff] }
 0x394   :  { %v6555_v62 = vpop.f32.mrf.mxu1  ;;  %6807 = vmatprep.subr.bf16.mxu1 %v7784_v60  ;;  %v993_v44 = vld [vmem:[#allocation5 + $0x1bd8] sm:$0xff]  ;;  %v7720_v27 = vcombine.high %v849_v43, %v853_v35  ;;  %v7719_v57 = vcombine.low %v849_v43, %v853_v35 }
 0x395   :  { %6771 = vmatpush1.bf16.msra.mxu0 %v7639_v3  ;;  %v997_v21 = vld [vmem:[#allocation5 + $0x1bf8] sm:$0xff] }
 0x396   :  { %6772 = vmatprep.subr.bf16.mxu0 %v7632_v61  ;;  %v7864_v51 = vcombine.high %v993_v44, %v997_v21  ;;  %v841_v32 = vld [vmem:[#allocation5 + $0x1718] sm:$0xff]  ;;  %v7863_v54 = vcombine.low %v993_v44, %v997_v21 }
 0x397   :  { %6808 = vmatpush1.bf16.msra.mxu1 %v7783_v39  ;;  %v845_v60 = vld [vmem:[#allocation5 + $0x1738] sm:$0xff] }
 0x398   :  { %6809 = vmatprep.subr.bf16.mxu1 %v7776_v23  ;;  %v985_v55 = vld [vmem:[#allocation5 + $0x1b98] sm:$0xff]  ;;  %v7712_v58 = vcombine.high %v841_v32, %v845_v60  ;;  %v7711_v63 = vcombine.low %v841_v32, %v845_v60 }
 0x399   :  { %6773 = vmatpush1.bf16.msra.mxu0 %v7631_v9  ;;  %v989_v56 = vld [vmem:[#allocation5 + $0x1bb8] sm:$0xff] }
 0x39a   :  { %6774 = vmatprep.subr.bf16.mxu0 %v7624_v12  ;;  %v7856_v3 = vcombine.high %v985_v55, %v989_v56  ;;  %v833_v39 = vld [vmem:[#allocation5 + $0x16d8] sm:$0xff]  ;;  %v7855_v4 = vcombine.low %v985_v55, %v989_v56 }
 0x39b   :  { %6810 = vmatpush1.bf16.msra.mxu1 %v7775_v14  ;;  %v837_v61 = vld [vmem:[#allocation5 + $0x16f8] sm:$0xff] }
 0x39c   :  { %6811 = vmatprep.subr.bf16.mxu1 %v7768_v36  ;;  %v977_v62 = vld [vmem:[#allocation5 + $0x1b58] sm:$0xff]  ;;  %v7704_v42 = vcombine.high %v833_v39, %v837_v61  ;;  %v7703_v11 = vcombine.low %v833_v39, %v837_v61 }
 0x39d   :  { %6775 = vmatpush1.bf16.msra.mxu0 %v7623_v13  ;;  %v981_v23 = vld [vmem:[#allocation5 + $0x1b78] sm:$0xff] }
 0x39e   :  { %6776 = vmatprep.subr.bf16.mxu0 %v7616_v15  ;;  %v7848_v5 = vcombine.high %v977_v62, %v981_v23  ;;  %v825_v9 = vld [vmem:[#allocation5 + $0x1698] sm:$0xff]  ;;  %v7847_v2 = vcombine.low %v977_v62, %v981_v23 }
 0x39f   :  { %6812 = vmatpush1.bf16.msra.mxu1 %v7767_v17  ;;  %v829_v14 = vld [vmem:[#allocation5 + $0x16b8] sm:$0xff] }
 0x3a0   :  { %6813 = vmatprep.subr.bf16.mxu1 %v7760_v16  ;;  %v969_v12 = vld [vmem:[#allocation5 + $0x1b18] sm:$0xff]  ;;  %v7696_v37 = vcombine.high %v825_v9, %v829_v14  ;;  %v7695_v59 = vcombine.low %v825_v9, %v829_v14  ;;  %v1030_v9 = vsub.s32 6, %v8087_v25  ;;  %v7901_v14 = vld [vmem:[#allocation7] sm:$0xff] }
 0x3a1   :  { %6777 = vmatpush1.bf16.msra.mxu0 %v7615_v38  ;;  %v973_v36 = vld [vmem:[#allocation5 + $0x1b38] sm:$0xff] }
 0x3a2   :  { %6778 = vmatprep.subr.bf16.mxu0 %v7736_v29  ;;  %v7840_v53 = vcombine.high %v969_v12, %v973_v36  ;;  %v817_v13 = vld [vmem:[#allocation5 + $0x1658] sm:$0xff]  ;;  %v7839_v18 = vcombine.low %v969_v12, %v973_v36  ;;  %v1031_v12 = vrot.slane %v7901_v14, %v1030_v9 }
 0x3a3   :  { %6814 = vmatpush1.bf16.msra.mxu1 %v7759_v41  ;;  %v821_v17 = vld [vmem:[#allocation5 + $0x1678] sm:$0xff] }
 0x3a4   :  { %6815 = vmatprep.subr.bf16.mxu1 %v7752_v22  ;;  %v961_v15 = vld [vmem:[#allocation5 + $0x1ad8] sm:$0xff]  ;;  %v7688_v49 = vcombine.high %v817_v13, %v821_v17  ;;  %v7687_v40 = vcombine.low %v817_v13, %v821_v17 }
 0x3a5   :  { %6779 = vmatpush2.bf16.msra.mxu0 %v7735_v30  ;;  %v965_v16 = vld [vmem:[#allocation5 + $0x1af8] sm:$0xff] }
 0x3a6   :  { %6780 = vmatprep.subr.bf16.mxu0 %v7728_v31  ;;  %v7832_v28 = vcombine.high %v961_v15, %v965_v16  ;;  %v809_v38 = vld [vmem:[#allocation5 + $0x1618] sm:$0xff]  ;;  %v7831_v24 = vcombine.low %v961_v15, %v965_v16 }
 0x3a7   :  { %6816 = vmatpush1.bf16.msra.mxu1 %v7751_v33  ;;  %v813_v41 = vld [vmem:[#allocation5 + $0x1638] sm:$0xff] }
 0x3a8   :  { %6817 = vmatprep.subr.bf16.mxu1 %v7744_v34  ;;  %v953_v29 = vld [vmem:[#allocation5 + $0x1a98] sm:$0xff]  ;;  %v7680_v45 = vcombine.high %v809_v38, %v813_v41  ;;  %v7679_v34 = vcombine.low %v809_v38, %v813_v41 }
 0x3a9   :  { %6781 = vmatpush2.bf16.msra.mxu0 %v7727_v46  ;;  %v957_v22 = vld [vmem:[#allocation5 + $0x1ab8] sm:$0xff] }
 0x3aa   :  { %6782 = vmatprep.subr.bf16.mxu0 %v7720_v27  ;;  %v7824_v52 = vcombine.high %v953_v29, %v957_v22  ;;  %v1001_v30 = vld [vmem:[#allocation5 + $0x1c18] sm:$0xff]  ;;  %v7823_v43 = vcombine.low %v953_v29, %v957_v22 }
 0x3ab   :  { %6818 = vmatpush1.bf16.msra.mxu1 %v7743_v47  ;;  %v945_v33 = vld [vmem:[#allocation5 + $0x1a58] sm:$0xff]  ;;  %v7872_v35 = vcombine.high %v1001_v30, %v1001_v30  ;;  %v7871_v44 = vcombine.low %v1001_v30, %v1001_v30 }
 0x3ac   :  { %6819 = vmatprep.subr.bf16.mxu1 %v7864_v51  ;;  %v949_v31 = vld [vmem:[#allocation5 + $0x1a78] sm:$0xff] }
 0x3ad   :  { %6783 = vmatpush2.bf16.msra.mxu0 %v7719_v57  ;;  %v7816_v21 = vcombine.high %v945_v33, %v949_v31  ;;  %v937_v46 = vld [vmem:[#allocation5 + $0x1a18] sm:$0xff]  ;;  %v7815_v27 = vcombine.low %v945_v33, %v949_v31  ;;  %v5568_v51 = vsel %vm5548_vm0, %v7871_v44, 0 }
 0x3ae   :  { %6784 = vmatprep.subr.bf16.mxu0 %v7712_v58  ;;  %v941_v47 = vld [vmem:[#allocation5 + $0x1a38] sm:$0xff] }
 0x3af   :  { %6820 = vmatpush2.bf16.msra.mxu1 %v7863_v54  ;;  %v7808_v32 = vcombine.high %v937_v46, %v941_v47  ;;  %v7807_v57 = vcombine.low %v937_v46, %v941_v47  ;;  %v8239_v54 = vld [vmem:[#allocation8] sm:$0xff] }
 0x3b0   :  { %6821 = vmatprep.subr.bf16.mxu1 %v7856_v3  ;;  %v6914_v58 = vrot.slane %v8239_v54, %v1022_v0 }
 0x3b1   :  { %6785 = vmatpush2.bf16.msra.mxu0 %v7711_v63 }
 0x3b2   :  { %6786 = vmatprep.subr.bf16.mxu0 %v7704_v42 }
 0x3b3   :  { %6822 = vmatpush2.bf16.msra.mxu1 %v7855_v4 }
 0x3b4   :  { %6823 = vmatprep.subr.bf16.mxu1 %v7848_v5 }
 0x3b5   :  { %6787 = vmatpush2.bf16.msra.mxu0 %v7703_v11 }
 0x3b6   :  { %6788 = vmatprep.subr.bf16.mxu0 %v7696_v37 }
 0x3b7   :  { %6824 = vmatpush2.bf16.msra.mxu1 %v7847_v2 }
 0x3b8   :  { %6825 = vmatprep.subr.bf16.mxu1 %v7840_v53 }
 0x3b9   :  { %6789 = vmatpush2.bf16.msra.mxu0 %v7695_v59 }
 0x3ba   :  { %6790 = vmatprep.subr.bf16.mxu0 %v7688_v49 }
 0x3bb   :  { %6826 = vmatpush2.bf16.msra.mxu1 %v7839_v18 }
 0x3bc   :  { %6827 = vmatprep.subr.bf16.mxu1 %v7832_v28 }
 0x3bd   :  { %6791 = vmatpush2.bf16.msra.mxu0 %v7687_v40 }
 0x3be   :  { %6792 = vmatprep.subr.bf16.mxu0 %v7680_v45 }
 0x3bf   :  { %6828 = vmatpush2.bf16.msra.mxu1 %v7831_v24 }
 0x3c0   :  { %6829 = vmatprep.subr.bf16.mxu1 %v7824_v52 }
 0x3c1   :  { %6793 = vmatpush2.bf16.msra.mxu0 %v7679_v34 }
 0x3c2   :  { %7879 = vmatprep.subr.msk.bf16.mxu0 %vm5548_vm0, %v7872_v35 }
 0x3c3   :  { %6830 = vmatpush2.bf16.msra.mxu1 %v7823_v43 }
 0x3c4   :  { %6831 = vmatprep.subr.bf16.mxu1 %v7816_v21  ;;  %v6509_v60 = vpop.f32.mrf.mxu0  ;;  %6795 = vmatmul.mubr.bf16.vlgmr.msra.gmra.mxu0 %v8072_v6 }
 0x3c5   :  { %v6510_v55 = vadd.f32 %v6509_v60, %v8223_v20  ;;  %6859 = vmatpush1.bf16.msra.mxu0 %v5568_v51  ;;  %6876 = vmatprep.mubr.bf16.mxu0 %v7994_v19  ;;  %v6918_v20 = vrot.slane %v8239_v54, %v1026_v7 }
 0x3c6   :  { %v6511_v56 = vpop.f32.mrf.mxu0 }
 0x3c7   :  { %6832 = vmatpush2.bf16.msra.mxu1 %v7815_v27  ;;  %v6551_v3 = vadd.f32 %v8229_v10, %v6510_v55  ;;  %v6512_v39 = vadd.f32 %v6511_v56, %v8226_v8  ;;  %v6922_v55 = vrot.slane %v8239_v54, %v1030_v9 }
 0x3c8   :  { %6833 = vmatprep.subr.bf16.mxu1 %v7808_v32  ;;  %v6513_v6 = vpop.f32.mrf.mxu0 }
 0x3c9   :  { %v6889_v19 = vmax.f32 %v6551_v3, 0.0  ;;  %v6553_v61 = vadd.f32 %v8231_v50, %v6512_v39  ;;  %v1034_v50 = vsub.s32 7, %v8087_v25 }
 0x3ca   :  { %v6514_v62 = vpop.f32.mrf.mxu0 }
 0x3cb   :  { %6834 = vmatpush2.bf16.msra.mxu1 %v7807_v57  ;;  %v6939_v23 = vmul.f32 %v6914_v58, %v6889_v19  ;;  %v6890_v63 = vmax.f32 %v6553_v61, 0.0  ;;  %v1035_v36 = vrot.slane %v7901_v14, %v1034_v50 }
 0x3cc   :  { %7880 = vmatmul.mubr.msk.bf16.vlgmr.msra.gmra.mxu0 %vm5544_vm1, %v8082_v26 }
 0x3cd   :  { %v6940_v0 = vmul.f32 %v6918_v20, %v6890_v63  ;;  %v6946_v8 = vadd.f32 %v8194_v1, %v6939_v23  ;;  %v6926_v20 = vrot.slane %v8239_v54, %v1034_v50 }
 0x3ce   :  { %v6591_v10 = vpop.f32.mrf.mxu1  ;;  %6836 = vmatmul.mubr.bf16.vlgmr.msra.gmra.mxu1 %v8091_v48 }
 0x3cf   :  { %v6947_v42 = vadd.f32 %v6946_v8, %v6940_v0  ;;  %v6592_v11 = vadd.f32 %v6591_v10, %v1031_v12  ;;  %v7881_v10 = vld [vmem:[#allocation2] ss:$0 sm:$0xff] }
 0x3d0   :  { %v6593_v4 = vpop.f32.mrf.mxu1 }
 0x3d1   :  { %v6594_v26 = vadd.f32 %v6593_v4, %v1035_v36 }
 0x3d2   :  { %v6595_v5 = vpop.f32.mrf.mxu1 }
 0x3d4   :  { %v6596_v7 = vpop.f32.mrf.mxu1 }
 0x404   :  { %v6632_v2 = vpop.f32.mrf.mxu0 }
 0x405   :  { %v6633_v37 = vadd.f32 %v6632_v2, %v6592_v11 }
 0x406   :  { %v6634_v53 = vpop.f32.mrf.mxu0 }
 0x407   :  { %v6635_v13 = vadd.f32 %v6634_v53, %v6594_v26 }
 0x408   :  { %v6636_v48 = vpop.f32.mrf.mxu0 }
 0x40a   :  { %v6637_v17 = vpop.f32.mrf.mxu0 }
 0x40e   :  { %v6673_v1 = vpop.f32.mrf.mxu1 }
 0x40f   :  { %v6674_v15 = vadd.f32 %v6673_v1, %v6633_v37 }
 0x410   :  { %v6675_v16 = vpop.f32.mrf.mxu1 }
 0x411   :  { %v6676_v59 = vadd.f32 %v6675_v16, %v6635_v13 }
 0x412   :  { %v6677_v18 = vpop.f32.mrf.mxu1 }
 0x414   :  { %v6678_v49 = vpop.f32.mrf.mxu1 }
 0x444   :  { %v6714_v28 = vpop.f32.mrf.mxu0 }
 0x445   :  { %v6715_v38 = vadd.f32 %v6714_v28, %v6674_v15 }
 0x446   :  { %v6716_v25 = vpop.f32.mrf.mxu0 }
 0x447   :  { %v6717_v41 = vadd.f32 %v6716_v25, %v6676_v59 }
 0x448   :  { %v6718_v29 = vpop.f32.mrf.mxu0 }
 0x44a   :  { %v6719_v22 = vpop.f32.mrf.mxu0 }
 0x44e   :  { %v6755_v40 = vpop.f32.mrf.mxu1 }
 0x44f   :  { %v6756_v34 = vadd.f32 %v6755_v40, %v6715_v38 }
 0x450   :  { %v6757_v24 = vpop.f32.mrf.mxu1 }
 0x451   :  { %v6758_v35 = vadd.f32 %v6757_v24, %v6717_v41 }
 0x452   :  { %v6759_v45 = vpop.f32.mrf.mxu1 }
 0x454   :  { %v6760_v52 = vpop.f32.mrf.mxu1 }
 0x484   :  { %v6796_v30 = vpop.f32.mrf.mxu0 }
 0x485   :  { %v6797_v44 = vadd.f32 %v6796_v30, %v6756_v34 }
 0x486   :  { %v6798_v33 = vpop.f32.mrf.mxu0 }
 0x487   :  { %v6799_v47 = vadd.f32 %v6798_v33, %v6758_v35 }
 0x488   :  { %v6800_v31 = vpop.f32.mrf.mxu0 }
 0x48a   :  { %v6801_v43 = vpop.f32.mrf.mxu0 }
 0x48c   :  { %v6878_v21 = vpop.f32.mrf.mxu0 }
 0x48e   :  { %v6837_v46 = vpop.f32.mrf.mxu1  ;;  %v6880_v51 = vpop.f32.mrf.mxu0 }
 0x48f   :  { %v6838_v27 = vadd.f32 %v6837_v46, %v6797_v44 }
 0x490   :  { %v6839_v32 = vpop.f32.mrf.mxu1  ;;  %v6882_v57 = vpop.f32.mrf.mxu0 }
 0x491   :  { %v6879_v60 = vadd.f32 %v6878_v21, %v6838_v27  ;;  %v6840_v56 = vadd.f32 %v6839_v32, %v6799_v47 }
 0x492   :  { %v6841_v58 = vpop.f32.mrf.mxu1  ;;  %v6883_v6 = vpop.f32.mrf.mxu0 }
 0x493   :  { %v6891_v3 = vmax.f32 %v6879_v60, 0.0  ;;  %v6881_v39 = vadd.f32 %v6880_v51, %v6840_v56 }
 0x494   :  { %v6842_v19 = vpop.f32.mrf.mxu1 }
 0x495   :  { %v6941_v61 = vmul.f32 %v6922_v55, %v6891_v3  ;;  %v6892_v62 = vmax.f32 %v6881_v39, 0.0 }
 0x497   :  { %v6942_v23 = vmul.f32 %v6926_v20, %v6892_v62  ;;  %v6948_v63 = vadd.f32 %v6947_v42, %v6941_v61 }
 0x499   :  { %v6949_v0 = vadd.f32 %v6948_v63, %v6942_v23 }
 0x49b   :  { %6950 = vadd.xlane.f32.xlu0 %v6949_v0 }
 0x524   :  { %v6951_v8 = vpop.xlane.xlu0 %6950 }
 0x525   :  { %v6959_v4 = vadd.f32 %v7881_v10, %v6951_v8 }
 0x527   :  { %6961 = vst.msk [vmem:[%s8266_s5] sm:$0xff] %vm6960_vm2, %v6959_v4 }
 0x528   :  { %6966 = vsyncpa [#allocation4], 1 }
 0x529   :  { %6967 = vsyncpa [#allocation6], 1 }
 0x52a   :  { %6968 = vsyncpa [#allocation9], 1 }

// kernel: tpu_custom_call.1
= control target key start
LH: loop header
LB: loop body
LE: loop exit
PB: predicated region body
PF: predicated region fallthrough
CT: control target
= control target key end

     0   :  { %s8261_s0 = inlined_call_operand.hbm [shape: f32[8,1800], index: 0, kind: input, shape index: {}]   ;;  %s8262_s1 = inlined_call_operand.hbm [shape: bf16[1800,1024], index: 1, kind: input, shape index: {}]   ;;  %s8263_s2 = inlined_call_operand.hbm [shape: f32[1,1024], index: 2, kind: input, shape index: {}]   ;;  %s8264_s3 = inlined_call_operand.hbm [shape: f32[1,1024], index: 3, kind: input, shape index: {}]   ;;  %s8265_s4 = inlined_call_operand.<no memory space> [shape: f32[1,1], index: 4, kind: input, shape index: {}]   ;;  %s8266_s5 = inlined_call_operand.vmem [shape: f32[8,1], index: 5, kind: output, shape index: {}]  }
   0x1   :  { %v10_v0 = vstv %s8265_s4 }
   0x2   :  { %11 = vst [vmem:[#allocation2] sm:$0x1] %v10_v0 }
   0x3   :  { %12 = vsyncpa [#allocation4], 0 }
   0x4   :  { %13 = vsyncpa [#allocation6], 0 }
   0x5   :  { %14 = vsyncpa [#allocation9], 0  ;;  %s7988_s20 = smov [#allocation5]  }
   0x6   :  { %s30_s21 = sshll.u32 %s7988_s20, 4  ;;  %s31_s21 = int_to_ptr.vmem [resolvable:$true] %s30_s21 }
   0x7   :  { %s7910_s22 = scalar_lea.vmem %s31_s21, 115200  ;;  %p7915_p1 = scmp.lt.s32.totalorder %s31_s21, %s31_s21 }
   0x8   :  { %p7911_p0 = scmp.ne.s32.totalorder %s31_s21, %s7910_s22  ;;  %p7916_p2 = scmp.lt.s32.totalorder %s7910_s22, %s7910_s22 }
   0xa   :  { %p7917_p3 = por %p7916_p2, %p7915_p1 }
   0xc   :  { %p7918_p4 = pnand %p7917_p3, %p7911_p0 }
   0xe   :  { %7921 = shalt.err (!%p7918_p4)
}
   0xf   :  { %s7989_s23 = smov 512   ;;  %s7990_s24 = smov 32  }
  0x10   :  { %36 = dma.hbm_to_vmem [thread:$0]  %s8262_s1, 115200, %s31_s21, [#allocation6], %s7989_s23, %s7989_s23, %s7990_s24  }
  0x11   :  { %s7991_s4 = smov [#allocation3]   ;;  %s7992_s28 = smov [#allocation7]  }
  0x12   :  { %s21_s27 = sshll.u32 %s7991_s4, 4  ;;  %s43_s29 = sshll.u32 %s7992_s28, 4  ;;  %s22_s27 = int_to_ptr.vmem [resolvable:$true] %s21_s27  ;;  %s44_s29 = int_to_ptr.vmem [resolvable:$true] %s43_s29 }
  0x13   :  { %s7930_s30 = scalar_lea.vmem %s22_s27, 1920  ;;  %p7935_p6 = scmp.lt.s32.totalorder %s22_s27, %s22_s27 }
  0x14   :  { %p7931_p5 = scmp.ne.s32.totalorder %s22_s27, %s7930_s30  ;;  %p7936_p7 = scmp.lt.s32.totalorder %s7930_s30, %s7930_s30 }
  0x16   :  { %p7937_p8 = por %p7936_p7, %p7935_p6 }
  0x18   :  { %p7938_p9 = pnand %p7937_p8, %p7931_p5 }
  0x1a   :  { %7941 = shalt.err (!%p7938_p9)
}
  0x1b   :  { %24 = dma.hbm_to_vmem [thread:$0]  %s8261_s0, 1920, %s22_s27, [#allocation4]  }
  0x1c   :  { %s7950_s8 = scalar_lea.vmem %s44_s29, 128  ;;  %p7955_p11 = scmp.lt.s32.totalorder %s44_s29, %s44_s29 }
  0x1d   :  { %p7951_p10 = scmp.ne.s32.totalorder %s44_s29, %s7950_s8  ;;  %p7956_p12 = scmp.lt.s32.totalorder %s7950_s8, %s7950_s8 }
  0x1f   :  { %p7957_p13 = por %p7956_p12, %p7955_p11 }
  0x21   :  { %p7958_p0 = pnand %p7957_p13, %p7951_p10 }
  0x23   :  { %7961 = shalt.err (!%p7958_p0)
}
  0x24   :  { %46 = dma.hbm_to_vmem [thread:$0]  %s8263_s2, 128, %s44_s29, [#allocation6]  }
  0x25   :  { %s7993_s10 = smov [#allocation8]  }
  0x26   :  { %s53_s11 = sshll.u32 %s7993_s10, 4  ;;  %s54_s11 = int_to_ptr.vmem [resolvable:$true] %s53_s11 }
  0x27   :  { %s7970_s12 = scalar_lea.vmem %s54_s11, 128  ;;  %p7975_p2 = scmp.lt.s32.totalorder %s54_s11, %s54_s11 }
  0x28   :  { %p7971_p1 = scmp.ne.s32.totalorder %s54_s11, %s7970_s12  ;;  %p7976_p3 = scmp.lt.s32.totalorder %s7970_s12, %s7970_s12 }
  0x2a   :  { %p7977_p4 = por %p7976_p3, %p7975_p2 }
  0x2c   :  { %p7978_p5 = pnand %p7977_p4, %p7971_p1 }
  0x2e   :  { %7981 = shalt.err (!%p7978_p5)
}
  0x2f   :  { %56 = dma.hbm_to_vmem [thread:$0]  %s8264_s3, 128, %s54_s11, [#allocation9]  }
  0x30   :  { %7982 = dma.done.wait [#allocation4], 1920  }
  0x31   :  { %7983 = vsyncadd [#allocation4], 4294965376 }
  0x32   :  { %7984 = dma.done.wait [#allocation6], 115328  }
  0x33   :  { %7985 = vsyncadd [#allocation6], 4294851968 }
  0x34   :  { %7986 = dma.done.wait [#allocation9], 128  }
  0x35   :  { %7987 = vsyncadd [#allocation9], 4294967168  ;;  %v158_v1 = vld [vmem:[#allocation5 + $0x1c0] sm:$0xff]  ;;  %v73_v54 = vld [vmem:[#allocation3 + $0x8] sm:$0xff]  ;;  %vm5548_vm0 = vcmask 1043456   ;;  %vm5544_vm1 = vcmask 64512  }
  0x36   :  { %v162_v2 = vld [vmem:[#allocation5 + $0x1e0] sm:$0xff]  ;;  %v8040_v59 = vpack.c.bf16 %v73_v54, %v73_v54  ;;  %vm6960_vm2 = vcmask 7168  }
  0x37   :  { %v286_v3 = vld [vmem:[#allocation5 + $0x5c0] sm:$0xff]  ;;  %v7026_v4 = vcombine.high %v158_v1, %v162_v2  ;;  %v7025_v6 = vcombine.low %v158_v1, %v162_v2 }
  0x38   :  { %v290_v5 = vld [vmem:[#allocation5 + $0x5e0] sm:$0xff]  ;;  %5605 = vmatprep.mubr.bf16.mxu0 %v8040_v59 }
  0x39   :  { %v150_v7 = vld [vmem:[#allocation5 + $0x180] sm:$0xff]  ;;  %v7154_v9 = vcombine.high %v286_v3, %v290_v5  ;;  %v7153_v10 = vcombine.low %v286_v3, %v290_v5  ;;  %5573 = vmatprep.subr.bf16.mxu0 %v7026_v4 }
  0x3a   :  { %v154_v8 = vld [vmem:[#allocation5 + $0x1a0] sm:$0xff]  ;;  %5574 = vmatpush1.bf16.msra.mxu0 %v7025_v6 }
  0x3b   :  { %v7018_v11 = vcombine.high %v150_v7, %v154_v8  ;;  %v278_v12 = vld [vmem:[#allocation5 + $0x580] sm:$0xff]  ;;  %5614 = vmatprep.subr.bf16.mxu1 %v7154_v9  ;;  %v7017_v19 = vcombine.low %v150_v7, %v154_v8 }
  0x3c   :  { %v282_v13 = vld [vmem:[#allocation5 + $0x5a0] sm:$0xff]  ;;  %5615 = vmatpush1.bf16.msra.mxu1 %v7153_v10 }
  0x3d   :  { %v142_v14 = vld [vmem:[#allocation5 + $0x140] sm:$0xff]  ;;  %v7146_v15 = vcombine.high %v278_v12, %v282_v13  ;;  %5575 = vmatprep.subr.bf16.mxu0 %v7018_v11  ;;  %v7145_v20 = vcombine.low %v278_v12, %v282_v13 }
  0x3e   :  { %v146_v16 = vld [vmem:[#allocation5 + $0x160] sm:$0xff]  ;;  %5576 = vmatpush1.bf16.msra.mxu0 %v7017_v19 }
  0x3f   :  { %v270_v17 = vld [vmem:[#allocation5 + $0x540] sm:$0xff]  ;;  %v7010_v21 = vcombine.high %v142_v14, %v146_v16  ;;  %5616 = vmatprep.subr.bf16.mxu1 %v7146_v15  ;;  %v7009_v27 = vcombine.low %v142_v14, %v146_v16 }
  0x40   :  { %v274_v18 = vld [vmem:[#allocation5 + $0x560] sm:$0xff]  ;;  %5617 = vmatpush1.bf16.msra.mxu1 %v7145_v20 }
  0x41   :  { %v7138_v22 = vcombine.high %v270_v17, %v274_v18  ;;  %v134_v23 = vld [vmem:[#allocation5 + $0x100] sm:$0xff]  ;;  %5577 = vmatprep.subr.bf16.mxu0 %v7010_v21  ;;  %v7137_v28 = vcombine.low %v270_v17, %v274_v18 }
  0x42   :  { %v138_v24 = vld [vmem:[#allocation5 + $0x120] sm:$0xff]  ;;  %5578 = vmatpush1.bf16.msra.mxu0 %v7009_v27 }
  0x43   :  { %v262_v25 = vld [vmem:[#allocation5 + $0x500] sm:$0xff]  ;;  %v7002_v29 = vcombine.high %v134_v23, %v138_v24  ;;  %5618 = vmatprep.subr.bf16.mxu1 %v7138_v22  ;;  %v7001_v35 = vcombine.low %v134_v23, %v138_v24 }
  0x44   :  { %v266_v26 = vld [vmem:[#allocation5 + $0x520] sm:$0xff]  ;;  %5619 = vmatpush1.bf16.msra.mxu1 %v7137_v28 }
  0x45   :  { %v7130_v30 = vcombine.high %v262_v25, %v266_v26  ;;  %v126_v31 = vld [vmem:[#allocation5 + $0xc0] sm:$0xff]  ;;  %5579 = vmatprep.subr.bf16.mxu0 %v7002_v29  ;;  %v7129_v36 = vcombine.low %v262_v25, %v266_v26 }
  0x46   :  { %v130_v32 = vld [vmem:[#allocation5 + $0xe0] sm:$0xff]  ;;  %5580 = vmatpush1.bf16.msra.mxu0 %v7001_v35 }
  0x47   :  { %v254_v33 = vld [vmem:[#allocation5 + $0x4c0] sm:$0xff]  ;;  %v6994_v37 = vcombine.high %v126_v31, %v130_v32  ;;  %5620 = vmatprep.subr.bf16.mxu1 %v7130_v30  ;;  %v6993_v43 = vcombine.low %v126_v31, %v130_v32 }
  0x48   :  { %v258_v34 = vld [vmem:[#allocation5 + $0x4e0] sm:$0xff]  ;;  %5621 = vmatpush1.bf16.msra.mxu1 %v7129_v36 }
  0x49   :  { %v7122_v38 = vcombine.high %v254_v33, %v258_v34  ;;  %v118_v39 = vld [vmem:[#allocation5 + $0x80] sm:$0xff]  ;;  %5581 = vmatprep.subr.bf16.mxu0 %v6994_v37  ;;  %v7121_v44 = vcombine.low %v254_v33, %v258_v34 }
  0x4a   :  { %v122_v40 = vld [vmem:[#allocation5 + $0xa0] sm:$0xff]  ;;  %5582 = vmatpush1.bf16.msra.mxu0 %v6993_v43 }
  0x4b   :  { %v246_v41 = vld [vmem:[#allocation5 + $0x480] sm:$0xff]  ;;  %v6986_v45 = vcombine.high %v118_v39, %v122_v40  ;;  %5622 = vmatprep.subr.bf16.mxu1 %v7122_v38  ;;  %v6985_v51 = vcombine.low %v118_v39, %v122_v40 }
  0x4c   :  { %v250_v42 = vld [vmem:[#allocation5 + $0x4a0] sm:$0xff]  ;;  %5623 = vmatpush1.bf16.msra.mxu1 %v7121_v44 }
  0x4d   :  { %v7114_v46 = vcombine.high %v246_v41, %v250_v42  ;;  %v110_v47 = vld [vmem:[#allocation5 + $0x40] sm:$0xff]  ;;  %5583 = vmatprep.subr.bf16.mxu0 %v6986_v45  ;;  %v7113_v52 = vcombine.low %v246_v41, %v250_v42 }
  0x4e   :  { %v114_v48 = vld [vmem:[#allocation5 + $0x60] sm:$0xff]  ;;  %5584 = vmatpush1.bf16.msra.mxu0 %v6985_v51 }
  0x4f   :  { %v238_v49 = vld [vmem:[#allocation5 + $0x440] sm:$0xff]  ;;  %v6978_v53 = vcombine.high %v110_v47, %v114_v48  ;;  %5624 = vmatprep.subr.bf16.mxu1 %v7114_v46  ;;  %v6977_v63 = vcombine.low %v110_v47, %v114_v48 }
  0x50   :  { %v242_v50 = vld [vmem:[#allocation5 + $0x460] sm:$0xff]  ;;  %5625 = vmatpush1.bf16.msra.mxu1 %v7113_v52 }
  0x51   :  { %v75_v55 = vld [vmem:[#allocation3 + $0x18] sm:$0xff]  ;;  %v7106_v56 = vcombine.high %v238_v49, %v242_v50  ;;  %5585 = vmatprep.subr.bf16.mxu0 %v6978_v53  ;;  %v7105_v0 = vcombine.low %v238_v49, %v242_v50 }
  0x52   :  { %v102_v57 = vld [vmem:[#allocation5] sm:$0xff]  ;;  %v8042_v60 = vpack.c.bf16 %v75_v55, %v75_v55  ;;  %5586 = vmatpush1.bf16.msra.mxu0 %v6977_v63 }
  0x53   :  { %v106_v58 = vld [vmem:[#allocation5 + $0x20] sm:$0xff]  ;;  %5626 = vmatprep.subr.bf16.mxu1 %v7106_v56 }
  0x54   :  { %v230_v61 = vld [vmem:[#allocation5 + $0x400] sm:$0xff]  ;;  %v6970_v1 = vcombine.high %v102_v57, %v106_v58  ;;  %5646 = vmatprep.mubr.bf16.mxu1 %v8042_v60  ;;  %v6969_v7 = vcombine.low %v102_v57, %v106_v58  ;;  %5627 = vmatpush1.bf16.msra.mxu1 %v7105_v0 }
  0x55   :  { %v234_v62 = vld [vmem:[#allocation5 + $0x420] sm:$0xff] }
  0x56   :  { %v7098_v2 = vcombine.high %v230_v61, %v234_v62  ;;  %v222_v3 = vld [vmem:[#allocation5 + $0x3c0] sm:$0xff]  ;;  %5587 = vmatprep.subr.bf16.mxu0 %v6970_v1  ;;  %v7097_v8 = vcombine.low %v230_v61, %v234_v62 }
  0x57   :  { %v226_v4 = vld [vmem:[#allocation5 + $0x3e0] sm:$0xff]  ;;  %5588 = vmatpush1.bf16.msra.mxu0 %v6969_v7 }
  0x58   :  { %v350_v5 = vld [vmem:[#allocation5 + $0x7c0] sm:$0xff]  ;;  %v7090_v9 = vcombine.high %v222_v3, %v226_v4  ;;  %5628 = vmatprep.subr.bf16.mxu1 %v7098_v2  ;;  %v7089_v15 = vcombine.low %v222_v3, %v226_v4 }
  0x59   :  { %v354_v6 = vld [vmem:[#allocation5 + $0x7e0] sm:$0xff]  ;;  %5629 = vmatpush1.bf16.msra.mxu1 %v7097_v8 }
  0x5a   :  { %v7218_v10 = vcombine.high %v350_v5, %v354_v6  ;;  %v214_v11 = vld [vmem:[#allocation5 + $0x380] sm:$0xff]  ;;  %5589 = vmatprep.subr.bf16.mxu0 %v7090_v9  ;;  %v7217_v16 = vcombine.low %v350_v5, %v354_v6 }
  0x5b   :  { %v218_v12 = vld [vmem:[#allocation5 + $0x3a0] sm:$0xff]  ;;  %5590 = vmatpush2.bf16.msra.mxu0 %v7089_v15 }
  0x5c   :  { %v342_v13 = vld [vmem:[#allocation5 + $0x780] sm:$0xff]  ;;  %v7082_v17 = vcombine.high %v214_v11, %v218_v12  ;;  %5630 = vmatprep.subr.bf16.mxu1 %v7218_v10  ;;  %v7081_v23 = vcombine.low %v214_v11, %v218_v12  ;;  %v72_v10 = vld [vmem:[#allocation3] sm:$0xff]  ;;  %v74_v12 = vld [vmem:[#allocation3 + $0x10] sm:$0xff] }
  0x5d   :  { %v346_v14 = vld [vmem:[#allocation5 + $0x7a0] sm:$0xff]  ;;  %5631 = vmatpush2.bf16.msra.mxu1 %v7217_v16 }
  0x5e   :  { %v7210_v18 = vcombine.high %v342_v13, %v346_v14  ;;  %v206_v19 = vld [vmem:[#allocation5 + $0x340] sm:$0xff]  ;;  %5591 = vmatprep.subr.bf16.mxu0 %v7082_v17  ;;  %v7209_v24 = vcombine.low %v342_v13, %v346_v14  ;;  %v8046_v17 = vpack.c.bf16 %v72_v10, %v72_v10 }
  0x5f   :  { %v210_v20 = vld [vmem:[#allocation5 + $0x360] sm:$0xff]  ;;  %5592 = vmatpush2.bf16.msra.mxu0 %v7081_v23 }
  0x60   :  { %v334_v21 = vld [vmem:[#allocation5 + $0x740] sm:$0xff]  ;;  %v7074_v25 = vcombine.high %v206_v19, %v210_v20  ;;  %5632 = vmatprep.subr.bf16.mxu1 %v7210_v18  ;;  %v7073_v31 = vcombine.low %v206_v19, %v210_v20  ;;  %v77_v20 = vld [vmem:[#allocation3 + $0x28] sm:$0xff] }
  0x61   :  { %v338_v22 = vld [vmem:[#allocation5 + $0x760] sm:$0xff]  ;;  %5633 = vmatpush2.bf16.msra.mxu1 %v7209_v24 }
  0x62   :  { %v7202_v26 = vcombine.high %v334_v21, %v338_v22  ;;  %v198_v27 = vld [vmem:[#allocation5 + $0x300] sm:$0xff]  ;;  %5593 = vmatprep.subr.bf16.mxu0 %v7074_v25  ;;  %v7201_v32 = vcombine.low %v334_v21, %v338_v22  ;;  %v8048_v21 = vpack.c.bf16 %v74_v12, %v74_v12 }
  0x63   :  { %v202_v28 = vld [vmem:[#allocation5 + $0x320] sm:$0xff]  ;;  %5594 = vmatpush2.bf16.msra.mxu0 %v7073_v31 }
  0x64   :  { %v326_v29 = vld [vmem:[#allocation5 + $0x700] sm:$0xff]  ;;  %v7066_v33 = vcombine.high %v198_v27, %v202_v28  ;;  %5634 = vmatprep.subr.bf16.mxu1 %v7202_v26  ;;  %v7065_v39 = vcombine.low %v198_v27, %v202_v28 }
  0x65   :  { %v330_v30 = vld [vmem:[#allocation5 + $0x720] sm:$0xff]  ;;  %5635 = vmatpush2.bf16.msra.mxu1 %v7201_v32 }
  0x66   :  { %v7194_v34 = vcombine.high %v326_v29, %v330_v30  ;;  %v190_v35 = vld [vmem:[#allocation5 + $0x2c0] sm:$0xff]  ;;  %5595 = vmatprep.subr.bf16.mxu0 %v7066_v33  ;;  %v7193_v40 = vcombine.low %v326_v29, %v330_v30  ;;  %v8050_v29 = vpack.c.bf16 %v77_v20, %v77_v20 }
  0x67   :  { %v194_v36 = vld [vmem:[#allocation5 + $0x2e0] sm:$0xff]  ;;  %5596 = vmatpush2.bf16.msra.mxu0 %v7065_v39 }
  0x68   :  { %v318_v37 = vld [vmem:[#allocation5 + $0x6c0] sm:$0xff]  ;;  %v7058_v41 = vcombine.high %v190_v35, %v194_v36  ;;  %5636 = vmatprep.subr.bf16.mxu1 %v7194_v34  ;;  %v7057_v47 = vcombine.low %v190_v35, %v194_v36 }
  0x69   :  { %v322_v38 = vld [vmem:[#allocation5 + $0x6e0] sm:$0xff]  ;;  %5637 = vmatpush2.bf16.msra.mxu1 %v7193_v40 }
  0x6a   :  { %v7186_v42 = vcombine.high %v318_v37, %v322_v38  ;;  %v182_v43 = vld [vmem:[#allocation5 + $0x280] sm:$0xff]  ;;  %5597 = vmatprep.subr.bf16.mxu0 %v7058_v41  ;;  %v7185_v48 = vcombine.low %v318_v37, %v322_v38 }
  0x6b   :  { %v186_v44 = vld [vmem:[#allocation5 + $0x2a0] sm:$0xff]  ;;  %5598 = vmatpush2.bf16.msra.mxu0 %v7057_v47 }
  0x6c   :  { %v310_v45 = vld [vmem:[#allocation5 + $0x680] sm:$0xff]  ;;  %v7050_v49 = vcombine.high %v182_v43, %v186_v44  ;;  %5638 = vmatprep.subr.bf16.mxu1 %v7186_v42  ;;  %v7049_v55 = vcombine.low %v182_v43, %v186_v44 }
  0x6d   :  { %v314_v46 = vld [vmem:[#allocation5 + $0x6a0] sm:$0xff]  ;;  %5639 = vmatpush2.bf16.msra.mxu1 %v7185_v48 }
  0x6e   :  { %v7178_v50 = vcombine.high %v310_v45, %v314_v46  ;;  %v174_v51 = vld [vmem:[#allocation5 + $0x240] sm:$0xff]  ;;  %5599 = vmatprep.subr.bf16.mxu0 %v7050_v49  ;;  %v7177_v56 = vcombine.low %v310_v45, %v314_v46 }
  0x6f   :  { %v178_v52 = vld [vmem:[#allocation5 + $0x260] sm:$0xff]  ;;  %5600 = vmatpush2.bf16.msra.mxu0 %v7049_v55 }
  0x70   :  { %v302_v53 = vld [vmem:[#allocation5 + $0x640] sm:$0xff]  ;;  %v7042_v57 = vcombine.high %v174_v51, %v178_v52  ;;  %5640 = vmatprep.subr.bf16.mxu1 %v7178_v50  ;;  %v7041_v1 = vcombine.low %v174_v51, %v178_v52 }
  0x71   :  { %v306_v54 = vld [vmem:[#allocation5 + $0x660] sm:$0xff]  ;;  %5641 = vmatpush2.bf16.msra.mxu1 %v7177_v56 }
  0x72   :  { %v7170_v58 = vcombine.high %v302_v53, %v306_v54  ;;  %v166_v61 = vld [vmem:[#allocation5 + $0x200] sm:$0xff]  ;;  %5601 = vmatprep.subr.bf16.mxu0 %v7042_v57  ;;  %v7169_v2 = vcombine.low %v302_v53, %v306_v54 }
  0x73   :  { %v170_v62 = vld [vmem:[#allocation5 + $0x220] sm:$0xff]  ;;  %5602 = vmatpush2.bf16.msra.mxu0 %v7041_v1 }
  0x74   :  { %v294_v63 = vld [vmem:[#allocation5 + $0x600] sm:$0xff]  ;;  %v7034_v3 = vcombine.high %v166_v61, %v170_v62  ;;  %5642 = vmatprep.subr.bf16.mxu1 %v7170_v58  ;;  %v7033_v9 = vcombine.low %v166_v61, %v170_v62 }
  0x75   :  { %v298_v0 = vld [vmem:[#allocation5 + $0x620] sm:$0xff]  ;;  %5643 = vmatpush2.bf16.msra.mxu1 %v7169_v2 }
  0x76   :  { %v7162_v4 = vcombine.high %v294_v63, %v298_v0  ;;  %v414_v5 = vld [vmem:[#allocation5 + $0x9c0] sm:$0xff]  ;;  %5603 = vmatprep.subr.bf16.mxu0 %v7034_v3  ;;  %v7161_v11 = vcombine.low %v294_v63, %v298_v0 }
  0x77   :  { %v418_v6 = vld [vmem:[#allocation5 + $0x9e0] sm:$0xff]  ;;  %5604 = vmatpush2.bf16.msra.mxu0 %v7033_v9 }
  0x78   :  { %v542_v7 = vld [vmem:[#allocation5 + $0xdc0] sm:$0xff]  ;;  %v7282_v13 = vcombine.high %v414_v5, %v418_v6  ;;  %5644 = vmatprep.subr.bf16.mxu1 %v7162_v4  ;;  %v7281_v22 = vcombine.low %v414_v5, %v418_v6 }
  0x79   :  { %v546_v8 = vld [vmem:[#allocation5 + $0xde0] sm:$0xff]  ;;  %5645 = vmatpush2.bf16.msra.mxu1 %v7161_v11 }
  0x7a   :  { %v7410_v14 = vcombine.high %v542_v7, %v546_v8  ;;  %v406_v15 = vld [vmem:[#allocation5 + $0x980] sm:$0xff]  ;;  %5655 = vmatprep.subr.bf16.mxu0 %v7282_v13  ;;  %v7409_v24 = vcombine.low %v542_v7, %v546_v8  ;;  %5606 = vmatmul.mubr.bf16.vlgmr.msra.gmra.mxu0 %v8046_v17 }
  0x7b   :  { %v410_v16 = vld [vmem:[#allocation5 + $0x9a0] sm:$0xff]  ;;  %5656 = vmatpush1.bf16.msra.mxu0 %v7281_v22  ;;  %5687 = vmatprep.mubr.bf16.mxu0 %v8050_v29 }
  0x7c   :  { %v534_v18 = vld [vmem:[#allocation5 + $0xd80] sm:$0xff]  ;;  %v7274_v25 = vcombine.high %v406_v15, %v410_v16  ;;  %5696 = vmatprep.subr.bf16.mxu1 %v7410_v14  ;;  %5647 = vmatmul.mubr.bf16.vlgmr.msra.gmra.mxu1 %v8048_v21  ;;  %v7273_v33 = vcombine.low %v406_v15, %v410_v16 }
  0x7d   :  { %v538_v19 = vld [vmem:[#allocation5 + $0xda0] sm:$0xff]  ;;  %5697 = vmatpush1.bf16.msra.mxu1 %v7409_v24 }
  0x7e   :  { %v79_v23 = vld [vmem:[#allocation3 + $0x38] sm:$0xff]  ;;  %v7402_v26 = vcombine.high %v534_v18, %v538_v19  ;;  %5657 = vmatprep.subr.bf16.mxu0 %v7274_v25  ;;  %v7401_v34 = vcombine.low %v534_v18, %v538_v19 }
  0x7f   :  { %v398_v27 = vld [vmem:[#allocation5 + $0x940] sm:$0xff]  ;;  %v8053_v32 = vpack.c.bf16 %v79_v23, %v79_v23  ;;  %5658 = vmatpush1.bf16.msra.mxu0 %v7273_v33 }
  0x80   :  { %v402_v28 = vld [vmem:[#allocation5 + $0x960] sm:$0xff]  ;;  %5698 = vmatprep.subr.bf16.mxu1 %v7402_v26 }
  0x81   :  { %v526_v30 = vld [vmem:[#allocation5 + $0xd40] sm:$0xff]  ;;  %v7266_v35 = vcombine.high %v398_v27, %v402_v28  ;;  %5728 = vmatprep.mubr.bf16.mxu1 %v8053_v32  ;;  %v7265_v41 = vcombine.low %v398_v27, %v402_v28  ;;  %5699 = vmatpush1.bf16.msra.mxu1 %v7401_v34 }
  0x82   :  { %v530_v31 = vld [vmem:[#allocation5 + $0xd60] sm:$0xff] }
  0x83   :  { %v7394_v36 = vcombine.high %v526_v30, %v530_v31  ;;  %v390_v37 = vld [vmem:[#allocation5 + $0x900] sm:$0xff]  ;;  %5659 = vmatprep.subr.bf16.mxu0 %v7266_v35  ;;  %v7393_v42 = vcombine.low %v526_v30, %v530_v31 }
  0x84   :  { %v394_v38 = vld [vmem:[#allocation5 + $0x920] sm:$0xff]  ;;  %5660 = vmatpush1.bf16.msra.mxu0 %v7265_v41 }
  0x85   :  { %v518_v39 = vld [vmem:[#allocation5 + $0xd00] sm:$0xff]  ;;  %v7258_v43 = vcombine.high %v390_v37, %v394_v38  ;;  %5700 = vmatprep.subr.bf16.mxu1 %v7394_v36  ;;  %v7257_v49 = vcombine.low %v390_v37, %v394_v38 }
  0x86   :  { %v522_v40 = vld [vmem:[#allocation5 + $0xd20] sm:$0xff]  ;;  %5701 = vmatpush1.bf16.msra.mxu1 %v7393_v42 }
  0x87   :  { %v7386_v44 = vcombine.high %v518_v39, %v522_v40  ;;  %v382_v45 = vld [vmem:[#allocation5 + $0x8c0] sm:$0xff]  ;;  %5661 = vmatprep.subr.bf16.mxu0 %v7258_v43  ;;  %v7385_v50 = vcombine.low %v518_v39, %v522_v40 }
  0x88   :  { %v386_v46 = vld [vmem:[#allocation5 + $0x8e0] sm:$0xff]  ;;  %5662 = vmatpush1.bf16.msra.mxu0 %v7257_v49 }
  0x89   :  { %v510_v47 = vld [vmem:[#allocation5 + $0xcc0] sm:$0xff]  ;;  %v7250_v51 = vcombine.high %v382_v45, %v386_v46  ;;  %5702 = vmatprep.subr.bf16.mxu1 %v7386_v44  ;;  %v7249_v57 = vcombine.low %v382_v45, %v386_v46 }
  0x8a   :  { %v514_v48 = vld [vmem:[#allocation5 + $0xce0] sm:$0xff]  ;;  %5703 = vmatpush1.bf16.msra.mxu1 %v7385_v50 }
  0x8b   :  { %v7378_v52 = vcombine.high %v510_v47, %v514_v48  ;;  %v374_v53 = vld [vmem:[#allocation5 + $0x880] sm:$0xff]  ;;  %5663 = vmatprep.subr.bf16.mxu0 %v7250_v51  ;;  %v7377_v58 = vcombine.low %v510_v47, %v514_v48 }
  0x8c   :  { %v378_v54 = vld [vmem:[#allocation5 + $0x8a0] sm:$0xff]  ;;  %5664 = vmatpush1.bf16.msra.mxu0 %v7249_v57 }
  0x8d   :  { %v502_v55 = vld [vmem:[#allocation5 + $0xc80] sm:$0xff]  ;;  %v7242_v61 = vcombine.high %v374_v53, %v378_v54  ;;  %5704 = vmatprep.subr.bf16.mxu1 %v7378_v52  ;;  %v7241_v3 = vcombine.low %v374_v53, %v378_v54 }
  0x8e   :  { %v506_v56 = vld [vmem:[#allocation5 + $0xca0] sm:$0xff]  ;;  %5705 = vmatpush1.bf16.msra.mxu1 %v7377_v58 }
  0x8f   :  { %v7370_v62 = vcombine.high %v502_v55, %v506_v56  ;;  %v366_v63 = vld [vmem:[#allocation5 + $0x840] sm:$0xff]  ;;  %5665 = vmatprep.subr.bf16.mxu0 %v7242_v61  ;;  %v7369_v4 = vcombine.low %v502_v55, %v506_v56 }
  0x90   :  { %v370_v0 = vld [vmem:[#allocation5 + $0x860] sm:$0xff]  ;;  %5666 = vmatpush1.bf16.msra.mxu0 %v7241_v3 }
  0x91   :  { %v494_v1 = vld [vmem:[#allocation5 + $0xc40] sm:$0xff]  ;;  %v7234_v5 = vcombine.high %v366_v63, %v370_v0  ;;  %5706 = vmatprep.subr.bf16.mxu1 %v7370_v62  ;;  %v7233_v11 = vcombine.low %v366_v63, %v370_v0 }
  0x92   :  { %v498_v2 = vld [vmem:[#allocation5 + $0xc60] sm:$0xff]  ;;  %5707 = vmatpush1.bf16.msra.mxu1 %v7369_v4 }
  0x93   :  { %v7362_v6 = vcombine.high %v494_v1, %v498_v2  ;;  %v358_v7 = vld [vmem:[#allocation5 + $0x800] sm:$0xff]  ;;  %5667 = vmatprep.subr.bf16.mxu0 %v7234_v5  ;;  %v7361_v12 = vcombine.low %v494_v1, %v498_v2 }
  0x94   :  { %v362_v8 = vld [vmem:[#allocation5 + $0x820] sm:$0xff]  ;;  %5668 = vmatpush1.bf16.msra.mxu0 %v7233_v11 }
  0x95   :  { %v486_v9 = vld [vmem:[#allocation5 + $0xc00] sm:$0xff]  ;;  %v7226_v13 = vcombine.high %v358_v7, %v362_v8  ;;  %5708 = vmatprep.subr.bf16.mxu1 %v7362_v6  ;;  %v7225_v20 = vcombine.low %v358_v7, %v362_v8 }
  0x96   :  { %v490_v10 = vld [vmem:[#allocation5 + $0xc20] sm:$0xff]  ;;  %5709 = vmatpush1.bf16.msra.mxu1 %v7361_v12 }
  0x97   :  { %v7354_v14 = vcombine.high %v486_v9, %v490_v10  ;;  %v478_v15 = vld [vmem:[#allocation5 + $0xbc0] sm:$0xff]  ;;  %5669 = vmatprep.subr.bf16.mxu0 %v7226_v13  ;;  %v7353_v22 = vcombine.low %v486_v9, %v490_v10 }
  0x98   :  { %v482_v16 = vld [vmem:[#allocation5 + $0xbe0] sm:$0xff]  ;;  %5670 = vmatpush1.bf16.msra.mxu0 %v7225_v20 }
  0x99   :  { %v606_v18 = vld [vmem:[#allocation5 + $0xfc0] sm:$0xff]  ;;  %v7346_v23 = vcombine.high %v478_v15, %v482_v16  ;;  %5710 = vmatprep.subr.bf16.mxu1 %v7354_v14  ;;  %v7345_v30 = vcombine.low %v478_v15, %v482_v16 }
  0x9a   :  { %v610_v19 = vld [vmem:[#allocation5 + $0xfe0] sm:$0xff]  ;;  %5711 = vmatpush1.bf16.msra.mxu1 %v7353_v22 }
  0x9b   :  { %v7474_v24 = vcombine.high %v606_v18, %v610_v19  ;;  %v470_v25 = vld [vmem:[#allocation5 + $0xb80] sm:$0xff]  ;;  %5671 = vmatprep.subr.bf16.mxu0 %v7346_v23  ;;  %v7473_v31 = vcombine.low %v606_v18, %v610_v19 }
  0x9c   :  { %v474_v26 = vld [vmem:[#allocation5 + $0xba0] sm:$0xff]  ;;  %5672 = vmatpush2.bf16.msra.mxu0 %v7345_v30 }
  0x9d   :  { %v598_v27 = vld [vmem:[#allocation5 + $0xf80] sm:$0xff]  ;;  %v7338_v33 = vcombine.high %v470_v25, %v474_v26  ;;  %5712 = vmatprep.subr.bf16.mxu1 %v7474_v24  ;;  %v7337_v39 = vcombine.low %v470_v25, %v474_v26 }
  0x9e   :  { %v602_v28 = vld [vmem:[#allocation5 + $0xfa0] sm:$0xff]  ;;  %5713 = vmatpush2.bf16.msra.mxu1 %v7473_v31  ;;  %v78_v31 = vld [vmem:[#allocation3 + $0x30] sm:$0xff] }
  0x9f   :  { %v7466_v34 = vcombine.high %v598_v27, %v602_v28  ;;  %v462_v35 = vld [vmem:[#allocation5 + $0xb40] sm:$0xff]  ;;  %5673 = vmatprep.subr.bf16.mxu0 %v7338_v33  ;;  %v7465_v40 = vcombine.low %v598_v27, %v602_v28  ;;  %v76_v28 = vld [vmem:[#allocation3 + $0x20] sm:$0xff] }
  0xa0   :  { %v466_v36 = vld [vmem:[#allocation5 + $0xb60] sm:$0xff]  ;;  %5674 = vmatpush2.bf16.msra.mxu0 %v7337_v39 }
  0xa1   :  { %v590_v37 = vld [vmem:[#allocation5 + $0xf40] sm:$0xff]  ;;  %v7330_v41 = vcombine.high %v462_v35, %v466_v36  ;;  %5714 = vmatprep.subr.bf16.mxu1 %v7466_v34  ;;  %v7329_v47 = vcombine.low %v462_v35, %v466_v36 }
  0xa2   :  { %v594_v38 = vld [vmem:[#allocation5 + $0xf60] sm:$0xff]  ;;  %5715 = vmatpush2.bf16.msra.mxu1 %v7465_v40  ;;  %v81_v40 = vld [vmem:[#allocation3 + $0x48] sm:$0xff] }
  0xa3   :  { %v7458_v42 = vcombine.high %v590_v37, %v594_v38  ;;  %v454_v43 = vld [vmem:[#allocation5 + $0xb00] sm:$0xff]  ;;  %5675 = vmatprep.subr.bf16.mxu0 %v7330_v41  ;;  %v7457_v48 = vcombine.low %v590_v37, %v594_v38  ;;  %v8058_v37 = vpack.c.bf16 %v76_v28, %v76_v28  ;;  %v8060_v41 = vpack.c.bf16 %v78_v31, %v78_v31 }
  0xa4   :  { %v458_v44 = vld [vmem:[#allocation5 + $0xb20] sm:$0xff]  ;;  %5676 = vmatpush2.bf16.msra.mxu0 %v7329_v47 }
  0xa5   :  { %v582_v45 = vld [vmem:[#allocation5 + $0xf00] sm:$0xff]  ;;  %v7322_v49 = vcombine.high %v454_v43, %v458_v44  ;;  %5716 = vmatprep.subr.bf16.mxu1 %v7458_v42  ;;  %v7321_v55 = vcombine.low %v454_v43, %v458_v44 }
  0xa6   :  { %v586_v46 = vld [vmem:[#allocation5 + $0xf20] sm:$0xff]  ;;  %5717 = vmatpush2.bf16.msra.mxu1 %v7457_v48 }
  0xa7   :  { %v7450_v50 = vcombine.high %v582_v45, %v586_v46  ;;  %v446_v51 = vld [vmem:[#allocation5 + $0xac0] sm:$0xff]  ;;  %5677 = vmatprep.subr.bf16.mxu0 %v7322_v49  ;;  %v7449_v56 = vcombine.low %v582_v45, %v586_v46  ;;  %v8062_v49 = vpack.c.bf16 %v81_v40, %v81_v40 }
  0xa8   :  { %v450_v52 = vld [vmem:[#allocation5 + $0xae0] sm:$0xff]  ;;  %5678 = vmatpush2.bf16.msra.mxu0 %v7321_v55 }
  0xa9   :  { %v574_v53 = vld [vmem:[#allocation5 + $0xec0] sm:$0xff]  ;;  %v7314_v57 = vcombine.high %v446_v51, %v450_v52  ;;  %5718 = vmatprep.subr.bf16.mxu1 %v7450_v50  ;;  %v7313_v1 = vcombine.low %v446_v51, %v450_v52 }
  0xaa   :  { %v578_v54 = vld [vmem:[#allocation5 + $0xee0] sm:$0xff]  ;;  %5719 = vmatpush2.bf16.msra.mxu1 %v7449_v56 }
  0xab   :  { %v7442_v58 = vcombine.high %v574_v53, %v578_v54  ;;  %v438_v61 = vld [vmem:[#allocation5 + $0xa80] sm:$0xff]  ;;  %5679 = vmatprep.subr.bf16.mxu0 %v7314_v57  ;;  %v7441_v2 = vcombine.low %v574_v53, %v578_v54 }
  0xac   :  { %v442_v62 = vld [vmem:[#allocation5 + $0xaa0] sm:$0xff]  ;;  %5680 = vmatpush2.bf16.msra.mxu0 %v7313_v1 }
  0xad   :  { %v566_v63 = vld [vmem:[#allocation5 + $0xe80] sm:$0xff]  ;;  %v7306_v3 = vcombine.high %v438_v61, %v442_v62  ;;  %5720 = vmatprep.subr.bf16.mxu1 %v7442_v58  ;;  %v7305_v9 = vcombine.low %v438_v61, %v442_v62 }
  0xae   :  { %v570_v0 = vld [vmem:[#allocation5 + $0xea0] sm:$0xff]  ;;  %5721 = vmatpush2.bf16.msra.mxu1 %v7441_v2 }
  0xaf   :  { %v7434_v4 = vcombine.high %v566_v63, %v570_v0  ;;  %v430_v5 = vld [vmem:[#allocation5 + $0xa40] sm:$0xff]  ;;  %5681 = vmatprep.subr.bf16.mxu0 %v7306_v3  ;;  %v7433_v10 = vcombine.low %v566_v63, %v570_v0 }
  0xb0   :  { %v434_v6 = vld [vmem:[#allocation5 + $0xa60] sm:$0xff]  ;;  %5682 = vmatpush2.bf16.msra.mxu0 %v7305_v9 }
  0xb1   :  { %v558_v7 = vld [vmem:[#allocation5 + $0xe40] sm:$0xff]  ;;  %v7298_v11 = vcombine.high %v430_v5, %v434_v6  ;;  %5722 = vmatprep.subr.bf16.mxu1 %v7434_v4  ;;  %v7297_v18 = vcombine.low %v430_v5, %v434_v6 }
  0xb2   :  { %v562_v8 = vld [vmem:[#allocation5 + $0xe60] sm:$0xff]  ;;  %5723 = vmatpush2.bf16.msra.mxu1 %v7433_v10 }
  0xb3   :  { %v7426_v12 = vcombine.high %v558_v7, %v562_v8  ;;  %v422_v13 = vld [vmem:[#allocation5 + $0xa00] sm:$0xff]  ;;  %5683 = vmatprep.subr.bf16.mxu0 %v7298_v11  ;;  %v7425_v19 = vcombine.low %v558_v7, %v562_v8 }
  0xb4   :  { %v426_v14 = vld [vmem:[#allocation5 + $0xa20] sm:$0xff]  ;;  %5684 = vmatpush2.bf16.msra.mxu0 %v7297_v18 }
  0xb5   :  { %v550_v15 = vld [vmem:[#allocation5 + $0xe00] sm:$0xff]  ;;  %v7290_v20 = vcombine.high %v422_v13, %v426_v14  ;;  %5724 = vmatprep.subr.bf16.mxu1 %v7426_v12  ;;  %v7289_v27 = vcombine.low %v422_v13, %v426_v14 }
  0xb6   :  { %v554_v16 = vld [vmem:[#allocation5 + $0xe20] sm:$0xff]  ;;  %5725 = vmatpush2.bf16.msra.mxu1 %v7425_v19 }
  0xb7   :  { %v7418_v22 = vcombine.high %v550_v15, %v554_v16  ;;  %v670_v23 = vld [vmem:[#allocation5 + $0x11c0] sm:$0xff]  ;;  %5685 = vmatprep.subr.bf16.mxu0 %v7290_v20  ;;  %v7417_v30 = vcombine.low %v550_v15, %v554_v16 }
  0xb8   :  { %v674_v24 = vld [vmem:[#allocation5 + $0x11e0] sm:$0xff]  ;;  %5686 = vmatpush2.bf16.msra.mxu0 %v7289_v27 }
  0xb9   :  { %v798_v25 = vld [vmem:[#allocation5 + $0x15c0] sm:$0xff]  ;;  %v7538_v33 = vcombine.high %v670_v23, %v674_v24  ;;  %5726 = vmatprep.subr.bf16.mxu1 %v7418_v22  ;;  %v7537_v42 = vcombine.low %v670_v23, %v674_v24 }
  0xba   :  { %v802_v26 = vld [vmem:[#allocation5 + $0x15e0] sm:$0xff]  ;;  %5727 = vmatpush2.bf16.msra.mxu1 %v7417_v30 }
  0xbb   :  { %v7666_v34 = vcombine.high %v798_v25, %v802_v26  ;;  %v662_v35 = vld [vmem:[#allocation5 + $0x1180] sm:$0xff]  ;;  %5737 = vmatprep.subr.bf16.mxu0 %v7538_v33  ;;  %v7665_v44 = vcombine.low %v798_v25, %v802_v26  ;;  %5688 = vmatmul.mubr.bf16.vlgmr.msra.gmra.mxu0 %v8058_v37 }
  0xbc   :  { %v666_v36 = vld [vmem:[#allocation5 + $0x11a0] sm:$0xff]  ;;  %5738 = vmatpush1.bf16.msra.mxu0 %v7537_v42  ;;  %5769 = vmatprep.mubr.bf16.mxu0 %v8062_v49 }
  0xbd   :  { %v790_v38 = vld [vmem:[#allocation5 + $0x1580] sm:$0xff]  ;;  %v7530_v45 = vcombine.high %v662_v35, %v666_v36  ;;  %5778 = vmatprep.subr.bf16.mxu1 %v7666_v34  ;;  %5729 = vmatmul.mubr.bf16.vlgmr.msra.gmra.mxu1 %v8060_v41  ;;  %v7529_v53 = vcombine.low %v662_v35, %v666_v36 }
  0xbe   :  { %v794_v39 = vld [vmem:[#allocation5 + $0x15a0] sm:$0xff]  ;;  %5779 = vmatpush1.bf16.msra.mxu1 %v7665_v44 }
  0xbf   :  { %v83_v43 = vld [vmem:[#allocation3 + $0x58] sm:$0xff]  ;;  %v7658_v46 = vcombine.high %v790_v38, %v794_v39  ;;  %5739 = vmatprep.subr.bf16.mxu0 %v7530_v45  ;;  %v7657_v54 = vcombine.low %v790_v38, %v794_v39 }
  0xc0   :  { %v654_v47 = vld [vmem:[#allocation5 + $0x1140] sm:$0xff]  ;;  %v8065_v52 = vpack.c.bf16 %v83_v43, %v83_v43  ;;  %5740 = vmatpush1.bf16.msra.mxu0 %v7529_v53 }
  0xc1   :  { %v658_v48 = vld [vmem:[#allocation5 + $0x1160] sm:$0xff]  ;;  %5780 = vmatprep.subr.bf16.mxu1 %v7658_v46 }
  0xc2   :  { %v782_v50 = vld [vmem:[#allocation5 + $0x1540] sm:$0xff]  ;;  %v7522_v55 = vcombine.high %v654_v47, %v658_v48  ;;  %5810 = vmatprep.mubr.bf16.mxu1 %v8065_v52  ;;  %v7521_v63 = vcombine.low %v654_v47, %v658_v48  ;;  %5781 = vmatpush1.bf16.msra.mxu1 %v7657_v54 }
  0xc3   :  { %v786_v51 = vld [vmem:[#allocation5 + $0x1560] sm:$0xff] }
  0xc4   :  { %v7650_v56 = vcombine.high %v782_v50, %v786_v51  ;;  %v646_v57 = vld [vmem:[#allocation5 + $0x1100] sm:$0xff]  ;;  %5741 = vmatprep.subr.bf16.mxu0 %v7522_v55  ;;  %v7649_v0 = vcombine.low %v782_v50, %v786_v51 }
  0xc5   :  { %v650_v58 = vld [vmem:[#allocation5 + $0x1120] sm:$0xff]  ;;  %5742 = vmatpush1.bf16.msra.mxu0 %v7521_v63 }
  0xc6   :  { %v774_v61 = vld [vmem:[#allocation5 + $0x1500] sm:$0xff]  ;;  %v7514_v1 = vcombine.high %v646_v57, %v650_v58  ;;  %5782 = vmatprep.subr.bf16.mxu1 %v7650_v56  ;;  %v7513_v7 = vcombine.low %v646_v57, %v650_v58 }
  0xc7   :  { %v778_v62 = vld [vmem:[#allocation5 + $0x1520] sm:$0xff]  ;;  %5783 = vmatpush1.bf16.msra.mxu1 %v7649_v0 }
  0xc8   :  { %v7642_v2 = vcombine.high %v774_v61, %v778_v62  ;;  %v638_v3 = vld [vmem:[#allocation5 + $0x10c0] sm:$0xff]  ;;  %5743 = vmatprep.subr.bf16.mxu0 %v7514_v1  ;;  %v7641_v8 = vcombine.low %v774_v61, %v778_v62 }
  0xc9   :  { %v642_v4 = vld [vmem:[#allocation5 + $0x10e0] sm:$0xff]  ;;  %5744 = vmatpush1.bf16.msra.mxu0 %v7513_v7 }
  0xca   :  { %v766_v5 = vld [vmem:[#allocation5 + $0x14c0] sm:$0xff]  ;;  %v7506_v9 = vcombine.high %v638_v3, %v642_v4  ;;  %5784 = vmatprep.subr.bf16.mxu1 %v7642_v2  ;;  %v7505_v15 = vcombine.low %v638_v3, %v642_v4 }
  0xcb   :  { %v770_v6 = vld [vmem:[#allocation5 + $0x14e0] sm:$0xff]  ;;  %5785 = vmatpush1.bf16.msra.mxu1 %v7641_v8 }
  0xcc   :  { %v7634_v10 = vcombine.high %v766_v5, %v770_v6  ;;  %v630_v11 = vld [vmem:[#allocation5 + $0x1080] sm:$0xff]  ;;  %5745 = vmatprep.subr.bf16.mxu0 %v7506_v9  ;;  %v7633_v16 = vcombine.low %v766_v5, %v770_v6 }
  0xcd   :  { %v634_v12 = vld [vmem:[#allocation5 + $0x10a0] sm:$0xff]  ;;  %5746 = vmatpush1.bf16.msra.mxu0 %v7505_v15 }
  0xce   :  { %v758_v13 = vld [vmem:[#allocation5 + $0x1480] sm:$0xff]  ;;  %v7498_v18 = vcombine.high %v630_v11, %v634_v12  ;;  %5786 = vmatprep.subr.bf16.mxu1 %v7634_v10  ;;  %v7497_v25 = vcombine.low %v630_v11, %v634_v12 }
  0xcf   :  { %v762_v14 = vld [vmem:[#allocation5 + $0x14a0] sm:$0xff]  ;;  %5787 = vmatpush1.bf16.msra.mxu1 %v7633_v16 }
  0xd0   :  { %v7626_v19 = vcombine.high %v758_v13, %v762_v14  ;;  %v622_v20 = vld [vmem:[#allocation5 + $0x1040] sm:$0xff]  ;;  %5747 = vmatprep.subr.bf16.mxu0 %v7498_v18  ;;  %v7625_v26 = vcombine.low %v758_v13, %v762_v14 }
  0xd1   :  { %v626_v22 = vld [vmem:[#allocation5 + $0x1060] sm:$0xff]  ;;  %5748 = vmatpush1.bf16.msra.mxu0 %v7497_v25 }
  0xd2   :  { %v750_v23 = vld [vmem:[#allocation5 + $0x1440] sm:$0xff]  ;;  %v7490_v27 = vcombine.high %v622_v20, %v626_v22  ;;  %5788 = vmatprep.subr.bf16.mxu1 %v7626_v19  ;;  %v7489_v35 = vcombine.low %v622_v20, %v626_v22 }
  0xd3   :  { %v754_v24 = vld [vmem:[#allocation5 + $0x1460] sm:$0xff]  ;;  %5789 = vmatpush1.bf16.msra.mxu1 %v7625_v26 }
  0xd4   :  { %v7618_v28 = vcombine.high %v750_v23, %v754_v24  ;;  %v614_v30 = vld [vmem:[#allocation5 + $0x1000] sm:$0xff]  ;;  %5749 = vmatprep.subr.bf16.mxu0 %v7490_v27  ;;  %v7617_v36 = vcombine.low %v750_v23, %v754_v24 }
  0xd5   :  { %v618_v31 = vld [vmem:[#allocation5 + $0x1020] sm:$0xff]  ;;  %5750 = vmatpush1.bf16.msra.mxu0 %v7489_v35 }
  0xd6   :  { %v742_v33 = vld [vmem:[#allocation5 + $0x1400] sm:$0xff]  ;;  %v7482_v38 = vcombine.high %v614_v30, %v618_v31  ;;  %5790 = vmatprep.subr.bf16.mxu1 %v7618_v28  ;;  %v7481_v45 = vcombine.low %v614_v30, %v618_v31 }
  0xd7   :  { %v746_v34 = vld [vmem:[#allocation5 + $0x1420] sm:$0xff]  ;;  %5791 = vmatpush1.bf16.msra.mxu1 %v7617_v36 }
  0xd8   :  { %v7610_v39 = vcombine.high %v742_v33, %v746_v34  ;;  %v734_v40 = vld [vmem:[#allocation5 + $0x13c0] sm:$0xff]  ;;  %5751 = vmatprep.subr.bf16.mxu0 %v7482_v38  ;;  %v7609_v46 = vcombine.low %v742_v33, %v746_v34 }
  0xd9   :  { %v738_v42 = vld [vmem:[#allocation5 + $0x13e0] sm:$0xff]  ;;  %5752 = vmatpush1.bf16.msra.mxu0 %v7481_v45 }
  0xda   :  { %v862_v43 = vld [vmem:[#allocation5 + $0x17c0] sm:$0xff]  ;;  %v7602_v47 = vcombine.high %v734_v40, %v738_v42  ;;  %5792 = vmatprep.subr.bf16.mxu1 %v7610_v39  ;;  %v7601_v55 = vcombine.low %v734_v40, %v738_v42 }
  0xdb   :  { %v866_v44 = vld [vmem:[#allocation5 + $0x17e0] sm:$0xff]  ;;  %5793 = vmatpush1.bf16.msra.mxu1 %v7609_v46 }
  0xdc   :  { %v7730_v48 = vcombine.high %v862_v43, %v866_v44  ;;  %v726_v50 = vld [vmem:[#allocation5 + $0x1380] sm:$0xff]  ;;  %5753 = vmatprep.subr.bf16.mxu0 %v7602_v47  ;;  %v7729_v56 = vcombine.low %v862_v43, %v866_v44 }
  0xdd   :  { %v730_v51 = vld [vmem:[#allocation5 + $0x13a0] sm:$0xff]  ;;  %5754 = vmatpush2.bf16.msra.mxu0 %v7601_v55 }
  0xde   :  { %v854_v53 = vld [vmem:[#allocation5 + $0x1780] sm:$0xff]  ;;  %v7594_v57 = vcombine.high %v726_v50, %v730_v51  ;;  %5794 = vmatprep.subr.bf16.mxu1 %v7730_v48  ;;  %v7593_v1 = vcombine.low %v726_v50, %v730_v51 }
  0xdf   :  { %v858_v54 = vld [vmem:[#allocation5 + $0x17a0] sm:$0xff]  ;;  %5795 = vmatpush2.bf16.msra.mxu1 %v7729_v56 }
  0xe0   :  { %v7722_v58 = vcombine.high %v854_v53, %v858_v54  ;;  %v718_v61 = vld [vmem:[#allocation5 + $0x1340] sm:$0xff]  ;;  %5755 = vmatprep.subr.bf16.mxu0 %v7594_v57  ;;  %v7721_v2 = vcombine.low %v854_v53, %v858_v54  ;;  %v80_v57 = vld [vmem:[#allocation3 + $0x40] sm:$0xff] }
  0xe1   :  { %v722_v62 = vld [vmem:[#allocation5 + $0x1360] sm:$0xff]  ;;  %5756 = vmatpush2.bf16.msra.mxu0 %v7593_v1 }
  0xe2   :  { %v846_v63 = vld [vmem:[#allocation5 + $0x1740] sm:$0xff]  ;;  %v7586_v3 = vcombine.high %v718_v61, %v722_v62  ;;  %5796 = vmatprep.subr.bf16.mxu1 %v7722_v58  ;;  %v7585_v9 = vcombine.low %v718_v61, %v722_v62  ;;  %v82_v61 = vld [vmem:[#allocation3 + $0x50] sm:$0xff] }
  0xe3   :  { %v850_v0 = vld [vmem:[#allocation5 + $0x1760] sm:$0xff]  ;;  %5797 = vmatpush2.bf16.msra.mxu1 %v7721_v2 }
  0xe4   :  { %v7714_v4 = vcombine.high %v846_v63, %v850_v0  ;;  %v710_v5 = vld [vmem:[#allocation5 + $0x1300] sm:$0xff]  ;;  %5757 = vmatprep.subr.bf16.mxu0 %v7586_v3  ;;  %v7713_v10 = vcombine.low %v846_v63, %v850_v0  ;;  %v8070_v3 = vpack.c.bf16 %v80_v57, %v80_v57 }
  0xe5   :  { %v714_v6 = vld [vmem:[#allocation5 + $0x1320] sm:$0xff]  ;;  %5758 = vmatpush2.bf16.msra.mxu0 %v7585_v9 }
  0xe6   :  { %v838_v7 = vld [vmem:[#allocation5 + $0x1700] sm:$0xff]  ;;  %v7578_v11 = vcombine.high %v710_v5, %v714_v6  ;;  %5798 = vmatprep.subr.bf16.mxu1 %v7714_v4  ;;  %v7577_v18 = vcombine.low %v710_v5, %v714_v6  ;;  %v159_v4 = vld [vmem:[#allocation5 + $0x1c8] sm:$0xff]  ;;  %v8072_v6 = vpack.c.bf16 %v82_v61, %v82_v61 }
  0xe7   :  { %v842_v8 = vld [vmem:[#allocation5 + $0x1720] sm:$0xff]  ;;  %5799 = vmatpush2.bf16.msra.mxu1 %v7713_v10  ;;  %v163_v5 = vld [vmem:[#allocation5 + $0x1e8] sm:$0xff] }
  0xe8   :  { %v7706_v12 = vcombine.high %v838_v7, %v842_v8  ;;  %v702_v13 = vld [vmem:[#allocation5 + $0x12c0] sm:$0xff]  ;;  %5759 = vmatprep.subr.bf16.mxu0 %v7578_v11  ;;  %v7705_v19 = vcombine.low %v838_v7, %v842_v8  ;;  %v85_v8 = vld [vmem:[#allocation3 + $0x68] sm:$0xff]  ;;  %v7028_v11 = vcombine.high %v159_v4, %v163_v5 }
  0xe9   :  { %v706_v14 = vld [vmem:[#allocation5 + $0x12e0] sm:$0xff]  ;;  %5760 = vmatpush2.bf16.msra.mxu0 %v7577_v18  ;;  %v86_v18 = vld [vmem:[#allocation3 + $0x70] sm:$0xff] }
  0xea   :  { %v830_v15 = vld [vmem:[#allocation5 + $0x16c0] sm:$0xff]  ;;  %v7570_v20 = vcombine.high %v702_v13, %v706_v14  ;;  %5800 = vmatprep.subr.bf16.mxu1 %v7706_v12  ;;  %v7569_v27 = vcombine.low %v702_v13, %v706_v14  ;;  %v8077_v14 = vpack.c.bf16 %v85_v8, %v85_v8 }
  0xeb   :  { %v834_v16 = vld [vmem:[#allocation5 + $0x16e0] sm:$0xff]  ;;  %5801 = vmatpush2.bf16.msra.mxu1 %v7705_v19  ;;  %v7994_v19 = vmov 0  }
  0xec   :  { %v7698_v22 = vcombine.high %v830_v15, %v834_v16  ;;  %v694_v23 = vld [vmem:[#allocation5 + $0x1280] sm:$0xff]  ;;  %5761 = vmatprep.subr.bf16.mxu0 %v7570_v20  ;;  %v7697_v28 = vcombine.low %v830_v15, %v834_v16 }
  0xed   :  { %v698_v24 = vld [vmem:[#allocation5 + $0x12a0] sm:$0xff]  ;;  %5762 = vmatpush2.bf16.msra.mxu0 %v7569_v27  ;;  %v7027_v27 = vcombine.low %v159_v4, %v163_v5 }
  0xee   :  { %v822_v25 = vld [vmem:[#allocation5 + $0x1680] sm:$0xff]  ;;  %v7562_v30 = vcombine.high %v694_v23, %v698_v24  ;;  %5802 = vmatprep.subr.bf16.mxu1 %v7698_v22  ;;  %v7561_v38 = vcombine.low %v694_v23, %v698_v24  ;;  %v151_v23 = vld [vmem:[#allocation5 + $0x188] sm:$0xff] }
  0xef   :  { %v826_v26 = vld [vmem:[#allocation5 + $0x16a0] sm:$0xff]  ;;  %5803 = vmatpush2.bf16.msra.mxu1 %v7697_v28  ;;  %v155_v24 = vld [vmem:[#allocation5 + $0x1a8] sm:$0xff] }
  0xf0   :  { %v7690_v31 = vcombine.high %v822_v25, %v826_v26  ;;  %v686_v33 = vld [vmem:[#allocation5 + $0x1240] sm:$0xff]  ;;  %5763 = vmatprep.subr.bf16.mxu0 %v7562_v30  ;;  %v7689_v39 = vcombine.low %v822_v25, %v826_v26  ;;  %v8082_v26 = vpack.c.bf16 %v86_v18, %v86_v18  ;;  %v7020_v30 = vcombine.high %v151_v23, %v155_v24 }
  0xf1   :  { %v690_v34 = vld [vmem:[#allocation5 + $0x1260] sm:$0xff]  ;;  %5764 = vmatpush2.bf16.msra.mxu0 %v7561_v38  ;;  %v7019_v38 = vcombine.low %v151_v23, %v155_v24  ;;  %v107_v23 = vld [vmem:[#allocation5 + $0x28] sm:$0xff] }
  0xf2   :  { %v814_v35 = vld [vmem:[#allocation5 + $0x1640] sm:$0xff]  ;;  %v7554_v40 = vcombine.high %v686_v33, %v690_v34  ;;  %5804 = vmatprep.subr.bf16.mxu1 %v7690_v31  ;;  %v7553_v47 = vcombine.low %v686_v33, %v690_v34  ;;  %v143_v34 = vld [vmem:[#allocation5 + $0x148] sm:$0xff] }
  0xf3   :  { %v818_v36 = vld [vmem:[#allocation5 + $0x1660] sm:$0xff]  ;;  %5805 = vmatpush2.bf16.msra.mxu1 %v7689_v39 }
  0xf4   :  { %v7682_v42 = vcombine.high %v814_v35, %v818_v36  ;;  %v678_v43 = vld [vmem:[#allocation5 + $0x1200] sm:$0xff]  ;;  %5765 = vmatprep.subr.bf16.mxu0 %v7554_v40  ;;  %v7681_v48 = vcombine.low %v814_v35, %v818_v36  ;;  %v147_v35 = vld [vmem:[#allocation5 + $0x168] sm:$0xff] }
  0xf5   :  { %v682_v44 = vld [vmem:[#allocation5 + $0x1220] sm:$0xff]  ;;  %5766 = vmatpush2.bf16.msra.mxu0 %v7553_v47  ;;  %v7012_v40 = vcombine.high %v143_v34, %v147_v35  ;;  %v7011_v47 = vcombine.low %v143_v34, %v147_v35  ;;  %v227_v34 = vld [vmem:[#allocation5 + $0x3e8] sm:$0xff] }
  0xf6   :  { %v806_v45 = vld [vmem:[#allocation5 + $0x1600] sm:$0xff]  ;;  %v7546_v50 = vcombine.high %v678_v43, %v682_v44  ;;  %5806 = vmatprep.subr.bf16.mxu1 %v7682_v42  ;;  %v7545_v56 = vcombine.low %v678_v43, %v682_v44  ;;  %v135_v44 = vld [vmem:[#allocation5 + $0x108] sm:$0xff] }
  0xf7   :  { %v810_v46 = vld [vmem:[#allocation5 + $0x1620] sm:$0xff]  ;;  %5807 = vmatpush2.bf16.msra.mxu1 %v7681_v48 }
  0xf8   :  { %v7674_v51 = vcombine.high %v806_v45, %v810_v46  ;;  %v926_v53 = vld [vmem:[#allocation5 + $0x19c0] sm:$0xff]  ;;  %5767 = vmatprep.subr.bf16.mxu0 %v7546_v50  ;;  %v7673_v58 = vcombine.low %v806_v45, %v810_v46  ;;  %v139_v45 = vld [vmem:[#allocation5 + $0x128] sm:$0xff] }
  0xf9   :  { %v930_v54 = vld [vmem:[#allocation5 + $0x19e0] sm:$0xff]  ;;  %5768 = vmatpush2.bf16.msra.mxu0 %v7545_v56  ;;  %v7004_v50 = vcombine.high %v135_v44, %v139_v45  ;;  %v7003_v57 = vcombine.low %v135_v44, %v139_v45  ;;  %v219_v44 = vld [vmem:[#allocation5 + $0x3a8] sm:$0xff] }
  0xfa   :  { %v998_v55 = vld [vmem:[#allocation5 + $0x1c00] sm:$0xff]  ;;  %v7794_v62 = vcombine.high %v926_v53, %v930_v54  ;;  %5808 = vmatprep.subr.bf16.mxu1 %v7674_v51  ;;  %v7793_v7 = vcombine.low %v926_v53, %v930_v54  ;;  %v127_v54 = vld [vmem:[#allocation5 + $0xc8] sm:$0xff] }
  0xfb   :  { %v7866_v63 = vcombine.high %v998_v55, %v998_v55  ;;  %v7865_v0 = vcombine.low %v998_v55, %v998_v55  ;;  %v918_v1 = vld [vmem:[#allocation5 + $0x1980] sm:$0xff]  ;;  %5809 = vmatpush2.bf16.msra.mxu1 %v7673_v58  ;;  %v131_v55 = vld [vmem:[#allocation5 + $0xe8] sm:$0xff] }
  0xfc   :  { %v922_v2 = vld [vmem:[#allocation5 + $0x19a0] sm:$0xff]  ;;  %5819 = vmatprep.subr.bf16.mxu0 %v7794_v62  ;;  %5770 = vmatmul.mubr.bf16.vlgmr.msra.gmra.mxu0 %v8070_v3  ;;  %v6996_v61 = vcombine.high %v127_v54, %v131_v55  ;;  %v6995_v4 = vcombine.low %v127_v54, %v131_v55  ;;  %v211_v54 = vld [vmem:[#allocation5 + $0x368] sm:$0xff] }
  0xfd   :  { %v7786_v9 = vcombine.high %v918_v1, %v922_v2  ;;  %7873 = vmatprep.subr.msk.bf16.mxu1 %vm5548_vm0, %v7866_v63  ;;  %v5550_v10 = vsel %vm5548_vm0, %v7865_v0, 0  ;;  %v910_v12 = vld [vmem:[#allocation5 + $0x1940] sm:$0xff]  ;;  %5820 = vmatpush1.bf16.msra.mxu0 %v7793_v7  ;;  %v7785_v15 = vcombine.low %v918_v1, %v922_v2  ;;  %v119_v0 = vld [vmem:[#allocation5 + $0x88] sm:$0xff] }
  0xfe   :  { %v914_v13 = vld [vmem:[#allocation5 + $0x1960] sm:$0xff]  ;;  %5811 = vmatmul.mubr.bf16.vlgmr.msra.gmra.mxu1 %v8072_v6  ;;  %5851 = vmatprep.mubr.bf16.mxu0 %v8077_v14  ;;  %v123_v1 = vld [vmem:[#allocation5 + $0xa8] sm:$0xff] }
  0xff   :  { %5875 = vmatpush1.bf16.msra.mxu1 %v5550_v10  ;;  %5821 = vmatprep.subr.bf16.mxu0 %v7786_v9  ;;  %v7778_v16 = vcombine.high %v910_v12, %v914_v13  ;;  %v902_v20 = vld [vmem:[#allocation5 + $0x1900] sm:$0xff]  ;;  %v7777_v25 = vcombine.low %v910_v12, %v914_v13  ;;  %v6988_v7 = vcombine.high %v119_v0, %v123_v1  ;;  %v111_v10 = vld [vmem:[#allocation5 + $0x48] sm:$0xff] }
 0x100   :  { %5892 = vmatprep.mubr.bf16.mxu1 %v7994_v19  ;;  %5901 = vmatprep.subr.bf16.mxu1 %v7028_v11  ;;  %v906_v22 = vld [vmem:[#allocation5 + $0x1920] sm:$0xff]  ;;  %v115_v11 = vld [vmem:[#allocation5 + $0x68] sm:$0xff]  ;;  %v6987_v13 = vcombine.low %v119_v0, %v123_v1 }
 0x101   :  { %5822 = vmatpush1.bf16.msra.mxu0 %v7785_v15  ;;  %v7770_v28 = vcombine.high %v902_v20, %v906_v22  ;;  %v894_v31 = vld [vmem:[#allocation5 + $0x18c0] sm:$0xff]  ;;  %v7769_v36 = vcombine.low %v902_v20, %v906_v22  ;;  %v103_v22 = vld [vmem:[#allocation5 + $0x8] sm:$0xff] }
 0x102   :  { %5823 = vmatprep.subr.bf16.mxu0 %v7778_v16  ;;  %v898_v33 = vld [vmem:[#allocation5 + $0x18e0] sm:$0xff]  ;;  %v6980_v16 = vcombine.high %v111_v10, %v115_v11  ;;  %v203_v0 = vld [vmem:[#allocation5 + $0x328] sm:$0xff] }
 0x103   :  { %v7762_v39 = vcombine.high %v894_v31, %v898_v33  ;;  %v886_v42 = vld [vmem:[#allocation5 + $0x1880] sm:$0xff]  ;;  %v7761_v46 = vcombine.low %v894_v31, %v898_v33  ;;  %v223_v33 = vld [vmem:[#allocation5 + $0x3c8] sm:$0xff] }
 0x104   :  { %v890_v43 = vld [vmem:[#allocation5 + $0x18a0] sm:$0xff] }
 0x105   :  { %5824 = vmatpush1.bf16.msra.mxu0 %v7777_v25  ;;  %v7754_v48 = vcombine.high %v886_v42, %v890_v43  ;;  %v878_v51 = vld [vmem:[#allocation5 + $0x1840] sm:$0xff]  ;;  %v7753_v56 = vcombine.low %v886_v42, %v890_v43  ;;  %v6979_v25 = vcombine.low %v111_v10, %v115_v11  ;;  %v215_v43 = vld [vmem:[#allocation5 + $0x388] sm:$0xff] }
 0x106   :  { %7874 = vmatmul.mubr.msk.bf16.vlgmr.msra.gmra.mxu1 %vm5544_vm1, %v8082_v26  ;;  %5825 = vmatprep.subr.bf16.mxu0 %v7770_v28  ;;  %v882_v53 = vld [vmem:[#allocation5 + $0x1860] sm:$0xff]  ;;  %v6972_v28 = vcombine.high %v103_v22, %v107_v23  ;;  %v195_v10 = vld [vmem:[#allocation5 + $0x2e8] sm:$0xff] }
 0x107   :  { %5902 = vmatpush1.bf16.msra.mxu1 %v7027_v27  ;;  %5933 = vmatprep.mubr.bf16.mxu1 %v8040_v59  ;;  %v7746_v58 = vcombine.high %v878_v51, %v882_v53  ;;  %v870_v62 = vld [vmem:[#allocation5 + $0x1800] sm:$0xff]  ;;  %v7745_v2 = vcombine.low %v878_v51, %v882_v53  ;;  %v207_v53 = vld [vmem:[#allocation5 + $0x348] sm:$0xff] }
 0x108   :  { %5903 = vmatprep.subr.bf16.mxu1 %v7020_v30  ;;  %v874_v63 = vld [vmem:[#allocation5 + $0x1820] sm:$0xff] }
 0x109   :  { %5826 = vmatpush1.bf16.msra.mxu0 %v7769_v36  ;;  %v7738_v5 = vcombine.high %v870_v62, %v874_v63  ;;  %v990_v8 = vld [vmem:[#allocation5 + $0x1bc0] sm:$0xff]  ;;  %v7737_v12 = vcombine.low %v870_v62, %v874_v63  ;;  %v6971_v36 = vcombine.low %v103_v22, %v107_v23  ;;  %v199_v63 = vld [vmem:[#allocation5 + $0x308] sm:$0xff] }
 0x10a   :  { %5827 = vmatprep.subr.bf16.mxu0 %v7762_v39  ;;  %v994_v9 = vld [vmem:[#allocation5 + $0x1be0] sm:$0xff]  ;;  %v7092_v39 = vcombine.high %v223_v33, %v227_v34  ;;  %v183_v22 = vld [vmem:[#allocation5 + $0x288] sm:$0xff] }
 0x10b   :  { %5904 = vmatpush1.bf16.msra.mxu1 %v7019_v38  ;;  %v7858_v15 = vcombine.high %v990_v8, %v994_v9  ;;  %v982_v18 = vld [vmem:[#allocation5 + $0x1b80] sm:$0xff]  ;;  %v7857_v24 = vcombine.low %v990_v8, %v994_v9  ;;  %v191_v9 = vld [vmem:[#allocation5 + $0x2c8] sm:$0xff] }
 0x10c   :  { %5905 = vmatprep.subr.bf16.mxu1 %v7012_v40  ;;  %v986_v20 = vld [vmem:[#allocation5 + $0x1ba0] sm:$0xff]  ;;  %v187_v23 = vld [vmem:[#allocation5 + $0x2a8] sm:$0xff] }
 0x10d   :  { %5828 = vmatpush1.bf16.msra.mxu0 %v7761_v46  ;;  %v7850_v27 = vcombine.high %v982_v18, %v986_v20  ;;  %v974_v30 = vld [vmem:[#allocation5 + $0x1b40] sm:$0xff]  ;;  %v7849_v35 = vcombine.low %v982_v18, %v986_v20  ;;  %v7091_v46 = vcombine.low %v223_v33, %v227_v34  ;;  %v291_v33 = vld [vmem:[#allocation5 + $0x5e8] sm:$0xff] }
 0x10e   :  { %5829 = vmatprep.subr.bf16.mxu0 %v7754_v48  ;;  %v978_v31 = vld [vmem:[#allocation5 + $0x1b60] sm:$0xff]  ;;  %v7084_v48 = vcombine.high %v215_v43, %v219_v44  ;;  %v175_v34 = vld [vmem:[#allocation5 + $0x248] sm:$0xff] }
 0x10f   :  { %5906 = vmatpush1.bf16.msra.mxu1 %v7011_v47  ;;  %v7842_v38 = vcombine.high %v974_v30, %v978_v31  ;;  %v966_v40 = vld [vmem:[#allocation5 + $0x1b00] sm:$0xff]  ;;  %v7841_v45 = vcombine.low %v974_v30, %v978_v31  ;;  %v7052_v30 = vcombine.high %v183_v22, %v187_v23  ;;  %v287_v31 = vld [vmem:[#allocation5 + $0x5c8] sm:$0xff] }
 0x110   :  { %5907 = vmatprep.subr.bf16.mxu1 %v7004_v50  ;;  %v970_v42 = vld [vmem:[#allocation5 + $0x1b20] sm:$0xff] }
 0x111   :  { %5830 = vmatpush1.bf16.msra.mxu0 %v7753_v56  ;;  %v7834_v47 = vcombine.high %v966_v40, %v970_v42  ;;  %v958_v50 = vld [vmem:[#allocation5 + $0x1ac0] sm:$0xff]  ;;  %v7833_v55 = vcombine.low %v966_v40, %v970_v42  ;;  %v7083_v56 = vcombine.low %v215_v43, %v219_v44  ;;  %v7051_v40 = vcombine.low %v183_v22, %v187_v23  ;;  %v411_v22 = vld [vmem:[#allocation5 + $0x9a8] sm:$0xff] }
 0x112   :  { %5831 = vmatprep.subr.bf16.mxu0 %v7746_v58  ;;  %v962_v51 = vld [vmem:[#allocation5 + $0x1ae0] sm:$0xff]  ;;  %v7076_v58 = vcombine.high %v207_v53, %v211_v54  ;;  %v7156_v43 = vcombine.high %v287_v31, %v291_v33 }
 0x113   :  { %5908 = vmatpush1.bf16.msra.mxu1 %v7003_v57  ;;  %v7826_v57 = vcombine.high %v958_v50, %v962_v51  ;;  %v954_v62 = vld [vmem:[#allocation5 + $0x1aa0] sm:$0xff]  ;;  %v7825_v1 = vcombine.low %v958_v50, %v962_v51  ;;  %v167_v50 = vld [vmem:[#allocation5 + $0x208] sm:$0xff] }
 0x114   :  { %5909 = vmatprep.subr.bf16.mxu1 %v6996_v61  ;;  %v950_v61 = vld [vmem:[#allocation5 + $0x1a80] sm:$0xff]  ;;  %v171_v51 = vld [vmem:[#allocation5 + $0x228] sm:$0xff] }
 0x115   :  { %5832 = vmatpush1.bf16.msra.mxu0 %v7745_v2  ;;  %v7075_v2 = vcombine.low %v207_v53, %v211_v54  ;;  %v946_v8 = vld [vmem:[#allocation5 + $0x1a60] sm:$0xff]  ;;  %v7817_v11 = vcombine.low %v950_v61, %v954_v62  ;;  %v7155_v54 = vcombine.low %v287_v31, %v291_v33 }
 0x116   :  { %5833 = vmatprep.subr.bf16.mxu0 %v7738_v5  ;;  %v7068_v5 = vcombine.high %v199_v63, %v203_v0  ;;  %v934_v18 = vld [vmem:[#allocation5 + $0x1a00] sm:$0xff] }
 0x117   :  { %5910 = vmatpush1.bf16.msra.mxu1 %v6995_v4  ;;  %v7818_v4 = vcombine.high %v950_v61, %v954_v62  ;;  %v938_v20 = vld [vmem:[#allocation5 + $0x1a20] sm:$0xff]  ;;  %v271_v61 = vld [vmem:[#allocation5 + $0x548] sm:$0xff] }
 0x118   :  { %5911 = vmatprep.subr.bf16.mxu1 %v6988_v7  ;;  %v942_v7 = vld [vmem:[#allocation5 + $0x1a40] sm:$0xff]  ;;  %v275_v62 = vld [vmem:[#allocation5 + $0x568] sm:$0xff] }
 0x119   :  { %5834 = vmatpush1.bf16.msra.mxu0 %v7737_v12  ;;  %v1004_v12 = vlaneseq  ;;  %v1002_v42 = vld [vmem:[#allocation7] sm:$0xff] }
 0x11a   :  { %5835 = vmatprep.subr.bf16.mxu0 %v7858_v15  ;;  %v7810_v15 = vcombine.high %v942_v7, %v946_v8 }
 0x11b   :  { %5912 = vmatpush1.bf16.msra.mxu1 %v6987_v13  ;;  %v7067_v13 = vcombine.low %v199_v63, %v203_v0  ;;  %v415_v0 = vld [vmem:[#allocation5 + $0x9c8] sm:$0xff] }
 0x11c   :  { %5913 = vmatprep.subr.bf16.mxu1 %v6980_v16  ;;  %v7060_v16 = vcombine.high %v191_v9, %v195_v10 }
 0x11d   :  { %5836 = vmatpush2.bf16.msra.mxu0 %v7857_v24  ;;  %v7809_v24 = vcombine.low %v942_v7, %v946_v8  ;;  %v7035_v8 = vcombine.low %v167_v50, %v171_v51 }
 0x11e   :  { %5837 = vmatprep.subr.bf16.mxu0 %v7850_v27  ;;  %v7059_v27 = vcombine.low %v191_v9, %v195_v10  ;;  %v7140_v9 = vcombine.high %v271_v61, %v275_v62 }
 0x11f   :  { %5914 = vmatpush1.bf16.msra.mxu1 %v6979_v25  ;;  %v8087_v25 = vshrl.u32 %v1004_v12, 7 }
 0x120   :  { %5915 = vmatprep.subr.bf16.mxu1 %v6972_v28  ;;  %v7802_v28 = vcombine.high %v934_v18, %v938_v20 }
 0x121   :  { %5838 = vmatpush2.bf16.msra.mxu0 %v7849_v35  ;;  %v179_v35 = vld [vmem:[#allocation5 + $0x268] sm:$0xff] }
 0x122   :  { %5839 = vmatprep.subr.bf16.mxu0 %v7842_v38  ;;  %v1006_v38 = vsub.s32 0, %v8087_v25  ;;  %v7044_v44 = vcombine.high %v175_v34, %v179_v35 }
 0x123   :  { %5916 = vmatpush1.bf16.msra.mxu1 %v6971_v36  ;;  %v7801_v36 = vcombine.low %v934_v18, %v938_v20  ;;  %v407_v20 = vld [vmem:[#allocation5 + $0x988] sm:$0xff] }
 0x124   :  { %5917 = vmatprep.subr.bf16.mxu1 %v7092_v39  ;;  %v84_v39 = vld [vmem:[#allocation3 + $0x60] sm:$0xff]  ;;  %v1007_v53 = vrot.slane %v1002_v42, %v1006_v38 }
 0x125   :  { %5840 = vmatpush2.bf16.msra.mxu0 %v7841_v45  ;;  %v1010_v45 = vsub.s32 1, %v8087_v25 }
 0x126   :  { %5841 = vmatprep.subr.bf16.mxu0 %v7834_v47  ;;  %v283_v47 = vld [vmem:[#allocation5 + $0x5a8] sm:$0xff] }
 0x127   :  { %5918 = vmatpush2.bf16.msra.mxu1 %v7091_v46  ;;  %v279_v46 = vld [vmem:[#allocation5 + $0x588] sm:$0xff] }
 0x128   :  { %5919 = vmatprep.subr.bf16.mxu1 %v7084_v48  ;;  %v8091_v48 = vpack.c.bf16 %v84_v39, %v84_v39  ;;  %v399_v39 = vld [vmem:[#allocation5 + $0x948] sm:$0xff] }
 0x129   :  { %5842 = vmatpush2.bf16.msra.mxu0 %v7833_v55  ;;  %v7043_v55 = vcombine.low %v175_v34, %v179_v35  ;;  %v7276_v34 = vcombine.high %v407_v20, %v411_v22  ;;  %v255_v35 = vld [vmem:[#allocation5 + $0x4c8] sm:$0xff] }
 0x12a   :  { %5843 = vmatprep.subr.bf16.mxu0 %v7826_v57  ;;  %v1011_v57 = vrot.slane %v1002_v42, %v1010_v45 }
 0x12b   :  { %5920 = vmatpush2.bf16.msra.mxu1 %v7083_v56  ;;  %v7148_v56 = vcombine.high %v279_v46, %v283_v47 }
 0x12c   :  { %5921 = vmatprep.subr.bf16.mxu1 %v7076_v58  ;;  %v7036_v58 = vcombine.high %v167_v50, %v171_v51  ;;  %v251_v50 = vld [vmem:[#allocation5 + $0x4a8] sm:$0xff] }
 0x12d   :  { %5844 = vmatpush2.bf16.msra.mxu0 %v7825_v1  ;;  %v419_v1 = vld [vmem:[#allocation5 + $0x9e8] sm:$0xff] }
 0x12e   :  { %5845 = vmatprep.subr.bf16.mxu0 %v7818_v4  ;;  %v391_v51 = vld [vmem:[#allocation5 + $0x908] sm:$0xff] }
 0x12f   :  { %5922 = vmatpush2.bf16.msra.mxu1 %v7075_v2 }
 0x130   :  { %5923 = vmatprep.subr.bf16.mxu1 %v7068_v5  ;;  %v7147_v5 = vcombine.low %v279_v46, %v283_v47  ;;  %v247_v47 = vld [vmem:[#allocation5 + $0x488] sm:$0xff] }
 0x131   :  { %5846 = vmatpush2.bf16.msra.mxu0 %v7817_v11 }
 0x132   :  { %5847 = vmatprep.subr.bf16.mxu0 %v7810_v15  ;;  %v263_v15 = vld [vmem:[#allocation5 + $0x508] sm:$0xff] }
 0x133   :  { %5924 = vmatpush2.bf16.msra.mxu1 %v7067_v13  ;;  %v7284_v13 = vcombine.high %v415_v0, %v419_v1 }
 0x134   :  { %5925 = vmatprep.subr.bf16.mxu1 %v7060_v16  ;;  %v267_v16 = vld [vmem:[#allocation5 + $0x528] sm:$0xff] }
 0x135   :  { %5848 = vmatpush2.bf16.msra.mxu0 %v7809_v24  ;;  %v7132_v31 = vcombine.high %v263_v15, %v267_v16  ;;  %v7131_v42 = vcombine.low %v263_v15, %v267_v16  ;;  %v351_v16 = vld [vmem:[#allocation5 + $0x7c8] sm:$0xff] }
 0x136   :  { %5849 = vmatprep.subr.bf16.mxu0 %v7802_v28 }
 0x137   :  { %5926 = vmatpush2.bf16.msra.mxu1 %v7059_v27  ;;  %v7139_v27 = vcombine.low %v271_v61, %v275_v62  ;;  %v243_v61 = vld [vmem:[#allocation5 + $0x468] sm:$0xff] }
 0x138   :  { %5927 = vmatprep.subr.bf16.mxu1 %v7052_v30  ;;  %v7283_v30 = vcombine.low %v415_v0, %v419_v1  ;;  %v383_v62 = vld [vmem:[#allocation5 + $0x8c8] sm:$0xff]  ;;  %v7115_v0 = vcombine.low %v247_v47, %v251_v50 }
 0x139   :  { %5850 = vmatpush2.bf16.msra.mxu0 %v7801_v36  ;;  %v259_v36 = vld [vmem:[#allocation5 + $0x4e8] sm:$0xff] }
 0x13a   :  { %5942 = vmatprep.subr.bf16.mxu0 %v7156_v43  ;;  %v5607_v63 = vpop.f32.mrf.mxu0  ;;  %v7275_v43 = vcombine.low %v407_v20, %v411_v22  ;;  %v367_v20 = vld [vmem:[#allocation5 + $0x848] sm:$0xff] }
 0x13b   :  { %5928 = vmatpush2.bf16.msra.mxu1 %v7051_v40  ;;  %v5608_v2 = vadd.f32 %v5607_v63, %v1007_v53  ;;  %v403_v40 = vld [vmem:[#allocation5 + $0x968] sm:$0xff] }
 0x13c   :  { %5929 = vmatprep.subr.bf16.mxu1 %v7044_v44  ;;  %5852 = vmatmul.mubr.bf16.vlgmr.msra.gmra.mxu0 %v8091_v48  ;;  %v5648_v4 = vpop.f32.mrf.mxu1  ;;  %v5609_v7 = vpop.f32.mrf.mxu0  ;;  %v7124_v44 = vcombine.high %v255_v35, %v259_v36  ;;  %v7268_v46 = vcombine.high %v399_v39, %v403_v40  ;;  %v395_v53 = vld [vmem:[#allocation5 + $0x928] sm:$0xff] }
 0x13d   :  { %5943 = vmatpush1.bf16.msra.mxu0 %v7155_v54  ;;  %5974 = vmatprep.mubr.bf16.mxu0 %v8042_v60  ;;  %v8099_v10 = vadd.f32 %v5648_v4, %v5608_v2  ;;  %v5610_v11 = vadd.f32 %v5609_v7, %v1011_v57  ;;  %v7123_v54 = vcombine.low %v255_v35, %v259_v36  ;;  %v387_v63 = vld [vmem:[#allocation5 + $0x8e8] sm:$0xff] }
 0x13e   :  { %5944 = vmatprep.subr.bf16.mxu0 %v7148_v56  ;;  %v5650_v12 = vpop.f32.mrf.mxu1  ;;  %v5611_v18 = vpop.f32.mrf.mxu0  ;;  %v7116_v56 = vcombine.high %v247_v47, %v251_v50  ;;  %v7260_v57 = vcombine.high %v391_v51, %v395_v53  ;;  %v7259_v1 = vcombine.low %v391_v51, %v395_v53  ;;  %v7252_v4 = vcombine.high %v383_v62, %v387_v63  ;;  %v235_v7 = vld [vmem:[#allocation5 + $0x428] sm:$0xff] }
 0x13f   :  { %5930 = vmatpush2.bf16.msra.mxu1 %v7043_v55  ;;  %v8101_v23 = vadd.f32 %v5650_v12, %v5610_v11  ;;  %v7267_v55 = vcombine.low %v399_v39, %v403_v40  ;;  %v7251_v12 = vcombine.low %v383_v62, %v387_v63  ;;  %v355_v18 = vld [vmem:[#allocation5 + $0x7e8] sm:$0xff] }
 0x140   :  { %5931 = vmatprep.subr.bf16.mxu1 %v7036_v58  ;;  %v5652_v24 = vpop.f32.mrf.mxu1  ;;  %v5612_v28 = vpop.f32.mrf.mxu0  ;;  %v239_v58 = vld [vmem:[#allocation5 + $0x448] sm:$0xff]  ;;  %v7219_v36 = vcombine.low %v351_v16, %v355_v18 }
 0x141   :  { %5945 = vmatpush1.bf16.msra.mxu0 %v7147_v5  ;;  %v7108_v2 = vcombine.high %v239_v58, %v243_v61  ;;  %v231_v5 = vld [vmem:[#allocation5 + $0x408] sm:$0xff]  ;;  %v7107_v11 = vcombine.low %v239_v58, %v243_v61  ;;  %v7220_v28 = vcombine.high %v351_v16, %v355_v18 }
 0x142   :  { %5946 = vmatprep.subr.bf16.mxu0 %v7140_v9  ;;  %v5653_v33 = vpop.f32.mrf.mxu1  ;;  %v379_v9 = vld [vmem:[#allocation5 + $0x8a8] sm:$0xff]  ;;  %v7099_v24 = vcombine.low %v231_v5, %v235_v7 }
 0x143   :  { %5932 = vmatpush2.bf16.msra.mxu1 %v7035_v8  ;;  %v375_v8 = vld [vmem:[#allocation5 + $0x888] sm:$0xff] }
 0x144   :  { %5983 = vmatprep.subr.bf16.mxu1 %v7284_v13  ;;  %v7100_v13 = vcombine.high %v231_v5, %v235_v7  ;;  %v7244_v15 = vcombine.high %v375_v8, %v379_v9  ;;  %v371_v22 = vld [vmem:[#allocation5 + $0x868] sm:$0xff] }
 0x145   :  { %5947 = vmatpush1.bf16.msra.mxu0 %v7139_v27  ;;  %v7243_v27 = vcombine.low %v375_v8, %v379_v9  ;;  %v347_v33 = vld [vmem:[#allocation5 + $0x7a8] sm:$0xff]  ;;  %v7235_v39 = vcombine.low %v367_v20, %v371_v22 }
 0x146   :  { %5934 = vmatmul.mubr.bf16.vlgmr.msra.gmra.mxu1 %v8046_v17  ;;  %5948 = vmatprep.subr.bf16.mxu0 %v7132_v31  ;;  %v343_v31 = vld [vmem:[#allocation5 + $0x788] sm:$0xff] }
 0x147   :  { %5984 = vmatpush1.bf16.msra.mxu1 %v7283_v30  ;;  %6015 = vmatprep.mubr.bf16.mxu1 %v8050_v29  ;;  %v7236_v30 = vcombine.high %v367_v20, %v371_v22  ;;  %v363_v35 = vld [vmem:[#allocation5 + $0x828] sm:$0xff]  ;;  %v7212_v40 = vcombine.high %v343_v31, %v347_v33  ;;  %v7211_v50 = vcombine.low %v343_v31, %v347_v33 }
 0x148   :  { %5985 = vmatprep.subr.bf16.mxu1 %v7276_v34  ;;  %v359_v34 = vld [vmem:[#allocation5 + $0x808] sm:$0xff] }
 0x149   :  { %5949 = vmatpush1.bf16.msra.mxu0 %v7131_v42  ;;  %v7228_v42 = vcombine.high %v359_v34, %v363_v35  ;;  %v483_v47 = vld [vmem:[#allocation5 + $0xbe8] sm:$0xff]  ;;  %v7227_v51 = vcombine.low %v359_v34, %v363_v35 }
 0x14a   :  { %5950 = vmatprep.subr.bf16.mxu0 %v7124_v44  ;;  %v339_v44 = vld [vmem:[#allocation5 + $0x768] sm:$0xff] }
 0x14b   :  { %5986 = vmatpush1.bf16.msra.mxu1 %v7275_v43  ;;  %v335_v43 = vld [vmem:[#allocation5 + $0x748] sm:$0xff] }
 0x14c   :  { %5987 = vmatprep.subr.bf16.mxu1 %v7268_v46  ;;  %v479_v46 = vld [vmem:[#allocation5 + $0xbc8] sm:$0xff]  ;;  %v7204_v53 = vcombine.high %v335_v43, %v339_v44  ;;  %v7203_v61 = vcombine.low %v335_v43, %v339_v44 }
 0x14d   :  { %5951 = vmatpush1.bf16.msra.mxu0 %v7123_v54  ;;  %v7348_v54 = vcombine.high %v479_v46, %v483_v47  ;;  %v475_v58 = vld [vmem:[#allocation5 + $0xba8] sm:$0xff]  ;;  %v7347_v62 = vcombine.low %v479_v46, %v483_v47 }
 0x14e   :  { %5952 = vmatprep.subr.bf16.mxu0 %v7116_v56  ;;  %v331_v56 = vld [vmem:[#allocation5 + $0x728] sm:$0xff] }
 0x14f   :  { %5988 = vmatpush1.bf16.msra.mxu1 %v7267_v55  ;;  %v327_v55 = vld [vmem:[#allocation5 + $0x708] sm:$0xff] }
 0x150   :  { %5989 = vmatprep.subr.bf16.mxu1 %v7260_v57  ;;  %v471_v57 = vld [vmem:[#allocation5 + $0xb88] sm:$0xff]  ;;  %v7196_v63 = vcombine.high %v327_v55, %v331_v56  ;;  %v7195_v7 = vcombine.low %v327_v55, %v331_v56 }
 0x151   :  { %5953 = vmatpush1.bf16.msra.mxu0 %v7115_v0  ;;  %v7340_v0 = vcombine.high %v471_v57, %v475_v58  ;;  %v467_v5 = vld [vmem:[#allocation5 + $0xb68] sm:$0xff]  ;;  %v7339_v8 = vcombine.low %v471_v57, %v475_v58 }
 0x152   :  { %5954 = vmatprep.subr.bf16.mxu0 %v7108_v2  ;;  %v323_v2 = vld [vmem:[#allocation5 + $0x6e8] sm:$0xff] }
 0x153   :  { %5990 = vmatpush1.bf16.msra.mxu1 %v7259_v1  ;;  %v319_v1 = vld [vmem:[#allocation5 + $0x6c8] sm:$0xff] }
 0x154   :  { %5991 = vmatprep.subr.bf16.mxu1 %v7252_v4  ;;  %v463_v4 = vld [vmem:[#allocation5 + $0xb48] sm:$0xff]  ;;  %v7188_v9 = vcombine.high %v319_v1, %v323_v2  ;;  %v7187_v18 = vcombine.low %v319_v1, %v323_v2 }
 0x155   :  { %5955 = vmatpush1.bf16.msra.mxu0 %v7107_v11  ;;  %v7332_v11 = vcombine.high %v463_v4, %v467_v5  ;;  %v459_v16 = vld [vmem:[#allocation5 + $0xb28] sm:$0xff]  ;;  %v7331_v20 = vcombine.low %v463_v4, %v467_v5 }
 0x156   :  { %5956 = vmatprep.subr.bf16.mxu0 %v7100_v13  ;;  %v315_v13 = vld [vmem:[#allocation5 + $0x6a8] sm:$0xff] }
 0x157   :  { %5992 = vmatpush1.bf16.msra.mxu1 %v7251_v12  ;;  %v311_v12 = vld [vmem:[#allocation5 + $0x688] sm:$0xff] }
 0x158   :  { %5993 = vmatprep.subr.bf16.mxu1 %v7244_v15  ;;  %v455_v15 = vld [vmem:[#allocation5 + $0xb08] sm:$0xff]  ;;  %v7180_v22 = vcombine.high %v311_v12, %v315_v13  ;;  %v7179_v33 = vcombine.low %v311_v12, %v315_v13 }
 0x159   :  { %5957 = vmatpush1.bf16.msra.mxu0 %v7099_v24  ;;  %v7324_v24 = vcombine.high %v455_v15, %v459_v16  ;;  %v451_v31 = vld [vmem:[#allocation5 + $0xae8] sm:$0xff]  ;;  %v7323_v34 = vcombine.low %v455_v15, %v459_v16 }
 0x15a   :  { %5958 = vmatprep.subr.bf16.mxu0 %v7220_v28  ;;  %v307_v28 = vld [vmem:[#allocation5 + $0x668] sm:$0xff] }
 0x15b   :  { %5994 = vmatpush1.bf16.msra.mxu1 %v7243_v27  ;;  %v303_v27 = vld [vmem:[#allocation5 + $0x648] sm:$0xff] }
 0x15c   :  { %5995 = vmatprep.subr.bf16.mxu1 %v7236_v30  ;;  %v447_v30 = vld [vmem:[#allocation5 + $0xac8] sm:$0xff]  ;;  %v7172_v35 = vcombine.high %v303_v27, %v307_v28  ;;  %v7171_v44 = vcombine.low %v303_v27, %v307_v28 }
 0x15d   :  { %5959 = vmatpush2.bf16.msra.mxu0 %v7219_v36  ;;  %v7316_v36 = vcombine.high %v447_v30, %v451_v31  ;;  %v443_v43 = vld [vmem:[#allocation5 + $0xaa8] sm:$0xff]  ;;  %v7315_v46 = vcombine.low %v447_v30, %v451_v31 }
 0x15e   :  { %5960 = vmatprep.subr.bf16.mxu0 %v7212_v40  ;;  %v299_v40 = vld [vmem:[#allocation5 + $0x628] sm:$0xff] }
 0x15f   :  { %5996 = vmatpush1.bf16.msra.mxu1 %v7235_v39  ;;  %v295_v39 = vld [vmem:[#allocation5 + $0x608] sm:$0xff] }
 0x160   :  { %5997 = vmatprep.subr.bf16.mxu1 %v7228_v42  ;;  %v439_v42 = vld [vmem:[#allocation5 + $0xa88] sm:$0xff]  ;;  %v7164_v47 = vcombine.high %v295_v39, %v299_v40  ;;  %v7163_v56 = vcombine.low %v295_v39, %v299_v40 }
 0x161   :  { %5961 = vmatpush2.bf16.msra.mxu0 %v7211_v50  ;;  %v7308_v50 = vcombine.high %v439_v42, %v443_v43  ;;  %v435_v55 = vld [vmem:[#allocation5 + $0xa68] sm:$0xff]  ;;  %v7307_v57 = vcombine.low %v439_v42, %v443_v43 }
 0x162   :  { %5962 = vmatprep.subr.bf16.mxu0 %v7204_v53  ;;  %v547_v53 = vld [vmem:[#allocation5 + $0xde8] sm:$0xff] }
 0x163   :  { %5998 = vmatpush1.bf16.msra.mxu1 %v7227_v51  ;;  %v543_v51 = vld [vmem:[#allocation5 + $0xdc8] sm:$0xff] }
 0x164   :  { %5999 = vmatprep.subr.bf16.mxu1 %v7348_v54  ;;  %v431_v54 = vld [vmem:[#allocation5 + $0xa48] sm:$0xff]  ;;  %v7412_v58 = vcombine.high %v543_v51, %v547_v53  ;;  %v7411_v2 = vcombine.low %v543_v51, %v547_v53 }
 0x165   :  { %5963 = vmatpush2.bf16.msra.mxu0 %v7203_v61  ;;  %v7300_v61 = vcombine.high %v431_v54, %v435_v55  ;;  %v427_v1 = vld [vmem:[#allocation5 + $0xa28] sm:$0xff]  ;;  %v7299_v4 = vcombine.low %v431_v54, %v435_v55 }
 0x166   :  { %5964 = vmatprep.subr.bf16.mxu0 %v7196_v63  ;;  %v539_v63 = vld [vmem:[#allocation5 + $0xda8] sm:$0xff] }
 0x167   :  { %6000 = vmatpush2.bf16.msra.mxu1 %v7347_v62  ;;  %v535_v62 = vld [vmem:[#allocation5 + $0xd88] sm:$0xff] }
 0x168   :  { %6001 = vmatprep.subr.bf16.mxu1 %v7340_v0  ;;  %v423_v0 = vld [vmem:[#allocation5 + $0xa08] sm:$0xff]  ;;  %v7404_v5 = vcombine.high %v535_v62, %v539_v63 }
 0x169   :  { %5965 = vmatpush2.bf16.msra.mxu0 %v7195_v7  ;;  %v7292_v7 = vcombine.high %v423_v0, %v427_v1  ;;  %v671_v12 = vld [vmem:[#allocation5 + $0x11c8] sm:$0xff] }
 0x16a   :  { %5966 = vmatprep.subr.bf16.mxu0 %v7188_v9  ;;  %v531_v9 = vld [vmem:[#allocation5 + $0xd68] sm:$0xff] }
 0x16b   :  { %6002 = vmatpush2.bf16.msra.mxu1 %v7339_v8  ;;  %v527_v8 = vld [vmem:[#allocation5 + $0xd48] sm:$0xff] }
 0x16c   :  { %6003 = vmatprep.subr.bf16.mxu1 %v7332_v11  ;;  %v675_v13 = vld [vmem:[#allocation5 + $0x11e8] sm:$0xff]  ;;  %v7395_v42 = vcombine.low %v527_v8, %v531_v9 }
 0x16d   :  { %5967 = vmatpush2.bf16.msra.mxu0 %v7187_v18  ;;  %v7403_v18 = vcombine.low %v535_v62, %v539_v63  ;;  %v7540_v31 = vcombine.high %v671_v12, %v675_v13  ;;  %v515_v51 = vld [vmem:[#allocation5 + $0xce8] sm:$0xff] }
 0x16e   :  { %5968 = vmatprep.subr.bf16.mxu0 %v7180_v22  ;;  %v7291_v22 = vcombine.low %v423_v0, %v427_v1  ;;  %v655_v53 = vld [vmem:[#allocation5 + $0x1148] sm:$0xff] }
 0x16f   :  { %6004 = vmatpush2.bf16.msra.mxu1 %v7331_v20  ;;  %v659_v54 = vld [vmem:[#allocation5 + $0x1168] sm:$0xff] }
 0x170   :  { %6005 = vmatprep.subr.bf16.mxu1 %v7324_v24  ;;  %v7396_v24 = vcombine.high %v527_v8, %v531_v9  ;;  %v507_v62 = vld [vmem:[#allocation5 + $0xca8] sm:$0xff] }
 0x171   :  { %5969 = vmatpush2.bf16.msra.mxu0 %v7179_v33  ;;  %v519_v33 = vld [vmem:[#allocation5 + $0xd08] sm:$0xff] }
 0x172   :  { %5970 = vmatprep.subr.bf16.mxu0 %v7172_v35  ;;  %v663_v35 = vld [vmem:[#allocation5 + $0x1188] sm:$0xff] }
 0x173   :  { %6006 = vmatpush2.bf16.msra.mxu1 %v7323_v34  ;;  %v523_v34 = vld [vmem:[#allocation5 + $0xd28] sm:$0xff] }
 0x174   :  { %6007 = vmatprep.subr.bf16.mxu1 %v7316_v36  ;;  %v667_v36 = vld [vmem:[#allocation5 + $0x11a8] sm:$0xff]  ;;  %v7387_v55 = vcombine.low %v519_v33, %v523_v34 }
 0x175   :  { %5971 = vmatpush2.bf16.msra.mxu0 %v7171_v44  ;;  %v7539_v44 = vcombine.low %v671_v12, %v675_v13  ;;  %v647_v63 = vld [vmem:[#allocation5 + $0x1108] sm:$0xff] }
 0x176   :  { %5972 = vmatprep.subr.bf16.mxu0 %v7164_v47  ;;  %v651_v0 = vld [vmem:[#allocation5 + $0x1128] sm:$0xff] }
 0x177   :  { %6008 = vmatpush2.bf16.msra.mxu1 %v7315_v46  ;;  %v7388_v46 = vcombine.high %v519_v33, %v523_v34  ;;  %v499_v8 = vld [vmem:[#allocation5 + $0xc68] sm:$0xff]  ;;  %v7515_v13 = vcombine.low %v647_v63, %v651_v0 }
 0x178   :  { %6009 = vmatprep.subr.bf16.mxu1 %v7308_v50  ;;  %v511_v50 = vld [vmem:[#allocation5 + $0xcc8] sm:$0xff] }
 0x179   :  { %5973 = vmatpush2.bf16.msra.mxu0 %v7163_v56  ;;  %v7531_v56 = vcombine.low %v663_v35, %v667_v36  ;;  %v7379_v1 = vcombine.low %v511_v50, %v515_v51  ;;  %v639_v9 = vld [vmem:[#allocation5 + $0x10c8] sm:$0xff] }
 0x17a   :  { %6024 = vmatprep.subr.bf16.mxu0 %v7412_v58  ;;  %v7524_v58 = vcombine.high %v655_v53, %v659_v54  ;;  %v607_v34 = vld [vmem:[#allocation5 + $0xfc8] sm:$0xff] }
 0x17b   :  { %6010 = vmatpush2.bf16.msra.mxu1 %v7307_v57  ;;  %v5689_v11 = vpop.f32.mrf.mxu0  ;;  %v7380_v57 = vcombine.high %v511_v50, %v515_v51  ;;  %v619_v50 = vld [vmem:[#allocation5 + $0x1028] sm:$0xff] }
 0x17c   :  { %6011 = vmatprep.subr.bf16.mxu1 %v7300_v61  ;;  %5975 = vmatmul.mubr.bf16.vlgmr.msra.gmra.mxu0 %v8048_v21  ;;  %v5690_v15 = vadd.f32 %v5689_v11, %v8099_v10  ;;  %v503_v61 = vld [vmem:[#allocation5 + $0xc88] sm:$0xff] }
 0x17d   :  { %v5730_v16 = vpop.f32.mrf.mxu1  ;;  %6025 = vmatpush1.bf16.msra.mxu0 %v7411_v2  ;;  %6056 = vmatprep.mubr.bf16.mxu0 %v8053_v32  ;;  %v5691_v20 = vpop.f32.mrf.mxu0  ;;  %v7523_v2 = vcombine.low %v655_v53, %v659_v54  ;;  %v643_v11 = vld [vmem:[#allocation5 + $0x10e8] sm:$0xff]  ;;  %v7371_v12 = vcombine.low %v503_v61, %v507_v62 }
 0x17e   :  { %6026 = vmatprep.subr.bf16.mxu0 %v7404_v5  ;;  %v8108_v27 = vadd.f32 %v5730_v16, %v5690_v15  ;;  %v5692_v28 = vadd.f32 %v5691_v20, %v8101_v23  ;;  %v7532_v23 = vcombine.high %v663_v35, %v667_v36  ;;  %v7516_v5 = vcombine.high %v647_v63, %v651_v0  ;;  %v491_v20 = vld [vmem:[#allocation5 + $0xc28] sm:$0xff] }
 0x17f   :  { %6012 = vmatpush2.bf16.msra.mxu1 %v7299_v4  ;;  %v5732_v30 = vpop.f32.mrf.mxu1  ;;  %v5693_v10 = vpop.f32.mrf.mxu0  ;;  %v7372_v4 = vcombine.high %v503_v61, %v507_v62  ;;  %v7508_v16 = vcombine.high %v639_v9, %v643_v11  ;;  %v623_v35 = vld [vmem:[#allocation5 + $0x1048] sm:$0xff] }
 0x180   :  { %6013 = vmatprep.subr.bf16.mxu1 %v7292_v7  ;;  %v8111_v39 = vadd.f32 %v5732_v30, %v5692_v28  ;;  %v495_v7 = vld [vmem:[#allocation5 + $0xc48] sm:$0xff]  ;;  %v7507_v30 = vcombine.low %v639_v9, %v643_v11 }
 0x181   :  { %v5734_v40 = vpop.f32.mrf.mxu1  ;;  %6027 = vmatpush1.bf16.msra.mxu0 %v7403_v18  ;;  %v5694_v43 = vpop.f32.mrf.mxu0  ;;  %v7364_v15 = vcombine.high %v495_v7, %v499_v8  ;;  %v487_v18 = vld [vmem:[#allocation5 + $0xc08] sm:$0xff]  ;;  %v7363_v28 = vcombine.low %v495_v7, %v499_v8 }
 0x182   :  { %6028 = vmatprep.subr.bf16.mxu0 %v7396_v24  ;;  %v635_v24 = vld [vmem:[#allocation5 + $0x10a8] sm:$0xff]  ;;  %v7355_v40 = vcombine.low %v487_v18, %v491_v20 }
 0x183   :  { %6014 = vmatpush2.bf16.msra.mxu1 %v7291_v22  ;;  %v5735_v47 = vpop.f32.mrf.mxu1  ;;  %v631_v22 = vld [vmem:[#allocation5 + $0x1088] sm:$0xff] }
 0x184   :  { %6065 = vmatprep.subr.bf16.mxu1 %v7540_v31  ;;  %v7356_v31 = vcombine.high %v487_v18, %v491_v20  ;;  %v7500_v33 = vcombine.high %v631_v22, %v635_v24  ;;  %v611_v10 = vld [vmem:[#allocation5 + $0xfe8] sm:$0xff] }
 0x185   :  { %6029 = vmatpush1.bf16.msra.mxu0 %v7395_v42  ;;  %v627_v36 = vld [vmem:[#allocation5 + $0x1068] sm:$0xff]  ;;  %v7499_v42 = vcombine.low %v631_v22, %v635_v24  ;;  %v7476_v43 = vcombine.high %v607_v34, %v611_v10  ;;  %v7475_v51 = vcombine.low %v607_v34, %v611_v10 }
 0x186   :  { %6016 = vmatmul.mubr.bf16.vlgmr.msra.gmra.mxu1 %v8058_v37  ;;  %6030 = vmatprep.subr.bf16.mxu0 %v7388_v46  ;;  %v599_v46 = vld [vmem:[#allocation5 + $0xf88] sm:$0xff]  ;;  %v7491_v53 = vcombine.low %v623_v35, %v627_v36 }
 0x187   :  { %6066 = vmatpush1.bf16.msra.mxu1 %v7539_v44  ;;  %6097 = vmatprep.mubr.bf16.mxu1 %v8062_v49  ;;  %v7492_v44 = vcombine.high %v623_v35, %v627_v36  ;;  %v603_v47 = vld [vmem:[#allocation5 + $0xfa8] sm:$0xff] }
 0x188   :  { %6067 = vmatprep.subr.bf16.mxu1 %v7532_v23  ;;  %v615_v23 = vld [vmem:[#allocation5 + $0x1008] sm:$0xff]  ;;  %v7468_v54 = vcombine.high %v599_v46, %v603_v47  ;;  %v7467_v62 = vcombine.low %v599_v46, %v603_v47 }
 0x189   :  { %6031 = vmatpush1.bf16.msra.mxu0 %v7387_v55  ;;  %v7484_v55 = vcombine.high %v615_v23, %v619_v50  ;;  %v739_v61 = vld [vmem:[#allocation5 + $0x13e8] sm:$0xff]  ;;  %v7483_v63 = vcombine.low %v615_v23, %v619_v50 }
 0x18a   :  { %6032 = vmatprep.subr.bf16.mxu0 %v7380_v57  ;;  %v595_v57 = vld [vmem:[#allocation5 + $0xf68] sm:$0xff] }
 0x18b   :  { %6068 = vmatpush1.bf16.msra.mxu1 %v7531_v56  ;;  %v591_v56 = vld [vmem:[#allocation5 + $0xf48] sm:$0xff] }
 0x18c   :  { %6069 = vmatprep.subr.bf16.mxu1 %v7524_v58  ;;  %v735_v58 = vld [vmem:[#allocation5 + $0x13c8] sm:$0xff]  ;;  %v7460_v0 = vcombine.high %v591_v56, %v595_v57  ;;  %v7459_v8 = vcombine.low %v591_v56, %v595_v57 }
 0x18d   :  { %6033 = vmatpush1.bf16.msra.mxu0 %v7379_v1  ;;  %v7604_v1 = vcombine.high %v735_v58, %v739_v61  ;;  %v731_v7 = vld [vmem:[#allocation5 + $0x13a8] sm:$0xff]  ;;  %v7603_v9 = vcombine.low %v735_v58, %v739_v61 }
 0x18e   :  { %6034 = vmatprep.subr.bf16.mxu0 %v7372_v4  ;;  %v587_v4 = vld [vmem:[#allocation5 + $0xf28] sm:$0xff] }
 0x18f   :  { %6070 = vmatpush1.bf16.msra.mxu1 %v7523_v2  ;;  %v583_v2 = vld [vmem:[#allocation5 + $0xf08] sm:$0xff] }
 0x190   :  { %6071 = vmatprep.subr.bf16.mxu1 %v7516_v5  ;;  %v727_v5 = vld [vmem:[#allocation5 + $0x1388] sm:$0xff]  ;;  %v7452_v11 = vcombine.high %v583_v2, %v587_v4  ;;  %v7451_v20 = vcombine.low %v583_v2, %v587_v4 }
 0x191   :  { %6035 = vmatpush1.bf16.msra.mxu0 %v7371_v12  ;;  %v7596_v12 = vcombine.high %v727_v5, %v731_v7  ;;  %v723_v18 = vld [vmem:[#allocation5 + $0x1368] sm:$0xff]  ;;  %v7595_v22 = vcombine.low %v727_v5, %v731_v7 }
 0x192   :  { %6036 = vmatprep.subr.bf16.mxu0 %v7364_v15  ;;  %v579_v15 = vld [vmem:[#allocation5 + $0xee8] sm:$0xff] }
 0x193   :  { %6072 = vmatpush1.bf16.msra.mxu1 %v7515_v13  ;;  %v575_v13 = vld [vmem:[#allocation5 + $0xec8] sm:$0xff] }
 0x194   :  { %6073 = vmatprep.subr.bf16.mxu1 %v7508_v16  ;;  %v719_v16 = vld [vmem:[#allocation5 + $0x1348] sm:$0xff]  ;;  %v7444_v24 = vcombine.high %v575_v13, %v579_v15  ;;  %v7443_v10 = vcombine.low %v575_v13, %v579_v15 }
 0x195   :  { %6037 = vmatpush1.bf16.msra.mxu0 %v7363_v28  ;;  %v7588_v28 = vcombine.high %v719_v16, %v723_v18  ;;  %v715_v34 = vld [vmem:[#allocation5 + $0x1328] sm:$0xff]  ;;  %v7587_v35 = vcombine.low %v719_v16, %v723_v18 }
 0x196   :  { %6038 = vmatprep.subr.bf16.mxu0 %v7356_v31  ;;  %v571_v31 = vld [vmem:[#allocation5 + $0xea8] sm:$0xff] }
 0x197   :  { %6074 = vmatpush1.bf16.msra.mxu1 %v7507_v30  ;;  %v567_v30 = vld [vmem:[#allocation5 + $0xe88] sm:$0xff] }
 0x198   :  { %6075 = vmatprep.subr.bf16.mxu1 %v7500_v33  ;;  %v711_v33 = vld [vmem:[#allocation5 + $0x1308] sm:$0xff]  ;;  %v7436_v36 = vcombine.high %v567_v30, %v571_v31  ;;  %v7435_v47 = vcombine.low %v567_v30, %v571_v31 }
 0x199   :  { %6039 = vmatpush1.bf16.msra.mxu0 %v7355_v40  ;;  %v7580_v40 = vcombine.high %v711_v33, %v715_v34  ;;  %v707_v46 = vld [vmem:[#allocation5 + $0x12e8] sm:$0xff]  ;;  %v7579_v23 = vcombine.low %v711_v33, %v715_v34 }
 0x19a   :  { %6040 = vmatprep.subr.bf16.mxu0 %v7476_v43  ;;  %v563_v43 = vld [vmem:[#allocation5 + $0xe68] sm:$0xff] }
 0x19b   :  { %6076 = vmatpush1.bf16.msra.mxu1 %v7499_v42  ;;  %v559_v42 = vld [vmem:[#allocation5 + $0xe48] sm:$0xff] }
 0x19c   :  { %6077 = vmatprep.subr.bf16.mxu1 %v7492_v44  ;;  %v703_v44 = vld [vmem:[#allocation5 + $0x12c8] sm:$0xff]  ;;  %v7428_v50 = vcombine.high %v559_v42, %v563_v43  ;;  %v7427_v57 = vcombine.low %v559_v42, %v563_v43 }
 0x19d   :  { %6041 = vmatpush2.bf16.msra.mxu0 %v7475_v51  ;;  %v7572_v51 = vcombine.high %v703_v44, %v707_v46  ;;  %v699_v56 = vld [vmem:[#allocation5 + $0x12a8] sm:$0xff]  ;;  %v7571_v58 = vcombine.low %v703_v44, %v707_v46 }
 0x19e   :  { %6042 = vmatprep.subr.bf16.mxu0 %v7468_v54  ;;  %v555_v54 = vld [vmem:[#allocation5 + $0xe28] sm:$0xff] }
 0x19f   :  { %6078 = vmatpush1.bf16.msra.mxu1 %v7491_v53  ;;  %v551_v53 = vld [vmem:[#allocation5 + $0xe08] sm:$0xff] }
 0x1a0   :  { %6079 = vmatprep.subr.bf16.mxu1 %v7484_v55  ;;  %v695_v55 = vld [vmem:[#allocation5 + $0x1288] sm:$0xff]  ;;  %v7420_v61 = vcombine.high %v551_v53, %v555_v54  ;;  %v7419_v4 = vcombine.low %v551_v53, %v555_v54 }
 0x1a1   :  { %6043 = vmatpush2.bf16.msra.mxu0 %v7467_v62  ;;  %v7564_v62 = vcombine.high %v695_v55, %v699_v56  ;;  %v691_v2 = vld [vmem:[#allocation5 + $0x1268] sm:$0xff]  ;;  %v7563_v5 = vcombine.low %v695_v55, %v699_v56 }
 0x1a2   :  { %6044 = vmatprep.subr.bf16.mxu0 %v7460_v0  ;;  %v803_v0 = vld [vmem:[#allocation5 + $0x15e8] sm:$0xff] }
 0x1a3   :  { %6080 = vmatpush1.bf16.msra.mxu1 %v7483_v63  ;;  %v799_v63 = vld [vmem:[#allocation5 + $0x15c8] sm:$0xff] }
 0x1a4   :  { %6081 = vmatprep.subr.bf16.mxu1 %v7604_v1  ;;  %v687_v1 = vld [vmem:[#allocation5 + $0x1248] sm:$0xff]  ;;  %v7668_v7 = vcombine.high %v799_v63, %v803_v0  ;;  %v7667_v15 = vcombine.low %v799_v63, %v803_v0 }
 0x1a5   :  { %6045 = vmatpush2.bf16.msra.mxu0 %v7459_v8  ;;  %v7556_v8 = vcombine.high %v687_v1, %v691_v2  ;;  %v683_v13 = vld [vmem:[#allocation5 + $0x1228] sm:$0xff]  ;;  %v7555_v16 = vcombine.low %v687_v1, %v691_v2 }
 0x1a6   :  { %6046 = vmatprep.subr.bf16.mxu0 %v7452_v11  ;;  %v795_v11 = vld [vmem:[#allocation5 + $0x15a8] sm:$0xff] }
 0x1a7   :  { %6082 = vmatpush2.bf16.msra.mxu1 %v7603_v9  ;;  %v791_v9 = vld [vmem:[#allocation5 + $0x1588] sm:$0xff] }
 0x1a8   :  { %6083 = vmatprep.subr.bf16.mxu1 %v7596_v12  ;;  %v679_v12 = vld [vmem:[#allocation5 + $0x1208] sm:$0xff]  ;;  %v7660_v18 = vcombine.high %v791_v9, %v795_v11 }
 0x1a9   :  { %6047 = vmatpush2.bf16.msra.mxu0 %v7451_v20  ;;  %v7548_v20 = vcombine.high %v679_v12, %v683_v13  ;;  %v927_v30 = vld [vmem:[#allocation5 + $0x19c8] sm:$0xff] }
 0x1aa   :  { %6048 = vmatprep.subr.bf16.mxu0 %v7444_v24  ;;  %v787_v24 = vld [vmem:[#allocation5 + $0x1568] sm:$0xff] }
 0x1ab   :  { %6084 = vmatpush2.bf16.msra.mxu1 %v7595_v22  ;;  %v783_v22 = vld [vmem:[#allocation5 + $0x1548] sm:$0xff] }
 0x1ac   :  { %6085 = vmatprep.subr.bf16.mxu1 %v7588_v28  ;;  %v931_v31 = vld [vmem:[#allocation5 + $0x19e8] sm:$0xff]  ;;  %v7651_v55 = vcombine.low %v783_v22, %v787_v24 }
 0x1ad   :  { %6049 = vmatpush2.bf16.msra.mxu0 %v7443_v10  ;;  %v7659_v10 = vcombine.low %v791_v9, %v795_v11  ;;  %v7796_v46 = vcombine.high %v927_v30, %v931_v31  ;;  %v771_v63 = vld [vmem:[#allocation5 + $0x14e8] sm:$0xff] }
 0x1ae   :  { %6050 = vmatprep.subr.bf16.mxu0 %v7436_v36  ;;  %v7547_v36 = vcombine.low %v679_v12, %v683_v13  ;;  %v911_v0 = vld [vmem:[#allocation5 + $0x1948] sm:$0xff] }
 0x1af   :  { %6086 = vmatpush2.bf16.msra.mxu1 %v7587_v35  ;;  %v915_v1 = vld [vmem:[#allocation5 + $0x1968] sm:$0xff] }
 0x1b0   :  { %6087 = vmatprep.subr.bf16.mxu1 %v7580_v40  ;;  %v7652_v40 = vcombine.high %v783_v22, %v787_v24  ;;  %v7780_v9 = vcombine.high %v911_v0, %v915_v1  ;;  %v759_v11 = vld [vmem:[#allocation5 + $0x1488] sm:$0xff] }
 0x1b1   :  { %6051 = vmatpush2.bf16.msra.mxu0 %v7435_v47  ;;  %v775_v47 = vld [vmem:[#allocation5 + $0x1508] sm:$0xff] }
 0x1b2   :  { %6052 = vmatprep.subr.bf16.mxu0 %v7428_v50  ;;  %v919_v50 = vld [vmem:[#allocation5 + $0x1988] sm:$0xff] }
 0x1b3   :  { %6088 = vmatpush2.bf16.msra.mxu1 %v7579_v23  ;;  %v779_v23 = vld [vmem:[#allocation5 + $0x1528] sm:$0xff] }
 0x1b4   :  { %6089 = vmatprep.subr.bf16.mxu1 %v7572_v51  ;;  %v923_v51 = vld [vmem:[#allocation5 + $0x19a8] sm:$0xff] }
 0x1b5   :  { %6053 = vmatpush2.bf16.msra.mxu0 %v7427_v57  ;;  %v7795_v57 = vcombine.low %v927_v30, %v931_v31  ;;  %v763_v12 = vld [vmem:[#allocation5 + $0x14a8] sm:$0xff] }
 0x1b6   :  { %6054 = vmatprep.subr.bf16.mxu0 %v7420_v61  ;;  %v903_v13 = vld [vmem:[#allocation5 + $0x1908] sm:$0xff]  ;;  %v7628_v22 = vcombine.high %v759_v11, %v763_v12 }
 0x1b7   :  { %6090 = vmatpush2.bf16.msra.mxu1 %v7571_v58  ;;  %v7644_v58 = vcombine.high %v775_v47, %v779_v23  ;;  %v751_v30 = vld [vmem:[#allocation5 + $0x1448] sm:$0xff] }
 0x1b8   :  { %6091 = vmatprep.subr.bf16.mxu1 %v7564_v62  ;;  %v767_v62 = vld [vmem:[#allocation5 + $0x14c8] sm:$0xff] }
 0x1b9   :  { %6055 = vmatpush2.bf16.msra.mxu0 %v7419_v4  ;;  %v7643_v4 = vcombine.low %v775_v47, %v779_v23  ;;  %v755_v31 = vld [vmem:[#allocation5 + $0x1468] sm:$0xff] }
 0x1ba   :  { %6106 = vmatprep.subr.bf16.mxu0 %v7668_v7  ;;  %v7636_v7 = vcombine.high %v767_v62, %v771_v63  ;;  %v891_v47 = vld [vmem:[#allocation5 + $0x18a8] sm:$0xff]  ;;  %v7619_v23 = vcombine.low %v751_v30, %v755_v31 }
 0x1bb   :  { %6092 = vmatpush2.bf16.msra.mxu1 %v7563_v5  ;;  %v7787_v5 = vcombine.low %v919_v50, %v923_v51 }
 0x1bc   :  { %6093 = vmatprep.subr.bf16.mxu1 %v7556_v8  ;;  %v5771_v28 = vpop.f32.mrf.mxu0  ;;  %6057 = vmatmul.mubr.bf16.vlgmr.msra.gmra.mxu0 %v8060_v41 }
 0x1bd   :  { %v5772_v33 = vadd.f32 %v5771_v28, %v8108_v27  ;;  %6107 = vmatpush1.bf16.msra.mxu0 %v7667_v15  ;;  %6138 = vmatprep.mubr.bf16.mxu0 %v8065_v52  ;;  %v907_v15 = vld [vmem:[#allocation5 + $0x1928] sm:$0xff] }
 0x1be   :  { %v5812_v34 = vpop.f32.mrf.mxu1  ;;  %v5773_v35 = vpop.f32.mrf.mxu0  ;;  %6108 = vmatprep.subr.bf16.mxu0 %v7660_v18  ;;  %v7635_v18 = vcombine.low %v767_v62, %v771_v63  ;;  %v7772_v28 = vcombine.high %v903_v13, %v907_v15  ;;  %v855_v63 = vld [vmem:[#allocation5 + $0x1788] sm:$0xff] }
 0x1bf   :  { %6094 = vmatpush2.bf16.msra.mxu1 %v7555_v16  ;;  %v8118_v42 = vadd.f32 %v5812_v34, %v5772_v33  ;;  %v5774_v43 = vadd.f32 %v5773_v35, %v8111_v39  ;;  %v7788_v39 = vcombine.high %v919_v50, %v923_v51  ;;  %v895_v33 = vld [vmem:[#allocation5 + $0x18c8] sm:$0xff]  ;;  %v7771_v35 = vcombine.low %v903_v13, %v907_v15 }
 0x1c0   :  { %v5814_v44 = vpop.f32.mrf.mxu1  ;;  %6095 = vmatprep.subr.bf16.mxu1 %v7548_v20  ;;  %v5775_v27 = vpop.f32.mrf.mxu0  ;;  %v7779_v20 = vcombine.low %v911_v0, %v915_v1  ;;  %v899_v34 = vld [vmem:[#allocation5 + $0x18e8] sm:$0xff] }
 0x1c1   :  { %v8121_v53 = vadd.f32 %v5814_v44, %v5774_v43  ;;  %6109 = vmatpush1.bf16.msra.mxu0 %v7659_v10  ;;  %v7627_v10 = vcombine.low %v759_v11, %v763_v12  ;;  %v743_v43 = vld [vmem:[#allocation5 + $0x1408] sm:$0xff]  ;;  %v7763_v27 = vcombine.low %v895_v33, %v899_v34 }
 0x1c2   :  { %v5816_v54 = vpop.f32.mrf.mxu1  ;;  %v5776_v56 = vpop.f32.mrf.mxu0  ;;  %6110 = vmatprep.subr.bf16.mxu0 %v7652_v40  ;;  %v7764_v40 = vcombine.high %v895_v33, %v899_v34  ;;  %v747_v44 = vld [vmem:[#allocation5 + $0x1428] sm:$0xff] }
 0x1c3   :  { %6096 = vmatpush2.bf16.msra.mxu1 %v7547_v36  ;;  %v7620_v36 = vcombine.high %v751_v30, %v755_v31  ;;  %v7612_v50 = vcombine.high %v743_v43, %v747_v44  ;;  %v863_v54 = vld [vmem:[#allocation5 + $0x17c8] sm:$0xff] }
 0x1c4   :  { %v5817_v61 = vpop.f32.mrf.mxu1  ;;  %6147 = vmatprep.subr.bf16.mxu1 %v7796_v46  ;;  %v887_v46 = vld [vmem:[#allocation5 + $0x1888] sm:$0xff] }
 0x1c5   :  { %6111 = vmatpush1.bf16.msra.mxu0 %v7651_v55  ;;  %v7756_v51 = vcombine.high %v887_v46, %v891_v47  ;;  %v867_v55 = vld [vmem:[#allocation5 + $0x17e8] sm:$0xff]  ;;  %v7755_v61 = vcombine.low %v887_v46, %v891_v47 }
 0x1c6   :  { %6098 = vmatmul.mubr.bf16.vlgmr.msra.gmra.mxu1 %v8070_v3  ;;  %v8124_v2 = vpop.f32.mrf.mxu1  ;;  %6112 = vmatprep.subr.bf16.mxu0 %v7644_v58  ;;  %v879_v56 = vld [vmem:[#allocation5 + $0x1848] sm:$0xff]  ;;  %v7611_v58 = vcombine.low %v743_v43, %v747_v44 }
 0x1c7   :  { %6148 = vmatpush1.bf16.msra.mxu1 %v7795_v57  ;;  %6179 = vmatprep.mubr.bf16.mxu1 %v8077_v14  ;;  %v883_v57 = vld [vmem:[#allocation5 + $0x1868] sm:$0xff] }
 0x1c8   :  { %v8126_v8 = vpop.f32.mrf.mxu1  ;;  %6149 = vmatprep.subr.bf16.mxu1 %v7788_v39  ;;  %v7732_v39 = vcombine.high %v863_v54, %v867_v55  ;;  %v7748_v62 = vcombine.high %v879_v56, %v883_v57  ;;  %v859_v0 = vld [vmem:[#allocation5 + $0x17a8] sm:$0xff] }
 0x1c9   :  { %6113 = vmatpush1.bf16.msra.mxu0 %v7643_v4  ;;  %v871_v1 = vld [vmem:[#allocation5 + $0x1808] sm:$0xff] }
 0x1ca   :  { %v5898_v16 = vpop.f32.mrf.mxu1  ;;  %6114 = vmatprep.subr.bf16.mxu0 %v7636_v7  ;;  %v875_v4 = vld [vmem:[#allocation5 + $0x1828] sm:$0xff]  ;;  %v7747_v7 = vcombine.low %v879_v56, %v883_v57 }
 0x1cb   :  { %6150 = vmatpush1.bf16.msra.mxu1 %v7787_v5  ;;  %v7731_v5 = vcombine.low %v863_v54, %v867_v55  ;;  %v7740_v11 = vcombine.high %v871_v1, %v875_v4  ;;  %v847_v12 = vld [vmem:[#allocation5 + $0x1748] sm:$0xff] }
 0x1cc   :  { %v5899_v24 = vpop.f32.mrf.mxu1  ;;  %6151 = vmatprep.subr.bf16.mxu1 %v7780_v9  ;;  %v7724_v9 = vcombine.high %v855_v63, %v859_v0  ;;  %v851_v13 = vld [vmem:[#allocation5 + $0x1768] sm:$0xff] }
 0x1cd   :  { %6115 = vmatpush1.bf16.msra.mxu0 %v7635_v18  ;;  %v991_v15 = vld [vmem:[#allocation5 + $0x1bc8] sm:$0xff]  ;;  %v7723_v18 = vcombine.low %v855_v63, %v859_v0  ;;  %v7715_v34 = vcombine.low %v847_v12, %v851_v13 }
 0x1ce   :  { %6116 = vmatprep.subr.bf16.mxu0 %v7628_v22  ;;  %v995_v16 = vld [vmem:[#allocation5 + $0x1be8] sm:$0xff]  ;;  %v7716_v22 = vcombine.high %v847_v12, %v851_v13 }
 0x1cf   :  { %6152 = vmatpush1.bf16.msra.mxu1 %v7779_v20  ;;  %v7739_v20 = vcombine.low %v871_v1, %v875_v4  ;;  %v7860_v24 = vcombine.high %v991_v15, %v995_v16  ;;  %v843_v30 = vld [vmem:[#allocation5 + $0x1728] sm:$0xff] }
 0x1d0   :  { %6153 = vmatprep.subr.bf16.mxu1 %v7772_v28  ;;  %v839_v28 = vld [vmem:[#allocation5 + $0x1708] sm:$0xff] }
 0x1d1   :  { %6117 = vmatpush1.bf16.msra.mxu0 %v7627_v10  ;;  %v983_v31 = vld [vmem:[#allocation5 + $0x1b88] sm:$0xff]  ;;  %v7859_v10 = vcombine.low %v991_v15, %v995_v16  ;;  %v7707_v47 = vcombine.low %v839_v28, %v843_v30 }
 0x1d2   :  { %6118 = vmatprep.subr.bf16.mxu0 %v7620_v36  ;;  %v987_v33 = vld [vmem:[#allocation5 + $0x1ba8] sm:$0xff] }
 0x1d3   :  { %6154 = vmatpush1.bf16.msra.mxu1 %v7771_v35  ;;  %v7708_v35 = vcombine.high %v839_v28, %v843_v30  ;;  %v7852_v36 = vcombine.high %v983_v31, %v987_v33  ;;  %v835_v43 = vld [vmem:[#allocation5 + $0x16e8] sm:$0xff] }
 0x1d4   :  { %6155 = vmatprep.subr.bf16.mxu1 %v7764_v40  ;;  %v831_v40 = vld [vmem:[#allocation5 + $0x16c8] sm:$0xff] }
 0x1d5   :  { %6119 = vmatpush1.bf16.msra.mxu0 %v7619_v23  ;;  %v975_v44 = vld [vmem:[#allocation5 + $0x1b48] sm:$0xff]  ;;  %v7851_v23 = vcombine.low %v983_v31, %v987_v33  ;;  %v7699_v57 = vcombine.low %v831_v40, %v835_v43 }
 0x1d6   :  { %6120 = vmatprep.subr.bf16.mxu0 %v7612_v50  ;;  %v979_v46 = vld [vmem:[#allocation5 + $0x1b68] sm:$0xff] }
 0x1d7   :  { %6156 = vmatpush1.bf16.msra.mxu1 %v7763_v27  ;;  %v7700_v27 = vcombine.high %v831_v40, %v835_v43  ;;  %v7844_v50 = vcombine.high %v975_v44, %v979_v46  ;;  %v827_v54 = vld [vmem:[#allocation5 + $0x16a8] sm:$0xff]  ;;  %v164_v40 = vld [vmem:[#allocation5 + $0x1f0] sm:$0xff] }
 0x1d8   :  { %6157 = vmatprep.subr.bf16.mxu1 %v7756_v51  ;;  %v823_v51 = vld [vmem:[#allocation5 + $0x1688] sm:$0xff] }
 0x1d9   :  { %6121 = vmatpush1.bf16.msra.mxu0 %v7611_v58  ;;  %v967_v55 = vld [vmem:[#allocation5 + $0x1b08] sm:$0xff]  ;;  %v7843_v58 = vcombine.low %v975_v44, %v979_v46  ;;  %v7691_v4 = vcombine.low %v823_v51, %v827_v54 }
 0x1da   :  { %6122 = vmatprep.subr.bf16.mxu0 %v7732_v39  ;;  %v971_v56 = vld [vmem:[#allocation5 + $0x1b28] sm:$0xff] }
 0x1db   :  { %6158 = vmatpush1.bf16.msra.mxu1 %v7755_v61  ;;  %v7692_v61 = vcombine.high %v823_v51, %v827_v54  ;;  %v7836_v39 = vcombine.high %v967_v55, %v971_v56  ;;  %v819_v63 = vld [vmem:[#allocation5 + $0x1668] sm:$0xff]  ;;  %v288_v51 = vld [vmem:[#allocation5 + $0x5d0] sm:$0xff] }
 0x1dc   :  { %6159 = vmatprep.subr.bf16.mxu1 %v7748_v62  ;;  %v815_v62 = vld [vmem:[#allocation5 + $0x1648] sm:$0xff]  ;;  %v292_v54 = vld [vmem:[#allocation5 + $0x5f0] sm:$0xff] }
 0x1dd   :  { %6123 = vmatpush2.bf16.msra.mxu0 %v7731_v5  ;;  %v959_v0 = vld [vmem:[#allocation5 + $0x1ac8] sm:$0xff]  ;;  %v7835_v5 = vcombine.low %v967_v55, %v971_v56  ;;  %v7683_v16 = vcombine.low %v815_v62, %v819_v63 }
 0x1de   :  { %6124 = vmatprep.subr.bf16.mxu0 %v7724_v9  ;;  %v963_v1 = vld [vmem:[#allocation5 + $0x1ae8] sm:$0xff] }
 0x1df   :  { %6160 = vmatpush1.bf16.msra.mxu1 %v7747_v7  ;;  %v7684_v7 = vcombine.high %v815_v62, %v819_v63  ;;  %v7828_v9 = vcombine.high %v959_v0, %v963_v1  ;;  %v811_v12 = vld [vmem:[#allocation5 + $0x1628] sm:$0xff]  ;;  %v7158_v62 = vcombine.high %v288_v51, %v292_v54  ;;  %v152_v63 = vld [vmem:[#allocation5 + $0x190] sm:$0xff] }
 0x1e0   :  { %6161 = vmatprep.subr.bf16.mxu1 %v7740_v11  ;;  %v807_v11 = vld [vmem:[#allocation5 + $0x1608] sm:$0xff] }
 0x1e1   :  { %6125 = vmatpush2.bf16.msra.mxu0 %v7723_v18  ;;  %v951_v13 = vld [vmem:[#allocation5 + $0x1a88] sm:$0xff]  ;;  %v7827_v18 = vcombine.low %v959_v0, %v963_v1  ;;  %v7675_v31 = vcombine.low %v807_v11, %v811_v12  ;;  %v156_v0 = vld [vmem:[#allocation5 + $0x1b0] sm:$0xff] }
 0x1e2   :  { %6126 = vmatprep.subr.bf16.mxu0 %v7716_v22  ;;  %v955_v15 = vld [vmem:[#allocation5 + $0x1aa8] sm:$0xff] }
 0x1e3   :  { %6162 = vmatpush1.bf16.msra.mxu1 %v7739_v20  ;;  %v7676_v20 = vcombine.high %v807_v11, %v811_v12  ;;  %v7820_v22 = vcombine.high %v951_v13, %v955_v15  ;;  %v943_v28 = vld [vmem:[#allocation5 + $0x1a48] sm:$0xff]  ;;  %v7819_v33 = vcombine.low %v951_v13, %v955_v15  ;;  %v7022_v13 = vcombine.high %v152_v63, %v156_v0 }
 0x1e4   :  { %6163 = vmatprep.subr.bf16.mxu1 %v7860_v24  ;;  %v999_v24 = vld [vmem:[#allocation5 + $0x1c08] sm:$0xff] }
 0x1e5   :  { %6127 = vmatpush2.bf16.msra.mxu0 %v7715_v34  ;;  %v947_v30 = vld [vmem:[#allocation5 + $0x1a68] sm:$0xff]  ;;  %v7868_v34 = vcombine.high %v999_v24, %v999_v24 }
 0x1e6   :  { %6128 = vmatprep.subr.bf16.mxu0 %v7708_v35  ;;  %v7812_v35 = vcombine.high %v943_v28, %v947_v30  ;;  %v935_v43 = vld [vmem:[#allocation5 + $0x1a08] sm:$0xff]  ;;  %v7811_v46 = vcombine.low %v943_v28, %v947_v30 }
 0x1e7   :  { %6164 = vmatpush2.bf16.msra.mxu1 %v7859_v10  ;;  %v7867_v10 = vcombine.low %v999_v24, %v999_v24  ;;  %v939_v44 = vld [vmem:[#allocation5 + $0x1a28] sm:$0xff] }
 0x1e8   :  { %6165 = vmatprep.subr.bf16.mxu1 %v7852_v36  ;;  %v160_v36 = vld [vmem:[#allocation5 + $0x1d0] sm:$0xff]  ;;  %v6893_v55 = vld [vmem:[#allocation8] sm:$0xff] }
 0x1e9   :  { %6129 = vmatpush2.bf16.msra.mxu0 %v7707_v47  ;;  %v5556_v47 = vsel %vm5548_vm0, %v7867_v10, 0  ;;  %v6898_v1 = vrot.slane %v6893_v55, %v1006_v38  ;;  %v7029_v12 = vcombine.low %v160_v36, %v164_v40  ;;  %v272_v38 = vld [vmem:[#allocation5 + $0x550] sm:$0xff] }
 0x1ea   :  { %6130 = vmatprep.subr.bf16.mxu0 %v7700_v27  ;;  %v7804_v27 = vcombine.high %v935_v43, %v939_v44  ;;  %v136_v10 = vld [vmem:[#allocation5 + $0x110] sm:$0xff] }
 0x1eb   :  { %6166 = vmatpush2.bf16.msra.mxu1 %v7851_v23  ;;  %v7030_v23 = vcombine.high %v160_v36, %v164_v40  ;;  %v264_v40 = vld [vmem:[#allocation5 + $0x510] sm:$0xff] }
 0x1ec   :  { %6167 = vmatprep.subr.bf16.mxu1 %v7844_v50 }
 0x1ed   :  { %6131 = vmatpush2.bf16.msra.mxu0 %v7699_v57 }
 0x1ee   :  { %6132 = vmatprep.subr.bf16.mxu0 %v7692_v61 }
 0x1ef   :  { %6168 = vmatpush2.bf16.msra.mxu1 %v7843_v58  ;;  %v7803_v58 = vcombine.low %v935_v43, %v939_v44  ;;  %v268_v43 = vld [vmem:[#allocation5 + $0x530] sm:$0xff] }
 0x1f0   :  { %6169 = vmatprep.subr.bf16.mxu1 %v7836_v39 }
 0x1f1   :  { %6133 = vmatpush2.bf16.msra.mxu0 %v7691_v4 }
 0x1f2   :  { %6134 = vmatprep.subr.bf16.mxu0 %v7684_v7  ;;  %v6902_v7 = vrot.slane %v6893_v55, %v1010_v45  ;;  %v256_v55 = vld [vmem:[#allocation5 + $0x4d0] sm:$0xff] }
 0x1f3   :  { %6170 = vmatpush2.bf16.msra.mxu1 %v7835_v5  ;;  %v284_v5 = vld [vmem:[#allocation5 + $0x5b0] sm:$0xff] }
 0x1f4   :  { %6171 = vmatprep.subr.bf16.mxu1 %v7828_v9 }
 0x1f5   :  { %6135 = vmatpush2.bf16.msra.mxu0 %v7683_v16 }
 0x1f6   :  { %6136 = vmatprep.subr.bf16.mxu0 %v7676_v20  ;;  %v148_v20 = vld [vmem:[#allocation5 + $0x170] sm:$0xff] }
 0x1f7   :  { %6172 = vmatpush2.bf16.msra.mxu1 %v7827_v18  ;;  %v144_v18 = vld [vmem:[#allocation5 + $0x150] sm:$0xff] }
 0x1f8   :  { %6173 = vmatprep.subr.bf16.mxu1 %v7820_v22  ;;  %v276_v22 = vld [vmem:[#allocation5 + $0x570] sm:$0xff] }
 0x1f9   :  { %6137 = vmatpush2.bf16.msra.mxu0 %v7675_v31  ;;  %v7014_v31 = vcombine.high %v144_v18, %v148_v20 }
 0x1fa   :  { %7875 = vmatprep.subr.msk.bf16.mxu0 %vm5548_vm0, %v7868_v34  ;;  %v7142_v34 = vcombine.high %v272_v38, %v276_v22 }
 0x1fb   :  { %6174 = vmatpush2.bf16.msra.mxu1 %v7819_v33 }
 0x1fc   :  { %6175 = vmatprep.subr.bf16.mxu1 %v7812_v35  ;;  %v5853_v50 = vpop.f32.mrf.mxu0  ;;  %6139 = vmatmul.mubr.bf16.vlgmr.msra.gmra.mxu0 %v8072_v6  ;;  %v140_v35 = vld [vmem:[#allocation5 + $0x130] sm:$0xff] }
 0x1fd   :  { %v5854_v56 = vadd.f32 %v5853_v50, %v8118_v42  ;;  %6203 = vmatpush1.bf16.msra.mxu0 %v5556_v47  ;;  %6220 = vmatprep.mubr.bf16.mxu0 %v7994_v19  ;;  %v280_v42 = vld [vmem:[#allocation5 + $0x590] sm:$0xff]  ;;  %v7141_v47 = vcombine.low %v272_v38, %v276_v22  ;;  %v7134_v50 = vcombine.high %v264_v40, %v268_v43 }
 0x1fe   :  { %v5855_v57 = vpop.f32.mrf.mxu0  ;;  %6229 = vmatprep.subr.bf16.mxu0 %v7030_v23  ;;  %v7150_v16 = vcombine.high %v280_v42, %v284_v5  ;;  %v7149_v30 = vcombine.low %v280_v42, %v284_v5  ;;  %v7006_v23 = vcombine.high %v136_v10, %v140_v35  ;;  %v232_v38 = vld [vmem:[#allocation5 + $0x410] sm:$0xff] }
 0x1ff   :  { %6176 = vmatpush2.bf16.msra.mxu1 %v7811_v46  ;;  %v5895_v61 = vadd.f32 %v8124_v2, %v5854_v56  ;;  %v5856_v39 = vadd.f32 %v5855_v57, %v8121_v53  ;;  %v7157_v53 = vcombine.low %v288_v51, %v292_v54  ;;  %v7013_v46 = vcombine.low %v144_v18, %v148_v20  ;;  %v128_v51 = vld [vmem:[#allocation5 + $0xd0] sm:$0xff] }
 0x200   :  { %6177 = vmatprep.subr.bf16.mxu1 %v7804_v27  ;;  %v5857_v4 = vpop.f32.mrf.mxu0  ;;  %v132_v54 = vld [vmem:[#allocation5 + $0xf0] sm:$0xff]  ;;  %v7005_v57 = vcombine.low %v136_v10, %v140_v35 }
 0x201   :  { %v6885_v9 = vmax.f32 %v5895_v61, 0.0  ;;  %v5897_v11 = vadd.f32 %v8126_v8, %v5856_v39  ;;  %v7021_v8 = vcombine.low %v152_v63, %v156_v0  ;;  %v260_v56 = vld [vmem:[#allocation5 + $0x4f0] sm:$0xff]  ;;  %v6998_v61 = vcombine.high %v128_v51, %v132_v54 }
 0x202   :  { %v5858_v2 = vpop.f32.mrf.mxu0  ;;  %v7126_v39 = vcombine.high %v256_v55, %v260_v56  ;;  %v124_v63 = vld [vmem:[#allocation5 + $0xb0] sm:$0xff]  ;;  %v6997_v4 = vcombine.low %v128_v51, %v132_v54  ;;  %v7125_v42 = vcombine.low %v256_v55, %v260_v56 }
 0x203   :  { %6178 = vmatpush2.bf16.msra.mxu1 %v7803_v58  ;;  %v6886_v15 = vmax.f32 %v5897_v11, 0.0  ;;  %v6935_v24 = vmul.f32 %v6898_v1, %v6885_v9  ;;  %v7133_v58 = vcombine.low %v264_v40, %v268_v43  ;;  %v248_v0 = vld [vmem:[#allocation5 + $0x490] sm:$0xff] }
 0x204   :  { %6270 = vmatprep.subr.bf16.mxu1 %v7158_v62  ;;  %7876 = vmatmul.mubr.msk.bf16.vlgmr.msra.gmra.mxu0 %vm5544_vm1, %v8082_v26  ;;  %v120_v62 = vld [vmem:[#allocation5 + $0x90] sm:$0xff] }
 0x205   :  { %v6936_v45 = vmul.f32 %v6902_v7, %v6886_v15  ;;  %6230 = vmatpush1.bf16.msra.mxu0 %v7029_v12  ;;  %6261 = vmatprep.mubr.bf16.mxu0 %v8040_v59  ;;  %v252_v1 = vld [vmem:[#allocation5 + $0x4b0] sm:$0xff]  ;;  %v6990_v5 = vcombine.high %v120_v62, %v124_v63 }
 0x206   :  { %v8143_v28 = vpop.f32.mrf.mxu1  ;;  %6180 = vmatmul.mubr.bf16.vlgmr.msra.gmra.mxu1 %v8091_v48  ;;  %6231 = vmatprep.subr.bf16.mxu0 %v7022_v13  ;;  %v7118_v7 = vcombine.high %v248_v0, %v252_v1  ;;  %v112_v9 = vld [vmem:[#allocation5 + $0x50] sm:$0xff]  ;;  %v7117_v13 = vcombine.low %v248_v0, %v252_v1 }
 0x207   :  { %6271 = vmatpush1.bf16.msra.mxu1 %v7157_v53  ;;  %v8149_v36 = vadd.f32 %v6936_v45, %v6935_v24  ;;  %6302 = vmatprep.mubr.bf16.mxu1 %v8042_v60  ;;  %v116_v11 = vld [vmem:[#allocation5 + $0x70] sm:$0xff]  ;;  %v6989_v53 = vcombine.low %v120_v62, %v124_v63 }
 0x208   :  { %v8146_v33 = vpop.f32.mrf.mxu1  ;;  %6272 = vmatprep.subr.bf16.mxu1 %v7150_v16  ;;  %v240_v12 = vld [vmem:[#allocation5 + $0x450] sm:$0xff]  ;;  %v6982_v15 = vcombine.high %v112_v9, %v116_v11  ;;  %v6981_v24 = vcombine.low %v112_v9, %v116_v11 }
 0x209   :  { %6232 = vmatpush1.bf16.msra.mxu0 %v7021_v8  ;;  %v244_v2 = vld [vmem:[#allocation5 + $0x470] sm:$0xff] }
 0x20a   :  { %v5939_v44 = vpop.f32.mrf.mxu1  ;;  %6233 = vmatprep.subr.bf16.mxu0 %v7014_v31  ;;  %v7110_v16 = vcombine.high %v240_v12, %v244_v2  ;;  %v104_v18 = vld [vmem:[#allocation5 + $0x10] sm:$0xff]  ;;  %v7109_v45 = vcombine.low %v240_v12, %v244_v2 }
 0x20b   :  { %6273 = vmatpush1.bf16.msra.mxu1 %v7149_v30  ;;  %v108_v20 = vld [vmem:[#allocation5 + $0x30] sm:$0xff] }
 0x20c   :  { %v5940_v27 = vpop.f32.mrf.mxu1  ;;  %6274 = vmatprep.subr.bf16.mxu1 %v7142_v34  ;;  %v236_v22 = vld [vmem:[#allocation5 + $0x430] sm:$0xff]  ;;  %v6974_v8 = vcombine.high %v104_v18, %v108_v20  ;;  %v6973_v40 = vcombine.low %v104_v18, %v108_v20 }
 0x20d   :  { %6234 = vmatpush1.bf16.msra.mxu0 %v7013_v46  ;;  %v7102_v30 = vcombine.high %v232_v38, %v236_v22  ;;  %v224_v31 = vld [vmem:[#allocation5 + $0x3d0] sm:$0xff]  ;;  %v7101_v43 = vcombine.low %v232_v38, %v236_v22 }
 0x20e   :  { %6235 = vmatprep.subr.bf16.mxu0 %v7006_v23  ;;  %v228_v34 = vld [vmem:[#allocation5 + $0x3f0] sm:$0xff] }
 0x20f   :  { %6275 = vmatpush1.bf16.msra.mxu1 %v7141_v47  ;;  %v352_v10 = vld [vmem:[#allocation5 + $0x7d0] sm:$0xff]  ;;  %v7094_v44 = vcombine.high %v224_v31, %v228_v34  ;;  %v7093_v51 = vcombine.low %v224_v31, %v228_v34 }
 0x210   :  { %6276 = vmatprep.subr.bf16.mxu1 %v7134_v50  ;;  %v356_v35 = vld [vmem:[#allocation5 + $0x7f0] sm:$0xff] }
 0x211   :  { %6236 = vmatpush1.bf16.msra.mxu0 %v7005_v57  ;;  %v7222_v46 = vcombine.high %v352_v10, %v356_v35  ;;  %v216_v47 = vld [vmem:[#allocation5 + $0x390] sm:$0xff]  ;;  %v7221_v54 = vcombine.low %v352_v10, %v356_v35  ;;  %v1014_v35 = vsub.s32 2, %v8087_v25 }
 0x212   :  { %6237 = vmatprep.subr.bf16.mxu0 %v6998_v61  ;;  %v220_v23 = vld [vmem:[#allocation5 + $0x3b0] sm:$0xff] }
 0x213   :  { %6277 = vmatpush1.bf16.msra.mxu1 %v7133_v58  ;;  %v344_v27 = vld [vmem:[#allocation5 + $0x790] sm:$0xff]  ;;  %v7086_v55 = vcombine.high %v216_v47, %v220_v23  ;;  %v7085_v62 = vcombine.low %v216_v47, %v220_v23  ;;  %v1018_v23 = vsub.s32 3, %v8087_v25 }
 0x214   :  { %6278 = vmatprep.subr.bf16.mxu1 %v7126_v39  ;;  %v348_v50 = vld [vmem:[#allocation5 + $0x7b0] sm:$0xff] }
 0x215   :  { %6238 = vmatpush1.bf16.msra.mxu0 %v6997_v4  ;;  %v7214_v56 = vcombine.high %v344_v27, %v348_v50  ;;  %v208_v57 = vld [vmem:[#allocation5 + $0x350] sm:$0xff]  ;;  %v7213_v63 = vcombine.low %v344_v27, %v348_v50 }
 0x216   :  { %6239 = vmatprep.subr.bf16.mxu0 %v6990_v5  ;;  %v212_v58 = vld [vmem:[#allocation5 + $0x370] sm:$0xff] }
 0x217   :  { %6279 = vmatpush1.bf16.msra.mxu1 %v7125_v42  ;;  %v336_v61 = vld [vmem:[#allocation5 + $0x750] sm:$0xff]  ;;  %v7078_v0 = vcombine.high %v208_v57, %v212_v58  ;;  %v7077_v9 = vcombine.low %v208_v57, %v212_v58 }
 0x218   :  { %6280 = vmatprep.subr.bf16.mxu1 %v7118_v7  ;;  %v340_v39 = vld [vmem:[#allocation5 + $0x770] sm:$0xff] }
 0x219   :  { %6240 = vmatpush1.bf16.msra.mxu0 %v6989_v53  ;;  %v7206_v1 = vcombine.high %v336_v61, %v340_v39  ;;  %v200_v4 = vld [vmem:[#allocation5 + $0x310] sm:$0xff]  ;;  %v7205_v11 = vcombine.low %v336_v61, %v340_v39 }
 0x21a   :  { %6241 = vmatprep.subr.bf16.mxu0 %v6982_v15  ;;  %v204_v42 = vld [vmem:[#allocation5 + $0x330] sm:$0xff] }
 0x21b   :  { %6281 = vmatpush1.bf16.msra.mxu1 %v7117_v13  ;;  %v328_v5 = vld [vmem:[#allocation5 + $0x710] sm:$0xff]  ;;  %v7070_v12 = vcombine.high %v200_v4, %v204_v42  ;;  %v7069_v18 = vcombine.low %v200_v4, %v204_v42 }
 0x21c   :  { %6282 = vmatprep.subr.bf16.mxu1 %v7110_v16  ;;  %v332_v7 = vld [vmem:[#allocation5 + $0x730] sm:$0xff] }
 0x21d   :  { %6242 = vmatpush1.bf16.msra.mxu0 %v6981_v24  ;;  %v7198_v2 = vcombine.high %v328_v5, %v332_v7  ;;  %v192_v53 = vld [vmem:[#allocation5 + $0x2d0] sm:$0xff]  ;;  %v7197_v20 = vcombine.low %v328_v5, %v332_v7 }
 0x21e   :  { %6243 = vmatprep.subr.bf16.mxu0 %v6974_v8  ;;  %v196_v13 = vld [vmem:[#allocation5 + $0x2f0] sm:$0xff] }
 0x21f   :  { %6283 = vmatpush1.bf16.msra.mxu1 %v7109_v45  ;;  %v320_v15 = vld [vmem:[#allocation5 + $0x6d0] sm:$0xff]  ;;  %v7062_v38 = vcombine.high %v192_v53, %v196_v13  ;;  %v7061_v31 = vcombine.low %v192_v53, %v196_v13 }
 0x220   :  { %6284 = vmatprep.subr.bf16.mxu1 %v7102_v30  ;;  %v324_v16 = vld [vmem:[#allocation5 + $0x6f0] sm:$0xff] }
 0x221   :  { %6244 = vmatpush1.bf16.msra.mxu0 %v6973_v40  ;;  %v7190_v22 = vcombine.high %v320_v15, %v324_v16  ;;  %v184_v24 = vld [vmem:[#allocation5 + $0x290] sm:$0xff]  ;;  %v7189_v34 = vcombine.low %v320_v15, %v324_v16 }
 0x222   :  { %6245 = vmatprep.subr.bf16.mxu0 %v7094_v44  ;;  %v188_v45 = vld [vmem:[#allocation5 + $0x2b0] sm:$0xff] }
 0x223   :  { %6285 = vmatpush1.bf16.msra.mxu1 %v7101_v43  ;;  %v312_v8 = vld [vmem:[#allocation5 + $0x690] sm:$0xff]  ;;  %v7054_v10 = vcombine.high %v184_v24, %v188_v45  ;;  %v7053_v27 = vcombine.low %v184_v24, %v188_v45 }
 0x224   :  { %6286 = vmatprep.subr.bf16.mxu1 %v7222_v46  ;;  %v316_v30 = vld [vmem:[#allocation5 + $0x6b0] sm:$0xff] }
 0x225   :  { %6246 = vmatpush2.bf16.msra.mxu0 %v7093_v51  ;;  %v7182_v40 = vcombine.high %v312_v8, %v316_v30  ;;  %v176_v43 = vld [vmem:[#allocation5 + $0x250] sm:$0xff]  ;;  %v7181_v50 = vcombine.low %v312_v8, %v316_v30 }
 0x226   :  { %6247 = vmatprep.subr.bf16.mxu0 %v7086_v55  ;;  %v180_v44 = vld [vmem:[#allocation5 + $0x270] sm:$0xff] }
 0x227   :  { %6287 = vmatpush2.bf16.msra.mxu1 %v7221_v54  ;;  %v304_v46 = vld [vmem:[#allocation5 + $0x650] sm:$0xff]  ;;  %v7046_v51 = vcombine.high %v176_v43, %v180_v44  ;;  %v7897_v54 = vld [vmem:[#allocation7] sm:$0xff] }
 0x228   :  { %6288 = vmatprep.subr.bf16.mxu1 %v7214_v56  ;;  %v308_v47 = vld [vmem:[#allocation5 + $0x670] sm:$0xff]  ;;  %v1015_v55 = vrot.slane %v7897_v54, %v1014_v35 }
 0x229   :  { %6248 = vmatpush2.bf16.msra.mxu0 %v7085_v62  ;;  %v7174_v56 = vcombine.high %v304_v46, %v308_v47  ;;  %v168_v57 = vld [vmem:[#allocation5 + $0x210] sm:$0xff]  ;;  %v1019_v62 = vrot.slane %v7897_v54, %v1018_v23 }
 0x22a   :  { %6249 = vmatprep.subr.bf16.mxu0 %v7078_v0  ;;  %v172_v58 = vld [vmem:[#allocation5 + $0x230] sm:$0xff]  ;;  %v7173_v0 = vcombine.low %v304_v46, %v308_v47  ;;  %v5936_v4 = vadd.f32 %v8143_v28, %v1015_v55 }
 0x22b   :  { %6289 = vmatpush2.bf16.msra.mxu1 %v7213_v63  ;;  %v296_v61 = vld [vmem:[#allocation5 + $0x610] sm:$0xff]  ;;  %v7045_v63 = vcombine.low %v176_v43, %v180_v44  ;;  %v7037_v13 = vcombine.low %v168_v57, %v172_v58 }
 0x22c   :  { %6290 = vmatprep.subr.bf16.mxu1 %v7206_v1  ;;  %v300_v39 = vld [vmem:[#allocation5 + $0x630] sm:$0xff]  ;;  %v7038_v1 = vcombine.high %v168_v57, %v172_v58 }
 0x22d   :  { %6250 = vmatpush2.bf16.msra.mxu0 %v7077_v9  ;;  %v7166_v42 = vcombine.high %v296_v61, %v300_v39  ;;  %v416_v5 = vld [vmem:[#allocation5 + $0x9d0] sm:$0xff]  ;;  %v7165_v16 = vcombine.low %v296_v61, %v300_v39 }
 0x22e   :  { %6251 = vmatprep.subr.bf16.mxu0 %v7070_v12  ;;  %v420_v7 = vld [vmem:[#allocation5 + $0x9f0] sm:$0xff] }
 0x22f   :  { %6291 = vmatpush2.bf16.msra.mxu1 %v7205_v11  ;;  %v544_v11 = vld [vmem:[#allocation5 + $0xdd0] sm:$0xff]  ;;  %v7285_v30 = vcombine.low %v416_v5, %v420_v7 }
 0x230   :  { %6292 = vmatprep.subr.bf16.mxu1 %v7198_v2  ;;  %v548_v12 = vld [vmem:[#allocation5 + $0xdf0] sm:$0xff]  ;;  %v5938_v2 = vadd.f32 %v8146_v33, %v1019_v62 }
 0x231   :  { %6252 = vmatpush2.bf16.msra.mxu0 %v7069_v18  ;;  %v7286_v18 = vcombine.high %v416_v5, %v420_v7  ;;  %v7414_v28 = vcombine.high %v544_v11, %v548_v12  ;;  %v536_v45 = vld [vmem:[#allocation5 + $0xd90] sm:$0xff] }
 0x232   :  { %6253 = vmatprep.subr.bf16.mxu0 %v7062_v38  ;;  %v408_v38 = vld [vmem:[#allocation5 + $0x990] sm:$0xff] }
 0x233   :  { %6293 = vmatpush2.bf16.msra.mxu1 %v7197_v20  ;;  %v540_v8 = vld [vmem:[#allocation5 + $0xdb0] sm:$0xff] }
 0x234   :  { %6294 = vmatprep.subr.bf16.mxu1 %v7190_v22  ;;  %v412_v22 = vld [vmem:[#allocation5 + $0x9b0] sm:$0xff] }
 0x235   :  { %6254 = vmatpush2.bf16.msra.mxu0 %v7061_v31  ;;  %v7413_v31 = vcombine.low %v544_v11, %v548_v12  ;;  %v404_v43 = vld [vmem:[#allocation5 + $0x970] sm:$0xff] }
 0x236   :  { %6255 = vmatprep.subr.bf16.mxu0 %v7054_v10  ;;  %v7406_v10 = vcombine.high %v536_v45, %v540_v8  ;;  %v528_v44 = vld [vmem:[#allocation5 + $0xd50] sm:$0xff] }
 0x237   :  { %6295 = vmatpush2.bf16.msra.mxu1 %v7189_v34  ;;  %v7278_v34 = vcombine.high %v408_v38, %v412_v22  ;;  %v532_v46 = vld [vmem:[#allocation5 + $0xd70] sm:$0xff] }
 0x238   :  { %6296 = vmatprep.subr.bf16.mxu1 %v7182_v40  ;;  %v400_v40 = vld [vmem:[#allocation5 + $0x950] sm:$0xff] }
 0x239   :  { %6256 = vmatpush2.bf16.msra.mxu0 %v7053_v27  ;;  %v7277_v27 = vcombine.low %v408_v38, %v412_v22  ;;  %v7270_v54 = vcombine.high %v400_v40, %v404_v43  ;;  %v392_v57 = vld [vmem:[#allocation5 + $0x910] sm:$0xff] }
 0x23a   :  { %6257 = vmatprep.subr.bf16.mxu0 %v7046_v51  ;;  %v7405_v51 = vcombine.low %v536_v45, %v540_v8  ;;  %v396_v58 = vld [vmem:[#allocation5 + $0x930] sm:$0xff] }
 0x23b   :  { %6297 = vmatpush2.bf16.msra.mxu1 %v7181_v50  ;;  %v520_v39 = vld [vmem:[#allocation5 + $0xd10] sm:$0xff] }
 0x23c   :  { %6298 = vmatprep.subr.bf16.mxu1 %v7174_v56  ;;  %v5976_v9 = vpop.f32.mrf.mxu0  ;;  %v7398_v56 = vcombine.high %v528_v44, %v532_v46  ;;  %v524_v62 = vld [vmem:[#allocation5 + $0xd30] sm:$0xff] }
 0x23d   :  { %v5977_v53 = vadd.f32 %v5976_v9, %v5936_v4  ;;  %6258 = vmatpush2.bf16.msra.mxu0 %v7045_v63  ;;  %v7262_v4 = vcombine.high %v392_v57, %v396_v58  ;;  %v7390_v5 = vcombine.high %v520_v39, %v524_v62  ;;  %v384_v7 = vld [vmem:[#allocation5 + $0x8d0] sm:$0xff] }
 0x23e   :  { %v5978_v15 = vpop.f32.mrf.mxu0  ;;  %6259 = vmatprep.subr.bf16.mxu0 %v7038_v1  ;;  %v7397_v1 = vcombine.low %v528_v44, %v532_v46  ;;  %v388_v9 = vld [vmem:[#allocation5 + $0x8f0] sm:$0xff] }
 0x23f   :  { %6299 = vmatpush2.bf16.msra.mxu1 %v7173_v0  ;;  %v5979_v20 = vadd.f32 %v5978_v15, %v5938_v2  ;;  %v7269_v0 = vcombine.low %v400_v40, %v404_v43  ;;  %v512_v11 = vld [vmem:[#allocation5 + $0xcd0] sm:$0xff]  ;;  %v7261_v2 = vcombine.low %v392_v57, %v396_v58  ;;  %v7253_v38 = vcombine.low %v384_v7, %v388_v9 }
 0x240   :  { %6300 = vmatprep.subr.bf16.mxu1 %v7166_v42  ;;  %v5980_v24 = vpop.f32.mrf.mxu0  ;;  %v516_v12 = vld [vmem:[#allocation5 + $0xcf0] sm:$0xff] }
 0x241   :  { %6260 = vmatpush2.bf16.msra.mxu0 %v7037_v13  ;;  %v7254_v13 = vcombine.high %v384_v7, %v388_v9  ;;  %v7382_v15 = vcombine.high %v512_v11, %v516_v12  ;;  %v7381_v22 = vcombine.low %v512_v11, %v516_v12  ;;  %v368_v8 = vld [vmem:[#allocation5 + $0x850] sm:$0xff] }
 0x242   :  { %v5981_v33 = vpop.f32.mrf.mxu0  ;;  %6311 = vmatprep.subr.bf16.mxu0 %v7286_v18  ;;  %v380_v18 = vld [vmem:[#allocation5 + $0x8b0] sm:$0xff] }
 0x243   :  { %6301 = vmatpush2.bf16.msra.mxu1 %v7165_v16  ;;  %v376_v16 = vld [vmem:[#allocation5 + $0x890] sm:$0xff] }
 0x244   :  { %6352 = vmatprep.subr.bf16.mxu1 %v7414_v28  ;;  %6262 = vmatmul.mubr.bf16.vlgmr.msra.gmra.mxu0 %v8046_v17  ;;  %v508_v28 = vld [vmem:[#allocation5 + $0xcb0] sm:$0xff]  ;;  %v7246_v24 = vcombine.high %v376_v16, %v380_v18 }
 0x245   :  { %6312 = vmatpush1.bf16.msra.mxu0 %v7285_v30  ;;  %6343 = vmatprep.mubr.bf16.mxu0 %v8050_v29  ;;  %v372_v30 = vld [vmem:[#allocation5 + $0x870] sm:$0xff] }
 0x246   :  { %v6017_v47 = vpop.f32.mrf.mxu1  ;;  %6303 = vmatmul.mubr.bf16.vlgmr.msra.gmra.mxu1 %v8048_v21  ;;  %6313 = vmatprep.subr.bf16.mxu0 %v7278_v34  ;;  %v496_v33 = vld [vmem:[#allocation5 + $0xc50] sm:$0xff]  ;;  %v7245_v34 = vcombine.low %v376_v16, %v380_v18  ;;  %v7238_v40 = vcombine.high %v368_v8, %v372_v30 }
 0x247   :  { %v8162_v50 = vadd.f32 %v6017_v47, %v5977_v53  ;;  %6353 = vmatpush1.bf16.msra.mxu1 %v7413_v31  ;;  %6384 = vmatprep.mubr.bf16.mxu1 %v8053_v32  ;;  %v7389_v53 = vcombine.low %v520_v39, %v524_v62  ;;  %v500_v31 = vld [vmem:[#allocation5 + $0xc70] sm:$0xff] }
 0x248   :  { %v6019_v55 = vpop.f32.mrf.mxu1  ;;  %6354 = vmatprep.subr.bf16.mxu1 %v7406_v10  ;;  %v7366_v43 = vcombine.high %v496_v33, %v500_v31  ;;  %v360_v44 = vld [vmem:[#allocation5 + $0x810] sm:$0xff] }
 0x249   :  { %v8165_v61 = vadd.f32 %v6019_v55, %v5979_v20  ;;  %6314 = vmatpush1.bf16.msra.mxu0 %v7277_v27  ;;  %v504_v20 = vld [vmem:[#allocation5 + $0xc90] sm:$0xff] }
 0x24a   :  { %v6021_v63 = vpop.f32.mrf.mxu1  ;;  %6315 = vmatprep.subr.bf16.mxu0 %v7270_v54  ;;  %v7374_v45 = vcombine.high %v504_v20, %v508_v28  ;;  %v7373_v10 = vcombine.low %v504_v20, %v508_v28  ;;  %v364_v46 = vld [vmem:[#allocation5 + $0x830] sm:$0xff]  ;;  %v7365_v54 = vcombine.low %v496_v33, %v500_v31 }
 0x24b   :  { %6355 = vmatpush1.bf16.msra.mxu1 %v7405_v51  ;;  %v488_v47 = vld [vmem:[#allocation5 + $0xc10] sm:$0xff]  ;;  %v7237_v51 = vcombine.low %v368_v8, %v372_v30  ;;  %v7230_v55 = vcombine.high %v360_v44, %v364_v46  ;;  %v7229_v63 = vcombine.low %v360_v44, %v364_v46 }
 0x24c   :  { %v6022_v42 = vpop.f32.mrf.mxu1  ;;  %6356 = vmatprep.subr.bf16.mxu1 %v7398_v56  ;;  %v492_v27 = vld [vmem:[#allocation5 + $0xc30] sm:$0xff] }
 0x24d   :  { %6316 = vmatpush1.bf16.msra.mxu0 %v7269_v0  ;;  %v7358_v56 = vcombine.high %v488_v47, %v492_v27  ;;  %v480_v57 = vld [vmem:[#allocation5 + $0xbd0] sm:$0xff]  ;;  %v7357_v0 = vcombine.low %v488_v47, %v492_v27 }
 0x24e   :  { %6317 = vmatprep.subr.bf16.mxu0 %v7262_v4  ;;  %v484_v58 = vld [vmem:[#allocation5 + $0xbf0] sm:$0xff] }
 0x24f   :  { %6357 = vmatpush1.bf16.msra.mxu1 %v7397_v1  ;;  %v608_v39 = vld [vmem:[#allocation5 + $0xfd0] sm:$0xff]  ;;  %v7350_v1 = vcombine.high %v480_v57, %v484_v58  ;;  %v7349_v11 = vcombine.low %v480_v57, %v484_v58 }
 0x250   :  { %6358 = vmatprep.subr.bf16.mxu1 %v7390_v5  ;;  %v612_v62 = vld [vmem:[#allocation5 + $0xff0] sm:$0xff] }
 0x251   :  { %6318 = vmatpush1.bf16.msra.mxu0 %v7261_v2  ;;  %v7478_v4 = vcombine.high %v608_v39, %v612_v62  ;;  %v472_v42 = vld [vmem:[#allocation5 + $0xb90] sm:$0xff]  ;;  %v7477_v12 = vcombine.low %v608_v39, %v612_v62 }
 0x252   :  { %6319 = vmatprep.subr.bf16.mxu0 %v7254_v13  ;;  %v476_v5 = vld [vmem:[#allocation5 + $0xbb0] sm:$0xff] }
 0x253   :  { %6359 = vmatpush1.bf16.msra.mxu1 %v7389_v53  ;;  %v600_v7 = vld [vmem:[#allocation5 + $0xf90] sm:$0xff]  ;;  %v7342_v2 = vcombine.high %v472_v42, %v476_v5  ;;  %v7341_v20 = vcombine.low %v472_v42, %v476_v5 }
 0x254   :  { %6360 = vmatprep.subr.bf16.mxu1 %v7382_v15  ;;  %v604_v9 = vld [vmem:[#allocation5 + $0xfb0] sm:$0xff] }
 0x255   :  { %6320 = vmatpush1.bf16.msra.mxu0 %v7253_v38  ;;  %v7470_v53 = vcombine.high %v600_v7, %v604_v9  ;;  %v464_v13 = vld [vmem:[#allocation5 + $0xb50] sm:$0xff]  ;;  %v7469_v28 = vcombine.low %v600_v7, %v604_v9 }
 0x256   :  { %6321 = vmatprep.subr.bf16.mxu0 %v7246_v24  ;;  %v468_v15 = vld [vmem:[#allocation5 + $0xb70] sm:$0xff] }
 0x257   :  { %6361 = vmatpush1.bf16.msra.mxu1 %v7381_v22  ;;  %v592_v16 = vld [vmem:[#allocation5 + $0xf50] sm:$0xff]  ;;  %v7334_v38 = vcombine.high %v464_v13, %v468_v15  ;;  %v7333_v33 = vcombine.low %v464_v13, %v468_v15 }
 0x258   :  { %6362 = vmatprep.subr.bf16.mxu1 %v7374_v45  ;;  %v596_v18 = vld [vmem:[#allocation5 + $0xf70] sm:$0xff] }
 0x259   :  { %6322 = vmatpush1.bf16.msra.mxu0 %v7245_v34  ;;  %v7462_v22 = vcombine.high %v592_v16, %v596_v18  ;;  %v456_v24 = vld [vmem:[#allocation5 + $0xb10] sm:$0xff]  ;;  %v7461_v31 = vcombine.low %v592_v16, %v596_v18 }
 0x25a   :  { %6323 = vmatprep.subr.bf16.mxu0 %v7238_v40  ;;  %v460_v45 = vld [vmem:[#allocation5 + $0xb30] sm:$0xff] }
 0x25b   :  { %6363 = vmatpush1.bf16.msra.mxu1 %v7373_v10  ;;  %v584_v8 = vld [vmem:[#allocation5 + $0xf10] sm:$0xff]  ;;  %v7326_v34 = vcombine.high %v456_v24, %v460_v45  ;;  %v7325_v47 = vcombine.low %v456_v24, %v460_v45 }
 0x25c   :  { %6364 = vmatprep.subr.bf16.mxu1 %v7366_v43  ;;  %v588_v30 = vld [vmem:[#allocation5 + $0xf30] sm:$0xff] }
 0x25d   :  { %6324 = vmatpush1.bf16.msra.mxu0 %v7237_v51  ;;  %v7454_v10 = vcombine.high %v584_v8, %v588_v30  ;;  %v448_v40 = vld [vmem:[#allocation5 + $0xad0] sm:$0xff]  ;;  %v7453_v27 = vcombine.low %v584_v8, %v588_v30 }
 0x25e   :  { %6325 = vmatprep.subr.bf16.mxu0 %v7230_v55  ;;  %v452_v43 = vld [vmem:[#allocation5 + $0xaf0] sm:$0xff] }
 0x25f   :  { %6365 = vmatpush1.bf16.msra.mxu1 %v7365_v54  ;;  %v576_v44 = vld [vmem:[#allocation5 + $0xed0] sm:$0xff]  ;;  %v7318_v51 = vcombine.high %v448_v40, %v452_v43  ;;  %v7317_v39 = vcombine.low %v448_v40, %v452_v43 }
 0x260   :  { %6366 = vmatprep.subr.bf16.mxu1 %v7358_v56  ;;  %v580_v46 = vld [vmem:[#allocation5 + $0xef0] sm:$0xff] }
 0x261   :  { %6326 = vmatpush1.bf16.msra.mxu0 %v7229_v63  ;;  %v7446_v54 = vcombine.high %v576_v44, %v580_v46  ;;  %v440_v55 = vld [vmem:[#allocation5 + $0xa90] sm:$0xff]  ;;  %v7445_v62 = vcombine.low %v576_v44, %v580_v46 }
 0x262   :  { %6327 = vmatprep.subr.bf16.mxu0 %v7350_v1  ;;  %v444_v56 = vld [vmem:[#allocation5 + $0xab0] sm:$0xff] }
 0x263   :  { %6367 = vmatpush1.bf16.msra.mxu1 %v7357_v0  ;;  %v568_v57 = vld [vmem:[#allocation5 + $0xe90] sm:$0xff]  ;;  %v7310_v63 = vcombine.high %v440_v55, %v444_v56  ;;  %v7309_v7 = vcombine.low %v440_v55, %v444_v56 }
 0x264   :  { %6368 = vmatprep.subr.bf16.mxu1 %v7478_v4  ;;  %v572_v58 = vld [vmem:[#allocation5 + $0xeb0] sm:$0xff] }
 0x265   :  { %6328 = vmatpush2.bf16.msra.mxu0 %v7349_v11  ;;  %v7438_v0 = vcombine.high %v568_v57, %v572_v58  ;;  %v432_v1 = vld [vmem:[#allocation5 + $0xa50] sm:$0xff]  ;;  %v7437_v9 = vcombine.low %v568_v57, %v572_v58 }
 0x266   :  { %6329 = vmatprep.subr.bf16.mxu0 %v7342_v2  ;;  %v436_v4 = vld [vmem:[#allocation5 + $0xa70] sm:$0xff] }
 0x267   :  { %6369 = vmatpush2.bf16.msra.mxu1 %v7477_v12  ;;  %v560_v42 = vld [vmem:[#allocation5 + $0xe50] sm:$0xff]  ;;  %v7302_v11 = vcombine.high %v432_v1, %v436_v4  ;;  %v7301_v16 = vcombine.low %v432_v1, %v436_v4 }
 0x268   :  { %6370 = vmatprep.subr.bf16.mxu1 %v7470_v53  ;;  %v564_v5 = vld [vmem:[#allocation5 + $0xe70] sm:$0xff] }
 0x269   :  { %6330 = vmatpush2.bf16.msra.mxu0 %v7341_v20  ;;  %v7430_v12 = vcombine.high %v560_v42, %v564_v5  ;;  %v424_v2 = vld [vmem:[#allocation5 + $0xa10] sm:$0xff]  ;;  %v7429_v18 = vcombine.low %v560_v42, %v564_v5 }
 0x26a   :  { %6331 = vmatprep.subr.bf16.mxu0 %v7334_v38  ;;  %v428_v53 = vld [vmem:[#allocation5 + $0xa30] sm:$0xff] }
 0x26b   :  { %6371 = vmatpush2.bf16.msra.mxu1 %v7469_v28  ;;  %v552_v13 = vld [vmem:[#allocation5 + $0xe10] sm:$0xff]  ;;  %v7294_v20 = vcombine.high %v424_v2, %v428_v53 }
 0x26c   :  { %6372 = vmatprep.subr.bf16.mxu1 %v7462_v22  ;;  %v556_v15 = vld [vmem:[#allocation5 + $0xe30] sm:$0xff] }
 0x26d   :  { %6332 = vmatpush2.bf16.msra.mxu0 %v7333_v33  ;;  %v7422_v28 = vcombine.high %v552_v13, %v556_v15  ;;  %v672_v38 = vld [vmem:[#allocation5 + $0x11d0] sm:$0xff]  ;;  %v7293_v33 = vcombine.low %v424_v2, %v428_v53 }
 0x26e   :  { %6333 = vmatprep.subr.bf16.mxu0 %v7326_v34  ;;  %v676_v22 = vld [vmem:[#allocation5 + $0x11f0] sm:$0xff]  ;;  %v7421_v34 = vcombine.low %v552_v13, %v556_v15 }
 0x26f   :  { %6373 = vmatpush2.bf16.msra.mxu1 %v7461_v31  ;;  %v800_v45 = vld [vmem:[#allocation5 + $0x15d0] sm:$0xff] }
 0x270   :  { %6374 = vmatprep.subr.bf16.mxu1 %v7454_v10  ;;  %v804_v8 = vld [vmem:[#allocation5 + $0x15f0] sm:$0xff]  ;;  %v7542_v10 = vcombine.high %v672_v38, %v676_v22 }
 0x271   :  { %6334 = vmatpush2.bf16.msra.mxu0 %v7325_v47  ;;  %v7670_v43 = vcombine.high %v800_v45, %v804_v8  ;;  %v664_v44 = vld [vmem:[#allocation5 + $0x1190] sm:$0xff]  ;;  %v7669_v55 = vcombine.low %v800_v45, %v804_v8 }
 0x272   :  { %6335 = vmatprep.subr.bf16.mxu0 %v7318_v51  ;;  %v668_v46 = vld [vmem:[#allocation5 + $0x11b0] sm:$0xff] }
 0x273   :  { %6375 = vmatpush2.bf16.msra.mxu1 %v7453_v27  ;;  %v792_v27 = vld [vmem:[#allocation5 + $0x1590] sm:$0xff]  ;;  %v7534_v56 = vcombine.high %v664_v44, %v668_v46 }
 0x274   :  { %6376 = vmatprep.subr.bf16.mxu1 %v7446_v54  ;;  %v796_v51 = vld [vmem:[#allocation5 + $0x15b0] sm:$0xff]  ;;  %v7541_v54 = vcombine.low %v672_v38, %v676_v22 }
 0x275   :  { %6336 = vmatpush2.bf16.msra.mxu0 %v7317_v39  ;;  %v7662_v57 = vcombine.high %v792_v27, %v796_v51  ;;  %v656_v58 = vld [vmem:[#allocation5 + $0x1150] sm:$0xff]  ;;  %v7661_v4 = vcombine.low %v792_v27, %v796_v51 }
 0x276   :  { %6337 = vmatprep.subr.bf16.mxu0 %v7310_v63  ;;  %v660_v39 = vld [vmem:[#allocation5 + $0x1170] sm:$0xff] }
 0x277   :  { %6377 = vmatpush2.bf16.msra.mxu1 %v7445_v62  ;;  %v788_v62 = vld [vmem:[#allocation5 + $0x1570] sm:$0xff]  ;;  %v7526_v42 = vcombine.high %v656_v58, %v660_v39  ;;  %v7525_v15 = vcombine.low %v656_v58, %v660_v39 }
 0x278   :  { %6378 = vmatprep.subr.bf16.mxu1 %v7438_v0  ;;  %v7533_v0 = vcombine.low %v664_v44, %v668_v46  ;;  %v776_v2 = vld [vmem:[#allocation5 + $0x1510] sm:$0xff] }
 0x279   :  { %6338 = vmatpush2.bf16.msra.mxu0 %v7309_v7  ;;  %v780_v53 = vld [vmem:[#allocation5 + $0x1530] sm:$0xff] }
 0x27a   :  { %6339 = vmatprep.subr.bf16.mxu0 %v7302_v11  ;;  %v652_v11 = vld [vmem:[#allocation5 + $0x1130] sm:$0xff] }
 0x27b   :  { %6379 = vmatpush2.bf16.msra.mxu1 %v7437_v9  ;;  %v648_v9 = vld [vmem:[#allocation5 + $0x1110] sm:$0xff] }
 0x27c   :  { %6380 = vmatprep.subr.bf16.mxu1 %v7430_v12  ;;  %v6058_v24 = vpop.f32.mrf.mxu0  ;;  %v640_v38 = vld [vmem:[#allocation5 + $0x10d0] sm:$0xff]  ;;  %v7517_v8 = vcombine.low %v648_v9, %v652_v11 }
 0x27d   :  { %v6059_v30 = vadd.f32 %v6058_v24, %v8162_v50  ;;  %6340 = vmatpush2.bf16.msra.mxu0 %v7301_v16  ;;  %v644_v22 = vld [vmem:[#allocation5 + $0x10f0] sm:$0xff] }
 0x27e   :  { %v6060_v31 = vpop.f32.mrf.mxu0  ;;  %6341 = vmatprep.subr.bf16.mxu0 %v7294_v20  ;;  %v768_v24 = vld [vmem:[#allocation5 + $0x14d0] sm:$0xff]  ;;  %v7509_v44 = vcombine.low %v640_v38, %v644_v22 }
 0x27f   :  { %6381 = vmatpush2.bf16.msra.mxu1 %v7429_v18  ;;  %v6061_v40 = vadd.f32 %v6060_v31, %v8165_v61  ;;  %v784_v61 = vld [vmem:[#allocation5 + $0x1550] sm:$0xff]  ;;  %v7518_v18 = vcombine.high %v648_v9, %v652_v11 }
 0x280   :  { %6382 = vmatprep.subr.bf16.mxu1 %v7422_v28  ;;  %v6062_v47 = vpop.f32.mrf.mxu0  ;;  %v7654_v7 = vcombine.high %v784_v61, %v788_v62  ;;  %v7653_v16 = vcombine.low %v784_v61, %v788_v62  ;;  %v7646_v28 = vcombine.high %v776_v2, %v780_v53  ;;  %v772_v45 = vld [vmem:[#allocation5 + $0x14f0] sm:$0xff] }
 0x281   :  { %6342 = vmatpush2.bf16.msra.mxu0 %v7293_v33  ;;  %v7510_v33 = vcombine.high %v640_v38, %v644_v22  ;;  %v7638_v31 = vcombine.high %v768_v24, %v772_v45  ;;  %v7637_v46 = vcombine.low %v768_v24, %v772_v45  ;;  %v624_v51 = vld [vmem:[#allocation5 + $0x1050] sm:$0xff] }
 0x282   :  { %v6063_v50 = vpop.f32.mrf.mxu0  ;;  %6393 = vmatprep.subr.bf16.mxu0 %v7542_v10  ;;  %v636_v10 = vld [vmem:[#allocation5 + $0x10b0] sm:$0xff] }
 0x283   :  { %6383 = vmatpush2.bf16.msra.mxu1 %v7421_v34  ;;  %v632_v34 = vld [vmem:[#allocation5 + $0x1090] sm:$0xff] }
 0x284   :  { %6434 = vmatprep.subr.bf16.mxu1 %v7670_v43  ;;  %6344 = vmatmul.mubr.bf16.vlgmr.msra.gmra.mxu0 %v8058_v37  ;;  %v764_v43 = vld [vmem:[#allocation5 + $0x14b0] sm:$0xff]  ;;  %v7502_v47 = vcombine.high %v632_v34, %v636_v10 }
 0x285   :  { %6394 = vmatpush1.bf16.msra.mxu0 %v7541_v54  ;;  %6425 = vmatprep.mubr.bf16.mxu0 %v8062_v49  ;;  %v628_v54 = vld [vmem:[#allocation5 + $0x1070] sm:$0xff] }
 0x286   :  { %v6099_v63 = vpop.f32.mrf.mxu1  ;;  %6385 = vmatmul.mubr.bf16.vlgmr.msra.gmra.mxu1 %v8060_v41  ;;  %6395 = vmatprep.subr.bf16.mxu0 %v7534_v56  ;;  %v752_v50 = vld [vmem:[#allocation5 + $0x1450] sm:$0xff]  ;;  %v7501_v56 = vcombine.low %v632_v34, %v636_v10  ;;  %v7494_v58 = vcombine.high %v624_v51, %v628_v54 }
 0x287   :  { %v8172_v1 = vadd.f32 %v6099_v63, %v6059_v30  ;;  %6435 = vmatpush1.bf16.msra.mxu1 %v7669_v55  ;;  %6466 = vmatprep.mubr.bf16.mxu1 %v8065_v52  ;;  %v7645_v30 = vcombine.low %v776_v2, %v780_v53  ;;  %v756_v55 = vld [vmem:[#allocation5 + $0x1470] sm:$0xff] }
 0x288   :  { %v6101_v5 = vpop.f32.mrf.mxu1  ;;  %6436 = vmatprep.subr.bf16.mxu1 %v7662_v57  ;;  %v7622_v39 = vcombine.high %v752_v50, %v756_v55  ;;  %v616_v61 = vld [vmem:[#allocation5 + $0x1010] sm:$0xff] }
 0x289   :  { %v8175_v12 = vadd.f32 %v6101_v5, %v6061_v40  ;;  %6396 = vmatpush1.bf16.msra.mxu0 %v7533_v0  ;;  %v760_v40 = vld [vmem:[#allocation5 + $0x1490] sm:$0xff] }
 0x28a   :  { %v6103_v13 = vpop.f32.mrf.mxu1  ;;  %6397 = vmatprep.subr.bf16.mxu0 %v7526_v42  ;;  %v7630_v27 = vcombine.high %v760_v40, %v764_v43  ;;  %v7629_v57 = vcombine.low %v760_v40, %v764_v43  ;;  %v620_v62 = vld [vmem:[#allocation5 + $0x1030] sm:$0xff]  ;;  %v7621_v42 = vcombine.low %v752_v50, %v756_v55 }
 0x28b   :  { %6437 = vmatpush1.bf16.msra.mxu1 %v7661_v4  ;;  %v744_v63 = vld [vmem:[#allocation5 + $0x1410] sm:$0xff]  ;;  %v7493_v4 = vcombine.low %v624_v51, %v628_v54  ;;  %v7486_v5 = vcombine.high %v616_v61, %v620_v62  ;;  %v7485_v13 = vcombine.low %v616_v61, %v620_v62 }
 0x28c   :  { %v6104_v20 = vpop.f32.mrf.mxu1  ;;  %6438 = vmatprep.subr.bf16.mxu1 %v7654_v7  ;;  %v748_v0 = vld [vmem:[#allocation5 + $0x1430] sm:$0xff] }
 0x28d   :  { %6398 = vmatpush1.bf16.msra.mxu0 %v7525_v15  ;;  %v7614_v7 = vcombine.high %v744_v63, %v748_v0  ;;  %v736_v9 = vld [vmem:[#allocation5 + $0x13d0] sm:$0xff]  ;;  %v7613_v15 = vcombine.low %v744_v63, %v748_v0 }
 0x28e   :  { %6399 = vmatprep.subr.bf16.mxu0 %v7518_v18  ;;  %v740_v11 = vld [vmem:[#allocation5 + $0x13f0] sm:$0xff] }
 0x28f   :  { %6439 = vmatpush1.bf16.msra.mxu1 %v7653_v16  ;;  %v864_v2 = vld [vmem:[#allocation5 + $0x17d0] sm:$0xff]  ;;  %v7606_v16 = vcombine.high %v736_v9, %v740_v11  ;;  %v7605_v24 = vcombine.low %v736_v9, %v740_v11 }
 0x290   :  { %6440 = vmatprep.subr.bf16.mxu1 %v7646_v28  ;;  %v868_v53 = vld [vmem:[#allocation5 + $0x17f0] sm:$0xff] }
 0x291   :  { %6400 = vmatpush1.bf16.msra.mxu0 %v7517_v8  ;;  %v7734_v18 = vcombine.high %v864_v2, %v868_v53  ;;  %v728_v20 = vld [vmem:[#allocation5 + $0x1390] sm:$0xff]  ;;  %v7733_v45 = vcombine.low %v864_v2, %v868_v53 }
 0x292   :  { %6401 = vmatprep.subr.bf16.mxu0 %v7510_v33  ;;  %v732_v28 = vld [vmem:[#allocation5 + $0x13b0] sm:$0xff] }
 0x293   :  { %6441 = vmatpush1.bf16.msra.mxu1 %v7645_v30  ;;  %v856_v38 = vld [vmem:[#allocation5 + $0x1790] sm:$0xff]  ;;  %v7598_v8 = vcombine.high %v728_v20, %v732_v28  ;;  %v7597_v40 = vcombine.low %v728_v20, %v732_v28 }
 0x294   :  { %6442 = vmatprep.subr.bf16.mxu1 %v7638_v31  ;;  %v860_v22 = vld [vmem:[#allocation5 + $0x17b0] sm:$0xff] }
 0x295   :  { %6402 = vmatpush1.bf16.msra.mxu0 %v7509_v44  ;;  %v7726_v30 = vcombine.high %v856_v38, %v860_v22  ;;  %v720_v33 = vld [vmem:[#allocation5 + $0x1350] sm:$0xff]  ;;  %v7725_v43 = vcombine.low %v856_v38, %v860_v22 }
 0x296   :  { %6403 = vmatprep.subr.bf16.mxu0 %v7502_v47  ;;  %v724_v31 = vld [vmem:[#allocation5 + $0x1370] sm:$0xff] }
 0x297   :  { %6443 = vmatpush1.bf16.msra.mxu1 %v7637_v46  ;;  %v848_v34 = vld [vmem:[#allocation5 + $0x1750] sm:$0xff]  ;;  %v7590_v44 = vcombine.high %v720_v33, %v724_v31  ;;  %v7589_v50 = vcombine.low %v720_v33, %v724_v31 }
 0x298   :  { %6444 = vmatprep.subr.bf16.mxu1 %v7630_v27  ;;  %v852_v10 = vld [vmem:[#allocation5 + $0x1770] sm:$0xff] }
 0x299   :  { %6404 = vmatpush1.bf16.msra.mxu0 %v7501_v56  ;;  %v7718_v46 = vcombine.high %v848_v34, %v852_v10  ;;  %v712_v47 = vld [vmem:[#allocation5 + $0x1310] sm:$0xff]  ;;  %v7717_v55 = vcombine.low %v848_v34, %v852_v10 }
 0x29a   :  { %6405 = vmatprep.subr.bf16.mxu0 %v7494_v58  ;;  %v716_v27 = vld [vmem:[#allocation5 + $0x1330] sm:$0xff] }
 0x29b   :  { %6445 = vmatpush1.bf16.msra.mxu1 %v7629_v57  ;;  %v840_v51 = vld [vmem:[#allocation5 + $0x1710] sm:$0xff]  ;;  %v7582_v56 = vcombine.high %v712_v47, %v716_v27  ;;  %v7581_v63 = vcombine.low %v712_v47, %v716_v27 }
 0x29c   :  { %6446 = vmatprep.subr.bf16.mxu1 %v7622_v39  ;;  %v844_v54 = vld [vmem:[#allocation5 + $0x1730] sm:$0xff] }
 0x29d   :  { %6406 = vmatpush1.bf16.msra.mxu0 %v7493_v4  ;;  %v7710_v57 = vcombine.high %v840_v51, %v844_v54  ;;  %v704_v58 = vld [vmem:[#allocation5 + $0x12d0] sm:$0xff]  ;;  %v7709_v0 = vcombine.low %v840_v51, %v844_v54 }
 0x29e   :  { %6407 = vmatprep.subr.bf16.mxu0 %v7486_v5  ;;  %v708_v39 = vld [vmem:[#allocation5 + $0x12f0] sm:$0xff] }
 0x29f   :  { %6447 = vmatpush1.bf16.msra.mxu1 %v7621_v42  ;;  %v832_v61 = vld [vmem:[#allocation5 + $0x16d0] sm:$0xff]  ;;  %v7574_v4 = vcombine.high %v704_v58, %v708_v39  ;;  %v7573_v2 = vcombine.low %v704_v58, %v708_v39 }
 0x2a0   :  { %6448 = vmatprep.subr.bf16.mxu1 %v7614_v7  ;;  %v836_v62 = vld [vmem:[#allocation5 + $0x16f0] sm:$0xff] }
 0x2a1   :  { %6408 = vmatpush1.bf16.msra.mxu0 %v7485_v13  ;;  %v7702_v42 = vcombine.high %v832_v61, %v836_v62  ;;  %v696_v5 = vld [vmem:[#allocation5 + $0x1290] sm:$0xff]  ;;  %v7701_v53 = vcombine.low %v832_v61, %v836_v62 }
 0x2a2   :  { %6409 = vmatprep.subr.bf16.mxu0 %v7606_v16  ;;  %v700_v7 = vld [vmem:[#allocation5 + $0x12b0] sm:$0xff] }
 0x2a3   :  { %6449 = vmatpush1.bf16.msra.mxu1 %v7613_v15  ;;  %v824_v9 = vld [vmem:[#allocation5 + $0x1690] sm:$0xff]  ;;  %v7566_v13 = vcombine.high %v696_v5, %v700_v7  ;;  %v7565_v38 = vcombine.low %v696_v5, %v700_v7 }
 0x2a4   :  { %6450 = vmatprep.subr.bf16.mxu1 %v7734_v18  ;;  %v828_v11 = vld [vmem:[#allocation5 + $0x16b0] sm:$0xff] }
 0x2a5   :  { %6410 = vmatpush2.bf16.msra.mxu0 %v7605_v24  ;;  %v7694_v15 = vcombine.high %v824_v9, %v828_v11  ;;  %v688_v16 = vld [vmem:[#allocation5 + $0x1250] sm:$0xff]  ;;  %v7693_v22 = vcombine.low %v824_v9, %v828_v11 }
 0x2a6   :  { %6411 = vmatprep.subr.bf16.mxu0 %v7598_v8  ;;  %v692_v18 = vld [vmem:[#allocation5 + $0x1270] sm:$0xff] }
 0x2a7   :  { %6451 = vmatpush2.bf16.msra.mxu1 %v7733_v45  ;;  %v816_v20 = vld [vmem:[#allocation5 + $0x1650] sm:$0xff]  ;;  %v7558_v24 = vcombine.high %v688_v16, %v692_v18  ;;  %v7557_v34 = vcombine.low %v688_v16, %v692_v18 }
 0x2a8   :  { %6452 = vmatprep.subr.bf16.mxu1 %v7726_v30  ;;  %v820_v28 = vld [vmem:[#allocation5 + $0x1670] sm:$0xff] }
 0x2a9   :  { %6412 = vmatpush2.bf16.msra.mxu0 %v7597_v40  ;;  %v7686_v45 = vcombine.high %v816_v20, %v820_v28  ;;  %v680_v8 = vld [vmem:[#allocation5 + $0x1210] sm:$0xff]  ;;  %v7685_v10 = vcombine.low %v816_v20, %v820_v28 }
 0x2aa   :  { %6413 = vmatprep.subr.bf16.mxu0 %v7590_v44  ;;  %v684_v30 = vld [vmem:[#allocation5 + $0x1230] sm:$0xff] }
 0x2ab   :  { %6453 = vmatpush2.bf16.msra.mxu1 %v7725_v43  ;;  %v808_v33 = vld [vmem:[#allocation5 + $0x1610] sm:$0xff]  ;;  %v7550_v40 = vcombine.high %v680_v8, %v684_v30  ;;  %v7549_v54 = vcombine.low %v680_v8, %v684_v30 }
 0x2ac   :  { %6454 = vmatprep.subr.bf16.mxu1 %v7718_v46  ;;  %v812_v31 = vld [vmem:[#allocation5 + $0x1630] sm:$0xff] }
 0x2ad   :  { %6414 = vmatpush2.bf16.msra.mxu0 %v7589_v50  ;;  %v7678_v43 = vcombine.high %v808_v33, %v812_v31  ;;  %v928_v44 = vld [vmem:[#allocation5 + $0x19d0] sm:$0xff] }
 0x2ae   :  { %6415 = vmatprep.subr.bf16.mxu0 %v7582_v56  ;;  %v932_v46 = vld [vmem:[#allocation5 + $0x19f0] sm:$0xff] }
 0x2af   :  { %6455 = vmatpush2.bf16.msra.mxu1 %v7717_v55  ;;  %v1000_v27 = vld [vmem:[#allocation5 + $0x1c10] sm:$0xff]  ;;  %v7677_v55 = vcombine.low %v808_v33, %v812_v31  ;;  %v7798_v56 = vcombine.high %v928_v44, %v932_v46  ;;  %v153_v33 = vld [vmem:[#allocation5 + $0x198] sm:$0xff] }
 0x2b0   :  { %6456 = vmatprep.subr.bf16.mxu1 %v7710_v57  ;;  %v7870_v58 = vcombine.high %v1000_v27, %v1000_v27  ;;  %v7869_v39 = vcombine.low %v1000_v27, %v1000_v27  ;;  %v920_v61 = vld [vmem:[#allocation5 + $0x1990] sm:$0xff]  ;;  %v157_v31 = vld [vmem:[#allocation5 + $0x1b8] sm:$0xff] }
 0x2b1   :  { %6416 = vmatpush2.bf16.msra.mxu0 %v7581_v63  ;;  %v924_v62 = vld [vmem:[#allocation5 + $0x19b0] sm:$0xff] }
 0x2b2   :  { %6417 = vmatprep.subr.bf16.mxu0 %v7574_v4  ;;  %v165_v4 = vld [vmem:[#allocation5 + $0x1f8] sm:$0xff]  ;;  %v7790_v5 = vcombine.high %v920_v61, %v924_v62  ;;  %v5562_v7 = vsel %vm5548_vm0, %v7869_v39, 0  ;;  %v916_v11 = vld [vmem:[#allocation5 + $0x1970] sm:$0xff]  ;;  %v7023_v39 = vcombine.low %v153_v33, %v157_v31 }
 0x2b3   :  { %6457 = vmatpush2.bf16.msra.mxu1 %v7709_v0  ;;  %v161_v0 = vld [vmem:[#allocation5 + $0x1d8] sm:$0xff]  ;;  %v904_v28 = vld [vmem:[#allocation5 + $0x1910] sm:$0xff] }
 0x2b4   :  { %6458 = vmatprep.subr.bf16.mxu1 %v7702_v42  ;;  %v7797_v42 = vcombine.low %v928_v44, %v932_v46  ;;  %v7032_v9 = vcombine.high %v161_v0, %v165_v4 }
 0x2b5   :  { %6418 = vmatpush2.bf16.msra.mxu0 %v7573_v2 }
 0x2b6   :  { %6419 = vmatprep.subr.bf16.mxu0 %v7566_v13  ;;  %v7789_v13 = vcombine.low %v920_v61, %v924_v62 }
 0x2b7   :  { %6459 = vmatpush2.bf16.msra.mxu1 %v7701_v53 }
 0x2b8   :  { %6460 = vmatprep.subr.bf16.mxu1 %v7694_v15 }
 0x2b9   :  { %6420 = vmatpush2.bf16.msra.mxu0 %v7565_v38  ;;  %v908_v38 = vld [vmem:[#allocation5 + $0x1930] sm:$0xff] }
 0x2ba   :  { %6421 = vmatprep.subr.bf16.mxu0 %v7558_v24  ;;  %v7898_v24 = vld [vmem:[#allocation8] sm:$0xff]  ;;  %v7774_v27 = vcombine.high %v904_v28, %v908_v38  ;;  %v7773_v61 = vcombine.low %v904_v28, %v908_v38  ;;  %v872_v28 = vld [vmem:[#allocation5 + $0x1810] sm:$0xff] }
 0x2bb   :  { %6461 = vmatpush2.bf16.msra.mxu1 %v7693_v22  ;;  %v6910_v46 = vrot.slane %v7898_v24, %v1018_v23  ;;  %v876_v38 = vld [vmem:[#allocation5 + $0x1830] sm:$0xff] }
 0x2bc   :  { %6462 = vmatprep.subr.bf16.mxu1 %v7686_v45  ;;  %v6140_v47 = vpop.f32.mrf.mxu0  ;;  %v6906_v45 = vrot.slane %v7898_v24, %v1014_v35  ;;  %v7024_v35 = vcombine.high %v153_v33, %v157_v31  ;;  %v125_v24 = vld [vmem:[#allocation5 + $0xb8] sm:$0xff]  ;;  %v992_v31 = vld [vmem:[#allocation5 + $0x1bd0] sm:$0xff] }
 0x2bd   :  { %v6141_v51 = vadd.f32 %v6140_v47, %v8172_v1  ;;  %6422 = vmatpush2.bf16.msra.mxu0 %v7557_v34 }
 0x2be   :  { %v6142_v50 = vpop.f32.mrf.mxu0  ;;  %6423 = vmatprep.subr.bf16.mxu0 %v7550_v40 }
 0x2bf   :  { %6463 = vmatpush2.bf16.msra.mxu1 %v7685_v10  ;;  %v6143_v57 = vadd.f32 %v6142_v50, %v8175_v12  ;;  %v912_v12 = vld [vmem:[#allocation5 + $0x1950] sm:$0xff]  ;;  %v7031_v10 = vcombine.low %v161_v0, %v165_v4 }
 0x2c0   :  { %6464 = vmatprep.subr.bf16.mxu1 %v7678_v43  ;;  %v6144_v63 = vpop.f32.mrf.mxu0  ;;  %v7782_v18 = vcombine.high %v912_v12, %v916_v11  ;;  %v7781_v40 = vcombine.low %v912_v12, %v916_v11  ;;  %v900_v50 = vld [vmem:[#allocation5 + $0x18f0] sm:$0xff] }
 0x2c1   :  { %6424 = vmatpush2.bf16.msra.mxu0 %v7549_v54  ;;  %v896_v54 = vld [vmem:[#allocation5 + $0x18d0] sm:$0xff] }
 0x2c2   :  { %v6145_v1 = vpop.f32.mrf.mxu0  ;;  %6475 = vmatprep.subr.bf16.mxu0 %v7798_v56  ;;  %v7766_v63 = vcombine.high %v896_v54, %v900_v50  ;;  %v888_v4 = vld [vmem:[#allocation5 + $0x1890] sm:$0xff] }
 0x2c3   :  { %6465 = vmatpush2.bf16.msra.mxu1 %v7677_v55 }
 0x2c4   :  { %7877 = vmatprep.subr.msk.bf16.mxu1 %vm5548_vm0, %v7870_v58  ;;  %6426 = vmatmul.mubr.bf16.vlgmr.msra.gmra.mxu0 %v8070_v3  ;;  %v6222_v2 = vpop.f32.mrf.mxu0  ;;  %v149_v58 = vld [vmem:[#allocation5 + $0x178] sm:$0xff] }
 0x2c5   :  { %6476 = vmatpush1.bf16.msra.mxu0 %v7797_v42  ;;  %6507 = vmatprep.mubr.bf16.mxu0 %v8077_v14  ;;  %v892_v42 = vld [vmem:[#allocation5 + $0x18b0] sm:$0xff] }
 0x2c6   :  { %v6181_v53 = vpop.f32.mrf.mxu1  ;;  %6467 = vmatmul.mubr.bf16.vlgmr.msra.gmra.mxu1 %v8072_v6  ;;  %v6224_v16 = vpop.f32.mrf.mxu0  ;;  %6477 = vmatprep.subr.bf16.mxu0 %v7790_v5  ;;  %v137_v5 = vld [vmem:[#allocation5 + $0x118] sm:$0xff] }
 0x2c7   :  { %v6182_v15 = vadd.f32 %v6181_v53, %v6141_v51  ;;  %6531 = vmatpush1.bf16.msra.mxu1 %v5562_v7  ;;  %6548 = vmatprep.mubr.bf16.mxu1 %v7994_v19  ;;  %v141_v7 = vld [vmem:[#allocation5 + $0x138] sm:$0xff]  ;;  %v884_v53 = vld [vmem:[#allocation5 + $0x1870] sm:$0xff] }
 0x2c8   :  { %v6183_v20 = vpop.f32.mrf.mxu1  ;;  %6557 = vmatprep.subr.bf16.mxu1 %v7032_v9  ;;  %v6226_v30 = vpop.f32.mrf.mxu0  ;;  %v7765_v9 = vcombine.low %v896_v54, %v900_v50  ;;  %v7008_v11 = vcombine.high %v137_v5, %v141_v7  ;;  %v109_v54 = vld [vmem:[#allocation5 + $0x38] sm:$0xff] }
 0x2c9   :  { %v6223_v22 = vadd.f32 %v6222_v2, %v6182_v15  ;;  %v6184_v8 = vadd.f32 %v6183_v20, %v6143_v57  ;;  %6478 = vmatpush1.bf16.msra.mxu0 %v7789_v13  ;;  %v145_v57 = vld [vmem:[#allocation5 + $0x158] sm:$0xff]  ;;  %v880_v2 = vld [vmem:[#allocation5 + $0x1850] sm:$0xff]  ;;  %v7742_v30 = vcombine.high %v872_v28, %v876_v38 }
 0x2ca   :  { %v6185_v34 = vpop.f32.mrf.mxu1  ;;  %v6227_v47 = vpop.f32.mrf.mxu0  ;;  %6479 = vmatprep.subr.bf16.mxu0 %v7782_v18  ;;  %v7016_v0 = vcombine.high %v145_v57, %v149_v58  ;;  %v7015_v12 = vcombine.low %v145_v57, %v149_v58  ;;  %v129_v13 = vld [vmem:[#allocation5 + $0xd8] sm:$0xff]  ;;  %v7750_v18 = vcombine.high %v880_v2, %v884_v53  ;;  %v976_v58 = vld [vmem:[#allocation5 + $0x1b50] sm:$0xff] }
 0x2cb   :  { %v6887_v43 = vmax.f32 %v6223_v22, 0.0  ;;  %v6225_v44 = vadd.f32 %v6224_v16, %v6184_v8  ;;  %v133_v15 = vld [vmem:[#allocation5 + $0xf8] sm:$0xff]  ;;  %v7757_v16 = vcombine.low %v888_v4, %v892_v42  ;;  %v996_v34 = vld [vmem:[#allocation5 + $0x1bf0] sm:$0xff] }
 0x2cc   :  { %v6186_v51 = vpop.f32.mrf.mxu1  ;;  %v7000_v20 = vcombine.high %v129_v13, %v133_v15  ;;  %v121_v22 = vld [vmem:[#allocation5 + $0x98] sm:$0xff]  ;;  %v6999_v8 = vcombine.low %v129_v13, %v133_v15  ;;  %v7861_v50 = vcombine.low %v992_v31, %v996_v34  ;;  %v964_v13 = vld [vmem:[#allocation5 + $0x1af0] sm:$0xff] }
 0x2cd   :  { %v6937_v55 = vmul.f32 %v6906_v45, %v6887_v43  ;;  %v6888_v56 = vmax.f32 %v6225_v44, 0.0  ;;  %6480 = vmatpush1.bf16.msra.mxu0 %v7781_v40  ;;  %v7749_v45 = vcombine.low %v880_v2, %v884_v53  ;;  %v6992_v33 = vcombine.high %v121_v22, %v125_v24  ;;  %v117_v40 = vld [vmem:[#allocation5 + $0x78] sm:$0xff]  ;;  %v988_v51 = vld [vmem:[#allocation5 + $0x1bb0] sm:$0xff] }
 0x2ce   :  { %7878 = vmatmul.mubr.msk.bf16.vlgmr.msra.gmra.mxu1 %vm5544_vm1, %v8082_v26  ;;  %6481 = vmatprep.subr.bf16.mxu0 %v7774_v27  ;;  %v7741_v43 = vcombine.low %v872_v28, %v876_v38  ;;  %v6991_v44 = vcombine.low %v121_v22, %v125_v24  ;;  %v984_v27 = vld [vmem:[#allocation5 + $0x1b90] sm:$0xff]  ;;  %v209_v15 = vld [vmem:[#allocation5 + $0x358] sm:$0xff] }
 0x2cf   :  { %v6944_v62 = vadd.f32 %v8149_v36, %v6937_v55  ;;  %v6938_v23 = vmul.f32 %v6910_v46, %v6888_v56  ;;  %6558 = vmatpush1.bf16.msra.mxu1 %v7031_v10  ;;  %6589 = vmatprep.mubr.bf16.mxu1 %v8040_v59  ;;  %v7758_v36 = vcombine.high %v888_v4, %v892_v42  ;;  %v113_v10 = vld [vmem:[#allocation5 + $0x58] sm:$0xff]  ;;  %v968_v42 = vld [vmem:[#allocation5 + $0x1b10] sm:$0xff] }
 0x2d0   :  { %6559 = vmatprep.subr.bf16.mxu1 %v7024_v35  ;;  %v7007_v59 = vcombine.low %v137_v5, %v141_v7  ;;  %v7862_v46 = vcombine.high %v992_v31, %v996_v34  ;;  %v6984_v47 = vcombine.high %v113_v10, %v117_v40  ;;  %v105_v35 = vld [vmem:[#allocation5 + $0x18] sm:$0xff]  ;;  %v6983_v55 = vcombine.low %v113_v10, %v117_v40  ;;  %v972_v5 = vld [vmem:[#allocation5 + $0x1b30] sm:$0xff] }
 0x2d1   :  { %v8194_v1 = vadd.f32 %v6944_v62, %v6938_v23  ;;  %6482 = vmatpush1.bf16.msra.mxu0 %v7773_v61  ;;  %v7854_v56 = vcombine.high %v984_v27, %v988_v51  ;;  %v6976_v57 = vcombine.high %v105_v35, %v109_v54  ;;  %v225_v61 = vld [vmem:[#allocation5 + $0x3d8] sm:$0xff]  ;;  %v7853_v23 = vcombine.low %v984_v27, %v988_v51  ;;  %v960_v53 = vld [vmem:[#allocation5 + $0x1ad0] sm:$0xff] }
 0x2d2   :  { %6483 = vmatprep.subr.bf16.mxu0 %v7766_v63  ;;  %v229_v62 = vld [vmem:[#allocation5 + $0x3f8] sm:$0xff]  ;;  %v6975_v63 = vcombine.low %v105_v35, %v109_v54  ;;  %v952_v38 = vld [vmem:[#allocation5 + $0x1a90] sm:$0xff] }
 0x2d3   :  { %6560 = vmatpush1.bf16.msra.mxu1 %v7023_v39  ;;  %v980_v39 = vld [vmem:[#allocation5 + $0x1b70] sm:$0xff]  ;;  %v7096_v4 = vcombine.high %v225_v61, %v229_v62  ;;  %v217_v7 = vld [vmem:[#allocation5 + $0x398] sm:$0xff] }
 0x2d4   :  { %6561 = vmatprep.subr.bf16.mxu1 %v7016_v0  ;;  %v7846_v0 = vcombine.high %v976_v58, %v980_v39  ;;  %v956_v22 = vld [vmem:[#allocation5 + $0x1ab0] sm:$0xff]  ;;  %v201_v24 = vld [vmem:[#allocation5 + $0x318] sm:$0xff] }
 0x2d5   :  { %6484 = vmatpush1.bf16.msra.mxu0 %v7765_v9  ;;  %v221_v9 = vld [vmem:[#allocation5 + $0x3b8] sm:$0xff]  ;;  %v944_v34 = vld [vmem:[#allocation5 + $0x1a50] sm:$0xff] }
 0x2d6   :  { %6485 = vmatprep.subr.bf16.mxu0 %v7758_v36  ;;  %v7095_v36 = vcombine.low %v225_v61, %v229_v62  ;;  %v7088_v2 = vcombine.high %v217_v7, %v221_v9  ;;  %v948_v10 = vld [vmem:[#allocation5 + $0x1a70] sm:$0xff]  ;;  %v193_v40 = vld [vmem:[#allocation5 + $0x2d8] sm:$0xff] }
 0x2d7   :  { %6562 = vmatpush1.bf16.msra.mxu1 %v7015_v12  ;;  %v7845_v12 = vcombine.low %v976_v58, %v980_v39  ;;  %v936_v51 = vld [vmem:[#allocation5 + $0x1a10] sm:$0xff]  ;;  %v185_v54 = vld [vmem:[#allocation5 + $0x298] sm:$0xff] }
 0x2d8   :  { %6563 = vmatprep.subr.bf16.mxu1 %v7008_v11  ;;  %v7838_v11 = vcombine.high %v968_v42, %v972_v5  ;;  %v940_v35 = vld [vmem:[#allocation5 + $0x1a30] sm:$0xff]  ;;  %v289_v39 = vld [vmem:[#allocation5 + $0x5d8] sm:$0xff] }
 0x2d9   :  { %6486 = vmatpush1.bf16.msra.mxu0 %v7757_v16  ;;  %v213_v16 = vld [vmem:[#allocation5 + $0x378] sm:$0xff] }
 0x2da   :  { %6487 = vmatprep.subr.bf16.mxu0 %v7750_v18  ;;  %v7087_v18 = vcombine.low %v217_v7, %v221_v9  ;;  %v7080_v28 = vcombine.high %v209_v15, %v213_v16  ;;  %v293_v61 = vld [vmem:[#allocation5 + $0x5f8] sm:$0xff]  ;;  %v1026_v7 = vsub.s32 5, %v8087_v25 }
 0x2db   :  { %6564 = vmatpush1.bf16.msra.mxu1 %v7007_v59  ;;  %v7837_v59 = vcombine.low %v968_v42, %v972_v5  ;;  %v177_v62 = vld [vmem:[#allocation5 + $0x258] sm:$0xff]  ;;  %v7160_v42 = vcombine.high %v289_v39, %v293_v61 }
 0x2dc   :  { %6565 = vmatprep.subr.bf16.mxu1 %v7000_v20  ;;  %v7830_v20 = vcombine.high %v960_v53, %v964_v13  ;;  %v281_v9 = vld [vmem:[#allocation5 + $0x598] sm:$0xff] }
 0x2dd   :  { %6488 = vmatpush1.bf16.msra.mxu0 %v7749_v45  ;;  %v205_v45 = vld [vmem:[#allocation5 + $0x338] sm:$0xff] }
 0x2de   :  { %6489 = vmatprep.subr.bf16.mxu0 %v7742_v30  ;;  %v7079_v30 = vcombine.low %v209_v15, %v213_v16  ;;  %v7072_v31 = vcombine.high %v201_v24, %v205_v45 }
 0x2df   :  { %6566 = vmatpush1.bf16.msra.mxu1 %v6999_v8  ;;  %v7829_v8 = vcombine.low %v960_v53, %v964_v13  ;;  %v7159_v13 = vcombine.low %v289_v39, %v293_v61  ;;  %v257_v61 = vld [vmem:[#allocation5 + $0x4d8] sm:$0xff] }
 0x2e0   :  { %6567 = vmatprep.subr.bf16.mxu1 %v6992_v33  ;;  %v7822_v33 = vcombine.high %v952_v38, %v956_v22 }
 0x2e1   :  { %6490 = vmatpush1.bf16.msra.mxu0 %v7741_v43  ;;  %v197_v43 = vld [vmem:[#allocation5 + $0x2f8] sm:$0xff] }
 0x2e2   :  { %6491 = vmatprep.subr.bf16.mxu0 %v7862_v46  ;;  %v7071_v46 = vcombine.low %v201_v24, %v205_v45  ;;  %v7064_v27 = vcombine.high %v193_v40, %v197_v43  ;;  %v421_v24 = vld [vmem:[#allocation5 + $0x9f8] sm:$0xff] }
 0x2e3   :  { %6568 = vmatpush1.bf16.msra.mxu1 %v6991_v44  ;;  %v7821_v44 = vcombine.low %v952_v38, %v956_v22  ;;  %v417_v22 = vld [vmem:[#allocation5 + $0x9d8] sm:$0xff] }
 0x2e4   :  { %6569 = vmatprep.subr.bf16.mxu1 %v6984_v47  ;;  %v7814_v47 = vcombine.high %v944_v34, %v948_v10 }
 0x2e5   :  { %6492 = vmatpush2.bf16.msra.mxu0 %v7861_v50  ;;  %v189_v50 = vld [vmem:[#allocation5 + $0x2b8] sm:$0xff] }
 0x2e6   :  { %6493 = vmatprep.subr.bf16.mxu0 %v7854_v56  ;;  %v7063_v56 = vcombine.low %v193_v40, %v197_v43  ;;  %v7056_v58 = vcombine.high %v185_v54, %v189_v50 }
 0x2e7   :  { %6570 = vmatpush1.bf16.msra.mxu1 %v6983_v55  ;;  %v7813_v55 = vcombine.low %v944_v34, %v948_v10 }
 0x2e8   :  { %6571 = vmatprep.subr.bf16.mxu1 %v6976_v57  ;;  %v7806_v57 = vcombine.high %v936_v51, %v940_v35 }
 0x2e9   :  { %6494 = vmatpush2.bf16.msra.mxu0 %v7853_v23  ;;  %v181_v23 = vld [vmem:[#allocation5 + $0x278] sm:$0xff] }
 0x2ea   :  { %6495 = vmatprep.subr.bf16.mxu0 %v7846_v0  ;;  %v1022_v0 = vsub.s32 4, %v8087_v25  ;;  %v7048_v5 = vcombine.high %v177_v62, %v181_v23  ;;  %v7047_v15 = vcombine.low %v177_v62, %v181_v23  ;;  %v261_v62 = vld [vmem:[#allocation5 + $0x4f8] sm:$0xff] }
 0x2eb   :  { %6572 = vmatpush1.bf16.msra.mxu1 %v6975_v63  ;;  %v7805_v63 = vcombine.low %v936_v51, %v940_v35  ;;  %v409_v51 = vld [vmem:[#allocation5 + $0x998] sm:$0xff] }
 0x2ec   :  { %6573 = vmatprep.subr.bf16.mxu1 %v7096_v4  ;;  %v7055_v4 = vcombine.low %v185_v54, %v189_v50  ;;  %v413_v35 = vld [vmem:[#allocation5 + $0x9b8] sm:$0xff] }
 0x2ed   :  { %6496 = vmatpush2.bf16.msra.mxu0 %v7845_v12  ;;  %v285_v12 = vld [vmem:[#allocation5 + $0x5b8] sm:$0xff]  ;;  %v7280_v39 = vcombine.high %v409_v51, %v413_v35 }
 0x2ee   :  { %6497 = vmatprep.subr.bf16.mxu0 %v7838_v11  ;;  %v173_v11 = vld [vmem:[#allocation5 + $0x238] sm:$0xff]  ;;  %v7152_v16 = vcombine.high %v281_v9, %v285_v12 }
 0x2ef   :  { %6574 = vmatpush2.bf16.msra.mxu1 %v7095_v36  ;;  %v169_v36 = vld [vmem:[#allocation5 + $0x218] sm:$0xff] }
 0x2f0   :  { %6575 = vmatprep.subr.bf16.mxu1 %v7088_v2  ;;  %v7899_v2 = vld [vmem:[#allocation7] sm:$0xff]  ;;  %v401_v23 = vld [vmem:[#allocation5 + $0x958] sm:$0xff] }
 0x2f1   :  { %6498 = vmatpush2.bf16.msra.mxu0 %v7837_v59  ;;  %v1023_v53 = vrot.slane %v7899_v2, %v1022_v0  ;;  %v1027_v59 = vrot.slane %v7899_v2, %v1026_v7  ;;  %v397_v2 = vld [vmem:[#allocation5 + $0x938] sm:$0xff] }
 0x2f2   :  { %6499 = vmatprep.subr.bf16.mxu0 %v7830_v20  ;;  %v273_v20 = vld [vmem:[#allocation5 + $0x558] sm:$0xff] }
 0x2f3   :  { %6576 = vmatpush2.bf16.msra.mxu1 %v7087_v18  ;;  %v7040_v18 = vcombine.high %v169_v36, %v173_v11 }
 0x2f4   :  { %6577 = vmatprep.subr.bf16.mxu1 %v7080_v28  ;;  %v277_v28 = vld [vmem:[#allocation5 + $0x578] sm:$0xff] }
 0x2f5   :  { %6500 = vmatpush2.bf16.msra.mxu0 %v7829_v8  ;;  %v7144_v34 = vcombine.high %v273_v20, %v277_v28 }
 0x2f6   :  { %6501 = vmatprep.subr.bf16.mxu0 %v7822_v33 }
 0x2f7   :  { %6578 = vmatpush2.bf16.msra.mxu1 %v7079_v30  ;;  %v7151_v30 = vcombine.low %v281_v9, %v285_v12  ;;  %v249_v12 = vld [vmem:[#allocation5 + $0x498] sm:$0xff] }
 0x2f8   :  { %6579 = vmatprep.subr.bf16.mxu1 %v7072_v31  ;;  %v7039_v31 = vcombine.low %v169_v36, %v173_v11  ;;  %v253_v36 = vld [vmem:[#allocation5 + $0x4b8] sm:$0xff] }
 0x2f9   :  { %6502 = vmatpush2.bf16.msra.mxu0 %v7821_v44  ;;  %v7288_v44 = vcombine.high %v417_v22, %v421_v24  ;;  %v393_v11 = vld [vmem:[#allocation5 + $0x918] sm:$0xff] }
 0x2fa   :  { %6503 = vmatprep.subr.bf16.mxu0 %v7814_v47  ;;  %v269_v47 = vld [vmem:[#allocation5 + $0x538] sm:$0xff] }
 0x2fb   :  { %6580 = vmatpush2.bf16.msra.mxu1 %v7071_v46  ;;  %v265_v46 = vld [vmem:[#allocation5 + $0x518] sm:$0xff] }
 0x2fc   :  { %6581 = vmatprep.subr.bf16.mxu1 %v7064_v27 }
 0x2fd   :  { %6504 = vmatpush2.bf16.msra.mxu0 %v7813_v55 }
 0x2fe   :  { %6505 = vmatprep.subr.bf16.mxu0 %v7806_v57  ;;  %v7136_v57 = vcombine.high %v265_v46, %v269_v47 }
 0x2ff   :  { %6582 = vmatpush2.bf16.msra.mxu1 %v7063_v56  ;;  %v7287_v56 = vcombine.low %v417_v22, %v421_v24  ;;  %v233_v24 = vld [vmem:[#allocation5 + $0x418] sm:$0xff] }
 0x300   :  { %6583 = vmatprep.subr.bf16.mxu1 %v7056_v58 }
 0x301   :  { %6506 = vmatpush2.bf16.msra.mxu0 %v7805_v63  ;;  %v405_v63 = vld [vmem:[#allocation5 + $0x978] sm:$0xff] }
 0x302   :  { %6598 = vmatprep.subr.bf16.mxu0 %v7160_v42  ;;  %v7279_v42 = vcombine.low %v409_v51, %v413_v35  ;;  %v7272_v9 = vcombine.high %v401_v23, %v405_v63 }
 0x303   :  { %6584 = vmatpush2.bf16.msra.mxu1 %v7055_v4  ;;  %v7135_v4 = vcombine.low %v265_v46, %v269_v47  ;;  %v369_v46 = vld [vmem:[#allocation5 + $0x858] sm:$0xff] }
 0x304   :  { %6585 = vmatprep.subr.bf16.mxu1 %v7048_v5  ;;  %v6263_v38 = vpop.f32.mrf.mxu0  ;;  %6508 = vmatmul.mubr.bf16.vlgmr.msra.gmra.mxu0 %v8091_v48  ;;  %v7128_v5 = vcombine.high %v257_v61, %v261_v62  ;;  %v373_v47 = vld [vmem:[#allocation5 + $0x878] sm:$0xff] }
 0x305   :  { %v6264_v45 = vadd.f32 %v6263_v38, %v1023_v53  ;;  %6599 = vmatpush1.bf16.msra.mxu0 %v7159_v13  ;;  %6630 = vmatprep.mubr.bf16.mxu0 %v8042_v60  ;;  %v7143_v60 = vcombine.low %v273_v20, %v277_v28  ;;  %v7127_v53 = vcombine.low %v257_v61, %v261_v62  ;;  %v389_v20 = vld [vmem:[#allocation5 + $0x8f8] sm:$0xff] }
 0x306   :  { %v6304_v8 = vpop.f32.mrf.mxu1  ;;  %v6265_v33 = vpop.f32.mrf.mxu0  ;;  %6600 = vmatprep.subr.bf16.mxu0 %v7152_v16  ;;  %v7271_v13 = vcombine.low %v401_v23, %v405_v63  ;;  %v241_v16 = vld [vmem:[#allocation5 + $0x458] sm:$0xff]  ;;  %v7119_v28 = vcombine.low %v249_v12, %v253_v36  ;;  %v7263_v38 = vcombine.low %v393_v11, %v397_v2 }
 0x307   :  { %6586 = vmatpush2.bf16.msra.mxu1 %v7047_v15  ;;  %v8204_v10 = vadd.f32 %v6304_v8, %v6264_v45  ;;  %v6266_v40 = vadd.f32 %v6265_v33, %v1027_v59  ;;  %v7264_v15 = vcombine.high %v393_v11, %v397_v2  ;;  %v245_v59 = vld [vmem:[#allocation5 + $0x478] sm:$0xff] }
 0x308   :  { %v6306_v43 = vpop.f32.mrf.mxu1  ;;  %6587 = vmatprep.subr.bf16.mxu1 %v7040_v18  ;;  %v6267_v27 = vpop.f32.mrf.mxu0  ;;  %v385_v18 = vld [vmem:[#allocation5 + $0x8d8] sm:$0xff]  ;;  %v7111_v33 = vcombine.low %v241_v16, %v245_v59 }
 0x309   :  { %v8206_v54 = vadd.f32 %v6306_v43, %v6266_v40  ;;  %6601 = vmatpush1.bf16.msra.mxu0 %v7151_v30  ;;  %v7256_v22 = vcombine.high %v385_v18, %v389_v20  ;;  %v237_v45 = vld [vmem:[#allocation5 + $0x438] sm:$0xff] }
 0x30a   :  { %v6308_v50 = vpop.f32.mrf.mxu1  ;;  %v6268_v55 = vpop.f32.mrf.mxu0  ;;  %6602 = vmatprep.subr.bf16.mxu0 %v7144_v34  ;;  %v377_v8 = vld [vmem:[#allocation5 + $0x898] sm:$0xff]  ;;  %v7104_v34 = vcombine.high %v233_v24, %v237_v45  ;;  %v7103_v27 = vcombine.low %v233_v24, %v237_v45 }
 0x30b   :  { %6588 = vmatpush2.bf16.msra.mxu1 %v7039_v31  ;;  %v381_v30 = vld [vmem:[#allocation5 + $0x8b8] sm:$0xff]  ;;  %v7255_v31 = vcombine.low %v385_v18, %v389_v20  ;;  %v7240_v50 = vcombine.high %v369_v46, %v373_v47 }
 0x30c   :  { %v6309_v58 = vpop.f32.mrf.mxu1  ;;  %6639 = vmatprep.subr.bf16.mxu1 %v7288_v44  ;;  %v7248_v40 = vcombine.high %v377_v8, %v381_v30  ;;  %v353_v43 = vld [vmem:[#allocation5 + $0x7d8] sm:$0xff]  ;;  %v7247_v51 = vcombine.low %v377_v8, %v381_v30 }
 0x30d   :  { %6603 = vmatpush1.bf16.msra.mxu0 %v7143_v60  ;;  %v357_v44 = vld [vmem:[#allocation5 + $0x7f8] sm:$0xff] }
 0x30e   :  { %6590 = vmatmul.mubr.bf16.vlgmr.msra.gmra.mxu1 %v8046_v17  ;;  %6604 = vmatprep.subr.bf16.mxu0 %v7136_v57  ;;  %v7120_v17 = vcombine.high %v249_v12, %v253_v36  ;;  %v7224_v35 = vcombine.high %v353_v43, %v357_v44  ;;  %v345_v60 = vld [vmem:[#allocation5 + $0x798] sm:$0xff]  ;;  %v7223_v58 = vcombine.low %v353_v43, %v357_v44 }
 0x30f   :  { %6640 = vmatpush1.bf16.msra.mxu1 %v7287_v56  ;;  %6671 = vmatprep.mubr.bf16.mxu1 %v8050_v29  ;;  %v7112_v29 = vcombine.high %v241_v16, %v245_v59  ;;  %v349_v55 = vld [vmem:[#allocation5 + $0x7b8] sm:$0xff] }
 0x310   :  { %6641 = vmatprep.subr.bf16.mxu1 %v7280_v39  ;;  %v361_v56 = vld [vmem:[#allocation5 + $0x818] sm:$0xff]  ;;  %v7239_v39 = vcombine.low %v369_v46, %v373_v47  ;;  %v7216_v61 = vcombine.high %v345_v60, %v349_v55 }
 0x311   :  { %6605 = vmatpush1.bf16.msra.mxu0 %v7135_v4  ;;  %v365_v57 = vld [vmem:[#allocation5 + $0x838] sm:$0xff] }
 0x312   :  { %6606 = vmatprep.subr.bf16.mxu0 %v7128_v5  ;;  %v7232_v62 = vcombine.high %v361_v56, %v365_v57  ;;  %v337_v23 = vld [vmem:[#allocation5 + $0x758] sm:$0xff]  ;;  %v7215_v5 = vcombine.low %v345_v60, %v349_v55 }
 0x313   :  { %6642 = vmatpush1.bf16.msra.mxu1 %v7279_v42  ;;  %v341_v63 = vld [vmem:[#allocation5 + $0x778] sm:$0xff] }
 0x314   :  { %6643 = vmatprep.subr.bf16.mxu1 %v7272_v9  ;;  %v481_v4 = vld [vmem:[#allocation5 + $0xbd8] sm:$0xff]  ;;  %v7231_v9 = vcombine.low %v361_v56, %v365_v57  ;;  %v7208_v12 = vcombine.high %v337_v23, %v341_v63 }
 0x315   :  { %6607 = vmatpush1.bf16.msra.mxu0 %v7127_v53  ;;  %v485_v42 = vld [vmem:[#allocation5 + $0xbf8] sm:$0xff] }
 0x316   :  { %6608 = vmatprep.subr.bf16.mxu0 %v7120_v17  ;;  %v7352_v36 = vcombine.high %v481_v4, %v485_v42  ;;  %v329_v11 = vld [vmem:[#allocation5 + $0x718] sm:$0xff]  ;;  %v7207_v17 = vcombine.low %v337_v23, %v341_v63 }
 0x317   :  { %6644 = vmatpush1.bf16.msra.mxu1 %v7271_v13  ;;  %v333_v2 = vld [vmem:[#allocation5 + $0x738] sm:$0xff] }
 0x318   :  { %6645 = vmatprep.subr.bf16.mxu1 %v7264_v15  ;;  %v473_v53 = vld [vmem:[#allocation5 + $0xb98] sm:$0xff]  ;;  %v7351_v15 = vcombine.low %v481_v4, %v485_v42  ;;  %v7200_v16 = vcombine.high %v329_v11, %v333_v2 }
 0x319   :  { %6609 = vmatpush1.bf16.msra.mxu0 %v7119_v28  ;;  %v477_v13 = vld [vmem:[#allocation5 + $0xbb8] sm:$0xff] }
 0x31a   :  { %6610 = vmatprep.subr.bf16.mxu0 %v7112_v29  ;;  %v7344_v59 = vcombine.high %v473_v53, %v477_v13  ;;  %v321_v18 = vld [vmem:[#allocation5 + $0x6d8] sm:$0xff]  ;;  %v7199_v29 = vcombine.low %v329_v11, %v333_v2 }
 0x31b   :  { %6646 = vmatpush1.bf16.msra.mxu1 %v7263_v38  ;;  %v325_v20 = vld [vmem:[#allocation5 + $0x6f8] sm:$0xff] }
 0x31c   :  { %6647 = vmatprep.subr.bf16.mxu1 %v7256_v22  ;;  %v465_v28 = vld [vmem:[#allocation5 + $0xb58] sm:$0xff]  ;;  %v7343_v22 = vcombine.low %v473_v53, %v477_v13  ;;  %v7192_v24 = vcombine.high %v321_v18, %v325_v20 }
 0x31d   :  { %6611 = vmatpush1.bf16.msra.mxu0 %v7111_v33  ;;  %v469_v38 = vld [vmem:[#allocation5 + $0xb78] sm:$0xff] }
 0x31e   :  { %6612 = vmatprep.subr.bf16.mxu0 %v7104_v34  ;;  %v7336_v45 = vcombine.high %v465_v28, %v469_v38  ;;  %v313_v8 = vld [vmem:[#allocation5 + $0x698] sm:$0xff]  ;;  %v7191_v34 = vcombine.low %v321_v18, %v325_v20 }
 0x31f   :  { %6648 = vmatpush1.bf16.msra.mxu1 %v7255_v31  ;;  %v317_v30 = vld [vmem:[#allocation5 + $0x6b8] sm:$0xff] }
 0x320   :  { %6649 = vmatprep.subr.bf16.mxu1 %v7248_v40  ;;  %v457_v33 = vld [vmem:[#allocation5 + $0xb18] sm:$0xff]  ;;  %v7335_v40 = vcombine.low %v465_v28, %v469_v38  ;;  %v7184_v43 = vcombine.high %v313_v8, %v317_v30 }
 0x321   :  { %6613 = vmatpush1.bf16.msra.mxu0 %v7103_v27  ;;  %v461_v31 = vld [vmem:[#allocation5 + $0xb38] sm:$0xff] }
 0x322   :  { %6614 = vmatprep.subr.bf16.mxu0 %v7224_v35  ;;  %v7328_v44 = vcombine.high %v457_v33, %v461_v31  ;;  %v305_v46 = vld [vmem:[#allocation5 + $0x658] sm:$0xff]  ;;  %v7183_v35 = vcombine.low %v313_v8, %v317_v30 }
 0x323   :  { %6650 = vmatpush1.bf16.msra.mxu1 %v7247_v51  ;;  %v309_v47 = vld [vmem:[#allocation5 + $0x678] sm:$0xff] }
 0x324   :  { %6651 = vmatprep.subr.bf16.mxu1 %v7240_v50  ;;  %v449_v27 = vld [vmem:[#allocation5 + $0xad8] sm:$0xff]  ;;  %v7327_v50 = vcombine.low %v457_v33, %v461_v31  ;;  %v7176_v60 = vcombine.high %v305_v46, %v309_v47 }
 0x325   :  { %6615 = vmatpush2.bf16.msra.mxu0 %v7223_v58  ;;  %v453_v51 = vld [vmem:[#allocation5 + $0xaf8] sm:$0xff] }
 0x326   :  { %6616 = vmatprep.subr.bf16.mxu0 %v7216_v61  ;;  %v7320_v55 = vcombine.high %v449_v27, %v453_v51  ;;  %v297_v56 = vld [vmem:[#allocation5 + $0x618] sm:$0xff]  ;;  %v7175_v61 = vcombine.low %v305_v46, %v309_v47 }
 0x327   :  { %6652 = vmatpush1.bf16.msra.mxu1 %v7239_v39  ;;  %v301_v57 = vld [vmem:[#allocation5 + $0x638] sm:$0xff] }
 0x328   :  { %6653 = vmatprep.subr.bf16.mxu1 %v7232_v62  ;;  %v441_v58 = vld [vmem:[#allocation5 + $0xa98] sm:$0xff]  ;;  %v7319_v62 = vcombine.low %v449_v27, %v453_v51  ;;  %v7168_v23 = vcombine.high %v297_v56, %v301_v57 }
 0x329   :  { %6617 = vmatpush2.bf16.msra.mxu0 %v7215_v5  ;;  %v445_v39 = vld [vmem:[#allocation5 + $0xab8] sm:$0xff] }
 0x32a   :  { %6618 = vmatprep.subr.bf16.mxu0 %v7208_v12  ;;  %v7312_v63 = vcombine.high %v441_v58, %v445_v39  ;;  %v545_v4 = vld [vmem:[#allocation5 + $0xdd8] sm:$0xff]  ;;  %v7167_v12 = vcombine.low %v297_v56, %v301_v57 }
 0x32b   :  { %6654 = vmatpush1.bf16.msra.mxu1 %v7231_v9  ;;  %v549_v42 = vld [vmem:[#allocation5 + $0xdf8] sm:$0xff] }
 0x32c   :  { %6655 = vmatprep.subr.bf16.mxu1 %v7352_v36  ;;  %v433_v5 = vld [vmem:[#allocation5 + $0xa58] sm:$0xff]  ;;  %v7311_v36 = vcombine.low %v441_v58, %v445_v39  ;;  %v7416_v11 = vcombine.high %v545_v4, %v549_v42 }
 0x32d   :  { %6619 = vmatpush2.bf16.msra.mxu0 %v7207_v17  ;;  %v437_v9 = vld [vmem:[#allocation5 + $0xa78] sm:$0xff] }
 0x32e   :  { %6620 = vmatprep.subr.bf16.mxu0 %v7200_v16  ;;  %v7304_v2 = vcombine.high %v433_v5, %v437_v9  ;;  %v537_v53 = vld [vmem:[#allocation5 + $0xd98] sm:$0xff]  ;;  %v7415_v16 = vcombine.low %v545_v4, %v549_v42 }
 0x32f   :  { %6656 = vmatpush2.bf16.msra.mxu1 %v7351_v15  ;;  %v541_v13 = vld [vmem:[#allocation5 + $0xdb8] sm:$0xff] }
 0x330   :  { %6657 = vmatprep.subr.bf16.mxu1 %v7344_v59  ;;  %v425_v17 = vld [vmem:[#allocation5 + $0xa18] sm:$0xff]  ;;  %v7303_v59 = vcombine.low %v433_v5, %v437_v9  ;;  %v7408_v18 = vcombine.high %v537_v53, %v541_v13  ;;  %v7407_v30 = vcombine.low %v537_v53, %v541_v13 }
 0x331   :  { %6621 = vmatpush2.bf16.msra.mxu0 %v7199_v29  ;;  %v429_v15 = vld [vmem:[#allocation5 + $0xa38] sm:$0xff] }
 0x332   :  { %6622 = vmatprep.subr.bf16.mxu0 %v7192_v24  ;;  %v7296_v20 = vcombine.high %v425_v17, %v429_v15  ;;  %v529_v28 = vld [vmem:[#allocation5 + $0xd58] sm:$0xff]  ;;  %v7295_v31 = vcombine.low %v425_v17, %v429_v15 }
 0x333   :  { %6658 = vmatpush2.bf16.msra.mxu1 %v7343_v22  ;;  %v533_v38 = vld [vmem:[#allocation5 + $0xd78] sm:$0xff] }
 0x334   :  { %6659 = vmatprep.subr.bf16.mxu1 %v7336_v45  ;;  %v673_v22 = vld [vmem:[#allocation5 + $0x11d8] sm:$0xff] }
 0x335   :  { %6623 = vmatpush2.bf16.msra.mxu0 %v7191_v34  ;;  %v677_v24 = vld [vmem:[#allocation5 + $0x11f8] sm:$0xff]  ;;  %v7400_v34 = vcombine.high %v529_v28, %v533_v38 }
 0x336   :  { %6624 = vmatprep.subr.bf16.mxu0 %v7184_v43  ;;  %v521_v46 = vld [vmem:[#allocation5 + $0xd18] sm:$0xff] }
 0x337   :  { %6660 = vmatpush2.bf16.msra.mxu1 %v7335_v40  ;;  %v525_v47 = vld [vmem:[#allocation5 + $0xd38] sm:$0xff] }
 0x338   :  { %6661 = vmatprep.subr.bf16.mxu1 %v7328_v44  ;;  %v665_v27 = vld [vmem:[#allocation5 + $0x1198] sm:$0xff]  ;;  %v7392_v56 = vcombine.high %v521_v46, %v525_v47 }
 0x339   :  { %6625 = vmatpush2.bf16.msra.mxu0 %v7183_v35  ;;  %v669_v51 = vld [vmem:[#allocation5 + $0x11b8] sm:$0xff] }
 0x33a   :  { %6626 = vmatprep.subr.bf16.mxu0 %v7176_v60  ;;  %v513_v58 = vld [vmem:[#allocation5 + $0xcd8] sm:$0xff] }
 0x33b   :  { %6662 = vmatpush2.bf16.msra.mxu1 %v7327_v50  ;;  %v7399_v50 = vcombine.low %v529_v28, %v533_v38  ;;  %v517_v39 = vld [vmem:[#allocation5 + $0xcf8] sm:$0xff] }
 0x33c   :  { %6663 = vmatprep.subr.bf16.mxu1 %v7320_v55  ;;  %v7543_v55 = vcombine.low %v673_v22, %v677_v24  ;;  %v7384_v4 = vcombine.high %v513_v58, %v517_v39  ;;  %v505_v5 = vld [vmem:[#allocation5 + $0xc98] sm:$0xff] }
 0x33d   :  { %6627 = vmatpush2.bf16.msra.mxu0 %v7175_v61  ;;  %v657_v61 = vld [vmem:[#allocation5 + $0x1158] sm:$0xff] }
 0x33e   :  { %6628 = vmatprep.subr.bf16.mxu0 %v7168_v23  ;;  %v7391_v23 = vcombine.low %v521_v46, %v525_v47  ;;  %v509_v9 = vld [vmem:[#allocation5 + $0xcb8] sm:$0xff] }
 0x33f   :  { %6664 = vmatpush2.bf16.msra.mxu1 %v7319_v62  ;;  %v661_v62 = vld [vmem:[#allocation5 + $0x1178] sm:$0xff] }
 0x340   :  { %6665 = vmatprep.subr.bf16.mxu1 %v7312_v63  ;;  %v7535_v63 = vcombine.low %v665_v27, %v669_v51  ;;  %v7528_v42 = vcombine.high %v657_v61, %v661_v62  ;;  %v497_v13 = vld [vmem:[#allocation5 + $0xc58] sm:$0xff] }
 0x341   :  { %6629 = vmatpush2.bf16.msra.mxu0 %v7167_v12  ;;  %v649_v12 = vld [vmem:[#allocation5 + $0x1118] sm:$0xff] }
 0x342   :  { %6680 = vmatprep.subr.bf16.mxu0 %v7416_v11  ;;  %v7383_v11 = vcombine.low %v513_v58, %v517_v39  ;;  %v501_v17 = vld [vmem:[#allocation5 + $0xc78] sm:$0xff] }
 0x343   :  { %6666 = vmatpush2.bf16.msra.mxu1 %v7311_v36  ;;  %v653_v36 = vld [vmem:[#allocation5 + $0x1138] sm:$0xff] }
 0x344   :  { %6667 = vmatprep.subr.bf16.mxu1 %v7304_v2  ;;  %v6345_v29 = vpop.f32.mrf.mxu0  ;;  %6631 = vmatmul.mubr.bf16.vlgmr.msra.gmra.mxu0 %v8048_v21  ;;  %v7544_v21 = vcombine.high %v673_v22, %v677_v24  ;;  %v7527_v2 = vcombine.low %v657_v61, %v661_v62  ;;  %v7520_v53 = vcombine.high %v649_v12, %v653_v36  ;;  %v641_v15 = vld [vmem:[#allocation5 + $0x10d8] sm:$0xff] }
 0x345   :  { %v6346_v45 = vadd.f32 %v6345_v29, %v8204_v10  ;;  %6681 = vmatpush1.bf16.msra.mxu0 %v7415_v16  ;;  %6712 = vmatprep.mubr.bf16.mxu0 %v8053_v32  ;;  %v645_v16 = vld [vmem:[#allocation5 + $0x10f8] sm:$0xff]  ;;  %v7367_v24 = vcombine.low %v497_v13, %v501_v17 }
 0x346   :  { %v6386_v8 = vpop.f32.mrf.mxu1  ;;  %v6347_v33 = vpop.f32.mrf.mxu0  ;;  %6682 = vmatprep.subr.bf16.mxu0 %v7408_v18  ;;  %v7519_v18 = vcombine.low %v649_v12, %v653_v36  ;;  %v489_v28 = vld [vmem:[#allocation5 + $0xc18] sm:$0xff] }
 0x347   :  { %6668 = vmatpush2.bf16.msra.mxu1 %v7303_v59  ;;  %v8213_v40 = vadd.f32 %v6386_v8, %v6346_v45  ;;  %v6348_v43 = vadd.f32 %v6347_v33, %v8206_v54  ;;  %v7536_v54 = vcombine.high %v665_v27, %v669_v51  ;;  %v7375_v59 = vcombine.low %v505_v5, %v509_v9  ;;  %v493_v38 = vld [vmem:[#allocation5 + $0xc38] sm:$0xff] }
 0x348   :  { %v6388_v44 = vpop.f32.mrf.mxu1  ;;  %6669 = vmatprep.subr.bf16.mxu1 %v7296_v20  ;;  %v6349_v10 = vpop.f32.mrf.mxu0  ;;  %v7512_v20 = vcombine.high %v641_v15, %v645_v16  ;;  %v633_v29 = vld [vmem:[#allocation5 + $0x1098] sm:$0xff]  ;;  %v7511_v45 = vcombine.low %v641_v15, %v645_v16  ;;  %v7360_v8 = vcombine.high %v489_v28, %v493_v38 }
 0x349   :  { %v8216_v35 = vadd.f32 %v6388_v44, %v6348_v43  ;;  %6683 = vmatpush1.bf16.msra.mxu0 %v7407_v30  ;;  %v637_v22 = vld [vmem:[#allocation5 + $0x10b8] sm:$0xff]  ;;  %v7359_v44 = vcombine.low %v489_v28, %v493_v38 }
 0x34a   :  { %v6390_v32 = vpop.f32.mrf.mxu1  ;;  %v6350_v60 = vpop.f32.mrf.mxu0  ;;  %6684 = vmatprep.subr.bf16.mxu0 %v7400_v34  ;;  %v7504_v30 = vcombine.high %v633_v29, %v637_v22  ;;  %v609_v33 = vld [vmem:[#allocation5 + $0xfd8] sm:$0xff] }
 0x34b   :  { %6670 = vmatpush2.bf16.msra.mxu1 %v7295_v31  ;;  %v613_v31 = vld [vmem:[#allocation5 + $0xff8] sm:$0xff] }
 0x34c   :  { %v6391_v57 = vpop.f32.mrf.mxu1  ;;  %6721 = vmatprep.subr.bf16.mxu1 %v7544_v21  ;;  %v625_v34 = vld [vmem:[#allocation5 + $0x1058] sm:$0xff]  ;;  %v7503_v21 = vcombine.low %v633_v29, %v637_v22  ;;  %v7480_v46 = vcombine.high %v609_v33, %v613_v31 }
 0x34d   :  { %6685 = vmatpush1.bf16.msra.mxu0 %v7399_v50  ;;  %v629_v43 = vld [vmem:[#allocation5 + $0x1078] sm:$0xff]  ;;  %v7479_v50 = vcombine.low %v609_v33, %v613_v31 }
 0x34e   :  { %6672 = vmatmul.mubr.bf16.vlgmr.msra.gmra.mxu1 %v8058_v37  ;;  %6686 = vmatprep.subr.bf16.mxu0 %v7392_v56  ;;  %v7376_v37 = vcombine.high %v505_v5, %v509_v9  ;;  %v7496_v47 = vcombine.high %v625_v34, %v629_v43  ;;  %v601_v10 = vld [vmem:[#allocation5 + $0xf98] sm:$0xff]  ;;  %v7495_v60 = vcombine.low %v625_v34, %v629_v43 }
 0x34f   :  { %6722 = vmatpush1.bf16.msra.mxu1 %v7543_v55  ;;  %6753 = vmatprep.mubr.bf16.mxu1 %v8062_v49  ;;  %v7368_v49 = vcombine.high %v497_v13, %v501_v17  ;;  %v605_v27 = vld [vmem:[#allocation5 + $0xfb8] sm:$0xff] }
 0x350   :  { %6723 = vmatprep.subr.bf16.mxu1 %v7536_v54  ;;  %v617_v51 = vld [vmem:[#allocation5 + $0x1018] sm:$0xff]  ;;  %v7472_v55 = vcombine.high %v601_v10, %v605_v27  ;;  %v7471_v61 = vcombine.low %v601_v10, %v605_v27 }
 0x351   :  { %6687 = vmatpush1.bf16.msra.mxu0 %v7391_v23  ;;  %v621_v32 = vld [vmem:[#allocation5 + $0x1038] sm:$0xff] }
 0x352   :  { %6688 = vmatprep.subr.bf16.mxu0 %v7384_v4  ;;  %v7488_v56 = vcombine.high %v617_v51, %v621_v32  ;;  %v593_v57 = vld [vmem:[#allocation5 + $0xf58] sm:$0xff]  ;;  %v7487_v62 = vcombine.low %v617_v51, %v621_v32 }
 0x353   :  { %6724 = vmatpush1.bf16.msra.mxu1 %v7535_v63  ;;  %v597_v54 = vld [vmem:[#allocation5 + $0xf78] sm:$0xff] }
 0x354   :  { %6725 = vmatprep.subr.bf16.mxu1 %v7528_v42  ;;  %v737_v58 = vld [vmem:[#allocation5 + $0x13d8] sm:$0xff]  ;;  %v7464_v23 = vcombine.high %v593_v57, %v597_v54  ;;  %v7463_v12 = vcombine.low %v593_v57, %v597_v54 }
 0x355   :  { %6689 = vmatpush1.bf16.msra.mxu0 %v7383_v11  ;;  %v741_v39 = vld [vmem:[#allocation5 + $0x13f8] sm:$0xff] }
 0x356   :  { %6690 = vmatprep.subr.bf16.mxu0 %v7376_v37  ;;  %v7608_v63 = vcombine.high %v737_v58, %v741_v39  ;;  %v585_v4 = vld [vmem:[#allocation5 + $0xf18] sm:$0xff]  ;;  %v7607_v36 = vcombine.low %v737_v58, %v741_v39 }
 0x357   :  { %6726 = vmatpush1.bf16.msra.mxu1 %v7527_v2  ;;  %v589_v42 = vld [vmem:[#allocation5 + $0xf38] sm:$0xff] }
 0x358   :  { %6727 = vmatprep.subr.bf16.mxu1 %v7520_v53  ;;  %v729_v5 = vld [vmem:[#allocation5 + $0x1398] sm:$0xff]  ;;  %v7456_v11 = vcombine.high %v585_v4, %v589_v42  ;;  %v7455_v15 = vcombine.low %v585_v4, %v589_v42 }
 0x359   :  { %6691 = vmatpush1.bf16.msra.mxu0 %v7375_v59  ;;  %v733_v9 = vld [vmem:[#allocation5 + $0x13b8] sm:$0xff] }
 0x35a   :  { %6692 = vmatprep.subr.bf16.mxu0 %v7368_v49  ;;  %v7600_v2 = vcombine.high %v729_v5, %v733_v9  ;;  %v577_v37 = vld [vmem:[#allocation5 + $0xed8] sm:$0xff]  ;;  %v7599_v16 = vcombine.low %v729_v5, %v733_v9 }
 0x35b   :  { %6728 = vmatpush1.bf16.msra.mxu1 %v7519_v18  ;;  %v581_v53 = vld [vmem:[#allocation5 + $0xef8] sm:$0xff] }
 0x35c   :  { %6729 = vmatprep.subr.bf16.mxu1 %v7512_v20  ;;  %v721_v13 = vld [vmem:[#allocation5 + $0x1358] sm:$0xff]  ;;  %v7448_v59 = vcombine.high %v577_v37, %v581_v53  ;;  %v7447_v29 = vcombine.low %v577_v37, %v581_v53 }
 0x35d   :  { %6693 = vmatpush1.bf16.msra.mxu0 %v7367_v24  ;;  %v725_v17 = vld [vmem:[#allocation5 + $0x1378] sm:$0xff] }
 0x35e   :  { %6694 = vmatprep.subr.bf16.mxu0 %v7360_v8  ;;  %v7592_v18 = vcombine.high %v721_v13, %v725_v17  ;;  %v569_v49 = vld [vmem:[#allocation5 + $0xe98] sm:$0xff]  ;;  %v7591_v22 = vcombine.low %v721_v13, %v725_v17 }
 0x35f   :  { %6730 = vmatpush1.bf16.msra.mxu1 %v7511_v45  ;;  %v573_v20 = vld [vmem:[#allocation5 + $0xeb8] sm:$0xff] }
 0x360   :  { %6731 = vmatprep.subr.bf16.mxu1 %v7504_v30  ;;  %v713_v28 = vld [vmem:[#allocation5 + $0x1318] sm:$0xff]  ;;  %v7440_v24 = vcombine.high %v569_v49, %v573_v20  ;;  %v7439_v34 = vcombine.low %v569_v49, %v573_v20 }
 0x361   :  { %6695 = vmatpush1.bf16.msra.mxu0 %v7359_v44  ;;  %v717_v38 = vld [vmem:[#allocation5 + $0x1338] sm:$0xff] }
 0x362   :  { %6696 = vmatprep.subr.bf16.mxu0 %v7480_v46  ;;  %v7584_v45 = vcombine.high %v713_v28, %v717_v38  ;;  %v561_v8 = vld [vmem:[#allocation5 + $0xe58] sm:$0xff]  ;;  %v7583_v43 = vcombine.low %v713_v28, %v717_v38 }
 0x363   :  { %6732 = vmatpush1.bf16.msra.mxu1 %v7503_v21  ;;  %v565_v30 = vld [vmem:[#allocation5 + $0xe78] sm:$0xff] }
 0x364   :  { %6733 = vmatprep.subr.bf16.mxu1 %v7496_v47  ;;  %v705_v33 = vld [vmem:[#allocation5 + $0x12d8] sm:$0xff]  ;;  %v7432_v44 = vcombine.high %v561_v8, %v565_v30  ;;  %v7431_v51 = vcombine.low %v561_v8, %v565_v30 }
 0x365   :  { %6697 = vmatpush2.bf16.msra.mxu0 %v7479_v50  ;;  %v709_v31 = vld [vmem:[#allocation5 + $0x12f8] sm:$0xff] }
 0x366   :  { %6698 = vmatprep.subr.bf16.mxu0 %v7472_v55  ;;  %v7576_v21 = vcombine.high %v705_v33, %v709_v31  ;;  %v553_v46 = vld [vmem:[#allocation5 + $0xe18] sm:$0xff]  ;;  %v7575_v32 = vcombine.low %v705_v33, %v709_v31 }
 0x367   :  { %6734 = vmatpush1.bf16.msra.mxu1 %v7495_v60  ;;  %v557_v47 = vld [vmem:[#allocation5 + $0xe38] sm:$0xff] }
 0x368   :  { %6735 = vmatprep.subr.bf16.mxu1 %v7488_v56  ;;  %v697_v10 = vld [vmem:[#allocation5 + $0x1298] sm:$0xff]  ;;  %v7424_v50 = vcombine.high %v553_v46, %v557_v47  ;;  %v7423_v58 = vcombine.low %v553_v46, %v557_v47 }
 0x369   :  { %6699 = vmatpush2.bf16.msra.mxu0 %v7471_v61  ;;  %v701_v27 = vld [vmem:[#allocation5 + $0x12b8] sm:$0xff] }
 0x36a   :  { %6700 = vmatprep.subr.bf16.mxu0 %v7464_v23  ;;  %v7568_v60 = vcombine.high %v697_v10, %v701_v27  ;;  %v801_v55 = vld [vmem:[#allocation5 + $0x15d8] sm:$0xff]  ;;  %v7567_v39 = vcombine.low %v697_v10, %v701_v27 }
 0x36b   :  { %6736 = vmatpush1.bf16.msra.mxu1 %v7487_v62  ;;  %v805_v56 = vld [vmem:[#allocation5 + $0x15f8] sm:$0xff] }
 0x36c   :  { %6737 = vmatprep.subr.bf16.mxu1 %v7608_v63  ;;  %v689_v57 = vld [vmem:[#allocation5 + $0x1258] sm:$0xff]  ;;  %v7672_v61 = vcombine.high %v801_v55, %v805_v56  ;;  %v7671_v5 = vcombine.low %v801_v55, %v805_v56 }
 0x36d   :  { %6701 = vmatpush2.bf16.msra.mxu0 %v7463_v12  ;;  %v693_v54 = vld [vmem:[#allocation5 + $0x1278] sm:$0xff] }
 0x36e   :  { %6702 = vmatprep.subr.bf16.mxu0 %v7456_v11  ;;  %v7560_v62 = vcombine.high %v689_v57, %v693_v54  ;;  %v793_v23 = vld [vmem:[#allocation5 + $0x1598] sm:$0xff]  ;;  %v7559_v9 = vcombine.low %v689_v57, %v693_v54 }
 0x36f   :  { %6738 = vmatpush2.bf16.msra.mxu1 %v7607_v36  ;;  %v797_v63 = vld [vmem:[#allocation5 + $0x15b8] sm:$0xff] }
 0x370   :  { %6739 = vmatprep.subr.bf16.mxu1 %v7600_v2  ;;  %v681_v4 = vld [vmem:[#allocation5 + $0x1218] sm:$0xff]  ;;  %v7664_v12 = vcombine.high %v793_v23, %v797_v63 }
 0x371   :  { %6703 = vmatpush2.bf16.msra.mxu0 %v7455_v15  ;;  %v685_v42 = vld [vmem:[#allocation5 + $0x1238] sm:$0xff] }
 0x372   :  { %6704 = vmatprep.subr.bf16.mxu0 %v7448_v59  ;;  %v7552_v36 = vcombine.high %v681_v4, %v685_v42  ;;  %v785_v11 = vld [vmem:[#allocation5 + $0x1558] sm:$0xff] }
 0x373   :  { %6740 = vmatpush2.bf16.msra.mxu1 %v7599_v16  ;;  %v789_v2 = vld [vmem:[#allocation5 + $0x1578] sm:$0xff]  ;;  %v7663_v16 = vcombine.low %v793_v23, %v797_v63 }
 0x374   :  { %6741 = vmatprep.subr.bf16.mxu1 %v7592_v18  ;;  %v929_v53 = vld [vmem:[#allocation5 + $0x19d8] sm:$0xff]  ;;  %v7551_v18 = vcombine.low %v681_v4, %v685_v42  ;;  %v7656_v49 = vcombine.high %v785_v11, %v789_v2  ;;  %v7655_v30 = vcombine.low %v785_v11, %v789_v2 }
 0x375   :  { %6705 = vmatpush2.bf16.msra.mxu0 %v7447_v29  ;;  %v933_v13 = vld [vmem:[#allocation5 + $0x19f8] sm:$0xff] }
 0x376   :  { %6706 = vmatprep.subr.bf16.mxu0 %v7440_v24  ;;  %v777_v29 = vld [vmem:[#allocation5 + $0x1518] sm:$0xff]  ;;  %v7799_v31 = vcombine.low %v929_v53, %v933_v13 }
 0x377   :  { %6742 = vmatpush2.bf16.msra.mxu1 %v7591_v22  ;;  %v781_v22 = vld [vmem:[#allocation5 + $0x1538] sm:$0xff] }
 0x378   :  { %6743 = vmatprep.subr.bf16.mxu1 %v7584_v45  ;;  %v921_v24 = vld [vmem:[#allocation5 + $0x1998] sm:$0xff]  ;;  %v7647_v27 = vcombine.low %v777_v29, %v781_v22 }
 0x379   :  { %6707 = vmatpush2.bf16.msra.mxu0 %v7439_v34  ;;  %v925_v45 = vld [vmem:[#allocation5 + $0x19b8] sm:$0xff]  ;;  %v7648_v34 = vcombine.high %v777_v29, %v781_v22 }
 0x37a   :  { %6708 = vmatprep.subr.bf16.mxu0 %v7432_v44  ;;  %v769_v44 = vld [vmem:[#allocation5 + $0x14d8] sm:$0xff] }
 0x37b   :  { %6744 = vmatpush2.bf16.msra.mxu1 %v7583_v43  ;;  %v913_v46 = vld [vmem:[#allocation5 + $0x1958] sm:$0xff] }
 0x37c   :  { %6745 = vmatprep.subr.bf16.mxu1 %v7576_v21  ;;  %v773_v21 = vld [vmem:[#allocation5 + $0x14f8] sm:$0xff] }
 0x37d   :  { %6709 = vmatpush2.bf16.msra.mxu0 %v7431_v51  ;;  %v917_v47 = vld [vmem:[#allocation5 + $0x1978] sm:$0xff]  ;;  %v7791_v51 = vcombine.low %v921_v24, %v925_v45 }
 0x37e   :  { %6710 = vmatprep.subr.bf16.mxu0 %v7424_v50  ;;  %v761_v55 = vld [vmem:[#allocation5 + $0x1498] sm:$0xff] }
 0x37f   :  { %6746 = vmatpush2.bf16.msra.mxu1 %v7575_v32  ;;  %v7640_v32 = vcombine.high %v769_v44, %v773_v21  ;;  %v765_v56 = vld [vmem:[#allocation5 + $0x14b8] sm:$0xff] }
 0x380   :  { %6747 = vmatprep.subr.bf16.mxu1 %v7568_v60  ;;  %v7784_v60 = vcombine.high %v913_v46, %v917_v47  ;;  %v905_v57 = vld [vmem:[#allocation5 + $0x1918] sm:$0xff] }
 0x381   :  { %6711 = vmatpush2.bf16.msra.mxu0 %v7423_v58  ;;  %v909_v54 = vld [vmem:[#allocation5 + $0x1938] sm:$0xff] }
 0x382   :  { %6762 = vmatprep.subr.bf16.mxu0 %v7672_v61  ;;  %v7632_v61 = vcombine.high %v761_v55, %v765_v56  ;;  %v7776_v23 = vcombine.high %v905_v57, %v909_v54  ;;  %v753_v63 = vld [vmem:[#allocation5 + $0x1458] sm:$0xff] }
 0x383   :  { %6748 = vmatpush2.bf16.msra.mxu1 %v7567_v39  ;;  %v7783_v39 = vcombine.low %v913_v46, %v917_v47  ;;  %v757_v4 = vld [vmem:[#allocation5 + $0x1478] sm:$0xff] }
 0x384   :  { %6749 = vmatprep.subr.bf16.mxu1 %v7560_v62  ;;  %v6427_v37 = vpop.f32.mrf.mxu0  ;;  %6713 = vmatmul.mubr.bf16.vlgmr.msra.gmra.mxu0 %v8060_v41  ;;  %v7800_v41 = vcombine.high %v929_v53, %v933_v13  ;;  %v897_v42 = vld [vmem:[#allocation5 + $0x18d8] sm:$0xff]  ;;  %v7623_v13 = vcombine.low %v753_v63, %v757_v4 }
 0x385   :  { %v6428_v17 = vadd.f32 %v6427_v37, %v8213_v40  ;;  %6763 = vmatpush1.bf16.msra.mxu0 %v7671_v5  ;;  %6794 = vmatprep.mubr.bf16.mxu0 %v8065_v52  ;;  %v901_v5 = vld [vmem:[#allocation5 + $0x18f8] sm:$0xff] }
 0x386   :  { %v6468_v15 = vpop.f32.mrf.mxu1  ;;  %v6429_v59 = vpop.f32.mrf.mxu0  ;;  %6764 = vmatprep.subr.bf16.mxu0 %v7664_v12  ;;  %v7624_v12 = vcombine.high %v753_v63, %v757_v4  ;;  %v745_v11 = vld [vmem:[#allocation5 + $0x1418] sm:$0xff] }
 0x387   :  { %6750 = vmatpush2.bf16.msra.mxu1 %v7559_v9  ;;  %v8223_v20 = vadd.f32 %v6468_v15, %v6428_v17  ;;  %v6430_v28 = vadd.f32 %v6429_v59, %v8216_v35  ;;  %v7792_v35 = vcombine.high %v921_v24, %v925_v45  ;;  %v7631_v9 = vcombine.low %v761_v55, %v765_v56  ;;  %v749_v2 = vld [vmem:[#allocation5 + $0x1438] sm:$0xff] }
 0x388   :  { %v6470_v38 = vpop.f32.mrf.mxu1  ;;  %6751 = vmatprep.subr.bf16.mxu1 %v7552_v36  ;;  %v6431_v40 = vpop.f32.mrf.mxu0  ;;  %v7768_v36 = vcombine.high %v897_v42, %v901_v5  ;;  %v889_v37 = vld [vmem:[#allocation5 + $0x1898] sm:$0xff]  ;;  %v7767_v17 = vcombine.low %v897_v42, %v901_v5  ;;  %v7616_v15 = vcombine.high %v745_v11, %v749_v2 }
 0x389   :  { %v8226_v8 = vadd.f32 %v6470_v38, %v6430_v28  ;;  %6765 = vmatpush1.bf16.msra.mxu0 %v7663_v16  ;;  %v893_v53 = vld [vmem:[#allocation5 + $0x18b8] sm:$0xff]  ;;  %v7615_v38 = vcombine.low %v745_v11, %v749_v2 }
 0x38a   :  { %v6472_v52 = vpop.f32.mrf.mxu1  ;;  %v6432_v33 = vpop.f32.mrf.mxu0  ;;  %6766 = vmatprep.subr.bf16.mxu0 %v7656_v49  ;;  %v7760_v16 = vcombine.high %v889_v37, %v893_v53  ;;  %v865_v59 = vld [vmem:[#allocation5 + $0x17d8] sm:$0xff] }
 0x38b   :  { %6752 = vmatpush2.bf16.msra.mxu1 %v7551_v18  ;;  %v869_v18 = vld [vmem:[#allocation5 + $0x17f8] sm:$0xff] }
 0x38c   :  { %v6473_v43 = vpop.f32.mrf.mxu1  ;;  %6803 = vmatprep.subr.bf16.mxu1 %v7800_v41  ;;  %v881_v49 = vld [vmem:[#allocation5 + $0x1858] sm:$0xff]  ;;  %v7759_v41 = vcombine.low %v889_v37, %v893_v53  ;;  %v7736_v29 = vcombine.high %v865_v59, %v869_v18 }
 0x38d   :  { %6767 = vmatpush1.bf16.msra.mxu0 %v7655_v30  ;;  %v885_v28 = vld [vmem:[#allocation5 + $0x1878] sm:$0xff]  ;;  %v7735_v30 = vcombine.low %v865_v59, %v869_v18 }
 0x38e   :  { %6754 = vmatmul.mubr.bf16.vlgmr.msra.gmra.mxu1 %v8070_v3  ;;  %v8229_v10 = vpop.f32.mrf.mxu1  ;;  %6768 = vmatprep.subr.bf16.mxu0 %v7648_v34  ;;  %v7639_v3 = vcombine.low %v769_v44, %v773_v21  ;;  %v7752_v22 = vcombine.high %v881_v49, %v885_v28  ;;  %v857_v40 = vld [vmem:[#allocation5 + $0x1798] sm:$0xff]  ;;  %v7751_v33 = vcombine.low %v881_v49, %v885_v28 }
 0x38f   :  { %6804 = vmatpush1.bf16.msra.mxu1 %v7799_v31  ;;  %6835 = vmatprep.mubr.bf16.mxu1 %v8077_v14  ;;  %v7775_v14 = vcombine.low %v905_v57, %v909_v54  ;;  %v861_v24 = vld [vmem:[#allocation5 + $0x17b8] sm:$0xff] }
 0x390   :  { %v8231_v50 = vpop.f32.mrf.mxu1  ;;  %6805 = vmatprep.subr.bf16.mxu1 %v7792_v35  ;;  %v873_v45 = vld [vmem:[#allocation5 + $0x1818] sm:$0xff]  ;;  %v7728_v31 = vcombine.high %v857_v40, %v861_v24  ;;  %v7727_v46 = vcombine.low %v857_v40, %v861_v24 }
 0x391   :  { %6769 = vmatpush1.bf16.msra.mxu0 %v7647_v27  ;;  %v877_v52 = vld [vmem:[#allocation5 + $0x1838] sm:$0xff] }
 0x392   :  { %v6554_v58 = vpop.f32.mrf.mxu1  ;;  %6770 = vmatprep.subr.bf16.mxu0 %v7640_v32  ;;  %v7744_v34 = vcombine.high %v873_v45, %v877_v52  ;;  %v849_v43 = vld [vmem:[#allocation5 + $0x1758] sm:$0xff]  ;;  %v7743_v47 = vcombine.low %v873_v45, %v877_v52 }
 0x393   :  { %6806 = vmatpush1.bf16.msra.mxu1 %v7791_v51  ;;  %v853_v35 = vld [vmem:[#allocation5 + $0x1778] sm:$0xff] }
 0x394   :  { %v6555_v62 = vpop.f32.mrf.mxu1  ;;  %6807 = vmatprep.subr.bf16.mxu1 %v7784_v60  ;;  %v993_v44 = vld [vmem:[#allocation5 + $0x1bd8] sm:$0xff]  ;;  %v7720_v27 = vcombine.high %v849_v43, %v853_v35  ;;  %v7719_v57 = vcombine.low %v849_v43, %v853_v35 }
 0x395   :  { %6771 = vmatpush1.bf16.msra.mxu0 %v7639_v3  ;;  %v997_v21 = vld [vmem:[#allocation5 + $0x1bf8] sm:$0xff] }
 0x396   :  { %6772 = vmatprep.subr.bf16.mxu0 %v7632_v61  ;;  %v7864_v51 = vcombine.high %v993_v44, %v997_v21  ;;  %v841_v32 = vld [vmem:[#allocation5 + $0x1718] sm:$0xff]  ;;  %v7863_v54 = vcombine.low %v993_v44, %v997_v21 }
 0x397   :  { %6808 = vmatpush1.bf16.msra.mxu1 %v7783_v39  ;;  %v845_v60 = vld [vmem:[#allocation5 + $0x1738] sm:$0xff] }
 0x398   :  { %6809 = vmatprep.subr.bf16.mxu1 %v7776_v23  ;;  %v985_v55 = vld [vmem:[#allocation5 + $0x1b98] sm:$0xff]  ;;  %v7712_v58 = vcombine.high %v841_v32, %v845_v60  ;;  %v7711_v63 = vcombine.low %v841_v32, %v845_v60 }
 0x399   :  { %6773 = vmatpush1.bf16.msra.mxu0 %v7631_v9  ;;  %v989_v56 = vld [vmem:[#allocation5 + $0x1bb8] sm:$0xff] }
 0x39a   :  { %6774 = vmatprep.subr.bf16.mxu0 %v7624_v12  ;;  %v7856_v3 = vcombine.high %v985_v55, %v989_v56  ;;  %v833_v39 = vld [vmem:[#allocation5 + $0x16d8] sm:$0xff]  ;;  %v7855_v4 = vcombine.low %v985_v55, %v989_v56 }
 0x39b   :  { %6810 = vmatpush1.bf16.msra.mxu1 %v7775_v14  ;;  %v837_v61 = vld [vmem:[#allocation5 + $0x16f8] sm:$0xff] }
 0x39c   :  { %6811 = vmatprep.subr.bf16.mxu1 %v7768_v36  ;;  %v977_v62 = vld [vmem:[#allocation5 + $0x1b58] sm:$0xff]  ;;  %v7704_v42 = vcombine.high %v833_v39, %v837_v61  ;;  %v7703_v11 = vcombine.low %v833_v39, %v837_v61 }
 0x39d   :  { %6775 = vmatpush1.bf16.msra.mxu0 %v7623_v13  ;;  %v981_v23 = vld [vmem:[#allocation5 + $0x1b78] sm:$0xff] }
 0x39e   :  { %6776 = vmatprep.subr.bf16.mxu0 %v7616_v15  ;;  %v7848_v5 = vcombine.high %v977_v62, %v981_v23  ;;  %v825_v9 = vld [vmem:[#allocation5 + $0x1698] sm:$0xff]  ;;  %v7847_v2 = vcombine.low %v977_v62, %v981_v23 }
 0x39f   :  { %6812 = vmatpush1.bf16.msra.mxu1 %v7767_v17  ;;  %v829_v14 = vld [vmem:[#allocation5 + $0x16b8] sm:$0xff] }
 0x3a0   :  { %6813 = vmatprep.subr.bf16.mxu1 %v7760_v16  ;;  %v969_v12 = vld [vmem:[#allocation5 + $0x1b18] sm:$0xff]  ;;  %v7696_v37 = vcombine.high %v825_v9, %v829_v14  ;;  %v7695_v59 = vcombine.low %v825_v9, %v829_v14  ;;  %v1030_v9 = vsub.s32 6, %v8087_v25  ;;  %v7901_v14 = vld [vmem:[#allocation7] sm:$0xff] }
 0x3a1   :  { %6777 = vmatpush1.bf16.msra.mxu0 %v7615_v38  ;;  %v973_v36 = vld [vmem:[#allocation5 + $0x1b38] sm:$0xff] }
 0x3a2   :  { %6778 = vmatprep.subr.bf16.mxu0 %v7736_v29  ;;  %v7840_v53 = vcombine.high %v969_v12, %v973_v36  ;;  %v817_v13 = vld [vmem:[#allocation5 + $0x1658] sm:$0xff]  ;;  %v7839_v18 = vcombine.low %v969_v12, %v973_v36  ;;  %v1031_v12 = vrot.slane %v7901_v14, %v1030_v9 }
 0x3a3   :  { %6814 = vmatpush1.bf16.msra.mxu1 %v7759_v41  ;;  %v821_v17 = vld [vmem:[#allocation5 + $0x1678] sm:$0xff] }
 0x3a4   :  { %6815 = vmatprep.subr.bf16.mxu1 %v7752_v22  ;;  %v961_v15 = vld [vmem:[#allocation5 + $0x1ad8] sm:$0xff]  ;;  %v7688_v49 = vcombine.high %v817_v13, %v821_v17  ;;  %v7687_v40 = vcombine.low %v817_v13, %v821_v17 }
 0x3a5   :  { %6779 = vmatpush2.bf16.msra.mxu0 %v7735_v30  ;;  %v965_v16 = vld [vmem:[#allocation5 + $0x1af8] sm:$0xff] }
 0x3a6   :  { %6780 = vmatprep.subr.bf16.mxu0 %v7728_v31  ;;  %v7832_v28 = vcombine.high %v961_v15, %v965_v16  ;;  %v809_v38 = vld [vmem:[#allocation5 + $0x1618] sm:$0xff]  ;;  %v7831_v24 = vcombine.low %v961_v15, %v965_v16 }
 0x3a7   :  { %6816 = vmatpush1.bf16.msra.mxu1 %v7751_v33  ;;  %v813_v41 = vld [vmem:[#allocation5 + $0x1638] sm:$0xff] }
 0x3a8   :  { %6817 = vmatprep.subr.bf16.mxu1 %v7744_v34  ;;  %v953_v29 = vld [vmem:[#allocation5 + $0x1a98] sm:$0xff]  ;;  %v7680_v45 = vcombine.high %v809_v38, %v813_v41  ;;  %v7679_v34 = vcombine.low %v809_v38, %v813_v41 }
 0x3a9   :  { %6781 = vmatpush2.bf16.msra.mxu0 %v7727_v46  ;;  %v957_v22 = vld [vmem:[#allocation5 + $0x1ab8] sm:$0xff] }
 0x3aa   :  { %6782 = vmatprep.subr.bf16.mxu0 %v7720_v27  ;;  %v7824_v52 = vcombine.high %v953_v29, %v957_v22  ;;  %v1001_v30 = vld [vmem:[#allocation5 + $0x1c18] sm:$0xff]  ;;  %v7823_v43 = vcombine.low %v953_v29, %v957_v22 }
 0x3ab   :  { %6818 = vmatpush1.bf16.msra.mxu1 %v7743_v47  ;;  %v945_v33 = vld [vmem:[#allocation5 + $0x1a58] sm:$0xff]  ;;  %v7872_v35 = vcombine.high %v1001_v30, %v1001_v30  ;;  %v7871_v44 = vcombine.low %v1001_v30, %v1001_v30 }
 0x3ac   :  { %6819 = vmatprep.subr.bf16.mxu1 %v7864_v51  ;;  %v949_v31 = vld [vmem:[#allocation5 + $0x1a78] sm:$0xff] }
 0x3ad   :  { %6783 = vmatpush2.bf16.msra.mxu0 %v7719_v57  ;;  %v7816_v21 = vcombine.high %v945_v33, %v949_v31  ;;  %v937_v46 = vld [vmem:[#allocation5 + $0x1a18] sm:$0xff]  ;;  %v7815_v27 = vcombine.low %v945_v33, %v949_v31  ;;  %v5568_v51 = vsel %vm5548_vm0, %v7871_v44, 0 }
 0x3ae   :  { %6784 = vmatprep.subr.bf16.mxu0 %v7712_v58  ;;  %v941_v47 = vld [vmem:[#allocation5 + $0x1a38] sm:$0xff] }
 0x3af   :  { %6820 = vmatpush2.bf16.msra.mxu1 %v7863_v54  ;;  %v7808_v32 = vcombine.high %v937_v46, %v941_v47  ;;  %v7807_v57 = vcombine.low %v937_v46, %v941_v47  ;;  %v8239_v54 = vld [vmem:[#allocation8] sm:$0xff] }
 0x3b0   :  { %6821 = vmatprep.subr.bf16.mxu1 %v7856_v3  ;;  %v6914_v58 = vrot.slane %v8239_v54, %v1022_v0 }
 0x3b1   :  { %6785 = vmatpush2.bf16.msra.mxu0 %v7711_v63 }
 0x3b2   :  { %6786 = vmatprep.subr.bf16.mxu0 %v7704_v42 }
 0x3b3   :  { %6822 = vmatpush2.bf16.msra.mxu1 %v7855_v4 }
 0x3b4   :  { %6823 = vmatprep.subr.bf16.mxu1 %v7848_v5 }
 0x3b5   :  { %6787 = vmatpush2.bf16.msra.mxu0 %v7703_v11 }
 0x3b6   :  { %6788 = vmatprep.subr.bf16.mxu0 %v7696_v37 }
 0x3b7   :  { %6824 = vmatpush2.bf16.msra.mxu1 %v7847_v2 }
 0x3b8   :  { %6825 = vmatprep.subr.bf16.mxu1 %v7840_v53 }
 0x3b9   :  { %6789 = vmatpush2.bf16.msra.mxu0 %v7695_v59 }
 0x3ba   :  { %6790 = vmatprep.subr.bf16.mxu0 %v7688_v49 }
 0x3bb   :  { %6826 = vmatpush2.bf16.msra.mxu1 %v7839_v18 }
 0x3bc   :  { %6827 = vmatprep.subr.bf16.mxu1 %v7832_v28 }
 0x3bd   :  { %6791 = vmatpush2.bf16.msra.mxu0 %v7687_v40 }
 0x3be   :  { %6792 = vmatprep.subr.bf16.mxu0 %v7680_v45 }
 0x3bf   :  { %6828 = vmatpush2.bf16.msra.mxu1 %v7831_v24 }
 0x3c0   :  { %6829 = vmatprep.subr.bf16.mxu1 %v7824_v52 }
 0x3c1   :  { %6793 = vmatpush2.bf16.msra.mxu0 %v7679_v34 }
 0x3c2   :  { %7879 = vmatprep.subr.msk.bf16.mxu0 %vm5548_vm0, %v7872_v35 }
 0x3c3   :  { %6830 = vmatpush2.bf16.msra.mxu1 %v7823_v43 }
 0x3c4   :  { %6831 = vmatprep.subr.bf16.mxu1 %v7816_v21  ;;  %v6509_v60 = vpop.f32.mrf.mxu0  ;;  %6795 = vmatmul.mubr.bf16.vlgmr.msra.gmra.mxu0 %v8072_v6 }
 0x3c5   :  { %v6510_v55 = vadd.f32 %v6509_v60, %v8223_v20  ;;  %6859 = vmatpush1.bf16.msra.mxu0 %v5568_v51  ;;  %6876 = vmatprep.mubr.bf16.mxu0 %v7994_v19  ;;  %v6918_v20 = vrot.slane %v8239_v54, %v1026_v7 }
 0x3c6   :  { %v6511_v56 = vpop.f32.mrf.mxu0 }
 0x3c7   :  { %6832 = vmatpush2.bf16.msra.mxu1 %v7815_v27  ;;  %v6551_v3 = vadd.f32 %v8229_v10, %v6510_v55  ;;  %v6512_v39 = vadd.f32 %v6511_v56, %v8226_v8  ;;  %v6922_v55 = vrot.slane %v8239_v54, %v1030_v9 }
 0x3c8   :  { %6833 = vmatprep.subr.bf16.mxu1 %v7808_v32  ;;  %v6513_v6 = vpop.f32.mrf.mxu0 }
 0x3c9   :  { %v6889_v19 = vmax.f32 %v6551_v3, 0.0  ;;  %v6553_v61 = vadd.f32 %v8231_v50, %v6512_v39  ;;  %v1034_v50 = vsub.s32 7, %v8087_v25 }
 0x3ca   :  { %v6514_v62 = vpop.f32.mrf.mxu0 }
 0x3cb   :  { %6834 = vmatpush2.bf16.msra.mxu1 %v7807_v57  ;;  %v6939_v23 = vmul.f32 %v6914_v58, %v6889_v19  ;;  %v6890_v63 = vmax.f32 %v6553_v61, 0.0  ;;  %v1035_v36 = vrot.slane %v7901_v14, %v1034_v50 }
 0x3cc   :  { %7880 = vmatmul.mubr.msk.bf16.vlgmr.msra.gmra.mxu0 %vm5544_vm1, %v8082_v26 }
 0x3cd   :  { %v6940_v0 = vmul.f32 %v6918_v20, %v6890_v63  ;;  %v6946_v8 = vadd.f32 %v8194_v1, %v6939_v23  ;;  %v6926_v20 = vrot.slane %v8239_v54, %v1034_v50 }
 0x3ce   :  { %v6591_v10 = vpop.f32.mrf.mxu1  ;;  %6836 = vmatmul.mubr.bf16.vlgmr.msra.gmra.mxu1 %v8091_v48 }
 0x3cf   :  { %v6947_v42 = vadd.f32 %v6946_v8, %v6940_v0  ;;  %v6592_v11 = vadd.f32 %v6591_v10, %v1031_v12  ;;  %v7881_v10 = vld [vmem:[#allocation2] ss:$0 sm:$0xff] }
 0x3d0   :  { %v6593_v4 = vpop.f32.mrf.mxu1 }
 0x3d1   :  { %v6594_v26 = vadd.f32 %v6593_v4, %v1035_v36 }
 0x3d2   :  { %v6595_v5 = vpop.f32.mrf.mxu1 }
 0x3d4   :  { %v6596_v7 = vpop.f32.mrf.mxu1 }
 0x404   :  { %v6632_v2 = vpop.f32.mrf.mxu0 }
 0x405   :  { %v6633_v37 = vadd.f32 %v6632_v2, %v6592_v11 }
 0x406   :  { %v6634_v53 = vpop.f32.mrf.mxu0 }
 0x407   :  { %v6635_v13 = vadd.f32 %v6634_v53, %v6594_v26 }
 0x408   :  { %v6636_v48 = vpop.f32.mrf.mxu0 }
 0x40a   :  { %v6637_v17 = vpop.f32.mrf.mxu0 }
 0x40e   :  { %v6673_v1 = vpop.f32.mrf.mxu1 }
 0x40f   :  { %v6674_v15 = vadd.f32 %v6673_v1, %v6633_v37 }
 0x410   :  { %v6675_v16 = vpop.f32.mrf.mxu1 }
 0x411   :  { %v6676_v59 = vadd.f32 %v6675_v16, %v6635_v13 }
 0x412   :  { %v6677_v18 = vpop.f32.mrf.mxu1 }
 0x414   :  { %v6678_v49 = vpop.f32.mrf.mxu1 }
 0x444   :  { %v6714_v28 = vpop.f32.mrf.mxu0 }
 0x445   :  { %v6715_v38 = vadd.f32 %v6714_v28, %v6674_v15 }
 0x446   :  { %v6716_v25 = vpop.f32.mrf.mxu0 }
 0x447   :  { %v6717_v41 = vadd.f32 %v6716_v25, %v6676_v59 }
 0x448   :  { %v6718_v29 = vpop.f32.mrf.mxu0 }
 0x44a   :  { %v6719_v22 = vpop.f32.mrf.mxu0 }
 0x44e   :  { %v6755_v40 = vpop.f32.mrf.mxu1 }
 0x44f   :  { %v6756_v34 = vadd.f32 %v6755_v40, %v6715_v38 }
 0x450   :  { %v6757_v24 = vpop.f32.mrf.mxu1 }
 0x451   :  { %v6758_v35 = vadd.f32 %v6757_v24, %v6717_v41 }
 0x452   :  { %v6759_v45 = vpop.f32.mrf.mxu1 }
 0x454   :  { %v6760_v52 = vpop.f32.mrf.mxu1 }
 0x484   :  { %v6796_v30 = vpop.f32.mrf.mxu0 }
 0x485   :  { %v6797_v44 = vadd.f32 %v6796_v30, %v6756_v34 }
 0x486   :  { %v6798_v33 = vpop.f32.mrf.mxu0 }
 0x487   :  { %v6799_v47 = vadd.f32 %v6798_v33, %v6758_v35 }
 0x488   :  { %v6800_v31 = vpop.f32.mrf.mxu0 }
 0x48a   :  { %v6801_v43 = vpop.f32.mrf.mxu0 }
 0x48c   :  { %v6878_v21 = vpop.f32.mrf.mxu0 }
 0x48e   :  { %v6837_v46 = vpop.f32.mrf.mxu1  ;;  %v6880_v51 = vpop.f32.mrf.mxu0 }
 0x48f   :  { %v6838_v27 = vadd.f32 %v6837_v46, %v6797_v44 }
 0x490   :  { %v6839_v32 = vpop.f32.mrf.mxu1  ;;  %v6882_v57 = vpop.f32.mrf.mxu0 }
 0x491   :  { %v6879_v60 = vadd.f32 %v6878_v21, %v6838_v27  ;;  %v6840_v56 = vadd.f32 %v6839_v32, %v6799_v47 }
 0x492   :  { %v6841_v58 = vpop.f32.mrf.mxu1  ;;  %v6883_v6 = vpop.f32.mrf.mxu0 }
 0x493   :  { %v6891_v3 = vmax.f32 %v6879_v60, 0.0  ;;  %v6881_v39 = vadd.f32 %v6880_v51, %v6840_v56 }
 0x494   :  { %v6842_v19 = vpop.f32.mrf.mxu1 }
 0x495   :  { %v6941_v61 = vmul.f32 %v6922_v55, %v6891_v3  ;;  %v6892_v62 = vmax.f32 %v6881_v39, 0.0 }
 0x497   :  { %v6942_v23 = vmul.f32 %v6926_v20, %v6892_v62  ;;  %v6948_v63 = vadd.f32 %v6947_v42, %v6941_v61 }
 0x499   :  { %v6949_v0 = vadd.f32 %v6948_v63, %v6942_v23 }
 0x49b   :  { %6950 = vadd.xlane.f32.xlu0 %v6949_v0 }
 0x524   :  { %v6951_v8 = vpop.xlane.xlu0 %6950 }
 0x525   :  { %v6959_v4 = vadd.f32 %v7881_v10, %v6951_v8 }
 0x527   :  { %6961 = vst.msk [vmem:[%s8266_s5] sm:$0xff] %vm6960_vm2, %v6959_v4 }
 0x528   :  { %6966 = vsyncpa [#allocation4], 1 }
 0x529   :  { %6967 = vsyncpa [#allocation6], 1 }
 0x52a   :  { %6968 = vsyncpa [#allocation9], 1 }

</bundles_post_ra>
